<compile_context>
chip_gen: v7x
topology: tpu7x:2x2x1
jax: 0.10.0
libtpu: 0.0.40
codegen_flags: <defaults>
</compile_context>

<pallas_src>
import jax
import jax.numpy as jnp
from jax.experimental import pallas as pl
from jax.experimental.pallas import tpu as pltpu


EXPANSION = 4                       # Bottleneck.expansion
BN_EPS = 1e-5
DEFAULT_VMEM_LIMIT = 32 * 1024 * 1024


# ----------------------------- Pallas kernels -----------------------------

def _make_bottleneck_kernel(H, W, has_downsample, has_conv_out):
    """Fully fused Bottleneck (+ optional fused Block.conv_out) in one kernel."""
    HW = H * W

    def kernel(x_ref, w1d_ref, b1d_ref, w2_ref, b2_ref, w3_ref, b3_ref, *rest):
        if has_conv_out:
            wco_ref, o_ref, copy_ref, hp_ref = rest
        else:
            o_ref, hp_ref = rest

        Cin = x_ref.shape[-1]
        width = w2_ref.shape[-1]
        Cout = w3_ref.shape[1]

        x2 = x_ref[0].reshape(HW, Cin)          # leading-dims merge: free
        xb = x2.astype(jnp.bfloat16)            # MXU feed

        # ---- stage 1 (+ merged downsample branch): one MXU pass, BN scale pre-folded ----
        h1d = jnp.dot(xb, w1d_ref[...], preferred_element_type=jnp.float32) + b1d_ref[...]
        h1 = jnp.maximum(h1d[:, :width], 0.0)
        if has_downsample:
            ident = h1d[:, width:]              # conv1x1 + BN, no ReLU
        else:
            ident = x2.astype(jnp.float32)      # Cin == Cout here

        # ---- stage 2: 3x3 conv as 9 accumulating dots over a bf16 padded scratch ----
        # Zero only the border strips (interior fully overwritten each step).
        zrow = jnp.zeros((1, W + 2, width), jnp.bfloat16)
        zcol = jnp.zeros((H + 2, 1, width), jnp.bfloat16)
        hp_ref[0:1, :, :] = zrow
        hp_ref[H + 1:H + 2, :, :] = zrow
        hp_ref[:, 0:1, :] = zcol
        hp_ref[:, W + 1:W + 2, :] = zcol
        hp_ref[1:H + 1, 1:W + 1, :] = h1.astype(jnp.bfloat16).reshape(H, W, width)

        acc = None
        for dy in range(3):
            for dx in range(3):
                win = hp_ref[dy:dy + H, dx:dx + W, :].reshape(HW, width)   # bf16 window
                d = jnp.dot(win, w2_ref[dy, dx], preferred_element_type=jnp.float32)
                acc = d if acc is None else acc + d
        h2 = jnp.maximum(acc + b2_ref[...], 0.0)

        # ---- stage 3: conv1x1 + bias + residual + ReLU ----
        y = jnp.dot(h2.astype(jnp.bfloat16), w3_ref[...],
                    preferred_element_type=jnp.float32)
        y = jnp.maximum(y + b3_ref[...] + ident, 0.0)
        o_ref[0] = y.reshape(H, W, Cout).astype(o_ref.dtype)

        # ---- fused Block.conv_out (plain 1x1, no BN / bias / ReLU) ----
        if has_conv_out:
            Cco = copy_ref.shape[-1]
            cp = jnp.dot(y.astype(jnp.bfloat16), wco_ref[...],
                         preferred_element_type=jnp.float32)
            copy_ref[0] = cp.reshape(H, W, Cco).astype(copy_ref.dtype)

    return kernel


# ----------------------------- wrappers -----------------------------

def bottleneck_forward(x_nhwc, p, *, out_dtype, conv_out_w=None):
    N, H, W, Cin = x_nhwc.shape
    width = p["w2"].shape[-1]
    Cout = p["w3"].shape[1]
    n1 = p["w1d"].shape[1]
    has_ds = n1 != width
    has_co = conv_out_w is not None
    Cco = conv_out_w.shape[1] if has_co else 0
    HW = H * W

    def rep(shape):
        return pl.BlockSpec(shape, lambda n, _l=len(shape): (0,) * _l)

    in_specs = [
        pl.BlockSpec((1, H, W, Cin), lambda n: (n, 0, 0, 0)),
        rep((Cin, n1)), rep((1, n1)),
        rep((3, 3, width, width)), rep((1, width)),
        rep((width, Cout)), rep((1, Cout)),
    ]
    args = [x_nhwc, p["w1d"], p["b1d"], p["w2"], p["b2"], p["w3"], p["b3"]]
    out_shape = [jax.ShapeDtypeStruct((N, H, W, Cout), out_dtype)]
    out_specs = [pl.BlockSpec((1, H, W, Cout), lambda n: (n, 0, 0, 0))]
    if has_co:
        in_specs.append(rep((Cout, Cco)))
        args.append(conv_out_w)
        out_shape.append(jax.ShapeDtypeStruct((N, H, W, Cco), jnp.float32))
        out_specs.append(pl.BlockSpec((1, H, W, Cco), lambda n: (n, 0, 0, 0)))

    in_b = x_nhwc.dtype.itemsize
    out_b = jnp.dtype(out_dtype).itemsize
    M = N * HW
    mac = Cin * n1 + 9 * width * width + width * Cout + Cout * Cco
    flops = 2 * M * mac
    w_bytes = 2 * mac + 4 * (n1 + width + Cout)
    bytes_accessed = M * Cin * in_b + M * Cout * out_b + M * Cco * 4 + w_bytes

    # per-step working set -> vmem limit (double-buffered blocks + scratch + f32 temps)
    block_bytes = HW * (Cin * in_b + Cout * out_b + Cco * 4)
    scratch_bytes = (H + 2) * (W + 2) * width * 2
    work_bytes = HW * (n1 + 2 * width + 2 * Cout + Cco) * 4
    est = 2 * (block_bytes + w_bytes) + scratch_bytes + work_bytes
    vmem_limit = int(min(max(DEFAULT_VMEM_LIMIT, 2 * est), 64 * 1024 * 1024))

    results = pl.pallas_call(
        _make_bottleneck_kernel(H, W, has_ds, has_co),
        out_shape=out_shape,
        grid=(N,),
        in_specs=in_specs,
        out_specs=out_specs,
        scratch_shapes=[pltpu.VMEM((H + 2, W + 2, width), jnp.bfloat16)],
        compiler_params=pltpu.CompilerParams(
            dimension_semantics=("parallel",),
            vmem_limit_bytes=vmem_limit),
        cost_estimate=pl.CostEstimate(flops=flops, transcendentals=0,
                                      bytes_accessed=bytes_accessed),
    )(*args)
    if has_co:
        return results[0], results[1]
    return results[0]


def block_forward(x_nchw, layer_params, conv_out_w):
    """Matches Block.forward: returns (out_x, copy) in NCHW."""
    x = jnp.transpose(x_nchw, (0, 2, 3, 1))           # NCHW -> NHWC
    n_layers = len(layer_params)
    copy = None
    for i, p in enumerate(layer_params):
        last = i == n_layers - 1
        if last and conv_out_w is not None:
            x, copy = bottleneck_forward(x, p, out_dtype=jnp.float32,
                                         conv_out_w=conv_out_w)
        else:
            # intermediate activations stored bf16 (halves HBM traffic), final f32
            x = bottleneck_forward(x, p,
                                   out_dtype=jnp.float32 if last else jnp.bfloat16)
    if copy is None:
        copy = x
    return jnp.transpose(x, (0, 3, 1, 2)), jnp.transpose(copy, (0, 3, 1, 2))


# ----------------------------- parameter construction -----------------------------

def _bn_fold(key, c):
    kg, kb, km, kv = jax.random.split(key, 4)
    gamma = 1.0 + 0.1 * jax.random.normal(kg, (c,), jnp.float32)
    beta = 0.1 * jax.random.normal(kb, (c,), jnp.float32)
    mean = 0.1 * jax.random.normal(km, (c,), jnp.float32)
    var = jnp.abs(jax.random.normal(kv, (c,), jnp.float32)) + 0.5
    scale = gamma * jax.lax.rsqrt(var + BN_EPS)
    bias = beta - mean * scale
    return scale, bias


def make_bottleneck_params(key, inplanes, planes):
    """Bottleneck params with BN scale folded into the conv weights (bf16 MXU feed)."""
    width = planes                     # base_width=64, groups=1
    out_c = planes * EXPANSION
    ks = jax.random.split(key, 8)

    w1 = jax.random.normal(ks[0], (inplanes, width), jnp.float32) / jnp.sqrt(inplanes)
    s1, b1 = _bn_fold(ks[1], width)
    w2 = jax.random.normal(ks[2], (3, 3, width, width), jnp.float32) / jnp.sqrt(9.0 * width)
    s2, b2 = _bn_fold(ks[3], width)
    w3 = jax.random.normal(ks[4], (width, out_c), jnp.float32) / jnp.sqrt(width)
    s3, b3 = _bn_fold(ks[5], out_c)

    w1f = w1 * s1[None, :]
    w2f = (w2 * s2[None, None, None, :]).astype(jnp.bfloat16)
    w3f = (w3 * s3[None, :]).astype(jnp.bfloat16)

    if inplanes != out_c:  # downsample (conv1x1 + BN, no ReLU) merged into stage-1 weight
        wd = jax.random.normal(ks[6], (inplanes, out_c), jnp.float32) / jnp.sqrt(inplanes)
        sd, bd = _bn_fold(ks[7], out_c)
        w1d = jnp.concatenate([w1f, wd * sd[None, :]], axis=1).astype(jnp.bfloat16)
        b1d = jnp.concatenate([b1, bd]).reshape(1, -1)
    else:
        w1d = w1f.astype(jnp.bfloat16)
        b1d = b1.reshape(1, -1)

    return {
        "w1d": w1d, "b1d": b1d,
        "w2": w2f, "b2": b2.reshape(1, width),
        "w3": w3f, "b3": b3.reshape(1, out_c),
    }


def make_conv_out_w(key, cin, cout):
    w = jax.random.normal(key, (cin, cout), jnp.float32) / jnp.sqrt(cin)
    return w.astype(jnp.bfloat16)


# ----------------------------- pure-JAX reference -----------------------------
# Matches the kernel arithmetic exactly: bf16 operands, f32 accumulation, f32 residual.

def _q(x):
    return x.astype(jnp.bfloat16).astype(jnp.float32)


def _ref_conv1x1(x, w):
    return jnp.einsum("nhwc,cd->nhwd", _q(x), w.astype(jnp.float32),
                      precision=jax.lax.Precision.HIGHEST)


def _ref_conv3x3(x, w):
    return jax.lax.conv_general_dilated(
        _q(x), w.astype(jnp.float32), window_strides=(1, 1), padding="SAME",
        dimension_numbers=("NHWC", "HWIO", "NHWC"),
        precision=jax.lax.Precision.HIGHEST)


def block_forward_ref(x_nchw, layer_params, conv_out_w):
    x = jnp.transpose(x_nchw, (0, 2, 3, 1)).astype(jnp.float32)
    n_layers = len(layer_params)
    for i, p in enumerate(layer_params):
        width = p["w2"].shape[-1]
        n1 = p["w1d"].shape[1]
        h1d = _ref_conv1x1(x, p["w1d"]) + p["b1d"][0]
        h1 = jnp.maximum(h1d[..., :width], 0.0)
        ident = h1d[..., width:] if n1 != width else x
        h2 = jnp.maximum(_ref_conv3x3(h1, p["w2"]) + p["b2"][0], 0.0)
        x = jnp.maximum(_ref_conv1x1(h2, p["w3"]) + p["b3"][0] + ident, 0.0)
        if i < n_layers - 1:
            x = _q(x)                      # inter-Bottleneck activations stored bf16
    copy = _ref_conv1x1(x, conv_out_w) if conv_out_w is not None else x
    return jnp.transpose(x, (0, 3, 1, 2)), jnp.transpose(copy, (0, 3, 1, 2))


# ----------------------------- main -----------------------------

if __name__ == "__main__":
    key = jax.random.PRNGKey(0)
    k_x, k_b1, k_b2, k_co = jax.random.split(key, 4)

    # Small Block: 2 Bottlenecks, inplanes=16, planes=8 (-> 32 channels), conv_out -> 16 channels.
    # NOTE: real ResNet stages use 64..512 channels; these toy widths under-fill the
    # 128-lane vregs / MXU and are for correctness only.
    N, C, H, W = 2, 16, 16, 16            # PyTorch-style NCHW input
    planes = 8
    x_nchw = jax.random.normal(k_x, (N, C, H, W), jnp.float32)

    layer_params = [
        make_bottleneck_params(k_b1, inplanes=C, planes=planes),                   # has downsample
        make_bottleneck_params(k_b2, inplanes=planes * EXPANSION, planes=planes),  # identity shortcut
    ]
    conv_out_w = make_conv_out_w(k_co, planes * EXPANSION, 16)  # Block(conv_out=True, out_channels=16)

    out_x, copy = jax.jit(block_forward)(x_nchw, layer_params, conv_out_w)
    jax.block_until_ready((out_x, copy))

    ref_out, ref_copy = block_forward_ref(x_nchw, layer_params, conv_out_w)
    assert out_x.shape == (N, planes * EXPANSION, H, W)
    assert copy.shape == (N, 16, H, W)
    err_x = float(jnp.max(jnp.abs(out_x - ref_out)))
    err_c = float(jnp.max(jnp.abs(copy - ref_copy)))
    assert jnp.allclose(out_x, ref_out, rtol=2e-2, atol=2e-2), err_x
    assert jnp.allclose(copy, ref_copy, rtol=2e-2, atol=2e-2), err_c

    print("KERNEL_OK")
</pallas_src>

<mosaic_0001>
module attributes {stable_mosaic.version = 11 : i64} {
  func.func @kernel(%arg0: i32, %arg1: memref<1x16x16x16xf32, #tpu.memory_space<vmem>>, %arg2: memref<16x40xbf16, #tpu.memory_space<vmem>>, %arg3: memref<1x40xf32, #tpu.memory_space<vmem>>, %arg4: memref<3x3x8x8xbf16, #tpu.memory_space<vmem>>, %arg5: memref<1x8xf32, #tpu.memory_space<vmem>>, %arg6: memref<8x32xbf16, #tpu.memory_space<vmem>>, %arg7: memref<1x32xf32, #tpu.memory_space<vmem>>, %arg8: memref<1x16x16x32xbf16, #tpu.memory_space<vmem>>, %arg9: memref<18x18x8xbf16, #tpu.memory_space<vmem>>) attributes {dimension_semantics = [#tpu.dimension_semantics<parallel>], iteration_bounds = array<i64: 2>, scalar_prefetch = 0 : i64, scratch_operands = 1 : i64, tpu.core_type = #tpu.core_type<tc>, window_params = [{transform_indices = @transform_0, window_bounds = array<i64: 1, 16, 16, 16>}, {pipeline_mode = #tpu.pipeline_mode<synchronous>, transform_indices = @transform_1, window_bounds = array<i64: 16, 40>}, {pipeline_mode = #tpu.pipeline_mode<synchronous>, transform_indices = @transform_2, window_bounds = array<i64: 1, 40>}, {pipeline_mode = #tpu.pipeline_mode<synchronous>, transform_indices = @transform_3, window_bounds = array<i64: 3, 3, 8, 8>}, {pipeline_mode = #tpu.pipeline_mode<synchronous>, transform_indices = @transform_4, window_bounds = array<i64: 1, 8>}, {pipeline_mode = #tpu.pipeline_mode<synchronous>, transform_indices = @transform_5, window_bounds = array<i64: 8, 32>}, {pipeline_mode = #tpu.pipeline_mode<synchronous>, transform_indices = @transform_6, window_bounds = array<i64: 1, 32>}, {transform_indices = @transform_7, window_bounds = array<i64: 1, 16, 16, 32>}]} {
    %c0 = arith.constant 0 : index
    %c0_0 = arith.constant 0 : index
    %c0_1 = arith.constant 0 : index
    %c0_2 = arith.constant 0 : index
    %0 = vector.load %arg1[%c0, %c0_0, %c0_1, %c0_2] : memref<1x16x16x16xf32, #tpu.memory_space<vmem>>, vector<1x16x16x16xf32>
    %1 = vector.shape_cast %0 : vector<1x16x16x16xf32> to vector<16x16x16xf32>
    %2 = vector.shape_cast %1 : vector<16x16x16xf32> to vector<256x16xf32>
    %3 = arith.truncf %2 : vector<256x16xf32> to vector<256x16xbf16>
    %c0_3 = arith.constant 0 : index
    %c0_4 = arith.constant 0 : index
    %4 = vector.load %arg2[%c0_3, %c0_4] : memref<16x40xbf16, #tpu.memory_space<vmem>>, vector<16x40xbf16>
    %cst = arith.constant dense<0.000000e+00> : vector<256x40xf32>
    %5 = tpu.matmul %3, %4, %cst {dimension_numbers = #tpu.dot_dimension_numbers<[1], [0], [0], [1], [0, 0, 1, 1], [], []>} : vector<256x16xbf16>, vector<16x40xbf16>, vector<256x40xf32> -> vector<256x40xf32>
    %c0_5 = arith.constant 0 : index
    %c0_6 = arith.constant 0 : index
    %6 = vector.load %arg3[%c0_5, %c0_6] : memref<1x40xf32, #tpu.memory_space<vmem>>, vector<1x40xf32>
    %7 = vector.broadcast %6 : vector<1x40xf32> to vector<256x40xf32>
    %8 = arith.addf %5, %7 : vector<256x40xf32>
    %9 = vector.extract_strided_slice %8 {offsets = [0, 0], sizes = [256, 8], strides = [1, 1]} : vector<256x40xf32> to vector<256x8xf32>
    %cst_7 = arith.constant 0.000000e+00 : f32
    %10 = vector.broadcast %cst_7 : f32 to vector<256x8xf32>
    %11 = arith.maximumf %9, %10 : vector<256x8xf32>
    %12 = vector.extract_strided_slice %8 {offsets = [0, 8], sizes = [256, 32], strides = [1, 1]} : vector<256x40xf32> to vector<256x32xf32>
    %cst_8 = arith.constant 0.000000e+00 : bf16
    %13 = vector.broadcast %cst_8 : bf16 to vector<1x18x8xbf16>
    %cst_9 = arith.constant 0.000000e+00 : bf16
    %14 = vector.broadcast %cst_9 : bf16 to vector<18x1x8xbf16>
    %c0_10 = arith.constant 0 : index
    %c0_11 = arith.constant 0 : index
    %c0_12 = arith.constant 0 : index
    %15 = vector.load %arg9[%c0_10, %c0_11, %c0_12] : memref<18x18x8xbf16, #tpu.memory_space<vmem>>, vector<1x18x8xbf16>
    tpu.vector_store %arg9[%c0_10, %c0_11, %c0_12], %13 {strides = array<i32>} : memref<18x18x8xbf16, #tpu.memory_space<vmem>>, vector<1x18x8xbf16>,
    %c17 = arith.constant 17 : index
    %c0_13 = arith.constant 0 : index
    %c0_14 = arith.constant 0 : index
    %16 = vector.load %arg9[%c17, %c0_13, %c0_14] : memref<18x18x8xbf16, #tpu.memory_space<vmem>>, vector<1x18x8xbf16>
    tpu.vector_store %arg9[%c17, %c0_13, %c0_14], %13 {strides = array<i32>} : memref<18x18x8xbf16, #tpu.memory_space<vmem>>, vector<1x18x8xbf16>,
    %c0_15 = arith.constant 0 : index
    %c0_16 = arith.constant 0 : index
    %c0_17 = arith.constant 0 : index
    %17 = vector.load %arg9[%c0_15, %c0_16, %c0_17] : memref<18x18x8xbf16, #tpu.memory_space<vmem>>, vector<18x1x8xbf16>
    tpu.vector_store %arg9[%c0_15, %c0_16, %c0_17], %14 {strides = array<i32>} : memref<18x18x8xbf16, #tpu.memory_space<vmem>>, vector<18x1x8xbf16>,
    %c0_18 = arith.constant 0 : index
    %c17_19 = arith.constant 17 : index
    %c0_20 = arith.constant 0 : index
    %18 = vector.load %arg9[%c0_18, %c17_19, %c0_20] : memref<18x18x8xbf16, #tpu.memory_space<vmem>>, vector<18x1x8xbf16>
    tpu.vector_store %arg9[%c0_18, %c17_19, %c0_20], %14 {strides = array<i32>} : memref<18x18x8xbf16, #tpu.memory_space<vmem>>, vector<18x1x8xbf16>,
    %19 = arith.truncf %11 : vector<256x8xf32> to vector<256x8xbf16>
    %20 = vector.shape_cast %19 : vector<256x8xbf16> to vector<16x16x8xbf16>
    %c1 = arith.constant 1 : index
    %c1_21 = arith.constant 1 : index
    %c0_22 = arith.constant 0 : index
    %21 = vector.load %arg9[%c1, %c1_21, %c0_22] : memref<18x18x8xbf16, #tpu.memory_space<vmem>>, vector<16x16x8xbf16>
    tpu.vector_store %arg9[%c1, %c1_21, %c0_22], %20 {strides = array<i32>} : memref<18x18x8xbf16, #tpu.memory_space<vmem>>, vector<16x16x8xbf16>,
    %c0_23 = arith.constant 0 : index
    %c0_24 = arith.constant 0 : index
    %c0_25 = arith.constant 0 : index
    %22 = vector.load %arg9[%c0_23, %c0_24, %c0_25] : memref<18x18x8xbf16, #tpu.memory_space<vmem>>, vector<16x16x8xbf16>
    %23 = vector.shape_cast %22 : vector<16x16x8xbf16> to vector<256x8xbf16>
    %c0_26 = arith.constant 0 : index
    %c0_27 = arith.constant 0 : index
    %c0_28 = arith.constant 0 : index
    %c0_29 = arith.constant 0 : index
    %24 = vector.load %arg4[%c0_26, %c0_27, %c0_28, %c0_29] : memref<3x3x8x8xbf16, #tpu.memory_space<vmem>>, vector<1x1x8x8xbf16>
    %25 = vector.shape_cast %24 : vector<1x1x8x8xbf16> to vector<8x8xbf16>
    %cst_30 = arith.constant dense<0.000000e+00> : vector<256x8xf32>
    %26 = tpu.matmul %23, %25, %cst_30 {dimension_numbers = #tpu.dot_dimension_numbers<[1], [0], [0], [1], [0, 0, 1, 1], [], []>} : vector<256x8xbf16>, vector<8x8xbf16>, vector<256x8xf32> -> vector<256x8xf32>
    %c0_31 = arith.constant 0 : index
    %c1_32 = arith.constant 1 : index
    %c0_33 = arith.constant 0 : index
    %27 = vector.load %arg9[%c0_31, %c1_32, %c0_33] : memref<18x18x8xbf16, #tpu.memory_space<vmem>>, vector<16x16x8xbf16>
    %28 = vector.shape_cast %27 : vector<16x16x8xbf16> to vector<256x8xbf16>
    %c0_34 = arith.constant 0 : index
    %c1_35 = arith.constant 1 : index
    %c0_36 = arith.constant 0 : index
    %c0_37 = arith.constant 0 : index
    %29 = vector.load %arg4[%c0_34, %c1_35, %c0_36, %c0_37] : memref<3x3x8x8xbf16, #tpu.memory_space<vmem>>, vector<1x1x8x8xbf16>
    %30 = vector.shape_cast %29 : vector<1x1x8x8xbf16> to vector<8x8xbf16>
    %cst_38 = arith.constant dense<0.000000e+00> : vector<256x8xf32>
    %31 = tpu.matmul %28, %30, %cst_38 {dimension_numbers = #tpu.dot_dimension_numbers<[1], [0], [0], [1], [0, 0, 1, 1], [], []>} : vector<256x8xbf16>, vector<8x8xbf16>, vector<256x8xf32> -> vector<256x8xf32>
    %32 = arith.addf %26, %31 : vector<256x8xf32>
    %c0_39 = arith.constant 0 : index
    %c2 = arith.constant 2 : index
    %c0_40 = arith.constant 0 : index
    %33 = vector.load %arg9[%c0_39, %c2, %c0_40] : memref<18x18x8xbf16, #tpu.memory_space<vmem>>, vector<16x16x8xbf16>
    %34 = vector.shape_cast %33 : vector<16x16x8xbf16> to vector<256x8xbf16>
    %c0_41 = arith.constant 0 : index
    %c2_42 = arith.constant 2 : index
    %c0_43 = arith.constant 0 : index
    %c0_44 = arith.constant 0 : index
    %35 = vector.load %arg4[%c0_41, %c2_42, %c0_43, %c0_44] : memref<3x3x8x8xbf16, #tpu.memory_space<vmem>>, vector<1x1x8x8xbf16>
    %36 = vector.shape_cast %35 : vector<1x1x8x8xbf16> to vector<8x8xbf16>
    %cst_45 = arith.constant dense<0.000000e+00> : vector<256x8xf32>
    %37 = tpu.matmul %34, %36, %cst_45 {dimension_numbers = #tpu.dot_dimension_numbers<[1], [0], [0], [1], [0, 0, 1, 1], [], []>} : vector<256x8xbf16>, vector<8x8xbf16>, vector<256x8xf32> -> vector<256x8xf32>
    %38 = arith.addf %32, %37 : vector<256x8xf32>
    %c1_46 = arith.constant 1 : index
    %c0_47 = arith.constant 0 : index
    %c0_48 = arith.constant 0 : index
    %39 = vector.load %arg9[%c1_46, %c0_47, %c0_48] : memref<18x18x8xbf16, #tpu.memory_space<vmem>>, vector<16x16x8xbf16>
    %40 = vector.shape_cast %39 : vector<16x16x8xbf16> to vector<256x8xbf16>
    %c1_49 = arith.constant 1 : index
    %c0_50 = arith.constant 0 : index
    %c0_51 = arith.constant 0 : index
    %c0_52 = arith.constant 0 : index
    %41 = vector.load %arg4[%c1_49, %c0_50, %c0_51, %c0_52] : memref<3x3x8x8xbf16, #tpu.memory_space<vmem>>, vector<1x1x8x8xbf16>
    %42 = vector.shape_cast %41 : vector<1x1x8x8xbf16> to vector<8x8xbf16>
    %cst_53 = arith.constant dense<0.000000e+00> : vector<256x8xf32>
    %43 = tpu.matmul %40, %42, %cst_53 {dimension_numbers = #tpu.dot_dimension_numbers<[1], [0], [0], [1], [0, 0, 1, 1], [], []>} : vector<256x8xbf16>, vector<8x8xbf16>, vector<256x8xf32> -> vector<256x8xf32>
    %44 = arith.addf %38, %43 : vector<256x8xf32>
    %c1_54 = arith.constant 1 : index
    %c1_55 = arith.constant 1 : index
    %c0_56 = arith.constant 0 : index
    %45 = vector.load %arg9[%c1_54, %c1_55, %c0_56] : memref<18x18x8xbf16, #tpu.memory_space<vmem>>, vector<16x16x8xbf16>
    %46 = vector.shape_cast %45 : vector<16x16x8xbf16> to vector<256x8xbf16>
    %c1_57 = arith.constant 1 : index
    %c1_58 = arith.constant 1 : index
    %c0_59 = arith.constant 0 : index
    %c0_60 = arith.constant 0 : index
    %47 = vector.load %arg4[%c1_57, %c1_58, %c0_59, %c0_60] : memref<3x3x8x8xbf16, #tpu.memory_space<vmem>>, vector<1x1x8x8xbf16>
    %48 = vector.shape_cast %47 : vector<1x1x8x8xbf16> to vector<8x8xbf16>
    %cst_61 = arith.constant dense<0.000000e+00> : vector<256x8xf32>
    %49 = tpu.matmul %46, %48, %cst_61 {dimension_numbers = #tpu.dot_dimension_numbers<[1], [0], [0], [1], [0, 0, 1, 1], [], []>} : vector<256x8xbf16>, vector<8x8xbf16>, vector<256x8xf32> -> vector<256x8xf32>
    %50 = arith.addf %44, %49 : vector<256x8xf32>
    %c1_62 = arith.constant 1 : index
    %c2_63 = arith.constant 2 : index
    %c0_64 = arith.constant 0 : index
    %51 = vector.load %arg9[%c1_62, %c2_63, %c0_64] : memref<18x18x8xbf16, #tpu.memory_space<vmem>>, vector<16x16x8xbf16>
    %52 = vector.shape_cast %51 : vector<16x16x8xbf16> to vector<256x8xbf16>
    %c1_65 = arith.constant 1 : index
    %c2_66 = arith.constant 2 : index
    %c0_67 = arith.constant 0 : index
    %c0_68 = arith.constant 0 : index
    %53 = vector.load %arg4[%c1_65, %c2_66, %c0_67, %c0_68] : memref<3x3x8x8xbf16, #tpu.memory_space<vmem>>, vector<1x1x8x8xbf16>
    %54 = vector.shape_cast %53 : vector<1x1x8x8xbf16> to vector<8x8xbf16>
    %cst_69 = arith.constant dense<0.000000e+00> : vector<256x8xf32>
    %55 = tpu.matmul %52, %54, %cst_69 {dimension_numbers = #tpu.dot_dimension_numbers<[1], [0], [0], [1], [0, 0, 1, 1], [], []>} : vector<256x8xbf16>, vector<8x8xbf16>, vector<256x8xf32> -> vector<256x8xf32>
    %56 = arith.addf %50, %55 : vector<256x8xf32>
    %c2_70 = arith.constant 2 : index
    %c0_71 = arith.constant 0 : index
    %c0_72 = arith.constant 0 : index
    %57 = vector.load %arg9[%c2_70, %c0_71, %c0_72] : memref<18x18x8xbf16, #tpu.memory_space<vmem>>, vector<16x16x8xbf16>
    %58 = vector.shape_cast %57 : vector<16x16x8xbf16> to vector<256x8xbf16>
    %c2_73 = arith.constant 2 : index
    %c0_74 = arith.constant 0 : index
    %c0_75 = arith.constant 0 : index
    %c0_76 = arith.constant 0 : index
    %59 = vector.load %arg4[%c2_73, %c0_74, %c0_75, %c0_76] : memref<3x3x8x8xbf16, #tpu.memory_space<vmem>>, vector<1x1x8x8xbf16>
    %60 = vector.shape_cast %59 : vector<1x1x8x8xbf16> to vector<8x8xbf16>
    %cst_77 = arith.constant dense<0.000000e+00> : vector<256x8xf32>
    %61 = tpu.matmul %58, %60, %cst_77 {dimension_numbers = #tpu.dot_dimension_numbers<[1], [0], [0], [1], [0, 0, 1, 1], [], []>} : vector<256x8xbf16>, vector<8x8xbf16>, vector<256x8xf32> -> vector<256x8xf32>
    %62 = arith.addf %56, %61 : vector<256x8xf32>
    %c2_78 = arith.constant 2 : index
    %c1_79 = arith.constant 1 : index
    %c0_80 = arith.constant 0 : index
    %63 = vector.load %arg9[%c2_78, %c1_79, %c0_80] : memref<18x18x8xbf16, #tpu.memory_space<vmem>>, vector<16x16x8xbf16>
    %64 = vector.shape_cast %63 : vector<16x16x8xbf16> to vector<256x8xbf16>
    %c2_81 = arith.constant 2 : index
    %c1_82 = arith.constant 1 : index
    %c0_83 = arith.constant 0 : index
    %c0_84 = arith.constant 0 : index
    %65 = vector.load %arg4[%c2_81, %c1_82, %c0_83, %c0_84] : memref<3x3x8x8xbf16, #tpu.memory_space<vmem>>, vector<1x1x8x8xbf16>
    %66 = vector.shape_cast %65 : vector<1x1x8x8xbf16> to vector<8x8xbf16>
    %cst_85 = arith.constant dense<0.000000e+00> : vector<256x8xf32>
    %67 = tpu.matmul %64, %66, %cst_85 {dimension_numbers = #tpu.dot_dimension_numbers<[1], [0], [0], [1], [0, 0, 1, 1], [], []>} : vector<256x8xbf16>, vector<8x8xbf16>, vector<256x8xf32> -> vector<256x8xf32>
    %68 = arith.addf %62, %67 : vector<256x8xf32>
    %c2_86 = arith.constant 2 : index
    %c2_87 = arith.constant 2 : index
    %c0_88 = arith.constant 0 : index
    %69 = vector.load %arg9[%c2_86, %c2_87, %c0_88] : memref<18x18x8xbf16, #tpu.memory_space<vmem>>, vector<16x16x8xbf16>
    %70 = vector.shape_cast %69 : vector<16x16x8xbf16> to vector<256x8xbf16>
    %c2_89 = arith.constant 2 : index
    %c2_90 = arith.constant 2 : index
    %c0_91 = arith.constant 0 : index
    %c0_92 = arith.constant 0 : index
    %71 = vector.load %arg4[%c2_89, %c2_90, %c0_91, %c0_92] : memref<3x3x8x8xbf16, #tpu.memory_space<vmem>>, vector<1x1x8x8xbf16>
    %72 = vector.shape_cast %71 : vector<1x1x8x8xbf16> to vector<8x8xbf16>
    %cst_93 = arith.constant dense<0.000000e+00> : vector<256x8xf32>
    %73 = tpu.matmul %70, %72, %cst_93 {dimension_numbers = #tpu.dot_dimension_numbers<[1], [0], [0], [1], [0, 0, 1, 1], [], []>} : vector<256x8xbf16>, vector<8x8xbf16>, vector<256x8xf32> -> vector<256x8xf32>
    %74 = arith.addf %68, %73 : vector<256x8xf32>
    %c0_94 = arith.constant 0 : index
    %c0_95 = arith.constant 0 : index
    %75 = vector.load %arg5[%c0_94, %c0_95] : memref<1x8xf32, #tpu.memory_space<vmem>>, vector<1x8xf32>
    %76 = vector.broadcast %75 : vector<1x8xf32> to vector<256x8xf32>
    %77 = arith.addf %74, %76 : vector<256x8xf32>
    %cst_96 = arith.constant 0.000000e+00 : f32
    %78 = vector.broadcast %cst_96 : f32 to vector<256x8xf32>
    %79 = arith.maximumf %77, %78 : vector<256x8xf32>
    %80 = arith.truncf %79 : vector<256x8xf32> to vector<256x8xbf16>
    %c0_97 = arith.constant 0 : index
    %c0_98 = arith.constant 0 : index
    %81 = vector.load %arg6[%c0_97, %c0_98] : memref<8x32xbf16, #tpu.memory_space<vmem>>, vector<8x32xbf16>
    %cst_99 = arith.constant dense<0.000000e+00> : vector<256x32xf32>
    %82 = tpu.matmul %80, %81, %cst_99 {dimension_numbers = #tpu.dot_dimension_numbers<[1], [0], [0], [1], [0, 0, 1, 1], [], []>} : vector<256x8xbf16>, vector<8x32xbf16>, vector<256x32xf32> -> vector<256x32xf32>
    %c0_100 = arith.constant 0 : index
    %c0_101 = arith.constant 0 : index
    %83 = vector.load %arg7[%c0_100, %c0_101] : memref<1x32xf32, #tpu.memory_space<vmem>>, vector<1x32xf32>
    %84 = vector.broadcast %83 : vector<1x32xf32> to vector<256x32xf32>
    %85 = arith.addf %82, %84 : vector<256x32xf32>
    %86 = arith.addf %85, %12 : vector<256x32xf32>
    %cst_102 = arith.constant 0.000000e+00 : f32
    %87 = vector.broadcast %cst_102 : f32 to vector<256x32xf32>
    %88 = arith.maximumf %86, %87 : vector<256x32xf32>
    %89 = vector.shape_cast %88 : vector<256x32xf32> to vector<16x16x32xf32>
    %90 = arith.truncf %89 : vector<16x16x32xf32> to vector<16x16x32xbf16>
    %c0_103 = arith.constant 0 : index
    %c0_104 = arith.constant 0 : index
    %c0_105 = arith.constant 0 : index
    %c0_106 = arith.constant 0 : index
    %91 = vector.load %arg8[%c0_103, %c0_104, %c0_105, %c0_106] : memref<1x16x16x32xbf16, #tpu.memory_space<vmem>>, vector<1x16x16x32xbf16>
    %92 = vector.shape_cast %91 : vector<1x16x16x32xbf16> to vector<16x16x32xbf16>
    %93 = vector.shape_cast %90 : vector<16x16x32xbf16> to vector<1x16x16x32xbf16>
    tpu.vector_store %arg8[%c0_103, %c0_104, %c0_105, %c0_106], %93 {strides = array<i32>} : memref<1x16x16x32xbf16, #tpu.memory_space<vmem>>, vector<1x16x16x32xbf16>,
    return
  }
  func.func @transform_0(%arg0: i32) -> (i32, i32, i32, i32) {
    %c0_i32 = arith.constant 0 : i32
    %c0_i32_0 = arith.constant 0 : i32
    %c0_i32_1 = arith.constant 0 : i32
    %c0_i32_2 = arith.constant 0 : i32
    return %arg0, %c0_i32, %c0_i32_0, %c0_i32_1 : i32, i32, i32, i32
  }
  func.func @transform_1(%arg0: i32) -> (i32, i32) {
    %c0_i32 = arith.constant 0 : i32
    %c0_i32_0 = arith.constant 0 : i32
    %c0_i32_1 = arith.constant 0 : i32
    return %c0_i32, %c0_i32_0 : i32, i32
  }
  func.func @transform_2(%arg0: i32) -> (i32, i32) {
    %c0_i32 = arith.constant 0 : i32
    %c0_i32_0 = arith.constant 0 : i32
    %c0_i32_1 = arith.constant 0 : i32
    return %c0_i32, %c0_i32_0 : i32, i32
  }
  func.func @transform_3(%arg0: i32) -> (i32, i32, i32, i32) {
    %c0_i32 = arith.constant 0 : i32
    %c0_i32_0 = arith.constant 0 : i32
    %c0_i32_1 = arith.constant 0 : i32
    %c0_i32_2 = arith.constant 0 : i32
    %c0_i32_3 = arith.constant 0 : i32
    return %c0_i32, %c0_i32_0, %c0_i32_1, %c0_i32_2 : i32, i32, i32, i32
  }
  func.func @transform_4(%arg0: i32) -> (i32, i32) {
    %c0_i32 = arith.constant 0 : i32
    %c0_i32_0 = arith.constant 0 : i32
    %c0_i32_1 = arith.constant 0 : i32
    return %c0_i32, %c0_i32_0 : i32, i32
  }
  func.func @transform_5(%arg0: i32) -> (i32, i32) {
    %c0_i32 = arith.constant 0 : i32
    %c0_i32_0 = arith.constant 0 : i32
    %c0_i32_1 = arith.constant 0 : i32
    return %c0_i32, %c0_i32_0 : i32, i32
  }
  func.func @transform_6(%arg0: i32) -> (i32, i32) {
    %c0_i32 = arith.constant 0 : i32
    %c0_i32_0 = arith.constant 0 : i32
    %c0_i32_1 = arith.constant 0 : i32
    return %c0_i32, %c0_i32_0 : i32, i32
  }
  func.func @transform_7(%arg0: i32) -> (i32, i32, i32, i32) {
    %c0_i32 = arith.constant 0 : i32
    %c0_i32_0 = arith.constant 0 : i32
    %c0_i32_1 = arith.constant 0 : i32
    %c0_i32_2 = arith.constant 0 : i32
    return %arg0, %c0_i32, %c0_i32_0, %c0_i32_1 : i32, i32, i32, i32
  }
}

module attributes {stable_mosaic.version = 11 : i64} {
  func.func @kernel(%arg0: i32, %arg1: memref<1x16x16x32xbf16, #tpu.memory_space<vmem>>, %arg2: memref<32x8xbf16, #tpu.memory_space<vmem>>, %arg3: memref<1x8xf32, #tpu.memory_space<vmem>>, %arg4: memref<3x3x8x8xbf16, #tpu.memory_space<vmem>>, %arg5: memref<1x8xf32, #tpu.memory_space<vmem>>, %arg6: memref<8x32xbf16, #tpu.memory_space<vmem>>, %arg7: memref<1x32xf32, #tpu.memory_space<vmem>>, %arg8: memref<32x16xbf16, #tpu.memory_space<vmem>>, %arg9: memref<1x16x16x32xf32, #tpu.memory_space<vmem>>, %arg10: memref<1x16x16x16xf32, #tpu.memory_space<vmem>>, %arg11: memref<18x18x8xbf16, #tpu.memory_space<vmem>>) attributes {dimension_semantics = [#tpu.dimension_semantics<parallel>], iteration_bounds = array<i64: 2>, scalar_prefetch = 0 : i64, scratch_operands = 1 : i64, tpu.core_type = #tpu.core_type<tc>, window_params = [{transform_indices = @transform_0, window_bounds = array<i64: 1, 16, 16, 32>}, {pipeline_mode = #tpu.pipeline_mode<synchronous>, transform_indices = @transform_1, window_bounds = array<i64: 32, 8>}, {pipeline_mode = #tpu.pipeline_mode<synchronous>, transform_indices = @transform_2, window_bounds = array<i64: 1, 8>}, {pipeline_mode = #tpu.pipeline_mode<synchronous>, transform_indices = @transform_3, window_bounds = array<i64: 3, 3, 8, 8>}, {pipeline_mode = #tpu.pipeline_mode<synchronous>, transform_indices = @transform_4, window_bounds = array<i64: 1, 8>}, {pipeline_mode = #tpu.pipeline_mode<synchronous>, transform_indices = @transform_5, window_bounds = array<i64: 8, 32>}, {pipeline_mode = #tpu.pipeline_mode<synchronous>, transform_indices = @transform_6, window_bounds = array<i64: 1, 32>}, {pipeline_mode = #tpu.pipeline_mode<synchronous>, transform_indices = @transform_7, window_bounds = array<i64: 32, 16>}, {transform_indices = @transform_8, window_bounds = array<i64: 1, 16, 16, 32>}, {transform_indices = @transform_9, window_bounds = array<i64: 1, 16, 16, 16>}]} {
    %c0 = arith.constant 0 : index
    %c0_0 = arith.constant 0 : index
    %c0_1 = arith.constant 0 : index
    %c0_2 = arith.constant 0 : index
    %0 = vector.load %arg1[%c0, %c0_0, %c0_1, %c0_2] : memref<1x16x16x32xbf16, #tpu.memory_space<vmem>>, vector<1x16x16x32xbf16>
    %1 = vector.shape_cast %0 : vector<1x16x16x32xbf16> to vector<16x16x32xbf16>
    %2 = vector.shape_cast %1 : vector<16x16x32xbf16> to vector<256x32xbf16>
    %c0_3 = arith.constant 0 : index
    %c0_4 = arith.constant 0 : index
    %3 = vector.load %arg2[%c0_3, %c0_4] : memref<32x8xbf16, #tpu.memory_space<vmem>>, vector<32x8xbf16>
    %cst = arith.constant dense<0.000000e+00> : vector<256x8xf32>
    %4 = tpu.matmul %2, %3, %cst {dimension_numbers = #tpu.dot_dimension_numbers<[1], [0], [0], [1], [0, 0, 1, 1], [], []>} : vector<256x32xbf16>, vector<32x8xbf16>, vector<256x8xf32> -> vector<256x8xf32>
    %c0_5 = arith.constant 0 : index
    %c0_6 = arith.constant 0 : index
    %5 = vector.load %arg3[%c0_5, %c0_6] : memref<1x8xf32, #tpu.memory_space<vmem>>, vector<1x8xf32>
    %6 = vector.broadcast %5 : vector<1x8xf32> to vector<256x8xf32>
    %7 = arith.addf %4, %6 : vector<256x8xf32>
    %cst_7 = arith.constant 0.000000e+00 : f32
    %8 = vector.broadcast %cst_7 : f32 to vector<256x8xf32>
    %9 = arith.maximumf %7, %8 : vector<256x8xf32>
    %10 = arith.extf %2 : vector<256x32xbf16> to vector<256x32xf32>
    %cst_8 = arith.constant 0.000000e+00 : bf16
    %11 = vector.broadcast %cst_8 : bf16 to vector<1x18x8xbf16>
    %cst_9 = arith.constant 0.000000e+00 : bf16
    %12 = vector.broadcast %cst_9 : bf16 to vector<18x1x8xbf16>
    %c0_10 = arith.constant 0 : index
    %c0_11 = arith.constant 0 : index
    %c0_12 = arith.constant 0 : index
    %13 = vector.load %arg11[%c0_10, %c0_11, %c0_12] : memref<18x18x8xbf16, #tpu.memory_space<vmem>>, vector<1x18x8xbf16>
    tpu.vector_store %arg11[%c0_10, %c0_11, %c0_12], %11 {strides = array<i32>} : memref<18x18x8xbf16, #tpu.memory_space<vmem>>, vector<1x18x8xbf16>,
    %c17 = arith.constant 17 : index
    %c0_13 = arith.constant 0 : index
    %c0_14 = arith.constant 0 : index
    %14 = vector.load %arg11[%c17, %c0_13, %c0_14] : memref<18x18x8xbf16, #tpu.memory_space<vmem>>, vector<1x18x8xbf16>
    tpu.vector_store %arg11[%c17, %c0_13, %c0_14], %11 {strides = array<i32>} : memref<18x18x8xbf16, #tpu.memory_space<vmem>>, vector<1x18x8xbf16>,
    %c0_15 = arith.constant 0 : index
    %c0_16 = arith.constant 0 : index
    %c0_17 = arith.constant 0 : index
    %15 = vector.load %arg11[%c0_15, %c0_16, %c0_17] : memref<18x18x8xbf16, #tpu.memory_space<vmem>>, vector<18x1x8xbf16>
    tpu.vector_store %arg11[%c0_15, %c0_16, %c0_17], %12 {strides = array<i32>} : memref<18x18x8xbf16, #tpu.memory_space<vmem>>, vector<18x1x8xbf16>,
    %c0_18 = arith.constant 0 : index
    %c17_19 = arith.constant 17 : index
    %c0_20 = arith.constant 0 : index
    %16 = vector.load %arg11[%c0_18, %c17_19, %c0_20] : memref<18x18x8xbf16, #tpu.memory_space<vmem>>, vector<18x1x8xbf16>
    tpu.vector_store %arg11[%c0_18, %c17_19, %c0_20], %12 {strides = array<i32>} : memref<18x18x8xbf16, #tpu.memory_space<vmem>>, vector<18x1x8xbf16>,
    %17 = arith.truncf %9 : vector<256x8xf32> to vector<256x8xbf16>
    %18 = vector.shape_cast %17 : vector<256x8xbf16> to vector<16x16x8xbf16>
    %c1 = arith.constant 1 : index
    %c1_21 = arith.constant 1 : index
    %c0_22 = arith.constant 0 : index
    %19 = vector.load %arg11[%c1, %c1_21, %c0_22] : memref<18x18x8xbf16, #tpu.memory_space<vmem>>, vector<16x16x8xbf16>
    tpu.vector_store %arg11[%c1, %c1_21, %c0_22], %18 {strides = array<i32>} : memref<18x18x8xbf16, #tpu.memory_space<vmem>>, vector<16x16x8xbf16>,
    %c0_23 = arith.constant 0 : index
    %c0_24 = arith.constant 0 : index
    %c0_25 = arith.constant 0 : index
    %20 = vector.load %arg11[%c0_23, %c0_24, %c0_25] : memref<18x18x8xbf16, #tpu.memory_space<vmem>>, vector<16x16x8xbf16>
    %21 = vector.shape_cast %20 : vector<16x16x8xbf16> to vector<256x8xbf16>
    %c0_26 = arith.constant 0 : index
    %c0_27 = arith.constant 0 : index
    %c0_28 = arith.constant 0 : index
    %c0_29 = arith.constant 0 : index
    %22 = vector.load %arg4[%c0_26, %c0_27, %c0_28, %c0_29] : memref<3x3x8x8xbf16, #tpu.memory_space<vmem>>, vector<1x1x8x8xbf16>
    %23 = vector.shape_cast %22 : vector<1x1x8x8xbf16> to vector<8x8xbf16>
    %cst_30 = arith.constant dense<0.000000e+00> : vector<256x8xf32>
    %24 = tpu.matmul %21, %23, %cst_30 {dimension_numbers = #tpu.dot_dimension_numbers<[1], [0], [0], [1], [0, 0, 1, 1], [], []>} : vector<256x8xbf16>, vector<8x8xbf16>, vector<256x8xf32> -> vector<256x8xf32>
    %c0_31 = arith.constant 0 : index
    %c1_32 = arith.constant 1 : index
    %c0_33 = arith.constant 0 : index
    %25 = vector.load %arg11[%c0_31, %c1_32, %c0_33] : memref<18x18x8xbf16, #tpu.memory_space<vmem>>, vector<16x16x8xbf16>
    %26 = vector.shape_cast %25 : vector<16x16x8xbf16> to vector<256x8xbf16>
    %c0_34 = arith.constant 0 : index
    %c1_35 = arith.constant 1 : index
    %c0_36 = arith.constant 0 : index
    %c0_37 = arith.constant 0 : index
    %27 = vector.load %arg4[%c0_34, %c1_35, %c0_36, %c0_37] : memref<3x3x8x8xbf16, #tpu.memory_space<vmem>>, vector<1x1x8x8xbf16>
    %28 = vector.shape_cast %27 : vector<1x1x8x8xbf16> to vector<8x8xbf16>
    %cst_38 = arith.constant dense<0.000000e+00> : vector<256x8xf32>
    %29 = tpu.matmul %26, %28, %cst_38 {dimension_numbers = #tpu.dot_dimension_numbers<[1], [0], [0], [1], [0, 0, 1, 1], [], []>} : vector<256x8xbf16>, vector<8x8xbf16>, vector<256x8xf32> -> vector<256x8xf32>
    %30 = arith.addf %24, %29 : vector<256x8xf32>
    %c0_39 = arith.constant 0 : index
    %c2 = arith.constant 2 : index
    %c0_40 = arith.constant 0 : index
    %31 = vector.load %arg11[%c0_39, %c2, %c0_40] : memref<18x18x8xbf16, #tpu.memory_space<vmem>>, vector<16x16x8xbf16>
    %32 = vector.shape_cast %31 : vector<16x16x8xbf16> to vector<256x8xbf16>
    %c0_41 = arith.constant 0 : index
    %c2_42 = arith.constant 2 : index
    %c0_43 = arith.constant 0 : index
    %c0_44 = arith.constant 0 : index
    %33 = vector.load %arg4[%c0_41, %c2_42, %c0_43, %c0_44] : memref<3x3x8x8xbf16, #tpu.memory_space<vmem>>, vector<1x1x8x8xbf16>
    %34 = vector.shape_cast %33 : vector<1x1x8x8xbf16> to vector<8x8xbf16>
    %cst_45 = arith.constant dense<0.000000e+00> : vector<256x8xf32>
    %35 = tpu.matmul %32, %34, %cst_45 {dimension_numbers = #tpu.dot_dimension_numbers<[1], [0], [0], [1], [0, 0, 1, 1], [], []>} : vector<256x8xbf16>, vector<8x8xbf16>, vector<256x8xf32> -> vector<256x8xf32>
    %36 = arith.addf %30, %35 : vector<256x8xf32>
    %c1_46 = arith.constant 1 : index
    %c0_47 = arith.constant 0 : index
    %c0_48 = arith.constant 0 : index
    %37 = vector.load %arg11[%c1_46, %c0_47, %c0_48] : memref<18x18x8xbf16, #tpu.memory_space<vmem>>, vector<16x16x8xbf16>
    %38 = vector.shape_cast %37 : vector<16x16x8xbf16> to vector<256x8xbf16>
    %c1_49 = arith.constant 1 : index
    %c0_50 = arith.constant 0 : index
    %c0_51 = arith.constant 0 : index
    %c0_52 = arith.constant 0 : index
    %39 = vector.load %arg4[%c1_49, %c0_50, %c0_51, %c0_52] : memref<3x3x8x8xbf16, #tpu.memory_space<vmem>>, vector<1x1x8x8xbf16>
    %40 = vector.shape_cast %39 : vector<1x1x8x8xbf16> to vector<8x8xbf16>
    %cst_53 = arith.constant dense<0.000000e+00> : vector<256x8xf32>
    %41 = tpu.matmul %38, %40, %cst_53 {dimension_numbers = #tpu.dot_dimension_numbers<[1], [0], [0], [1], [0, 0, 1, 1], [], []>} : vector<256x8xbf16>, vector<8x8xbf16>, vector<256x8xf32> -> vector<256x8xf32>
    %42 = arith.addf %36, %41 : vector<256x8xf32>
    %c1_54 = arith.constant 1 : index
    %c1_55 = arith.constant 1 : index
    %c0_56 = arith.constant 0 : index
    %43 = vector.load %arg11[%c1_54, %c1_55, %c0_56] : memref<18x18x8xbf16, #tpu.memory_space<vmem>>, vector<16x16x8xbf16>
    %44 = vector.shape_cast %43 : vector<16x16x8xbf16> to vector<256x8xbf16>
    %c1_57 = arith.constant 1 : index
    %c1_58 = arith.constant 1 : index
    %c0_59 = arith.constant 0 : index
    %c0_60 = arith.constant 0 : index
    %45 = vector.load %arg4[%c1_57, %c1_58, %c0_59, %c0_60] : memref<3x3x8x8xbf16, #tpu.memory_space<vmem>>, vector<1x1x8x8xbf16>
    %46 = vector.shape_cast %45 : vector<1x1x8x8xbf16> to vector<8x8xbf16>
    %cst_61 = arith.constant dense<0.000000e+00> : vector<256x8xf32>
    %47 = tpu.matmul %44, %46, %cst_61 {dimension_numbers = #tpu.dot_dimension_numbers<[1], [0], [0], [1], [0, 0, 1, 1], [], []>} : vector<256x8xbf16>, vector<8x8xbf16>, vector<256x8xf32> -> vector<256x8xf32>
    %48 = arith.addf %42, %47 : vector<256x8xf32>
    %c1_62 = arith.constant 1 : index
    %c2_63 = arith.constant 2 : index
    %c0_64 = arith.constant 0 : index
    %49 = vector.load %arg11[%c1_62, %c2_63, %c0_64] : memref<18x18x8xbf16, #tpu.memory_space<vmem>>, vector<16x16x8xbf16>
    %50 = vector.shape_cast %49 : vector<16x16x8xbf16> to vector<256x8xbf16>
    %c1_65 = arith.constant 1 : index
    %c2_66 = arith.constant 2 : index
    %c0_67 = arith.constant 0 : index
    %c0_68 = arith.constant 0 : index
    %51 = vector.load %arg4[%c1_65, %c2_66, %c0_67, %c0_68] : memref<3x3x8x8xbf16, #tpu.memory_space<vmem>>, vector<1x1x8x8xbf16>
    %52 = vector.shape_cast %51 : vector<1x1x8x8xbf16> to vector<8x8xbf16>
    %cst_69 = arith.constant dense<0.000000e+00> : vector<256x8xf32>
    %53 = tpu.matmul %50, %52, %cst_69 {dimension_numbers = #tpu.dot_dimension_numbers<[1], [0], [0], [1], [0, 0, 1, 1], [], []>} : vector<256x8xbf16>, vector<8x8xbf16>, vector<256x8xf32> -> vector<256x8xf32>
    %54 = arith.addf %48, %53 : vector<256x8xf32>
    %c2_70 = arith.constant 2 : index
    %c0_71 = arith.constant 0 : index
    %c0_72 = arith.constant 0 : index
    %55 = vector.load %arg11[%c2_70, %c0_71, %c0_72] : memref<18x18x8xbf16, #tpu.memory_space<vmem>>, vector<16x16x8xbf16>
    %56 = vector.shape_cast %55 : vector<16x16x8xbf16> to vector<256x8xbf16>
    %c2_73 = arith.constant 2 : index
    %c0_74 = arith.constant 0 : index
    %c0_75 = arith.constant 0 : index
    %c0_76 = arith.constant 0 : index
    %57 = vector.load %arg4[%c2_73, %c0_74, %c0_75, %c0_76] : memref<3x3x8x8xbf16, #tpu.memory_space<vmem>>, vector<1x1x8x8xbf16>
    %58 = vector.shape_cast %57 : vector<1x1x8x8xbf16> to vector<8x8xbf16>
    %cst_77 = arith.constant dense<0.000000e+00> : vector<256x8xf32>
    %59 = tpu.matmul %56, %58, %cst_77 {dimension_numbers = #tpu.dot_dimension_numbers<[1], [0], [0], [1], [0, 0, 1, 1], [], []>} : vector<256x8xbf16>, vector<8x8xbf16>, vector<256x8xf32> -> vector<256x8xf32>
    %60 = arith.addf %54, %59 : vector<256x8xf32>
    %c2_78 = arith.constant 2 : index
    %c1_79 = arith.constant 1 : index
    %c0_80 = arith.constant 0 : index
    %61 = vector.load %arg11[%c2_78, %c1_79, %c0_80] : memref<18x18x8xbf16, #tpu.memory_space<vmem>>, vector<16x16x8xbf16>
    %62 = vector.shape_cast %61 : vector<16x16x8xbf16> to vector<256x8xbf16>
    %c2_81 = arith.constant 2 : index
    %c1_82 = arith.constant 1 : index
    %c0_83 = arith.constant 0 : index
    %c0_84 = arith.constant 0 : index
    %63 = vector.load %arg4[%c2_81, %c1_82, %c0_83, %c0_84] : memref<3x3x8x8xbf16, #tpu.memory_space<vmem>>, vector<1x1x8x8xbf16>
    %64 = vector.shape_cast %63 : vector<1x1x8x8xbf16> to vector<8x8xbf16>
    %cst_85 = arith.constant dense<0.000000e+00> : vector<256x8xf32>
    %65 = tpu.matmul %62, %64, %cst_85 {dimension_numbers = #tpu.dot_dimension_numbers<[1], [0], [0], [1], [0, 0, 1, 1], [], []>} : vector<256x8xbf16>, vector<8x8xbf16>, vector<256x8xf32> -> vector<256x8xf32>
    %66 = arith.addf %60, %65 : vector<256x8xf32>
    %c2_86 = arith.constant 2 : index
    %c2_87 = arith.constant 2 : index
    %c0_88 = arith.constant 0 : index
    %67 = vector.load %arg11[%c2_86, %c2_87, %c0_88] : memref<18x18x8xbf16, #tpu.memory_space<vmem>>, vector<16x16x8xbf16>
    %68 = vector.shape_cast %67 : vector<16x16x8xbf16> to vector<256x8xbf16>
    %c2_89 = arith.constant 2 : index
    %c2_90 = arith.constant 2 : index
    %c0_91 = arith.constant 0 : index
    %c0_92 = arith.constant 0 : index
    %69 = vector.load %arg4[%c2_89, %c2_90, %c0_91, %c0_92] : memref<3x3x8x8xbf16, #tpu.memory_space<vmem>>, vector<1x1x8x8xbf16>
    %70 = vector.shape_cast %69 : vector<1x1x8x8xbf16> to vector<8x8xbf16>
    %cst_93 = arith.constant dense<0.000000e+00> : vector<256x8xf32>
    %71 = tpu.matmul %68, %70, %cst_93 {dimension_numbers = #tpu.dot_dimension_numbers<[1], [0], [0], [1], [0, 0, 1, 1], [], []>} : vector<256x8xbf16>, vector<8x8xbf16>, vector<256x8xf32> -> vector<256x8xf32>
    %72 = arith.addf %66, %71 : vector<256x8xf32>
    %c0_94 = arith.constant 0 : index
    %c0_95 = arith.constant 0 : index
    %73 = vector.load %arg5[%c0_94, %c0_95] : memref<1x8xf32, #tpu.memory_space<vmem>>, vector<1x8xf32>
    %74 = vector.broadcast %73 : vector<1x8xf32> to vector<256x8xf32>
    %75 = arith.addf %72, %74 : vector<256x8xf32>
    %cst_96 = arith.constant 0.000000e+00 : f32
    %76 = vector.broadcast %cst_96 : f32 to vector<256x8xf32>
    %77 = arith.maximumf %75, %76 : vector<256x8xf32>
    %78 = arith.truncf %77 : vector<256x8xf32> to vector<256x8xbf16>
    %c0_97 = arith.constant 0 : index
    %c0_98 = arith.constant 0 : index
    %79 = vector.load %arg6[%c0_97, %c0_98] : memref<8x32xbf16, #tpu.memory_space<vmem>>, vector<8x32xbf16>
    %cst_99 = arith.constant dense<0.000000e+00> : vector<256x32xf32>
    %80 = tpu.matmul %78, %79, %cst_99 {dimension_numbers = #tpu.dot_dimension_numbers<[1], [0], [0], [1], [0, 0, 1, 1], [], []>} : vector<256x8xbf16>, vector<8x32xbf16>, vector<256x32xf32> -> vector<256x32xf32>
    %c0_100 = arith.constant 0 : index
    %c0_101 = arith.constant 0 : index
    %81 = vector.load %arg7[%c0_100, %c0_101] : memref<1x32xf32, #tpu.memory_space<vmem>>, vector<1x32xf32>
    %82 = vector.broadcast %81 : vector<1x32xf32> to vector<256x32xf32>
    %83 = arith.addf %80, %82 : vector<256x32xf32>
    %84 = arith.addf %83, %10 : vector<256x32xf32>
    %cst_102 = arith.constant 0.000000e+00 : f32
    %85 = vector.broadcast %cst_102 : f32 to vector<256x32xf32>
    %86 = arith.maximumf %84, %85 : vector<256x32xf32>
    %87 = vector.shape_cast %86 : vector<256x32xf32> to vector<16x16x32xf32>
    %c0_103 = arith.constant 0 : index
    %c0_104 = arith.constant 0 : index
    %c0_105 = arith.constant 0 : index
    %c0_106 = arith.constant 0 : index
    %88 = vector.load %arg9[%c0_103, %c0_104, %c0_105, %c0_106] : memref<1x16x16x32xf32, #tpu.memory_space<vmem>>, vector<1x16x16x32xf32>
    %89 = vector.shape_cast %88 : vector<1x16x16x32xf32> to vector<16x16x32xf32>
    %90 = vector.shape_cast %87 : vector<16x16x32xf32> to vector<1x16x16x32xf32>
    tpu.vector_store %arg9[%c0_103, %c0_104, %c0_105, %c0_106], %90 {strides = array<i32>} : memref<1x16x16x32xf32, #tpu.memory_space<vmem>>, vector<1x16x16x32xf32>,
    %91 = arith.truncf %86 : vector<256x32xf32> to vector<256x32xbf16>
    %c0_107 = arith.constant 0 : index
    %c0_108 = arith.constant 0 : index
    %92 = vector.load %arg8[%c0_107, %c0_108] : memref<32x16xbf16, #tpu.memory_space<vmem>>, vector<32x16xbf16>
    %cst_109 = arith.constant dense<0.000000e+00> : vector<256x16xf32>
    %93 = tpu.matmul %91, %92, %cst_109 {dimension_numbers = #tpu.dot_dimension_numbers<[1], [0], [0], [1], [0, 0, 1, 1], [], []>} : vector<256x32xbf16>, vector<32x16xbf16>, vector<256x16xf32> -> vector<256x16xf32>
    %94 = vector.shape_cast %93 : vector<256x16xf32> to vector<16x16x16xf32>
    %c0_110 = arith.constant 0 : index
    %c0_111 = arith.constant 0 : index
    %c0_112 = arith.constant 0 : index
    %c0_113 = arith.constant 0 : index
    %95 = vector.load %arg10[%c0_110, %c0_111, %c0_112, %c0_113] : memref<1x16x16x16xf32, #tpu.memory_space<vmem>>, vector<1x16x16x16xf32>
    %96 = vector.shape_cast %95 : vector<1x16x16x16xf32> to vector<16x16x16xf32>
    %97 = vector.shape_cast %94 : vector<16x16x16xf32> to vector<1x16x16x16xf32>
    tpu.vector_store %arg10[%c0_110, %c0_111, %c0_112, %c0_113], %97 {strides = array<i32>} : memref<1x16x16x16xf32, #tpu.memory_space<vmem>>, vector<1x16x16x16xf32>,
    return
  }
  func.func @transform_0(%arg0: i32) -> (i32, i32, i32, i32) {
    %c0_i32 = arith.constant 0 : i32
    %c0_i32_0 = arith.constant 0 : i32
    %c0_i32_1 = arith.constant 0 : i32
    %c0_i32_2 = arith.constant 0 : i32
    return %arg0, %c0_i32, %c0_i32_0, %c0_i32_1 : i32, i32, i32, i32
  }
  func.func @transform_1(%arg0: i32) -> (i32, i32) {
    %c0_i32 = arith.constant 0 : i32
    %c0_i32_0 = arith.constant 0 : i32
    %c0_i32_1 = arith.constant 0 : i32
    return %c0_i32, %c0_i32_0 : i32, i32
  }
  func.func @transform_2(%arg0: i32) -> (i32, i32) {
    %c0_i32 = arith.constant 0 : i32
    %c0_i32_0 = arith.constant 0 : i32
    %c0_i32_1 = arith.constant 0 : i32
    return %c0_i32, %c0_i32_0 : i32, i32
  }
  func.func @transform_3(%arg0: i32) -> (i32, i32, i32, i32) {
    %c0_i32 = arith.constant 0 : i32
    %c0_i32_0 = arith.constant 0 : i32
    %c0_i32_1 = arith.constant 0 : i32
    %c0_i32_2 = arith.constant 0 : i32
    %c0_i32_3 = arith.constant 0 : i32
    return %c0_i32, %c0_i32_0, %c0_i32_1, %c0_i32_2 : i32, i32, i32, i32
  }
  func.func @transform_4(%arg0: i32) -> (i32, i32) {
    %c0_i32 = arith.constant 0 : i32
    %c0_i32_0 = arith.constant 0 : i32
    %c0_i32_1 = arith.constant 0 : i32
    return %c0_i32, %c0_i32_0 : i32, i32
  }
  func.func @transform_5(%arg0: i32) -> (i32, i32) {
    %c0_i32 = arith.constant 0 : i32
    %c0_i32_0 = arith.constant 0 : i32
    %c0_i32_1 = arith.constant 0 : i32
    return %c0_i32, %c0_i32_0 : i32, i32
  }
  func.func @transform_6(%arg0: i32) -> (i32, i32) {
    %c0_i32 = arith.constant 0 : i32
    %c0_i32_0 = arith.constant 0 : i32
    %c0_i32_1 = arith.constant 0 : i32
    return %c0_i32, %c0_i32_0 : i32, i32
  }
  func.func @transform_7(%arg0: i32) -> (i32, i32) {
    %c0_i32 = arith.constant 0 : i32
    %c0_i32_0 = arith.constant 0 : i32
    %c0_i32_1 = arith.constant 0 : i32
    return %c0_i32, %c0_i32_0 : i32, i32
  }
  func.func @transform_8(%arg0: i32) -> (i32, i32, i32, i32) {
    %c0_i32 = arith.constant 0 : i32
    %c0_i32_0 = arith.constant 0 : i32
    %c0_i32_1 = arith.constant 0 : i32
    %c0_i32_2 = arith.constant 0 : i32
    return %arg0, %c0_i32, %c0_i32_0, %c0_i32_1 : i32, i32, i32, i32
  }
  func.func @transform_9(%arg0: i32) -> (i32, i32, i32, i32) {
    %c0_i32 = arith.constant 0 : i32
    %c0_i32_0 = arith.constant 0 : i32
    %c0_i32_1 = arith.constant 0 : i32
    %c0_i32_2 = arith.constant 0 : i32
    return %arg0, %c0_i32, %c0_i32_0, %c0_i32_1 : i32, i32, i32, i32
  }
}

</mosaic_0001>

<bundles_post_ra>
// kernel: block_forward.2
= control target key start
LH: loop header
LB: loop body
LE: loop exit
PB: predicated region body
PF: predicated region fallthrough
CT: control target
= control target key end

     0   :  { %s8007_s24 = smov 0   ;;  %s9995_s0 = inlined_call_operand.vmem [shape: f32[2,16,16,16], index: 0, kind: input, shape index: {}]   ;;  %s9996_s1 = inlined_call_operand.vmem [shape: bf16[16,40], index: 1, kind: input, shape index: {}]   ;;  %s9997_s2 = inlined_call_operand.vmem [shape: f32[1,40], index: 2, kind: input, shape index: {}]   ;;  %s9998_s3 = inlined_call_operand.vmem [shape: bf16[3,3,8,8], index: 3, kind: input, shape index: {}]   ;;  %s9999_s4 = inlined_call_operand.vmem [shape: f32[1,8], index: 4, kind: input, shape index: {}]   ;;  %s10000_s5 = inlined_call_operand.vmem [shape: bf16[8,32], index: 5, kind: input, shape index: {}]   ;;  %s10001_s6 = inlined_call_operand.vmem [shape: f32[1,32], index: 6, kind: input, shape index: {}]   ;;  %s10002_s7 = inlined_call_operand.vmem [shape: bf16[2,16,16,32], index: 7, kind: output, shape index: {}]  }
   0x1 LB: > { %s6513_s25 = sadd.s32 4294967295, %s7963_s24   ;;  %p6517_p0 = scmp.ge.s32.totalorder %s7963_s24, 1  ;;  %s7963_s24 = sphi %s8007_s24, %s17_s24  }
   0x2   : > { %p237_p1 = scmp.lt.s32.totalorder %s7963_s24, 3 }
   0x4   : > { %p238_p2 = pnand %p6517_p0, %p237_p1 }
   0x6   : > { %241 = sbr.rel (%p238_p2) target bundleno = 1161 (0x489), region = 48 }
   0xd   : > { %v7874_v0 = vld [vmem:[%s9996_s1] sm:$0xff]   ;;  %p269_p3 = scmp.lt.s32.totalorder %s6513_s25, 1  ;;  %vm343_vm0 = vcmask 130048   ;;  %vm588_vm1 = vcmask 57344   ;;  %vm595_vm2 = vsmask.f32 256 }
   0xe   : > { %7221 = vmatprep.subr.bf16.mxu0 %v7874_v0  ;;  %vm8076_vm3 = vmand %vm588_vm1, %vm595_vm2  ;;  %v10027_v49 = vmov 0  ;;  %v603_v50 = vld [vmem:[#allocation2 + $0x18] sm:$0x1]  ;;  %vm651_vm4 = vsmask.f32 7938  ;;  %v10030_v54 = vmov 0 }
   0xf   : > { %s10112_s25 = smov (!%p269_p3, %s6513_s25), 1  ;;  %7222 = vmatpush3.bf16.msra.mxu0 %v7874_v0  ;;  %v10028_v49 = vsel %vm8076_vm3, 4294967295, %v10027_v49  ;;  %v604_v51 = vsel %vm8076_vm3, 0, %v603_v50  ;;  %v600_v52 = vld [vmem:[#allocation2 + $0xc] sm:$0x1]  ;;  %vm8086_vm5 = vmand %vm588_vm1, %vm651_vm4  ;;  %vm585_vm6 = vcmask 60416  }
  0x10   : > { %s6968_s28 = sshll.u32 %s10112_s25, 8  ;;  %10029 = vst [vmem:[#allocation3_spill] sm:$0xff] %v10028_v49  ;;  %605 = vst [vmem:[#allocation2 + $0x18] sm:$0x1] %v604_v51  ;;  %v601_v53 = vsel %vm8076_vm3, 0, %v600_v52  ;;  %v10031_v54 = vsel %vm8086_vm5, 4294967295, %v10030_v54 }
  0x11   : > { %s8024_s8 = scalar_lea.vmem %s9995_s0, %s6968_s28  ;;  %10032 = vst [vmem:[#allocation4_spill] sm:$0xff] %v10031_v54  ;;  %v659_v55 = vld [vmem:[#allocation2 + $0x20] sm:$0x1]  ;;  %602 = vst [vmem:[#allocation2 + $0xc] sm:$0x1] %v601_v53  ;;  %v7965_v63 = vmov 0  }
  0x12   : > { %v280_v1 = vld [vmem:[%s8024_s8] sm:$0xff]  ;;  %v281_v2 = vld [vmem:[%s8024_s8 + $0x8] sm:$0xff]  ;;  %v282_v3 = vld [vmem:[%s8024_s8 + $0x10] sm:$0xff]  ;;  %v660_v56 = vsel %vm8086_vm5, 0, %v659_v55  ;;  %586 = vst.msk [vmem:[#allocation2] sm:$0xf] %vm585_vm6, %v7965_v63 }
  0x13   : > { %v312_v4 = vpack.c.bf16 %v281_v2, %v280_v1  ;;  %v283_v5 = vld [vmem:[%s8024_s8 + $0x18] sm:$0xff]  ;;  %v284_v6 = vld [vmem:[%s8024_s8 + $0x20] sm:$0xff]  ;;  %v285_v7 = vld [vmem:[%s8024_s8 + $0x28] sm:$0xff]  ;;  %661 = vst [vmem:[#allocation2 + $0x20] sm:$0x1] %v660_v56  ;;  %vm1775_vm7 = vcmask 1043456  }
  0x14   : > { %v313_v8 = vpack.c.bf16 %v283_v5, %v282_v3  ;;  %v314_v9 = vpack.c.bf16 %v285_v7, %v284_v6  ;;  %v286_v10 = vld [vmem:[%s8024_s8 + $0x30] sm:$0xff]  ;;  %v287_v11 = vld [vmem:[%s8024_s8 + $0x38] sm:$0xff]  ;;  %v288_v12 = vld [vmem:[%s8024_s8 + $0x40] sm:$0xff]  ;;  %587 = vst.msk [vmem:[#allocation2 + $0x4] sm:$0xf] %vm585_vm6, %v7965_v63  ;;  %vm1726_vm11 = vcmask 64512  }
  0x15   : > { %7223 = vmatprep.mubr.msk.bf16.mxu0 %vm343_vm0, %v312_v4  ;;  %v289_v13 = vld [vmem:[%s8024_s8 + $0x48] sm:$0xff]  ;;  %v315_v14 = vpack.c.bf16 %v287_v11, %v286_v10  ;;  %v290_v16 = vld [vmem:[%s8024_s8 + $0x50] sm:$0xff]  ;;  %v291_v17 = vld [vmem:[%s8024_s8 + $0x58] sm:$0xff]  ;;  %589 = vst.msk [vmem:[#allocation2 + $0x8] sm:$0x1] %vm588_vm1, %v7965_v63  ;;  %s7966_s17 = smov 120  }
  0x16   : > { %7224 = vmatmul.mubr.msk.bf16.vlgmr.msra.gmra.mrb[0].mxu0 %vm343_vm0, %v313_v8  ;;  %v316_v15 = vpack.c.bf16 %v289_v13, %v288_v12  ;;  %v292_v18 = vld [vmem:[%s8024_s8 + $0x60] sm:$0xff]  ;;  %v293_v19 = vld [vmem:[%s8024_s8 + $0x68] sm:$0xff]  ;;  %v317_v20 = vpack.c.bf16 %v291_v17, %v290_v16  ;;  %v294_v22 = vld [vmem:[%s8024_s8 + $0x70] sm:$0xff]  ;;  %591 = vst.msk [vmem:[#allocation2 + $0xcc] sm:$0xf] %vm585_vm6, %v7965_v63  ;;  %vm2280_vm15 = vcmask 1042432  }
  0x17   : > { %7227 = vmatprep.mubr.msk.bf16.mxu0 %vm343_vm0, %v314_v9  ;;  %v318_v21 = vpack.c.bf16 %v293_v19, %v292_v18  ;;  %v295_v23 = vld [vmem:[%s8024_s8 + $0x78] sm:$0xff]  ;;  %v296_v24 = vld [vmem:[%s8024_s8 + $0x80] sm:$0xff]  ;;  %v297_v25 = vld [vmem:[%s8024_s8 + $0x88] sm:$0xff]  ;;  %592 = vst.msk [vmem:[#allocation2 + $0xd0] sm:$0xf] %vm585_vm6, %v7965_v63  ;;  %s6969_s21 = sshll.u32 %s10112_s25, 7 }
  0x18   : > { %v319_v26 = vpack.c.bf16 %v295_v23, %v294_v22  ;;  %v320_v27 = vpack.c.bf16 %v297_v25, %v296_v24  ;;  %v298_v28 = vld [vmem:[%s8024_s8 + $0x90] sm:$0xff]  ;;  %v299_v29 = vld [vmem:[%s8024_s8 + $0x98] sm:$0xff]  ;;  %v300_v30 = vld [vmem:[%s8024_s8 + $0xa0] sm:$0xff]  ;;  %593 = vst.msk [vmem:[#allocation2 + $0xd4] sm:$0x1] %vm588_vm1, %v7965_v63  ;;  %s9881_s26 = scalar_lea.vmem %s10002_s7, %s6969_s21 }
  0x19   : > { %v301_v31 = vld [vmem:[%s8024_s8 + $0xa8] sm:$0xff]  ;;  %v321_v32 = vpack.c.bf16 %v299_v29, %v298_v28  ;;  %v302_v34 = vld [vmem:[%s8024_s8 + $0xb0] sm:$0xff]  ;;  %v303_v35 = vld [vmem:[%s8024_s8 + $0xb8] sm:$0xff]  ;;  %vm1289_vm8 = vsmask.f32 3328 }
  0x1a   : > { %v322_v33 = vpack.c.bf16 %v301_v31, %v300_v30  ;;  %v304_v36 = vld [vmem:[%s8024_s8 + $0xc0] sm:$0xff]  ;;  %v305_v37 = vld [vmem:[%s8024_s8 + $0xc8] sm:$0xff]  ;;  %v323_v38 = vpack.c.bf16 %v303_v35, %v302_v34  ;;  %v306_v40 = vld [vmem:[%s8024_s8 + $0xd0] sm:$0xff]  ;;  %vm1290_vm9 = vsmask.f32 7440 }
  0x1b   : > { %v324_v39 = vpack.c.bf16 %v305_v37, %v304_v36  ;;  %v307_v41 = vld [vmem:[%s8024_s8 + $0xd8] sm:$0xff]  ;;  %v308_v42 = vld [vmem:[%s8024_s8 + $0xe0] sm:$0xff]  ;;  %v309_v43 = vld [vmem:[%s8024_s8 + $0xe8] sm:$0xff]  ;;  %vm803_vm12 = vsmask.f32 4368 }
  0x1c   : > { %v325_v44 = vpack.c.bf16 %v307_v41, %v306_v40  ;;  %v326_v45 = vpack.c.bf16 %v309_v43, %v308_v42  ;;  %v310_v46 = vld [vmem:[%s8024_s8 + $0xf0] sm:$0xff]  ;;  %v311_v47 = vld [vmem:[%s8024_s8 + $0xf8] sm:$0xff]  ;;  %v606_v61 = vld [vmem:[#allocation2 + $0x24] sm:$0x1] }
  0x1d   : > { %v327_v48 = vpack.c.bf16 %v311_v47, %v310_v46  ;;  %v656_v57 = vld [vmem:[#allocation2 + $0x14] sm:$0x1]  ;;  %v609_v59 = vld [vmem:[#allocation2 + $0x30] sm:$0x1]  ;;  %v607_v62 = vsel %vm8076_vm3, 0, %v606_v61  ;;  %vm8137_vm10 = vmor %vm1289_vm8, %vm1290_vm9 }
  0x1e   : > { %7228 = vmatmul.mubr.msk.bf16.gmra.mrb[4].mxu0 %vm343_vm0, %v315_v14  ;;  %v657_v58 = vsel %vm8086_vm5, 0, %v656_v57  ;;  %v610_v60 = vsel %vm8076_vm3, 0, %v609_v59  ;;  %608 = vst [vmem:[#allocation2 + $0x24] sm:$0x1] %v607_v62  ;;  %v665_v0 = vld [vmem:[#allocation2 + $0x38] sm:$0x1]  ;;  %vm8205_vm13 = vmand %vm585_vm6, %vm651_vm4 }
  0x1f   : > { %7231 = vmatprep.mubr.msk.bf16.mxu0 %vm343_vm0, %v316_v15  ;;  %658 = vst [vmem:[#allocation2 + $0x14] sm:$0x1] %v657_v58  ;;  %611 = vst [vmem:[#allocation2 + $0x30] sm:$0x1] %v610_v60  ;;  %v666_v1 = vsel %vm8086_vm5, 0, %v665_v0 }
  0x20   : > { %v662_v2 = vld [vmem:[#allocation2 + $0x2c] sm:$0x1]  ;;  %667 = vst [vmem:[#allocation2 + $0x38] sm:$0x1] %v666_v1  ;;  %v615_v4 = vld [vmem:[#allocation2 + $0x48] sm:$0x1]  ;;  %vm8212_vm14 = vmor %vm595_vm2, %vm803_vm12 }
  0x21   : > { %v663_v3 = vsel %vm8086_vm5, 0, %v662_v2  ;;  %v597_v5 = vld [vmem:[#allocation2] sm:$0x1]  ;;  %v616_v6 = vsel %vm8076_vm3, 0, %v615_v4  ;;  %v612_v7 = vld [vmem:[#allocation2 + $0x3c] sm:$0x1] }
  0x22   : > { %664 = vst [vmem:[#allocation2 + $0x2c] sm:$0x1] %v663_v3  ;;  %v598_v8 = vsel %vm8076_vm3, 0, %v597_v5  ;;  %617 = vst [vmem:[#allocation2 + $0x48] sm:$0x1] %v616_v6  ;;  %v613_v9 = vsel %vm8076_vm3, 0, %v612_v7 }
  0x23   : > { %v671_v10 = vld [vmem:[#allocation2 + $0x50] sm:$0x1]  ;;  %599 = vst [vmem:[#allocation2] sm:$0x1] %v598_v8  ;;  %614 = vst [vmem:[#allocation2 + $0x3c] sm:$0x1] %v613_v9 }
  0x24   : > { %v672_v11 = vsel %vm8086_vm5, 0, %v671_v10  ;;  %v668_v12 = vld [vmem:[#allocation2 + $0x44] sm:$0x1]  ;;  %v653_v13 = vld [vmem:[#allocation2 + $0x8] sm:$0x1]  ;;  %vm6425_vm2 = vcmask 257024  }
  0x25   : > { %673 = vst [vmem:[#allocation2 + $0x50] sm:$0x1] %v672_v11  ;;  %v669_v14 = vsel %vm8086_vm5, 0, %v668_v12  ;;  %v654_v15 = vsel %vm8086_vm5, 0, %v653_v13  ;;  %v621_v16 = vld [vmem:[#allocation2 + $0x60] sm:$0x1] }
  0x26   : > { %7232 = vmatmul.mubr.msk.bf16.gmra.mrb[8].mxu0 %vm343_vm0, %v317_v20  ;;  %670 = vst [vmem:[#allocation2 + $0x44] sm:$0x1] %v669_v14  ;;  %655 = vst [vmem:[#allocation2 + $0x8] sm:$0x1] %v654_v15  ;;  %v622_v18 = vsel %vm8076_vm3, 0, %v621_v16 }
  0x27   : > { %7235 = vmatprep.mubr.msk.bf16.mxu0 %vm343_vm0, %v318_v21  ;;  %v618_v19 = vld [vmem:[#allocation2 + $0x54] sm:$0x1]  ;;  %623 = vst [vmem:[#allocation2 + $0x60] sm:$0x1] %v622_v18  ;;  %v677_v22 = vld [vmem:[#allocation2 + $0x68] sm:$0x1] }
  0x28   : > { %v619_v21 = vsel %vm8076_vm3, 0, %v618_v19  ;;  %v678_v24 = vsel %vm8086_vm5, 0, %v677_v22  ;;  %v674_v25 = vld [vmem:[#allocation2 + $0x5c] sm:$0x1]  ;;  %v6572_v29 = vld [vmem:[%s9998_s3 + $0x4] sm:$0xf] }
  0x29   : > { %620 = vst [vmem:[#allocation2 + $0x54] sm:$0x1] %v619_v21  ;;  %679 = vst [vmem:[#allocation2 + $0x68] sm:$0x1] %v678_v24  ;;  %v675_v28 = vsel %vm8086_vm5, 0, %v674_v25  ;;  %7853 = vmatprep.subr.msk.bf16.mxu0 %vm1775_vm7, %v6572_v29  ;;  %v1777_v30 = vsel %vm1775_vm7, %v6572_v29, 0 }
  0x2a   : > { %v1240_v17 = vld [vmem:[#allocation2] sm:$0xf]  ;;  %676 = vst [vmem:[#allocation2 + $0x5c] sm:$0x1] %v675_v28  ;;  %7256 = vmatpush3.bf16.msra.mxu0 %v1777_v30  ;;  %v627_v37 = vld [vmem:[#allocation2 + $0x78] sm:$0x1] }
  0x2b   : > { %v1293_v20 = vshrl.u32 %v1240_v17, 16  ;;  %v1296_v23 = vshll.u32 %v1240_v17, 16  ;;  %v628_v40 = vsel %vm8076_vm3, 0, %v627_v37  ;;  %v624_v41 = vld [vmem:[#allocation2 + $0x6c] sm:$0x1] }
  0x2c   : > { %629 = vst [vmem:[#allocation2 + $0x78] sm:$0x1] %v628_v40  ;;  %v625_v43 = vsel %vm8076_vm3, 0, %v624_v41  ;;  %v683_v50 = vld [vmem:[#allocation2 + $0x80] sm:$0x1] }
  0x2d   : > { %v1273_v31 = vld [vmem:[#allocation2 + $0x8] sm:$0x1]  ;;  %626 = vst [vmem:[#allocation2 + $0x6c] sm:$0x1] %v625_v43  ;;  %v684_v51 = vsel %vm8086_vm5, 0, %v683_v50 }
  0x2e   : > { %7236 = vmatmul.mubr.msk.bf16.gmra.mrb[12].mxu0 %vm343_vm0, %v319_v26  ;;  %v1241_v26 = vld [vmem:[#allocation2 + $0x4] sm:$0xf]  ;;  %v1312_v35 = vshll.u32 %v1273_v31, 16  ;;  %685 = vst [vmem:[#allocation2 + $0x80] sm:$0x1] %v684_v51 }
  0x2f   : > { %7239 = vmatprep.mubr.msk.bf16.mxu0 %vm343_vm0, %v320_v27  ;;  %v1295_v27 = vrot.slane %v1293_v20, 4  ;;  %v1306_v34 = vshrl.u32 %v1241_v26, 16  ;;  %v680_v53 = vld [vmem:[#allocation2 + $0x74] sm:$0x1]  ;;  %v633_v57 = vld [vmem:[#allocation2 + $0x90] sm:$0x1] }
  0x30   : > { %v681_v56 = vsel %vm8086_vm5, 0, %v680_v53  ;;  %v634_v58 = vsel %vm8076_vm3, 0, %v633_v57  ;;  %v630_v59 = vld [vmem:[#allocation2 + $0x84] sm:$0x1]  ;;  %v689_v60 = vld [vmem:[#allocation2 + $0x98] sm:$0x1] }
  0x31   : > { %682 = vst [vmem:[#allocation2 + $0x74] sm:$0x1] %v681_v56  ;;  %635 = vst [vmem:[#allocation2 + $0x90] sm:$0x1] %v634_v58  ;;  %v631_v61 = vsel %vm8076_vm3, 0, %v630_v59  ;;  %v690_v62 = vsel %vm8086_vm5, 0, %v689_v60 }
  0x32   : > { %v686_v63 = vld [vmem:[#allocation2 + $0x8c] sm:$0x1]  ;;  %632 = vst [vmem:[#allocation2 + $0x84] sm:$0x1] %v631_v61  ;;  %691 = vst [vmem:[#allocation2 + $0x98] sm:$0x1] %v690_v62 }
  0x33   : > { %v687_v0 = vsel %vm8086_vm5, 0, %v686_v63  ;;  %v639_v1 = vld [vmem:[#allocation2 + $0xa8] sm:$0x1]  ;;  %v636_v3 = vld [vmem:[#allocation2 + $0x9c] sm:$0x1] }
  0x34   : > { %688 = vst [vmem:[#allocation2 + $0x8c] sm:$0x1] %v687_v0  ;;  %v640_v2 = vsel %vm8076_vm3, 0, %v639_v1  ;;  %v695_v4 = vld [vmem:[#allocation2 + $0xb0] sm:$0x1]  ;;  %v637_v5 = vsel %vm8076_vm3, 0, %v636_v3 }
  0x35   : > { %641 = vst [vmem:[#allocation2 + $0xa8] sm:$0x1] %v640_v2  ;;  %v696_v6 = vsel %vm8086_vm5, 0, %v695_v4  ;;  %638 = vst [vmem:[#allocation2 + $0x9c] sm:$0x1] %v637_v5 }
  0x36   : > { %7240 = vmatmul.mubr.msk.bf16.gmra.mrb[16].mxu0 %vm343_vm0, %v321_v32  ;;  %v1298_v32 = vrot.slane %v1296_v23, 5  ;;  %697 = vst [vmem:[#allocation2 + $0xb0] sm:$0x1] %v696_v6  ;;  %v692_v7 = vld [vmem:[#allocation2 + $0xa4] sm:$0x1] }
  0x37   : > { %7243 = vmatprep.mubr.msk.bf16.mxu0 %vm343_vm0, %v322_v33  ;;  %v1302_v33 = vshll.u32 %v1241_v26, 16  ;;  %v693_v8 = vsel %vm8086_vm5, 0, %v692_v7  ;;  %v6686_v9 = vld [vmem:[%s9998_s3 + $0xc] sm:$0xf]  ;;  %v645_v10 = vld [vmem:[#allocation2 + $0xc0] sm:$0x1] }
  0x38   : > { %v1299_v36 = vor.u32 %v1298_v32, %v1295_v27  ;;  %694 = vst [vmem:[#allocation2 + $0xa4] sm:$0x1] %v693_v8  ;;  %7857 = vmatprep.subr.msk.bf16.mxu1 %vm1775_vm7, %v6686_v9  ;;  %v646_v11 = vsel %vm8076_vm3, 0, %v645_v10  ;;  %v8173_v12 = vsel %vm1775_vm7, %v6686_v9, 0  ;;  %v642_v13 = vld [vmem:[#allocation2 + $0xb4] sm:$0x1] }
  0x39   : > { %647 = vst [vmem:[#allocation2 + $0xc0] sm:$0x1] %v646_v11  ;;  %10035 = vst [vmem:[#allocation5_spill] sm:$0xff] %v8173_v12  ;;  %7596 = vmatpush3.bf16.msra.mxu1 %v8173_v12  ;;  %v643_v14 = vsel %vm8076_vm3, 0, %v642_v13  ;;  %v701_v15 = vld [vmem:[#allocation2 + $0xc8] sm:$0x1] }
  0x3a   : > { %v1300_v42 = vrot.slane %v1299_v36, 4  ;;  %644 = vst [vmem:[#allocation2 + $0xb4] sm:$0x1] %v643_v14  ;;  %v702_v16 = vsel %vm8086_vm5, 0, %v701_v15  ;;  %v698_v17 = vld [vmem:[#allocation2 + $0xbc] sm:$0x1] }
  0x3b   : > { %703 = vst [vmem:[#allocation2 + $0xc8] sm:$0x1] %v702_v16  ;;  %v699_v18 = vsel %vm8086_vm5, 0, %v698_v17  ;;  %v8185_v19 = vld [vmem:[%s9998_s3 + $0x10] sm:$0xf] }
  0x3c   : > { %700 = vst [vmem:[#allocation2 + $0xbc] sm:$0x1] %v699_v18  ;;  %7858 = vmatprep.subr.msk.bf16.mxu1 %vm1775_vm7, %v8185_v19  ;;  %v8192_v20 = vld [vmem:[%s9997_s2] ss:$0 sm:$0xff]  ;;  %v1135_v50 = vld [vmem:[#allocation2 + $0x18] sm:$0xf] }
  0x3d   : > { %v1128_v59 = vld [vmem:[#allocation2 + $0xc] sm:$0xf]  ;;  %v1139_v2 = vld [vmem:[#allocation2 + $0x20] sm:$0x1]  ;;  %v1132_v8 = vld [vmem:[#allocation2 + $0x14] sm:$0x1] }
  0x3e   : > { %7244 = vmatmul.mubr.msk.bf16.gmra.mrb[20].mxu0 %vm343_vm0, %v323_v38  ;;  %v1304_v38 = vrot.slane %v1302_v33, 5 }
  0x3f   : > { %7247 = vmatprep.mubr.msk.bf16.mxu0 %vm343_vm0, %v324_v39  ;;  %v1308_v39 = vrot.slane %v1306_v34, 4 }
  0x40   : > { %v1305_v47 = vsel %vm8137_vm10, %v1300_v42, %v1304_v38 }
  0x46   : > { %7248 = vmatmul.mubr.msk.bf16.gmra.mrb[24].mxu0 %vm343_vm0, %v325_v44  ;;  %v1309_v44 = vor.u32 %v1308_v39, %v1304_v38 }
  0x47   : > { %7251 = vmatprep.mubr.msk.bf16.mxu0 %vm343_vm0, %v326_v45  ;;  %v1314_v45 = vrot.slane %v1312_v35, 5 }
  0x4e   : > { %7252 = vmatmul.mubr.msk.bf16.gmra.mrb[28].mxu0 %vm343_vm0, %v327_v48  ;;  %v1310_v48 = vrot.slane %v1309_v44, 4  ;;  %vm2281_vm0 = vcmask 1046532  }
  0x4f   : > { %vm8871_vm1 = vmor %vm2280_vm15, %vm2281_vm0 }
  0x50   : > { %v1315_v52 = vsel %vm8137_vm10, %v1310_v48, %v1314_v45 }
  0x51   : > { %v6573_v55 = vcombine.low %v1305_v47, %v1315_v52 }
  0x53   : > { %7257 = vmatprep.mubr.msk.bf16.mxu0 %vm1726_vm11, %v6573_v55 }
  0xe9   : > { %v7225_v21 = vpop.f32.mrb[0].mxu0 }
  0xea   : > { %v435_v22 = vadd.f32 %v7225_v21, %v8192_v20  ;;  %v426_v23 = vpop.f32.mrb[1].mxu0 }
  0xeb   : > { %v427_v24 = vadd.f32 %v8192_v20, %v426_v23  ;;  %v7226_v25 = vpop.f32.mrb[2].mxu0 }
  0xec   : > { %v555_v26 = vmax.f32 %v435_v22, 0.0  ;;  %v438_v27 = vadd.f32 %v7226_v25, %v8192_v20  ;;  %6141 = vrot.lane.b32.xlu1 %v435_v22, %s7966_s17  ;;  %v429_v28 = vpop.f32.mrb[3].mxu0 }
  0xed   : > { %v553_v29 = vmax.f32 %v427_v24, 0.0  ;;  %v430_v30 = vadd.f32 %v8192_v20, %v429_v28  ;;  %6137 = vrot.lane.b32.xlu0 %v427_v24, %s7966_s17 }
  0xee   : > { %v6972_v31 = vpack.c.bf16 %v555_v26, %v555_v26  ;;  %v556_v32 = vmax.f32 %v438_v27, 0.0 }
  0xef   : > { %v6970_v33 = vpack.c.bf16 %v553_v29, %v553_v29  ;;  %v554_v34 = vmax.f32 %v430_v30, 0.0 }
  0xf0   : > { %v823_v35 = vshrl.u32 %v6972_v31, 16  ;;  %v6973_v36 = vpack.c.bf16 %v556_v32, %v556_v32  ;;  %6143 = vrot.lane.b32.xlu1 %v438_v27, %s7966_s17  ;;  %v826_v37 = vshll.u32 %v6972_v31, 16 }
  0xf1   : > { %v806_v38 = vshrl.u32 %v6970_v33, 16  ;;  %v809_v39 = vshll.u32 %v6970_v33, 16  ;;  %v6971_v40 = vpack.c.bf16 %v554_v34, %v554_v34  ;;  %v7229_v41 = vpop.f32.mrb[4].mxu0  ;;  %6139 = vrot.lane.b32.xlu0 %v430_v30, %s7966_s17  ;;  %v1149_v30 = vld [vmem:[#allocation2 + $0x30] sm:$0xf] }
  0xf2   : > { %v825_v42 = vrot.slane %v823_v35, 7  ;;  %v831_v43 = vshrl.u32 %v6973_v36, 16  ;;  %v834_v44 = vshll.u32 %v6973_v36, 16  ;;  %v451_v45 = vadd.f32 %v7229_v41, %v8192_v20  ;;  %v442_v47 = vpop.f32.mrb[5].mxu0 }
  0xf3   : > { %v808_v51 = vrot.slane %v806_v38, 7  ;;  %v814_v52 = vshrl.u32 %v6971_v40, 16  ;;  %v817_v53 = vshll.u32 %v6971_v40, 16  ;;  %v443_v55 = vadd.f32 %v8192_v20, %v442_v47  ;;  %v7230_v56 = vpop.f32.mrb[6].mxu0  ;;  %v1142_v38 = vld [vmem:[#allocation2 + $0x24] sm:$0xf] }
  0xf4   : > { %v828_v57 = vor.u32 %v826_v37, %v825_v42  ;;  %v829_v58 = vrot.slane %v825_v42, 4  ;;  %v833_v60 = vrot.slane %v831_v43, 7  ;;  %v559_v61 = vmax.f32 %v451_v45, 0.0  ;;  %v445_v62 = vpop.f32.mrb[7].mxu0 }
  0xf5   : > { %v811_v63 = vor.u32 %v809_v39, %v808_v51  ;;  %v812_v0 = vrot.slane %v808_v51, 4  ;;  %v816_v3 = vrot.slane %v814_v52, 7  ;;  %v557_v4 = vmax.f32 %v443_v55, 0.0  ;;  %6149 = vrot.lane.b32.xlu0 %v451_v45, %s7966_s17 }
  0xf6   : > { %v1136_v5 = vsel %vm8205_vm13, %v828_v57, %v1135_v50  ;;  %v836_v6 = vor.u32 %v834_v44, %v833_v60  ;;  %v838_v7 = vrot.slane %v833_v60, 4  ;;  %v6976_v9 = vpack.c.bf16 %v559_v61, %v559_v61  ;;  %v1153_v61 = vld [vmem:[#allocation2 + $0x38] sm:$0x1] }
  0xf7   : > { %1137 = vst [vmem:[#allocation2 + $0x18] sm:$0xf] %v1136_v5  ;;  %v1129_v10 = vsel %vm8205_vm13, %v811_v63, %v1128_v59  ;;  %v819_v11 = vor.u32 %v817_v53, %v816_v3  ;;  %v821_v13 = vrot.slane %v816_v3, 4  ;;  %v6974_v14 = vpack.c.bf16 %v557_v4, %v557_v4 }
  0xf8   : > { %1130 = vst [vmem:[#allocation2 + $0xc] sm:$0xf] %v1129_v10  ;;  %v837_v15 = vsel %vm8212_vm14, %v829_v58, %v836_v6  ;;  %v1140_v16 = vsel %vm8076_vm3, %v838_v7, %v1139_v2  ;;  %v857_v17 = vshrl.u32 %v6976_v9, 16  ;;  %v860_v22 = vshll.u32 %v6976_v9, 16 }
  0xf9   : > { %1138 = vst.msk [vmem:[#allocation2 + $0x1c] sm:$0xf] %vm585_vm6, %v837_v15  ;;  %1141 = vst [vmem:[#allocation2 + $0x20] sm:$0x1] %v1140_v16  ;;  %v820_v18 = vsel %vm8212_vm14, %v812_v0, %v819_v11  ;;  %v1133_v21 = vsel %vm8076_vm3, %v821_v13, %v1132_v8  ;;  %v840_v23 = vshrl.u32 %v6974_v14, 16  ;;  %v7233_v24 = vpop.f32.mrb[8].mxu0  ;;  %6145 = vrot.lane.b32.xlu0 %v443_v55, %s7966_s17 }
  0xfa   : > { %1131 = vst.msk [vmem:[#allocation2 + $0x10] sm:$0xf] %vm585_vm6, %v820_v18  ;;  %1134 = vst [vmem:[#allocation2 + $0x14] sm:$0x1] %v1133_v21  ;;  %v8232_v25 = vrot.slane %v857_v17, 7  ;;  %v454_v26 = vadd.f32 %v7230_v56, %v8192_v20  ;;  %v446_v27 = vadd.f32 %v8192_v20, %v445_v62  ;;  %v467_v28 = vadd.f32 %v7233_v24, %v8192_v20  ;;  %v458_v29 = vpop.f32.mrb[9].mxu0 }
  0xfb   : > { %v8237_v31 = vrot.slane %v840_v23, 7  ;;  %v843_v32 = vshll.u32 %v6974_v14, 16  ;;  %v459_v33 = vadd.f32 %v8192_v20, %v458_v29  ;;  %v7234_v34 = vpop.f32.mrb[10].mxu0  ;;  %v8242_v35 = vsel %vm1775_vm7, %v8185_v19, 0  ;;  %v1146_v62 = vld [vmem:[#allocation2 + $0x2c] sm:$0x1] }
  0xfc   : > { %v862_v36 = vor.u32 %v860_v22, %v8232_v25  ;;  %v863_v37 = vrot.slane %v8232_v25, 4  ;;  %v560_v39 = vmax.f32 %v454_v26, 0.0  ;;  %v558_v40 = vmax.f32 %v446_v27, 0.0  ;;  %6151 = vrot.lane.b32.xlu1 %v454_v26, %s7966_s17  ;;  %v461_v41 = vpop.f32.mrb[11].mxu0  ;;  %v1163_v11 = vld [vmem:[#allocation2 + $0x48] sm:$0xf] }
  0xfd   : > { %v845_v42 = vor.u32 %v843_v32, %v8237_v31  ;;  %v846_v43 = vrot.slane %v8237_v31, 4  ;;  %v563_v44 = vmax.f32 %v467_v28, 0.0  ;;  %v561_v45 = vmax.f32 %v459_v33, 0.0  ;;  %6157 = vrot.lane.b32.xlu0 %v467_v28, %s7966_s17  ;;  %v1156_v23 = vld [vmem:[#allocation2 + $0x3c] sm:$0xf] }
  0xfe   : > { %v1150_v19 = vsel %vm8205_vm13, %v862_v36, %v1149_v30  ;;  %v6977_v47 = vpack.c.bf16 %v560_v39, %v560_v39  ;;  %v6975_v50 = vpack.c.bf16 %v558_v40, %v558_v40  ;;  %v470_v51 = vadd.f32 %v7234_v34, %v8192_v20 }
  0xff   : > { %1151 = vst [vmem:[#allocation2 + $0x30] sm:$0xf] %v1150_v19  ;;  %v1143_v52 = vsel %vm8205_vm13, %v845_v42, %v1142_v38  ;;  %v6980_v53 = vpack.c.bf16 %v563_v44, %v563_v44  ;;  %v6978_v55 = vpack.c.bf16 %v561_v45, %v561_v45  ;;  %v462_v56 = vadd.f32 %v8192_v20, %v461_v41 }
 0x100   : > { %1144 = vst [vmem:[#allocation2 + $0x24] sm:$0xf] %v1143_v52  ;;  %v865_v57 = vshrl.u32 %v6977_v47, 16  ;;  %v868_v58 = vshll.u32 %v6977_v47, 16  ;;  %v848_v59 = vshrl.u32 %v6975_v50, 16  ;;  %v851_v60 = vshll.u32 %v6975_v50, 16  ;;  %6147 = vrot.lane.b32.xlu1 %v446_v27, %s7966_s17 }
 0x101   : > { %v891_v63 = vshrl.u32 %v6980_v53, 16  ;;  %v894_v0 = vshll.u32 %v6980_v53, 16  ;;  %v874_v2 = vshrl.u32 %v6978_v55, 16  ;;  %v877_v3 = vshll.u32 %v6978_v55, 16  ;;  %v7237_v4 = vpop.f32.mrb[12].mxu0  ;;  %6153 = vrot.lane.b32.xlu0 %v459_v33, %s7966_s17 }
 0x102   : > { %v867_v5 = vrot.slane %v865_v57, 7  ;;  %v850_v6 = vrot.slane %v848_v59, 7  ;;  %v564_v7 = vmax.f32 %v470_v51, 0.0  ;;  %v562_v8 = vmax.f32 %v462_v56, 0.0  ;;  %v474_v9 = vpop.f32.mrb[13].mxu0 }
 0x103   : > { %v8258_v10 = vrot.slane %v891_v63, 7  ;;  %v8260_v13 = vrot.slane %v874_v2, 7  ;;  %v483_v14 = vadd.f32 %v7237_v4, %v8192_v20  ;;  %v475_v15 = vadd.f32 %v8192_v20, %v474_v9  ;;  %v7238_v16 = vpop.f32.mrb[14].mxu0  ;;  %v1167_v47 = vld [vmem:[#allocation2 + $0x50] sm:$0x1] }
 0x104   : > { %v870_v17 = vor.u32 %v868_v58, %v867_v5  ;;  %v872_v18 = vrot.slane %v867_v5, 4  ;;  %v853_v21 = vor.u32 %v851_v60, %v850_v6  ;;  %v855_v22 = vrot.slane %v850_v6, 4  ;;  %6159 = vrot.lane.b32.xlu1 %v470_v51, %s7966_s17  ;;  %v477_v24 = vpop.f32.mrb[15].mxu0  ;;  %v1160_v50 = vld [vmem:[#allocation2 + $0x44] sm:$0x1] }
 0x105   : > { %v896_v25 = vor.u32 %v894_v0, %v8258_v10  ;;  %v897_v26 = vrot.slane %v8258_v10, 4  ;;  %v879_v27 = vor.u32 %v877_v3, %v8260_v13  ;;  %v880_v28 = vrot.slane %v8260_v13, 4  ;;  %6165 = vrot.lane.b32.xlu0 %v483_v14, %s7966_s17 }
 0x106   : > { %v871_v29 = vsel %vm8212_vm14, %v863_v37, %v870_v17  ;;  %v1154_v30 = vsel %vm8076_vm3, %v872_v18, %v1153_v61  ;;  %v854_v31 = vsel %vm8212_vm14, %v846_v43, %v853_v21  ;;  %v1147_v32 = vsel %vm8076_vm3, %v855_v22, %v1146_v62  ;;  %v1177_v18 = vld [vmem:[#allocation2 + $0x60] sm:$0xf]  ;;  %v1170_v21 = vld [vmem:[#allocation2 + $0x54] sm:$0xf] }
 0x107   : > { %1152 = vst.msk [vmem:[#allocation2 + $0x34] sm:$0xf] %vm585_vm6, %v871_v29  ;;  %1155 = vst [vmem:[#allocation2 + $0x38] sm:$0x1] %v1154_v30  ;;  %v1164_v33 = vsel %vm8205_vm13, %v896_v25, %v1163_v11  ;;  %v1157_v34 = vsel %vm8205_vm13, %v879_v27, %v1156_v23  ;;  %v6981_v36 = vpack.c.bf16 %v564_v7, %v564_v7  ;;  %v567_v38 = vmax.f32 %v483_v14, 0.0 }
 0x108   : > { %1145 = vst.msk [vmem:[#allocation2 + $0x28] sm:$0xf] %vm585_vm6, %v854_v31  ;;  %1148 = vst [vmem:[#allocation2 + $0x2c] sm:$0x1] %v1147_v32  ;;  %v6979_v37 = vpack.c.bf16 %v562_v8, %v562_v8  ;;  %v565_v39 = vmax.f32 %v475_v15, 0.0  ;;  %6155 = vrot.lane.b32.xlu1 %v462_v56, %s7966_s17  ;;  %v486_v40 = vadd.f32 %v7238_v16, %v8192_v20 }
 0x109   : > { %1165 = vst [vmem:[#allocation2 + $0x48] sm:$0xf] %v1164_v33  ;;  %1158 = vst [vmem:[#allocation2 + $0x3c] sm:$0xf] %v1157_v34  ;;  %v478_v41 = vadd.f32 %v8192_v20, %v477_v24  ;;  %v899_v42 = vshrl.u32 %v6981_v36, 16  ;;  %v902_v43 = vshll.u32 %v6981_v36, 16  ;;  %6161 = vrot.lane.b32.xlu0 %v475_v15, %s7966_s17  ;;  %v6984_v51 = vpack.c.bf16 %v567_v38, %v567_v38 }
 0x10a   : > { %v882_v44 = vshrl.u32 %v6979_v37, 16  ;;  %v885_v45 = vshll.u32 %v6979_v37, 16  ;;  %v7241_v19 = vpop.f32.mrb[16].mxu0  ;;  %v6982_v52 = vpack.c.bf16 %v565_v39, %v565_v39  ;;  %v568_v53 = vmax.f32 %v486_v40, 0.0  ;;  %v1272_v8 = vld [vmem:[%s9998_s3] sm:$0xf] }
 0x10b   : > { %v566_v55 = vmax.f32 %v478_v41, 0.0  ;;  %v490_v57 = vpop.f32.mrb[17].mxu0  ;;  %v901_v58 = vrot.slane %v899_v42, 7  ;;  %v499_v59 = vadd.f32 %v7241_v19, %v8192_v20  ;;  %v925_v62 = vshrl.u32 %v6984_v51, 16  ;;  %7854 = vmatprep.subr.msk.bf16.mxu0 %vm1775_vm7, %v1272_v8  ;;  %v1181_v39 = vld [vmem:[#allocation2 + $0x68] sm:$0x1] }
 0x10c   : > { %v884_v56 = vrot.slane %v882_v44, 7  ;;  %v491_v60 = vadd.f32 %v8192_v20, %v490_v57  ;;  %v7242_v61 = vpop.f32.mrb[18].mxu0  ;;  %v928_v63 = vshll.u32 %v6984_v51, 16  ;;  %v908_v0 = vshrl.u32 %v6982_v52, 16  ;;  %6167 = vrot.lane.b32.xlu1 %v486_v40, %s7966_s17  ;;  %v1174_v44 = vld [vmem:[#allocation2 + $0x5c] sm:$0x1] }
 0x10d   : > { %v911_v2 = vshll.u32 %v6982_v52, 16  ;;  %v493_v3 = vpop.f32.mrb[19].mxu0  ;;  %v904_v4 = vor.u32 %v902_v43, %v901_v58  ;;  %v906_v5 = vrot.slane %v901_v58, 4  ;;  %6173 = vrot.lane.b32.xlu0 %v499_v59, %s7966_s17  ;;  %v927_v9 = vrot.slane %v925_v62, 7  ;;  %v1243_v58 = vld [vmem:[#allocation2 + $0x10] sm:$0xf] }
 0x10e   : > { %v887_v6 = vor.u32 %v885_v45, %v884_v56  ;;  %v889_v7 = vrot.slane %v884_v56, 4  ;;  %v910_v10 = vrot.slane %v908_v0, 7  ;;  %v6985_v11 = vpack.c.bf16 %v568_v53, %v568_v53 }
 0x10f   : > { %v6983_v13 = vpack.c.bf16 %v566_v55, %v566_v55  ;;  %v905_v14 = vsel %vm8212_vm14, %v897_v26, %v904_v4  ;;  %v1168_v15 = vsel %vm8076_vm3, %v906_v5, %v1167_v47  ;;  %v930_v22 = vor.u32 %v928_v63, %v927_v9  ;;  %v1242_v26 = vld [vmem:[#allocation2 + $0xc] sm:$0xf] }
 0x110   : > { %v888_v16 = vsel %vm8212_vm14, %v880_v28, %v887_v6  ;;  %v1161_v17 = vsel %vm8076_vm3, %v889_v7, %v1160_v50  ;;  %1166 = vst.msk [vmem:[#allocation2 + $0x4c] sm:$0xf] %vm585_vm6, %v905_v14  ;;  %1169 = vst [vmem:[#allocation2 + $0x50] sm:$0x1] %v1168_v15  ;;  %v931_v23 = vrot.slane %v927_v9, 4  ;;  %v913_v24 = vor.u32 %v911_v2, %v910_v10 }
 0x111   : > { %1159 = vst.msk [vmem:[#allocation2 + $0x40] sm:$0xf] %vm585_vm6, %v888_v16  ;;  %1162 = vst [vmem:[#allocation2 + $0x44] sm:$0x1] %v1161_v17  ;;  %v914_v25 = vrot.slane %v910_v10, 4  ;;  %6163 = vrot.lane.b32.xlu1 %v478_v41, %s7966_s17  ;;  %v933_v27 = vshrl.u32 %v6985_v11, 16  ;;  %6169 = vrot.lane.b32.xlu0 %v491_v60, %s7966_s17  ;;  %v1178_v32 = vsel %vm8205_vm13, %v930_v22, %v1177_v18 }
 0x112   : > { %v936_v28 = vshll.u32 %v6985_v11, 16  ;;  %v916_v29 = vshrl.u32 %v6983_v13, 16  ;;  %v919_v30 = vshll.u32 %v6983_v13, 16  ;;  %v8307_v31 = vpop.f32.mrb[20].mxu0  ;;  %v1171_v33 = vsel %vm8205_vm13, %v913_v24, %v1170_v21  ;;  %1179 = vst [vmem:[#allocation2 + $0x60] sm:$0xf] %v1178_v32 }
 0x113   : > { %v571_v34 = vmax.f32 %v499_v59, 0.0  ;;  %v569_v36 = vmax.f32 %v491_v60, 0.0  ;;  %v8314_v37 = vpop.f32.mrb[21].mxu0  ;;  %1172 = vst [vmem:[#allocation2 + $0x54] sm:$0xf] %v1171_v33  ;;  %v935_v38 = vrot.slane %v933_v27, 7  ;;  %v502_v41 = vadd.f32 %v7242_v61, %v8192_v20 }
 0x114   : > { %v918_v40 = vrot.slane %v916_v29, 7  ;;  %v494_v42 = vadd.f32 %v8192_v20, %v493_v3  ;;  %v8318_v43 = vpop.f32.mrb[22].mxu0  ;;  %v1317_v47 = vshrl.u32 %v1242_v26, 16  ;;  %v1320_v50 = vshll.u32 %v1242_v26, 16  ;;  %v1191_v3 = vld [vmem:[#allocation2 + $0x78] sm:$0xf] }
 0x115   : > { %v6988_v45 = vpack.c.bf16 %v571_v34, %v571_v34  ;;  %v6986_v19 = vpack.c.bf16 %v569_v36, %v569_v36  ;;  %v8320_v51 = vpop.f32.mrb[23].mxu0  ;;  %v938_v52 = vor.u32 %v936_v28, %v935_v38  ;;  %v940_v53 = vrot.slane %v935_v38, 4  ;;  %6175 = vrot.lane.b32.xlu1 %v502_v41, %s7966_s17  ;;  %v1184_v4 = vld [vmem:[#allocation2 + $0x6c] sm:$0xf]  ;;  %v1274_v9 = vld [vmem:[#allocation2 + $0x14] sm:$0x1] }
 0x116   : > { %v921_v55 = vor.u32 %v919_v30, %v918_v40  ;;  %v923_v57 = vrot.slane %v918_v40, 4  ;;  %v572_v7 = vmax.f32 %v502_v41, 0.0  ;;  %v570_v8 = vmax.f32 %v494_v42, 0.0  ;;  %v1244_v27 = vld [vmem:[#allocation2 + $0x18] sm:$0xf] }
 0x117   : > { %v959_v56 = vshrl.u32 %v6988_v45, 16  ;;  %v962_v59 = vshll.u32 %v6988_v45, 16  ;;  %v942_v60 = vshrl.u32 %v6986_v19, 16  ;;  %v945_v61 = vshll.u32 %v6986_v19, 16  ;;  %v1245_v34 = vld [vmem:[#allocation2 + $0x1c] sm:$0xf] }
 0x118   : > { %v939_v62 = vsel %vm8212_vm14, %v931_v23, %v938_v52  ;;  %v1182_v63 = vsel %vm8076_vm3, %v940_v53, %v1181_v39  ;;  %v922_v0 = vsel %vm8212_vm14, %v914_v25, %v921_v55  ;;  %v1175_v2 = vsel %vm8076_vm3, %v923_v57, %v1174_v44  ;;  %v1188_v57 = vld [vmem:[#allocation2 + $0x74] sm:$0x1]  ;;  %v8695_v54 = vld [vmem:[#allocation2 + $0x4c] sm:$0xf] }
 0x119   : > { %1180 = vst.msk [vmem:[#allocation2 + $0x64] sm:$0xf] %vm585_vm6, %v939_v62  ;;  %1183 = vst [vmem:[#allocation2 + $0x68] sm:$0x1] %v1182_v63  ;;  %v961_v5 = vrot.slane %v959_v56, 7  ;;  %v944_v6 = vrot.slane %v942_v60, 7  ;;  %6171 = vrot.lane.b32.xlu1 %v494_v42, %s7966_s17  ;;  %v6989_v23 = vpack.c.bf16 %v572_v7, %v572_v7  ;;  %v6987_v24 = vpack.c.bf16 %v570_v8, %v570_v8 }
 0x11a   : > { %1173 = vst.msk [vmem:[#allocation2 + $0x58] sm:$0xf] %vm585_vm6, %v922_v0  ;;  %1176 = vst [vmem:[#allocation2 + $0x5c] sm:$0x1] %v1175_v2  ;;  %v1319_v10 = vrot.slane %v1317_v47, 4  ;;  %v1322_v11 = vrot.slane %v1320_v50, 5 }
 0x11b   : > { %v1326_v13 = vshll.u32 %v1243_v58, 16  ;;  %v1330_v14 = vshrl.u32 %v1243_v58, 16  ;;  %v8334_v15 = vpop.f32.mrb[24].mxu0  ;;  %v964_v16 = vor.u32 %v962_v59, %v961_v5  ;;  %v965_v17 = vrot.slane %v961_v5, 4  ;;  %v1195_v50 = vld [vmem:[#allocation2 + $0x80] sm:$0x1] }
 0x11c   : > { %v947_v18 = vor.u32 %v945_v61, %v944_v6  ;;  %v948_v21 = vrot.slane %v944_v6, 4  ;;  %v8336_v22 = vpop.f32.mrb[25].mxu0  ;;  %v1323_v25 = vor.u32 %v1322_v11, %v1319_v10  ;;  %v1336_v33 = vshll.u32 %v1274_v9, 16  ;;  %v1275_v2 = vld [vmem:[#allocation2 + $0x20] sm:$0x1] }
 0x11d   : > { %v1328_v26 = vrot.slane %v1326_v13, 5  ;;  %v8338_v28 = vpop.f32.mrb[26].mxu0  ;;  %v1192_v29 = vsel %vm8205_vm13, %v964_v16, %v1191_v3  ;;  %v1332_v32 = vrot.slane %v1330_v14, 4  ;;  %v967_v38 = vshrl.u32 %v6989_v23, 16  ;;  %v1246_v14 = vld [vmem:[#allocation2 + $0x24] sm:$0xf] }
 0x11e   : > { %v1185_v30 = vsel %vm8205_vm13, %v947_v18, %v1184_v4  ;;  %v8344_v36 = vpop.f32.mrb[27].mxu0  ;;  %1193 = vst [vmem:[#allocation2 + $0x78] sm:$0xf] %v1192_v29  ;;  %v970_v39 = vshll.u32 %v6989_v23, 16  ;;  %v950_v40 = vshrl.u32 %v6987_v24, 16  ;;  %v953_v41 = vshll.u32 %v6987_v24, 16 }
 0x11f   : > { %1186 = vst [vmem:[#allocation2 + $0x6c] sm:$0xf] %v1185_v30  ;;  %v1324_v42 = vrot.slane %v1323_v25, 4  ;;  %v1333_v44 = vor.u32 %v1332_v32, %v1328_v26  ;;  %v1338_v45 = vrot.slane %v1336_v33, 5  ;;  %v1341_v19 = vshrl.u32 %v1244_v27, 16 }
 0x120   : > { %v969_v47 = vrot.slane %v967_v38, 7  ;;  %v952_v52 = vrot.slane %v950_v40, 7  ;;  %v1344_v53 = vshll.u32 %v1244_v27, 16  ;;  %v1350_v55 = vshll.u32 %v1245_v34, 16 }
 0x121   : > { %v1329_v58 = vsel %vm8137_vm10, %v1324_v42, %v1328_v26  ;;  %v1334_v56 = vrot.slane %v1333_v44, 4  ;;  %v1343_v59 = vrot.slane %v1341_v19, 4  ;;  %v1354_v60 = vshrl.u32 %v1245_v34, 16  ;;  %v8348_v3 = vpop.f32.mrb[28].mxu0 }
 0x122   : > { %v972_v61 = vor.u32 %v970_v39, %v969_v47  ;;  %v974_v62 = vrot.slane %v969_v47, 4  ;;  %v955_v63 = vor.u32 %v953_v41, %v952_v52  ;;  %v957_v0 = vrot.slane %v952_v52, 4  ;;  %v8352_v8 = vpop.f32.mrb[29].mxu0 }
 0x123   : > { %v1339_v4 = vsel %vm8137_vm10, %v1334_v56, %v1338_v45  ;;  %v1346_v5 = vrot.slane %v1344_v53, 5  ;;  %v1352_v6 = vrot.slane %v1350_v55, 5  ;;  %v1356_v7 = vrot.slane %v1354_v60, 4  ;;  %v8362_v16 = vpop.f32.mrb[30].mxu0 }
 0x124   : > { %v973_v9 = vsel %vm8212_vm14, %v965_v17, %v972_v61  ;;  %v1196_v10 = vsel %vm8076_vm3, %v974_v62, %v1195_v50  ;;  %v956_v11 = vsel %vm8212_vm14, %v948_v21, %v955_v63  ;;  %v1189_v13 = vsel %vm8076_vm3, %v957_v0, %v1188_v57  ;;  %v8366_v25 = vpop.f32.mrb[31].mxu0  ;;  %v1276_v50 = vld [vmem:[#allocation2 + $0x2c] sm:$0x1]  ;;  %v1205_v61 = vld [vmem:[#allocation2 + $0x90] sm:$0xf] }
 0x125   : > { %1194 = vst.msk [vmem:[#allocation2 + $0x7c] sm:$0xf] %vm585_vm6, %v973_v9  ;;  %1197 = vst [vmem:[#allocation2 + $0x80] sm:$0x1] %v1196_v10  ;;  %v6574_v18 = vcombine.low %v1329_v58, %v1339_v4  ;;  %v1347_v17 = vor.u32 %v1346_v5, %v1343_v59  ;;  %v1357_v23 = vor.u32 %v1356_v7, %v1352_v6  ;;  %v1360_v24 = vshll.u32 %v1275_v2, 16 }
 0x126   : > { %1187 = vst.msk [vmem:[#allocation2 + $0x70] sm:$0xf] %vm585_vm6, %v956_v11  ;;  %1190 = vst [vmem:[#allocation2 + $0x74] sm:$0x1] %v1189_v13  ;;  %v515_v21 = vadd.f32 %v8307_v31, %v8192_v20  ;;  %v507_v26 = vadd.f32 %v8192_v20, %v8314_v37  ;;  %v518_v27 = vadd.f32 %v8318_v43, %v8192_v20  ;;  %v1365_v34 = vshrl.u32 %v1246_v14, 16 }
 0x127   : > { %v510_v29 = vadd.f32 %v8192_v20, %v8320_v51  ;;  %7258 = vmatmul.mubr.msk.bf16.vlgmr.msra.gmra.mrb[32].mxu0 %vm1726_vm11, %v6574_v18  ;;  %v1348_v30 = vrot.slane %v1347_v17, 4  ;;  %v1358_v32 = vrot.slane %v1357_v23, 4  ;;  %v1362_v33 = vrot.slane %v1360_v24, 5  ;;  %v1247_v31 = vld [vmem:[#allocation2 + $0x28] sm:$0xf] }
 0x128   : > { %v575_v38 = vmax.f32 %v515_v21, 0.0  ;;  %v573_v39 = vmax.f32 %v507_v26, 0.0  ;;  %v576_v40 = vmax.f32 %v518_v27, 0.0  ;;  %6181 = vrot.lane.b32.xlu0 %v515_v21, %s7966_s17  ;;  %6183 = vrot.lane.b32.xlu1 %v518_v27, %s7966_s17  ;;  %v1367_v51 = vrot.slane %v1365_v34, 4  ;;  %v1198_v62 = vld [vmem:[#allocation2 + $0x84] sm:$0xf] }
 0x129   : > { %v574_v41 = vmax.f32 %v510_v29, 0.0  ;;  %v1353_v37 = vsel %vm8137_vm10, %v1348_v30, %v1352_v6  ;;  %v1363_v43 = vsel %vm8137_vm10, %v1358_v32, %v1362_v33  ;;  %v1368_v42 = vshll.u32 %v1246_v14, 16  ;;  %v8390_v23 = vld [vmem:[%s9998_s3 + $0x14] sm:$0xf]  ;;  %v1202_v30 = vld [vmem:[#allocation2 + $0x8c] sm:$0x1] }
 0x12a   : > { %v6575_v44 = vcombine.low %v1353_v37, %v1363_v43  ;;  %v6992_v45 = vpack.c.bf16 %v575_v38, %v575_v38  ;;  %v6990_v19 = vpack.c.bf16 %v573_v39, %v573_v39  ;;  %v6993_v47 = vpack.c.bf16 %v576_v40, %v576_v40  ;;  %v1248_v39 = vld [vmem:[#allocation2 + $0x30] sm:$0xf]  ;;  %v1249_v43 = vld [vmem:[#allocation2 + $0x34] sm:$0xf] }
 0x12b   : > { %v6991_v52 = vpack.c.bf16 %v574_v41, %v574_v41  ;;  %v1370_v53 = vrot.slane %v1368_v42, 5  ;;  %v1374_v55 = vshll.u32 %v1247_v31, 16  ;;  %v1378_v57 = vshrl.u32 %v1247_v31, 16 }
 0x12c   : > { %7261 = vmatprep.mubr.msk.bf16.mxu0 %vm1726_vm11, %v6575_v44  ;;  %v993_v58 = vshrl.u32 %v6992_v45, 16  ;;  %v996_v56 = vshll.u32 %v6992_v45, 16  ;;  %v976_v59 = vshrl.u32 %v6990_v19, 16  ;;  %v979_v60 = vshll.u32 %v6990_v19, 16  ;;  %6177 = vrot.lane.b32.xlu0 %v507_v26, %s7966_s17  ;;  %v7876_v11 = vld [vmem:[#allocation2 + $0x78] sm:$0xff]  }
 0x12d   : > { %v1001_v63 = vshrl.u32 %v6993_v47, 16  ;;  %v1004_v0 = vshll.u32 %v6993_v47, 16  ;;  %v984_v2 = vshrl.u32 %v6991_v52, 16  ;;  %v987_v4 = vshll.u32 %v6991_v52, 16  ;;  %6179 = vrot.lane.b32.xlu1 %v510_v29, %s7966_s17  ;;  %v7875_v5 = vld [vmem:[#allocation2 + $0x6c] sm:$0xff]  }
 0x12e   : > { %v995_v6 = vrot.slane %v993_v58, 7  ;;  %v978_v7 = vrot.slane %v976_v59, 7  ;;  %v1371_v9 = vor.u32 %v1370_v53, %v1367_v51  ;;  %v1376_v10 = vrot.slane %v1374_v55, 5  ;;  %7375 = vmatprep.mubr.msk.bf16.mxu1 %vm1726_vm11, %v7875_v5  ;;  %v1209_v29 = vld [vmem:[#allocation2 + $0x98] sm:$0x1] }
 0x12f   : > { %v1003_v13 = vrot.slane %v1001_v63, 7  ;;  %v986_v14 = vrot.slane %v984_v2, 7  ;;  %v1380_v18 = vrot.slane %v1378_v57, 4  ;;  %v1384_v17 = vshll.u32 %v1276_v50, 16  ;;  %7376 = vmatmul.mubr.msk.bf16.vlgmr.msra.gmra.mrb[0].mxu1 %vm1726_vm11, %v7876_v11  ;;  %v1277_v51 = vld [vmem:[#allocation2 + $0x38] sm:$0x1] }
 0x130   : > { %v998_v24 = vor.u32 %v996_v56, %v995_v6  ;;  %v999_v21 = vrot.slane %v995_v6, 4  ;;  %v981_v26 = vor.u32 %v979_v60, %v978_v7  ;;  %v982_v27 = vrot.slane %v978_v7, 4  ;;  %7392 = vmatpush3.bf16.msra.mxu1 %v8242_v35  ;;  %v1250_v53 = vld [vmem:[#allocation2 + $0x3c] sm:$0xf] }
 0x131   : > { %v1006_v32 = vor.u32 %v1004_v0, %v1003_v13  ;;  %v1008_v33 = vrot.slane %v1003_v13, 4  ;;  %v989_v34 = vor.u32 %v987_v4, %v986_v14  ;;  %v991_v38 = vrot.slane %v986_v14, 4  ;;  %7859 = vmatprep.subr.msk.bf16.mxu1 %vm1775_vm7, %v8390_v23 }
 0x132   : > { %v1206_v40 = vsel %vm8205_vm13, %v998_v24, %v1205_v61  ;;  %v1199_v41 = vsel %vm8205_vm13, %v981_v26, %v1198_v62  ;;  %v1372_v31 = vrot.slane %v1371_v9, 4  ;;  %v1381_v37 = vor.u32 %v1380_v18, %v1376_v10 }
 0x133   : > { %1207 = vst [vmem:[#allocation2 + $0x90] sm:$0xf] %v1206_v40  ;;  %1200 = vst [vmem:[#allocation2 + $0x84] sm:$0xf] %v1199_v41  ;;  %v1007_v42 = vsel %vm8212_vm14, %v999_v21, %v1006_v32  ;;  %v1210_v35 = vsel %vm8076_vm3, %v1008_v33, %v1209_v29  ;;  %v990_v44 = vsel %vm8212_vm14, %v982_v27, %v989_v34  ;;  %v1386_v50 = vrot.slane %v1384_v17, 5 }
 0x134   : > { %v1203_v45 = vsel %vm8076_vm3, %v991_v38, %v1202_v30  ;;  %1208 = vst.msk [vmem:[#allocation2 + $0x94] sm:$0xf] %vm585_vm6, %v1007_v42  ;;  %1211 = vst [vmem:[#allocation2 + $0x98] sm:$0x1] %v1210_v35  ;;  %v1377_v19 = vsel %vm8137_vm10, %v1372_v31, %v1376_v10  ;;  %v1382_v47 = vrot.slane %v1381_v37, 4  ;;  %v1389_v52 = vshrl.u32 %v1248_v39, 16 }
 0x135   : > { %1201 = vst.msk [vmem:[#allocation2 + $0x88] sm:$0xf] %vm585_vm6, %v990_v44  ;;  %1204 = vst [vmem:[#allocation2 + $0x8c] sm:$0x1] %v1203_v45  ;;  %v1392_v55 = vshll.u32 %v1248_v39, 16  ;;  %v1398_v57 = vshll.u32 %v1249_v43, 16  ;;  %v531_v61 = vadd.f32 %v8334_v15, %v8192_v20  ;;  %v523_v62 = vadd.f32 %v8192_v20, %v8336_v22 }
 0x136   : > { %v1402_v58 = vshrl.u32 %v1249_v43, 16  ;;  %v1408_v56 = vshll.u32 %v1277_v51, 16  ;;  %v1387_v59 = vsel %vm8137_vm10, %v1382_v47, %v1386_v50  ;;  %v1391_v60 = vrot.slane %v1389_v52, 4  ;;  %v1219_v34 = vld [vmem:[#allocation2 + $0xa8] sm:$0xf] }
 0x137   : > { %v6576_v63 = vcombine.low %v1377_v19, %v1387_v59  ;;  %v1394_v0 = vrot.slane %v1392_v55, 5  ;;  %v1400_v2 = vrot.slane %v1398_v57, 5  ;;  %v579_v6 = vmax.f32 %v531_v61, 0.0  ;;  %6189 = vrot.lane.b32.xlu0 %v531_v61, %s7966_s17  ;;  %v1212_v38 = vld [vmem:[#allocation2 + $0x9c] sm:$0xf] }
 0x138   : > { %v1404_v4 = vrot.slane %v1402_v58, 4  ;;  %v1410_v5 = vrot.slane %v1408_v56, 5  ;;  %v577_v7 = vmax.f32 %v523_v62, 0.0  ;;  %v534_v9 = vadd.f32 %v8338_v28, %v8192_v20  ;;  %v8430_v51 = vld [vmem:[#allocation2 + $0x40] sm:$0xf] }
 0x139   : > { %7262 = vmatmul.mubr.msk.bf16.gmra.mrb[36].mxu0 %vm1726_vm11, %v6576_v63  ;;  %v1395_v10 = vor.u32 %v1394_v0, %v1391_v60  ;;  %v526_v15 = vadd.f32 %v8192_v20, %v8344_v36  ;;  %v1413_v22 = vshrl.u32 %v1250_v53, 16  ;;  %v6996_v13 = vpack.c.bf16 %v579_v6, %v579_v6  ;;  %v1278_v47 = vld [vmem:[#allocation2 + $0x44] sm:$0x1] }
 0x13a   : > { %v1405_v11 = vor.u32 %v1404_v4, %v1400_v2  ;;  %v6994_v14 = vpack.c.bf16 %v577_v7, %v577_v7  ;;  %v580_v18 = vmax.f32 %v534_v9, 0.0  ;;  %v1416_v17 = vshll.u32 %v1250_v53, 16  ;;  %6191 = vrot.lane.b32.xlu1 %v534_v9, %s7966_s17  ;;  %v1216_v63 = vld [vmem:[#allocation2 + $0xa4] sm:$0x1]  ;;  %v8442_v9 = vld [vmem:[#allocation2 + $0x48] sm:$0xf] }
 0x13b   : > { %v1396_v24 = vrot.slane %v1395_v10, 4  ;;  %v578_v26 = vmax.f32 %v526_v15, 0.0  ;;  %v1415_v28 = vrot.slane %v1413_v22, 4  ;;  %v1027_v27 = vshrl.u32 %v6996_v13, 16  ;;  %6185 = vrot.lane.b32.xlu0 %v523_v62, %s7966_s17  ;;  %v7878_v41 = vld [vmem:[#allocation2 + $0x90] sm:$0xff]  }
 0x13c   : > { %v1406_v21 = vrot.slane %v1405_v11, 4  ;;  %v1030_v29 = vshll.u32 %v6996_v13, 16  ;;  %v1010_v30 = vshrl.u32 %v6994_v14, 16  ;;  %v1013_v32 = vshll.u32 %v6994_v14, 16  ;;  %v7877_v33 = vld [vmem:[#allocation2 + $0x84] sm:$0xff]  }
 0x13d   : > { %v1401_v20 = vsel %vm8137_vm10, %v1396_v24, %v1400_v2  ;;  %v6997_v39 = vpack.c.bf16 %v580_v18, %v580_v18  ;;  %v6995_v40 = vpack.c.bf16 %v578_v26, %v578_v26  ;;  %v1029_v37 = vrot.slane %v1027_v27, 7  ;;  %7379 = vmatprep.mubr.msk.bf16.mxu1 %vm1726_vm11, %v7877_v33  ;;  %v1223_v62 = vld [vmem:[#allocation2 + $0xb0] sm:$0x1]  ;;  %v8444_v10 = vld [vmem:[#allocation2 + $0x4c] sm:$0xf] }
 0x13e   : > { %v1411_v36 = vsel %vm8137_vm10, %v1406_v21, %v1410_v5  ;;  %v1012_v43 = vrot.slane %v1010_v30, 7  ;;  %v1418_v42 = vrot.slane %v1416_v17, 5  ;;  %6187 = vrot.lane.b32.xlu1 %v526_v15, %s7966_s17  ;;  %7380 = vmatmul.mubr.msk.bf16.gmra.mrb[4].mxu1 %vm1726_vm11, %v7878_v41  ;;  %v1422_v59 = vshll.u32 %v8430_v51, 16  ;;  %v1279_v14 = vld [vmem:[#allocation2 + $0x50] sm:$0x1] }
 0x13f   : > { %v6577_v31 = vcombine.low %v1401_v20, %v1411_v36  ;;  %v1035_v35 = vshrl.u32 %v6997_v39, 16  ;;  %v1038_v44 = vshll.u32 %v6997_v39, 16  ;;  %v1018_v45 = vshrl.u32 %v6995_v40, 16  ;;  %v7916_v20 = vld [vmem:[%s9997_s2] ss:$0 sm:$0xff] }
 0x140   : > { %v1021_v19 = vshll.u32 %v6995_v40, 16  ;;  %v1032_v50 = vor.u32 %v1030_v29, %v1029_v37  ;;  %v1033_v52 = vrot.slane %v1029_v37, 4  ;;  %v1015_v53 = vor.u32 %v1013_v32, %v1012_v43  ;;  %v8467_v41 = vld [vmem:[#allocation2 + $0x54] sm:$0xf] }
 0x141   : > { %7265 = vmatprep.mubr.msk.bf16.mxu0 %vm1726_vm11, %v6577_v31  ;;  %v1016_v55 = vrot.slane %v1012_v43, 4  ;;  %v1037_v57 = vrot.slane %v1035_v35, 7  ;;  %v1020_v58 = vrot.slane %v1018_v45, 7  ;;  %v1419_v56 = vor.u32 %v1418_v42, %v1415_v28 }
 0x142   : > { %v1220_v60 = vsel %vm8205_vm13, %v1032_v50, %v1219_v34  ;;  %v1213_v61 = vsel %vm8205_vm13, %v1015_v53, %v1212_v38  ;;  %v1426_v0 = vshrl.u32 %v8430_v51, 16  ;;  %v1432_v2 = vshll.u32 %v1278_v47, 16 }
 0x143   : > { %1221 = vst [vmem:[#allocation2 + $0xa8] sm:$0xf] %v1220_v60  ;;  %1214 = vst [vmem:[#allocation2 + $0x9c] sm:$0xf] %v1213_v61  ;;  %v1040_v4 = vor.u32 %v1038_v44, %v1037_v57  ;;  %v1042_v5 = vrot.slane %v1037_v57, 4  ;;  %v1023_v6 = vor.u32 %v1021_v19, %v1020_v58  ;;  %v1025_v7 = vrot.slane %v1020_v58, 4 }
 0x144   : > { %v1420_v11 = vrot.slane %v1419_v56, 4  ;;  %v1424_v15 = vrot.slane %v1422_v59, 5  ;;  %v1428_v22 = vrot.slane %v1426_v0, 4  ;;  %v1434_v13 = vrot.slane %v1432_v2, 5 }
 0x145   : > { %v1041_v18 = vsel %vm8212_vm14, %v1033_v52, %v1040_v4  ;;  %v1224_v17 = vsel %vm8076_vm3, %v1042_v5, %v1223_v62  ;;  %v1024_v24 = vsel %vm8212_vm14, %v1016_v55, %v1023_v6  ;;  %v1217_v21 = vsel %vm8076_vm3, %v1025_v7, %v1216_v63  ;;  %v1233_v4 = vld [vmem:[#allocation2 + $0xc0] sm:$0xf] }
 0x146   : > { %1222 = vst.msk [vmem:[#allocation2 + $0xac] sm:$0xf] %vm585_vm6, %v1041_v18  ;;  %1225 = vst [vmem:[#allocation2 + $0xb0] sm:$0x1] %v1224_v17  ;;  %v1425_v26 = vsel %vm8137_vm10, %v1420_v11, %v1424_v15  ;;  %v1429_v28 = vor.u32 %v1428_v22, %v1424_v15  ;;  %v1437_v27 = vshrl.u32 %v8442_v9, 16  ;;  %v1440_v29 = vshll.u32 %v8442_v9, 16 }
 0x147   : > { %1215 = vst.msk [vmem:[#allocation2 + $0xa0] sm:$0xf] %vm585_vm6, %v1024_v24  ;;  %1218 = vst [vmem:[#allocation2 + $0xa4] sm:$0x1] %v1217_v21  ;;  %v1446_v30 = vshll.u32 %v8444_v10, 16  ;;  %v1450_v32 = vshrl.u32 %v8444_v10, 16  ;;  %v547_v36 = vadd.f32 %v7916_v20, %v8348_v3  ;;  %v539_v40 = vadd.f32 %v7916_v20, %v8352_v8 }
 0x148   : > { %v1456_v33 = vshll.u32 %v1279_v14, 16  ;;  %v1430_v34 = vrot.slane %v1429_v28, 4  ;;  %v1439_v38 = vrot.slane %v1437_v27, 4  ;;  %v1442_v39 = vrot.slane %v1440_v29, 5  ;;  %v8482_v14 = vld [vmem:[#allocation2 + $0x58] sm:$0xf] }
 0x149   : > { %v1448_v31 = vrot.slane %v1446_v30, 5  ;;  %v1452_v37 = vrot.slane %v1450_v32, 4  ;;  %v583_v42 = vmax.f32 %v547_v36, 0.0  ;;  %v581_v45 = vmax.f32 %v539_v40, 0.0  ;;  %6193 = vrot.lane.b32.xlu0 %v539_v40, %s7966_s17  ;;  %v1226_v24 = vld [vmem:[#allocation2 + $0xb4] sm:$0xf] }
 0x14a   : > { %v1458_v43 = vrot.slane %v1456_v33, 5  ;;  %v1435_v35 = vsel %vm8137_vm10, %v1430_v34, %v1434_v13  ;;  %v1443_v44 = vor.u32 %v1442_v39, %v1439_v38  ;;  %v550_v19 = vadd.f32 %v7916_v20, %v8362_v16  ;;  %v1237_v30 = vld [vmem:[#allocation2 + $0xc8] sm:$0x1] }
 0x14b   : > { %v6578_v3 = vcombine.low %v1425_v26, %v1435_v35  ;;  %v1453_v47 = vor.u32 %v1452_v37, %v1448_v31  ;;  %v7000_v50 = vpack.c.bf16 %v583_v42, %v583_v42  ;;  %v542_v8 = vadd.f32 %v7916_v20, %v8366_v25  ;;  %v1230_v37 = vld [vmem:[#allocation2 + $0xbc] sm:$0x1]  ;;  %v8495_v42 = vld [vmem:[#allocation2 + $0x60] sm:$0xf] }
 0x14c   : > { %v1444_v52 = vrot.slane %v1443_v44, 4  ;;  %v6998_v53 = vpack.c.bf16 %v581_v45, %v581_v45  ;;  %v584_v55 = vmax.f32 %v550_v19, 0.0  ;;  %v1461_v57 = vshrl.u32 %v8467_v41, 16 }
 0x14d   : > { %7266 = vmatmul.mubr.msk.bf16.gmra.mrb[40].mxu0 %vm1726_vm11, %v6578_v3  ;;  %v1454_v58 = vrot.slane %v1453_v47, 4  ;;  %v1061_v56 = vshrl.u32 %v7000_v50, 16  ;;  %v1064_v59 = vshll.u32 %v7000_v50, 16  ;;  %v582_v60 = vmax.f32 %v542_v8, 0.0  ;;  %6195 = vrot.lane.b32.xlu1 %v542_v8, %s7966_s17  ;;  %v7880_v7 = vld [vmem:[#allocation2 + $0xa8] sm:$0xff]  }
 0x14e   : > { %v1449_v16 = vsel %vm8137_vm10, %v1444_v52, %v1448_v31  ;;  %v1044_v61 = vshrl.u32 %v6998_v53, 16  ;;  %v1047_v62 = vshll.u32 %v6998_v53, 16  ;;  %v7001_v63 = vpack.c.bf16 %v584_v55, %v584_v55  ;;  %6197 = vrot.lane.b32.xlu0 %v547_v36, %s7966_s17  ;;  %v7879_v25 = vld [vmem:[#allocation2 + $0x9c] sm:$0xff]   ;;  %v8497_v3 = vld [vmem:[#allocation2 + $0x64] sm:$0xf] }
 0x14f   : > { %v1459_v0 = vsel %vm8137_vm10, %v1454_v58, %v1458_v43  ;;  %v1063_v2 = vrot.slane %v1061_v56, 7  ;;  %v6999_v5 = vpack.c.bf16 %v582_v60, %v582_v60  ;;  %v1463_v6 = vrot.slane %v1461_v57, 4  ;;  %7383 = vmatprep.mubr.msk.bf16.mxu1 %vm1726_vm11, %v7879_v25  ;;  %v1280_v36 = vld [vmem:[#allocation2 + $0x5c] sm:$0x1]  ;;  %v1281_v52 = vld [vmem:[#allocation2 + $0x68] sm:$0x1] }
 0x150   : > { %v6579_v11 = vcombine.low %v1449_v16, %v1459_v0  ;;  %v1046_v15 = vrot.slane %v1044_v61, 7  ;;  %v1069_v22 = vshrl.u32 %v7001_v63, 16  ;;  %v1072_v13 = vshll.u32 %v7001_v63, 16  ;;  %7384 = vmatmul.mubr.msk.bf16.gmra.mrb[8].mxu1 %vm1726_vm11, %v7880_v7  ;;  %v8509_v56 = vld [vmem:[#allocation2 + $0x6c] sm:$0xf] }
 0x151   : > { %v1066_v18 = vor.u32 %v1064_v59, %v1063_v2  ;;  %v1067_v17 = vrot.slane %v1063_v2, 4  ;;  %v1052_v21 = vshrl.u32 %v6999_v5, 16  ;;  %v1055_v26 = vshll.u32 %v6999_v5, 16  ;;  %6199 = vrot.lane.b32.xlu1 %v550_v19, %s7966_s17  ;;  %v8515_v0 = vld [vmem:[#allocation2 + $0x70] sm:$0xf] }
 0x152   : > { %7269 = vmatprep.mubr.msk.bf16.mxu0 %vm1726_vm11, %v6579_v11  ;;  %v1049_v28 = vor.u32 %v1047_v62, %v1046_v15  ;;  %v1050_v27 = vrot.slane %v1046_v15, 4  ;;  %v1071_v29 = vrot.slane %v1069_v22, 7  ;;  %v1464_v32 = vshll.u32 %v8467_v41, 16  ;;  %v8517_v2 = vld [vmem:[#allocation2 + $0x78] sm:$0xf] }
 0x153   : > { %v1234_v33 = vsel %vm8205_vm13, %v1066_v18, %v1233_v4  ;;  %v1054_v20 = vrot.slane %v1052_v21, 7  ;;  %v1470_v34 = vshll.u32 %v8482_v14, 16  ;;  %v1474_v38 = vshrl.u32 %v8482_v14, 16  ;;  %v1282_v7 = vld [vmem:[#allocation2 + $0x74] sm:$0x1] }
 0x154   : > { %1235 = vst [vmem:[#allocation2 + $0xc0] sm:$0xf] %v1234_v33  ;;  %v1227_v39 = vsel %vm8205_vm13, %v1049_v28, %v1226_v24  ;;  %v1074_v40 = vor.u32 %v1072_v13, %v1071_v29  ;;  %v1076_v31 = vrot.slane %v1071_v29, 4  ;;  %v1466_v43 = vrot.slane %v1464_v32, 5  ;;  %v8526_v28 = vld [vmem:[#allocation2 + $0x7c] sm:$0xf] }
 0x155   : > { %1228 = vst [vmem:[#allocation2 + $0xb4] sm:$0xf] %v1227_v39  ;;  %v1057_v35 = vor.u32 %v1055_v26, %v1054_v20  ;;  %v1059_v44 = vrot.slane %v1054_v20, 4  ;;  %v1472_v45 = vrot.slane %v1470_v34, 5  ;;  %v1476_v19 = vrot.slane %v1474_v38, 4 }
 0x156   : > { %v1075_v47 = vsel %vm8212_vm14, %v1067_v17, %v1074_v40  ;;  %v1238_v48 = vsel %vm8076_vm3, %v1076_v31, %v1237_v30  ;;  %v1467_v50 = vor.u32 %v1466_v43, %v1463_v6  ;;  %v1480_v8 = vshll.u32 %v1280_v36, 16  ;;  %v1283_v33 = vld [vmem:[#allocation2 + $0x80] sm:$0x1] }
 0x157   : > { %1236 = vst.msk [vmem:[#allocation2 + $0xc4] sm:$0xf] %vm585_vm6, %v1075_v47  ;;  %1239 = vst [vmem:[#allocation2 + $0xc8] sm:$0x1] %v1238_v48  ;;  %v1058_v53 = vsel %vm8212_vm14, %v1050_v27, %v1057_v35  ;;  %v1231_v55 = vsel %vm8076_vm3, %v1059_v44, %v1230_v37  ;;  %v1477_v57 = vor.u32 %v1476_v19, %v1472_v45  ;;  %v1485_v58 = vshrl.u32 %v8495_v42, 16 }
 0x158   : > { %1229 = vst.msk [vmem:[#allocation2 + $0xb8] sm:$0xf] %vm585_vm6, %v1058_v53  ;;  %1232 = vst [vmem:[#allocation2 + $0xbc] sm:$0x1] %v1231_v55  ;;  %v1468_v59 = vrot.slane %v1467_v50, 4  ;;  %v1482_v60 = vrot.slane %v1480_v8, 5 }
 0x159   : > { %v1488_v16 = vshll.u32 %v8495_v42, 16  ;;  %v1494_v61 = vshll.u32 %v8497_v3, 16  ;;  %v1478_v62 = vrot.slane %v1477_v57, 4  ;;  %v1487_v1 = vrot.slane %v1485_v58, 4  ;;  %v8535_v47 = vld [vmem:[#allocation2 + $0x84] sm:$0xf] }
 0x15a   : > { %v1498_v63 = vshrl.u32 %v8497_v3, 16  ;;  %v1504_v25 = vshll.u32 %v1281_v52, 16  ;;  %v1473_v4 = vsel %vm8137_vm10, %v1468_v59, %v1472_v45  ;;  %v1509_v11 = vshrl.u32 %v8509_v56, 16  ;;  %v8540_v55 = vld [vmem:[#allocation2 + $0x88] sm:$0xf] }
 0x15b   : > { %v1490_v5 = vrot.slane %v1488_v16, 5  ;;  %v1496_v6 = vrot.slane %v1494_v61, 5  ;;  %v1483_v15 = vsel %vm8137_vm10, %v1478_v62, %v1482_v60  ;;  %v1512_v18 = vshll.u32 %v8509_v56, 16 }
 0x15c   : > { %v1500_v22 = vrot.slane %v1498_v63, 4  ;;  %v1506_v13 = vrot.slane %v1504_v25, 5  ;;  %v6580_v17 = vcombine.low %v1473_v4, %v1483_v15  ;;  %v1511_v21 = vrot.slane %v1509_v11, 4 }
 0x15d   : > { %v1491_v24 = vor.u32 %v1490_v5, %v1487_v1  ;;  %v1518_v26 = vshll.u32 %v8515_v0, 16  ;;  %v1514_v29 = vrot.slane %v1512_v18, 5  ;;  %v1522_v30 = vshrl.u32 %v8515_v0, 16  ;;  %v1284_v1 = vld [vmem:[#allocation2 + $0x8c] sm:$0x1] }
 0x15e   : > { %v1501_v27 = vor.u32 %v1500_v22, %v1496_v6  ;;  %v1528_v32 = vshll.u32 %v1282_v7, 16  ;;  %7270 = vmatmul.mubr.msk.bf16.gmra.mrb[44].mxu0 %vm1726_vm11, %v6580_v17  ;;  %v1533_v34 = vshrl.u32 %v8517_v2, 16  ;;  %v1536_v38 = vshll.u32 %v8517_v2, 16  ;;  %v7882_v48 = vld [vmem:[#allocation2 + $0xc0] sm:$0xff]   ;;  %v8550_v7 = vld [vmem:[#allocation2 + $0x90] sm:$0xf] }
 0x15f   : > { %v1492_v20 = vrot.slane %v1491_v24, 4  ;;  %v1520_v36 = vrot.slane %v1518_v26, 5  ;;  %v1515_v40 = vor.u32 %v1514_v29, %v1511_v21  ;;  %v1524_v31 = vrot.slane %v1522_v30, 4  ;;  %v7881_v43 = vld [vmem:[#allocation2 + $0xb4] sm:$0xff]  }
 0x160   : > { %v1502_v39 = vrot.slane %v1501_v27, 4  ;;  %v1530_v37 = vrot.slane %v1528_v32, 5  ;;  %v1535_v44 = vrot.slane %v1533_v34, 4  ;;  %v1538_v45 = vrot.slane %v1536_v38, 5  ;;  %7387 = vmatprep.mubr.msk.bf16.mxu1 %vm1726_vm11, %v7881_v43  ;;  %v8555_v18 = vld [vmem:[#allocation2 + $0x94] sm:$0xf] }
 0x161   : > { %v1497_v35 = vsel %vm8137_vm10, %v1492_v20, %v1496_v6  ;;  %v1542_v19 = vshll.u32 %v8526_v28, 16  ;;  %v1516_v8 = vrot.slane %v1515_v40, 4  ;;  %v1525_v52 = vor.u32 %v1524_v31, %v1520_v36  ;;  %7388 = vmatmul.mubr.msk.bf16.gmra.mrb[12].mxu1 %vm1726_vm11, %v7882_v48  ;;  %v1285_v32 = vld [vmem:[#allocation2 + $0x98] sm:$0x1] }
 0x162   : > { %v1507_v50 = vsel %vm8137_vm10, %v1502_v39, %v1506_v13  ;;  %v1546_v53 = vshrl.u32 %v8526_v28, 16  ;;  %v1539_v58 = vor.u32 %v1538_v45, %v1535_v44  ;;  %v1552_v60 = vshll.u32 %v1283_v33, 16  ;;  %v8564_v39 = vld [vmem:[#allocation2 + $0x9c] sm:$0xf] }
 0x163   : > { %v6581_v57 = vcombine.low %v1497_v35, %v1507_v50  ;;  %v1544_v59 = vrot.slane %v1542_v19, 5  ;;  %v1521_v16 = vsel %vm8137_vm10, %v1516_v8, %v1520_v36  ;;  %v1526_v61 = vrot.slane %v1525_v52, 4  ;;  %v8568_v35 = vld [vmem:[#allocation2 + $0xa0] sm:$0xf] }
 0x164   : > { %v1548_v62 = vrot.slane %v1546_v53, 4  ;;  %v1557_v63 = vshrl.u32 %v8535_v47, 16  ;;  %v1540_v25 = vrot.slane %v1539_v58, 4  ;;  %v1554_v4 = vrot.slane %v1552_v60, 5  ;;  %v1286_v60 = vld [vmem:[#allocation2 + $0xa4] sm:$0x1] }
 0x165   : > { %7273 = vmatprep.mubr.msk.bf16.mxu0 %vm1726_vm11, %v6581_v57  ;;  %v1560_v5 = vshll.u32 %v8535_v47, 16  ;;  %v1566_v6 = vshll.u32 %v8540_v55, 16  ;;  %v1531_v11 = vsel %vm8137_vm10, %v1526_v61, %v1530_v37  ;;  %v1570_v13 = vshrl.u32 %v8540_v55, 16  ;;  %v8571_v57 = vld [vmem:[#allocation2 + $0xa8] sm:$0xf] }
 0x166   : > { %v1549_v15 = vor.u32 %v1548_v62, %v1544_v59  ;;  %v1559_v22 = vrot.slane %v1557_v63, 4  ;;  %v6582_v17 = vcombine.low %v1521_v16, %v1531_v11  ;;  %v1545_v24 = vsel %vm8137_vm10, %v1540_v25, %v1544_v59 }
 0x167   : > { %v1562_v21 = vrot.slane %v1560_v5, 5  ;;  %v1568_v26 = vrot.slane %v1566_v6, 5  ;;  %v1572_v29 = vrot.slane %v1570_v13, 4  ;;  %v1576_v30 = vshll.u32 %v1284_v1, 16 }
 0x168   : > { %v1550_v27 = vrot.slane %v1549_v15, 4  ;;  %v1581_v33 = vshrl.u32 %v8550_v7, 16  ;;  %7274 = vmatmul.mubr.msk.bf16.gmra.mrb[48].mxu0 %vm1726_vm11, %v6582_v17  ;;  %v1584_v36 = vshll.u32 %v8550_v7, 16  ;;  %v1590_v34 = vshll.u32 %v8555_v18, 16 }
 0x169   : > { %v1563_v20 = vor.u32 %v1562_v21, %v1559_v22  ;;  %v1594_v38 = vshrl.u32 %v8555_v18, 16  ;;  %v1573_v31 = vor.u32 %v1572_v29, %v1568_v26  ;;  %v1578_v37 = vrot.slane %v1576_v30, 5  ;;  %v3047_v22 = vld [vmem:[#allocation2 + $0xc] sm:$0xf]  ;;  %v1287_v29 = vld [vmem:[#allocation2 + $0xb0] sm:$0x1] }
 0x16a   : > { %v1555_v40 = vsel %vm8137_vm10, %v1550_v27, %v1554_v4  ;;  %v1583_v43 = vrot.slane %v1581_v33, 4  ;;  %v1586_v19 = vrot.slane %v1584_v36, 5  ;;  %v1592_v48 = vrot.slane %v1590_v34, 5  ;;  %v8580_v4 = vld [vmem:[#allocation2 + $0xac] sm:$0xf] }
 0x16b   : > { %v6583_v44 = vcombine.low %v1545_v24, %v1555_v40  ;;  %v1564_v45 = vrot.slane %v1563_v20, 4  ;;  %v1574_v50 = vrot.slane %v1573_v31, 4  ;;  %v1596_v8 = vrot.slane %v1594_v38, 4  ;;  %v8591_v38 = vld [vmem:[#allocation2 + $0x10] sm:$0xf] }
 0x16c   : > { %v1600_v52 = vshll.u32 %v1285_v32, 16  ;;  %v1605_v53 = vshrl.u32 %v8564_v39, 16  ;;  %v1587_v59 = vor.u32 %v1586_v19, %v1583_v43  ;;  %v1608_v16 = vshll.u32 %v8564_v39, 16 }
 0x16d   : > { %7277 = vmatprep.mubr.msk.bf16.mxu0 %vm1726_vm11, %v6583_v44  ;;  %v1569_v58 = vsel %vm8137_vm10, %v1564_v45, %v1568_v26  ;;  %v1614_v61 = vshll.u32 %v8568_v35, 16  ;;  %v1579_v62 = vsel %vm8137_vm10, %v1574_v50, %v1578_v37  ;;  %v1597_v1 = vor.u32 %v1596_v8, %v1592_v48  ;;  %v8593_v44 = vld [vmem:[#allocation2 + $0x14] sm:$0x1] }
 0x16e   : > { %v1602_v63 = vrot.slane %v1600_v52, 5  ;;  %v1607_v25 = vrot.slane %v1605_v53, 4  ;;  %v6584_v5 = vcombine.low %v1569_v58, %v1579_v62  ;;  %v1588_v6 = vrot.slane %v1587_v59, 4  ;;  %v8600_v59 = vld [vmem:[#allocation2 + $0xb4] sm:$0xf] }
 0x16f   : > { %v1610_v11 = vrot.slane %v1608_v16, 5  ;;  %v1616_v15 = vrot.slane %v1614_v61, 5  ;;  %v1598_v13 = vrot.slane %v1597_v1, 4  ;;  %v1618_v17 = vshrl.u32 %v8568_v35, 16  ;;  %v8602_v1 = vld [vmem:[#allocation2 + $0xb8] sm:$0xf] }
 0x170   : > { %v1624_v24 = vshll.u32 %v1286_v60, 16  ;;  %v1629_v21 = vshrl.u32 %v8571_v57, 16  ;;  %7278 = vmatmul.mubr.msk.bf16.gmra.mrb[52].mxu0 %vm1726_vm11, %v6584_v5  ;;  %v1593_v26 = vsel %vm8137_vm10, %v1588_v6, %v1592_v48  ;;  %v1632_v30 = vshll.u32 %v8571_v57, 16 }
 0x171   : > { %v1611_v27 = vor.u32 %v1610_v11, %v1607_v25  ;;  %v1638_v32 = vshll.u32 %v8580_v4, 16  ;;  %v1603_v33 = vsel %vm8137_vm10, %v1598_v13, %v1602_v63  ;;  %v1620_v20 = vrot.slane %v1618_v17, 4  ;;  %v1288_v11 = vld [vmem:[#allocation2 + $0xbc] sm:$0x1]  ;;  %v3050_v13 = vld [vmem:[#allocation2 + $0x18] sm:$0xf] }
 0x172   : > { %v1626_v36 = vrot.slane %v1624_v24, 5  ;;  %v1631_v34 = vrot.slane %v1629_v21, 4  ;;  %v6585_v40 = vcombine.low %v1593_v26, %v1603_v33  ;;  %v1634_v37 = vrot.slane %v1632_v30, 5 }
 0x173   : > { %v1612_v31 = vrot.slane %v1611_v27, 4  ;;  %v1640_v43 = vrot.slane %v1638_v32, 5  ;;  %v1621_v45 = vor.u32 %v1620_v20, %v1616_v15  ;;  %v1642_v19 = vshrl.u32 %v8580_v4, 16 }
 0x174   : > { %v1648_v48 = vshll.u32 %v1287_v29, 16  ;;  %v3096_v50 = vshrl.u32 %v3047_v22, 16  ;;  %7281 = vmatprep.mubr.msk.bf16.mxu0 %vm1726_vm11, %v6585_v40  ;;  %v1635_v52 = vor.u32 %v1634_v37, %v1631_v34  ;;  %v3099_v53 = vshll.u32 %v3047_v22, 16  ;;  %v8612_v34 = vld [vmem:[#allocation2 + $0x1c] sm:$0xf] }
 0x175   : > { %v1617_v8 = vsel %vm8137_vm10, %v1612_v31, %v1616_v15  ;;  %v3105_v58 = vshll.u32 %v8591_v38, 16  ;;  %v1622_v60 = vrot.slane %v1621_v45, 4  ;;  %v1644_v16 = vrot.slane %v1642_v19, 4  ;;  %v8617_v45 = vld [vmem:[#allocation2 + $0x20] sm:$0x1] }
 0x176   : > { %v1650_v61 = vrot.slane %v1648_v48, 5  ;;  %v3098_v62 = vrot.slane %v3096_v50, 4  ;;  %v1636_v63 = vrot.slane %v1635_v52, 4  ;;  %v3101_v25 = vrot.slane %v3099_v53, 5 }
 0x177   : > { %v3107_v5 = vrot.slane %v3105_v58, 5  ;;  %v3109_v6 = vshrl.u32 %v8591_v38, 16  ;;  %v1627_v15 = vsel %vm8137_vm10, %v1622_v60, %v1626_v36  ;;  %v1645_v22 = vor.u32 %v1644_v16, %v1640_v43  ;;  %v3053_v60 = vld [vmem:[#allocation2 + $0x24] sm:$0xf] }
 0x178   : > { %v3115_v17 = vshll.u32 %v8593_v44, 16  ;;  %v1653_v24 = vshrl.u32 %v8600_v59, 16  ;;  %v6586_v21 = vcombine.low %v1617_v8, %v1627_v15  ;;  %v1641_v26 = vsel %vm8137_vm10, %v1636_v63, %v1640_v43 }
 0x179   : > { %v3102_v27 = vor.u32 %v3101_v25, %v3098_v62  ;;  %v3111_v29 = vrot.slane %v3109_v6, 4  ;;  %v1646_v30 = vrot.slane %v1645_v22, 4  ;;  %v1656_v20 = vshll.u32 %v8600_v59, 16  ;;  %v8623_v6 = vld [vmem:[#allocation2 + $0x28] sm:$0xf] }
 0x17a   : > { %v3117_v32 = vrot.slane %v3115_v17, 5  ;;  %v1655_v33 = vrot.slane %v1653_v24, 4  ;;  %7282 = vmatmul.mubr.msk.bf16.gmra.mrb[56].mxu0 %vm1726_vm11, %v6586_v21  ;;  %v1662_v31 = vshll.u32 %v8602_v1, 16  ;;  %v1666_v37 = vshrl.u32 %v8602_v1, 16 }
 0x17b   : > { %v3103_v36 = vrot.slane %v3102_v27, 4  ;;  %v3112_v40 = vor.u32 %v3111_v29, %v3107_v5  ;;  %v1651_v43 = vsel %vm8137_vm10, %v1646_v30, %v1650_v61  ;;  %v1658_v19 = vrot.slane %v1656_v20, 5 }
 0x17c   : > { %v1672_v48 = vshll.u32 %v1288_v11, 16  ;;  %v3120_v50 = vshrl.u32 %v3050_v13, 16  ;;  %v6587_v8 = vcombine.low %v1641_v26, %v1651_v43  ;;  %v1664_v58 = vrot.slane %v1662_v31, 5 }
 0x17d   : > { %v3108_v52 = vsel %vm8137_vm10, %v3103_v36, %v3107_v5  ;;  %v3113_v53 = vrot.slane %v3112_v40, 4  ;;  %v1659_v16 = vor.u32 %v1658_v19, %v1655_v33  ;;  %v1668_v62 = vrot.slane %v1666_v37, 4  ;;  %v8633_v33 = vld [vmem:[#allocation2 + $0x2c] sm:$0x1]  ;;  %v3056_v19 = vld [vmem:[#allocation2 + $0x30] sm:$0xf] }
 0x17e   : > { %v1674_v63 = vrot.slane %v1672_v48, 5  ;;  %v3122_v25 = vrot.slane %v3120_v50, 4  ;;  %7285 = vmatprep.mubr.msk.bf16.mxu0 %vm1726_vm11, %v6587_v8  ;;  %v3123_v11 = vshll.u32 %v3050_v13, 16  ;;  %v3129_v15 = vshll.u32 %v8612_v34, 16 }
 0x17f   : > { %v3118_v61 = vsel %vm8137_vm10, %v3113_v53, %v3117_v32  ;;  %v3133_v22 = vshrl.u32 %v8612_v34, 16  ;;  %v1660_v17 = vrot.slane %v1659_v16, 4  ;;  %v1669_v24 = vor.u32 %v1668_v62, %v1664_v58 }
 0x180   : > { %v6720_v5 = vcombine.low %v3108_v52, %v3118_v61  ;;  %v3139_v21 = vshll.u32 %v8617_v45, 16  ;;  %v3125_v26 = vrot.slane %v3123_v11, 5  ;;  %v3131_v27 = vrot.slane %v3129_v15, 5  ;;  %v8643_v52 = vld [vmem:[#allocation2 + $0x34] sm:$0xf] }
 0x181   : > { %v3135_v29 = vrot.slane %v3133_v22, 4  ;;  %v4048_v30 = vsel %vm1775_vm7, %v8390_v23, 0  ;;  %v1665_v13 = vsel %vm8137_vm10, %v1660_v17, %v1664_v58  ;;  %v1670_v32 = vrot.slane %v1669_v24, 4  ;;  %v8654_v22 = vld [vmem:[%s9998_s3 + $0x8] sm:$0xf] }
 0x182   : > { %7393 = vmatprep.mubr.msk.bf16.mxu1 %vm1726_vm11, %v6720_v5  ;;  %v3141_v20 = vrot.slane %v3139_v21, 5  ;;  %v3144_v36 = vshrl.u32 %v3053_v60, 16  ;;  %v3126_v40 = vor.u32 %v3125_v26, %v3122_v25  ;;  %v3147_v37 = vshll.u32 %v3053_v60, 16  ;;  %v8645_v25 = vld [vmem:[#allocation2 + $0x38] sm:$0x1] }
 0x183   : > { %v3136_v31 = vor.u32 %v3135_v29, %v3131_v27  ;;  %v3153_v43 = vshll.u32 %v8623_v6, 16  ;;  %v1675_v48 = vsel %vm8137_vm10, %v1670_v32, %v1674_v63  ;;  %v3157_v50 = vshrl.u32 %v8623_v6, 16  ;;  %v7917_v63 = vld [vmem:[%s9998_s3] sm:$0xf]  ;;  %v8661_v26 = vld [vmem:[#allocation2 + $0x4] sm:$0xf] }
 0x184   : > { %v3146_v23 = vrot.slane %v3144_v36, 4  ;;  %v3163_v8 = vshll.u32 %v8633_v33, 16  ;;  %v6588_v53 = vcombine.low %v1665_v13, %v1675_v48  ;;  %v3127_v58 = vrot.slane %v3126_v40, 4  ;;  %v7918_v21 = vld [vmem:[#allocation2] sm:$0xf] }
 0x185   : > { %v3137_v16 = vrot.slane %v3136_v31, 4  ;;  %v3149_v62 = vrot.slane %v3147_v37, 5  ;;  %v3155_v60 = vrot.slane %v3153_v43, 5  ;;  %v3159_v61 = vrot.slane %v3157_v50, 4  ;;  %v7920_v36 = vld [vmem:[#allocation2 + $0xc] sm:$0xf] }
 0x186   : > { %v3165_v11 = vrot.slane %v3163_v8, 5  ;;  %v2069_v15 = vsel %vm1775_vm7, %v7917_v63, 0  ;;  %7286 = vmatmul.mubr.msk.bf16.gmra.mrb[60].mxu0 %vm1726_vm11, %v6588_v53  ;;  %v3132_v5 = vsel %vm8137_vm10, %v3127_v58, %v3131_v27  ;;  %v6605_v29 = vcombine.low %v7918_v21, %v8661_v26  ;;  %v8664_v40 = vld [vmem:[#allocation2 + $0x10] sm:$0xf]  ;;  %v3059_v43 = vld [vmem:[#allocation2 + $0x3c] sm:$0xf] }
 0x187   : > { %v3142_v17 = vsel %vm8137_vm10, %v3137_v16, %v3141_v20  ;;  %v3150_v24 = vor.u32 %v3149_v62, %v3146_v23  ;;  %v3160_v32 = vor.u32 %v3159_v61, %v3155_v60  ;;  %7290 = vmatpush3.bf16.msra.mxu0 %v2069_v15  ;;  %v6606_v31 = vcombine.low %v7920_v36, %v8664_v40  ;;  %v8673_v50 = vld [vmem:[%s9998_s3 + $0x18] sm:$0xf]  ;;  %v8682_v61 = vld [vmem:[#allocation2 + $0x40] sm:$0xf] }
 0x188   : > { %v6721_v13 = vcombine.low %v3132_v5, %v3142_v17  ;;  %v3168_v37 = vshrl.u32 %v3056_v19, 16  ;;  %7291 = vmatprep.mubr.msk.bf16.mxu0 %vm1726_vm11, %v6605_v29  ;;  %v3171_v20 = vshll.u32 %v3056_v19, 16  ;;  %v3177_v48 = vshll.u32 %v8643_v52, 16  ;;  %7855 = vmatprep.subr.msk.bf16.mxu0 %vm1775_vm7, %v8654_v22  ;;  %v7922_v16 = vld [vmem:[#allocation2 + $0x18] sm:$0xf] }
 0x189   : > { %v3151_v27 = vrot.slane %v3150_v24, 4  ;;  %v3181_v23 = vshrl.u32 %v8643_v52, 16  ;;  %v3161_v8 = vrot.slane %v3160_v32, 4  ;;  %v3187_v58 = vshll.u32 %v8645_v25, 16  ;;  %v8679_v19 = vld [vmem:[#allocation2 + $0x1c] sm:$0xf] }
 0x18a   : > { %7394 = vmatmul.mubr.msk.bf16.vlgmr.msra.gmra.mrb[16].mxu1 %vm1726_vm11, %v6721_v13  ;;  %v3170_v53 = vrot.slane %v3168_v37, 4  ;;  %v6607_v62 = vcombine.low %v7922_v16, %v8679_v19  ;;  %v3173_v15 = vrot.slane %v3171_v20, 5  ;;  %v3179_v5 = vrot.slane %v3177_v48, 5  ;;  %v8686_v24 = vld [vmem:[#allocation2 + $0x44] sm:$0x1] }
 0x18b   : > { %7426 = vmatpush3.bf16.msra.mxu1 %v4048_v30  ;;  %v3156_v63 = vsel %vm8137_vm10, %v3151_v27, %v3155_v60  ;;  %v3183_v17 = vrot.slane %v3181_v23, 4  ;;  %10040 = vst [vmem:[#allocation6_spill] sm:$0xff] %v8686_v24  ;;  %v3166_v21 = vsel %vm8137_vm10, %v3161_v8, %v3165_v11  ;;  %v3189_v29 = vrot.slane %v3187_v58, 5  ;;  %v3062_v60 = vld [vmem:[#allocation2 + $0x48] sm:$0xf] }
 0x18c   : > { %v3192_v13 = vshrl.u32 %v3059_v43, 16  ;;  %v3195_v32 = vshll.u32 %v3059_v43, 16  ;;  %7860 = vmatprep.subr.msk.bf16.mxu1 %vm1775_vm7, %v8673_v50  ;;  %v6722_v36 = vcombine.low %v3156_v63, %v3166_v21  ;;  %v3174_v37 = vor.u32 %v3173_v15, %v3170_v53  ;;  %v7924_v53 = vld [vmem:[#allocation2 + $0x24] sm:$0xf]  ;;  %v8699_v58 = vld [vmem:[#allocation2 + $0x28] sm:$0xf] }
 0x18d   : > { %v3184_v30 = vor.u32 %v3183_v17, %v3179_v5  ;;  %v3201_v16 = vshll.u32 %v8682_v61, 16  ;;  %v3205_v48 = vshrl.u32 %v8682_v61, 16  ;;  %v3211_v23 = vshll.u32 %v8686_v24, 16  ;;  %v8712_v24 = vld [vmem:[#allocation2 + $0x58] sm:$0xf] }
 0x18e   : > { %v3194_v27 = vrot.slane %v3192_v13, 4  ;;  %v3197_v20 = vrot.slane %v3195_v32, 5  ;;  %7397 = vmatprep.mubr.msk.bf16.mxu1 %vm1726_vm11, %v6722_v36  ;;  %7292 = vmatmul.mubr.msk.bf16.vlgmr.msra.gmra.mrb[32].mxu0 %vm1726_vm11, %v6606_v31  ;;  %v3175_v11 = vrot.slane %v3174_v37, 4  ;;  %v6608_v63 = vcombine.low %v7924_v53, %v8699_v58  ;;  %v8703_v13 = vld [vmem:[#allocation2 + $0x50] sm:$0x1]  ;;  %10042 = vst [vmem:[#allocation8_spill] sm:$0xff] %v8712_v24 }
 0x18f   : > { %v3185_v43 = vrot.slane %v3184_v30, 4  ;;  %v3203_v8 = vrot.slane %v3201_v16, 5  ;;  %7295 = vmatprep.mubr.msk.bf16.mxu0 %vm1726_vm11, %v6607_v62  ;;  %v3207_v17 = vrot.slane %v3205_v48, 4  ;;  %v3213_v21 = vrot.slane %v3211_v23, 5  ;;  %10041 = vst [vmem:[#allocation7_spill] sm:$0xff] %v8703_v13 }
 0x190   : > { %v3198_v15 = vor.u32 %v3197_v20, %v3194_v27  ;;  %v3216_v32 = vshrl.u32 %v3062_v60, 16  ;;  %v3180_v36 = vsel %vm8137_vm10, %v3175_v11, %v3179_v5  ;;  %v3219_v37 = vshll.u32 %v3062_v60, 16  ;;  %v3065_v16 = vld [vmem:[#allocation2 + $0x54] sm:$0xf]  ;;  %v7926_v60 = vld [vmem:[#allocation2 + $0x30] sm:$0xf] }
 0x191   : > { %v3190_v31 = vsel %vm8137_vm10, %v3185_v43, %v3189_v29  ;;  %v3225_v30 = vshll.u32 %v8695_v54, 16  ;;  %v3208_v12 = vor.u32 %v3207_v17, %v3203_v8  ;;  %v3229_v48 = vshrl.u32 %v8695_v54, 16  ;;  %v8717_v11 = vld [vmem:[#allocation2 + $0x34] sm:$0xf] }
 0x192   : > { %v6723_v49 = vcombine.low %v3180_v36, %v3190_v31  ;;  %v3199_v53 = vrot.slane %v3198_v15, 4  ;;  %v3218_v62 = vrot.slane %v3216_v32, 4  ;;  %v3221_v27 = vrot.slane %v3219_v37, 5  ;;  %10043 = vst [vmem:[#allocation9_spill] sm:$0xff] %v8717_v11  ;;  %v8720_v31 = vld [vmem:[#allocation2 + $0x5c] sm:$0x1] }
 0x193   : > { %v3227_v20 = vrot.slane %v3225_v30, 5  ;;  %v3235_v23 = vshll.u32 %v8703_v13, 16  ;;  %v3209_v29 = vrot.slane %v3208_v12, 4  ;;  %v6609_v43 = vcombine.low %v7926_v60, %v8717_v11  ;;  %10044 = vst [vmem:[#allocation10_spill] sm:$0xff] %v8720_v31 }
 0x194   : > { %7398 = vmatmul.mubr.msk.bf16.gmra.mrb[20].mxu1 %vm1726_vm11, %v6723_v49  ;;  %v3204_v5 = vsel %vm8137_vm10, %v3199_v53, %v3203_v8  ;;  %v3240_v15 = vshrl.u32 %v3065_v16, 16  ;;  %v3222_v17 = vor.u32 %v3221_v27, %v3218_v62  ;;  %v3231_v32 = vrot.slane %v3229_v48, 4  ;;  %v3068_v8 = vld [vmem:[#allocation2 + $0x60] sm:$0xf]  ;;  %v8727_v27 = vld [vmem:[#allocation2 + $0x64] sm:$0xf] }
 0x195   : > { %v3237_v36 = vrot.slane %v3235_v23, 5  ;;  %v3243_v37 = vshll.u32 %v3065_v16, 16  ;;  %v3214_v30 = vsel %vm8137_vm10, %v3209_v29, %v3213_v21  ;;  %v3249_v13 = vshll.u32 %v8712_v24, 16  ;;  %v7928_v23 = vld [vmem:[#allocation2 + $0x3c] sm:$0xf] }
 0x196   : > { %v3242_v49 = vrot.slane %v3240_v15, 4  ;;  %v3253_v12 = vshrl.u32 %v8712_v24, 16  ;;  %v6724_v53 = vcombine.low %v3204_v5, %v3214_v30  ;;  %7296 = vmatmul.mubr.msk.bf16.gmra.mrb[36].mxu0 %vm1726_vm11, %v6608_v63  ;;  %v3223_v60 = vrot.slane %v3222_v17, 4  ;;  %v8735_v30 = vld [vmem:[#allocation2 + $0x68] sm:$0x1] }
 0x197   : > { %v3232_v11 = vor.u32 %v3231_v32, %v3227_v20  ;;  %v3245_v62 = vrot.slane %v3243_v37, 5  ;;  %7299 = vmatprep.mubr.msk.bf16.mxu0 %vm1726_vm11, %v6609_v43  ;;  %v3251_v16 = vrot.slane %v3249_v13, 5  ;;  %v3259_v21 = vshll.u32 %v8720_v31, 16 }
 0x198   : > { %v3255_v48 = vrot.slane %v3253_v12, 4  ;;  %v6610_v29 = vcombine.low %v7928_v23, %v8430_v51  ;;  %7401 = vmatprep.mubr.msk.bf16.mxu1 %vm1726_vm11, %v6724_v53  ;;  %v3228_v5 = vsel %vm8137_vm10, %v3223_v60, %v3227_v20  ;;  %v3264_v17 = vshrl.u32 %v3068_v8, 16  ;;  %v3071_v23 = vld [vmem:[#allocation2 + $0x6c] sm:$0xf]  ;;  %v8741_v60 = vld [vmem:[#allocation2 + $0x70] sm:$0xf] }
 0x199   : > { %v3233_v63 = vrot.slane %v3232_v11, 4  ;;  %v3246_v15 = vor.u32 %v3245_v62, %v3242_v49  ;;  %v3261_v37 = vrot.slane %v3259_v21, 5  ;;  %v3267_v43 = vshll.u32 %v3068_v8, 16 }
 0x19a   : > { %v3256_v32 = vor.u32 %v3255_v48, %v3251_v16  ;;  %v3273_v13 = vshll.u32 %v8727_v27, 16  ;;  %v3266_v51 = vrot.slane %v3264_v17, 4  ;;  %v3277_v53 = vshrl.u32 %v8727_v27, 16 }
 0x19b   : > { %v3238_v12 = vsel %vm8137_vm10, %v3233_v63, %v3237_v36  ;;  %v3247_v31 = vrot.slane %v3246_v15, 4  ;;  %v3269_v11 = vrot.slane %v3267_v43, 5  ;;  %v3283_v48 = vshll.u32 %v8735_v30, 16  ;;  %v8751_v63 = vld [vmem:[#allocation2 + $0x74] sm:$0x1] }
 0x19c   : > { %v6725_v24 = vcombine.low %v3228_v5, %v3238_v12  ;;  %v3257_v20 = vrot.slane %v3256_v32, 4  ;;  %v3275_v49 = vrot.slane %v3273_v13, 5  ;;  %v3279_v8 = vrot.slane %v3277_v53, 4  ;;  %10045 = vst [vmem:[#allocation11_spill] sm:$0xff] %v8751_v63  ;;  %v3074_v13 = vld [vmem:[#allocation2 + $0x78] sm:$0xf] }
 0x19d   : > { %v3252_v62 = vsel %vm8137_vm10, %v3247_v31, %v3251_v16  ;;  %v6611_v36 = vcombine.low %v8442_v9, %v8444_v10  ;;  %v3270_v5 = vor.u32 %v3269_v11, %v3266_v51  ;;  %v3288_v15 = vshrl.u32 %v3071_v23, 16 }
 0x19e   : > { %7402 = vmatmul.mubr.msk.bf16.gmra.mrb[24].mxu1 %vm1726_vm11, %v6725_v24  ;;  %v3262_v21 = vsel %vm8137_vm10, %v3257_v20, %v3261_v37  ;;  %v3291_v17 = vshll.u32 %v3071_v23, 16  ;;  %7300 = vmatmul.mubr.msk.bf16.gmra.mrb[40].mxu0 %vm1726_vm11, %v6610_v29  ;;  %v3280_v31 = vor.u32 %v3279_v8, %v3275_v49  ;;  %v3285_v16 = vrot.slane %v3283_v48, 5  ;;  %v8757_v37 = vld [vmem:[#allocation2 + $0x7c] sm:$0xf]  ;;  %v8765_v8 = vld [vmem:[#allocation2 + $0x80] sm:$0x1] }
 0x19f   : > { %v6726_v32 = vcombine.low %v3252_v62, %v3262_v21  ;;  %v3297_v43 = vshll.u32 %v8741_v60, 16  ;;  %v3271_v12 = vrot.slane %v3270_v5, 4  ;;  %7303 = vmatprep.mubr.msk.bf16.mxu0 %vm1726_vm11, %v6611_v36  ;;  %v3290_v9 = vrot.slane %v3288_v15, 4 }
 0x1a0   : > { %v3293_v10 = vrot.slane %v3291_v17, 5  ;;  %v3301_v24 = vshrl.u32 %v8741_v60, 16  ;;  %v3281_v51 = vrot.slane %v3280_v31, 4  ;;  %v3307_v29 = vshll.u32 %v8751_v63, 16  ;;  %v3077_v17 = vld [vmem:[#allocation2 + $0x84] sm:$0xf] }
 0x1a1   : > { %7405 = vmatprep.mubr.msk.bf16.mxu1 %vm1726_vm11, %v6726_v32  ;;  %v3299_v53 = vrot.slane %v3297_v43, 5  ;;  %v6612_v23 = vcombine.low %v8467_v41, %v8482_v14  ;;  %v3276_v20 = vsel %vm8137_vm10, %v3271_v12, %v3275_v49  ;;  %v3312_v48 = vshrl.u32 %v3074_v13, 16 }
 0x1a2   : > { %v3294_v11 = vor.u32 %v3293_v10, %v3290_v9  ;;  %v3303_v62 = vrot.slane %v3301_v24, 4  ;;  %v3286_v36 = vsel %vm8137_vm10, %v3281_v51, %v3285_v16  ;;  %v3309_v21 = vrot.slane %v3307_v29, 5  ;;  %v8772_v9 = vld [vmem:[#allocation2 + $0x88] sm:$0xf] }
 0x1a3   : > { %v3315_v5 = vshll.u32 %v3074_v13, 16  ;;  %v3321_v15 = vshll.u32 %v8757_v37, 16  ;;  %v6727_v32 = vcombine.low %v3276_v20, %v3286_v36  ;;  %v3314_v41 = vrot.slane %v3312_v48, 4 }
 0x1a4   : > { %v3295_v31 = vrot.slane %v3294_v11, 4  ;;  %v3304_v43 = vor.u32 %v3303_v62, %v3299_v53  ;;  %v3325_v49 = vshrl.u32 %v8757_v37, 16  ;;  %v3331_v12 = vshll.u32 %v8765_v8, 16  ;;  %v8780_v11 = vld [vmem:[#allocation2 + $0x8c] sm:$0x1] }
 0x1a5   : > { %v3317_v14 = vrot.slane %v3315_v5, 5  ;;  %v3323_v63 = vrot.slane %v3321_v15, 5  ;;  %v6613_v10 = vcombine.low %v8495_v42, %v8497_v3  ;;  %v3336_v24 = vshrl.u32 %v3077_v17, 16  ;;  %v3080_v42 = vld [vmem:[#allocation2 + $0x90] sm:$0xf] }
 0x1a6   : > { %7406 = vmatmul.mubr.msk.bf16.gmra.mrb[28].mxu1 %vm1726_vm11, %v6727_v32  ;;  %v3300_v16 = vsel %vm8137_vm10, %v3295_v31, %v3299_v53  ;;  %v3305_v13 = vrot.slane %v3304_v43, 4  ;;  %7304 = vmatmul.mubr.msk.bf16.gmra.mrb[44].mxu0 %vm1726_vm11, %v6612_v23  ;;  %v3327_v29 = vrot.slane %v3325_v49, 4  ;;  %v3333_v20 = vrot.slane %v3331_v12, 5  ;;  %v8787_v31 = vld [vmem:[#allocation2 + $0x94] sm:$0xf] }
 0x1a7   : > { %v3318_v51 = vor.u32 %v3317_v14, %v3314_v41  ;;  %v3339_v62 = vshll.u32 %v3077_v17, 16  ;;  %7307 = vmatprep.mubr.msk.bf16.mxu0 %vm1726_vm11, %v6613_v10  ;;  %v3338_v36 = vrot.slane %v3336_v24, 4  ;;  %v3345_v53 = vshll.u32 %v8772_v9, 16  ;;  %v8795_v24 = vld [vmem:[#allocation2 + $0x98] sm:$0x1] }
 0x1a8   : > { %v3310_v48 = vsel %vm8137_vm10, %v3305_v13, %v3309_v21  ;;  %v3349_v5 = vshrl.u32 %v8772_v9, 16  ;;  %v3328_v23 = vor.u32 %v3327_v29, %v3323_v63  ;;  %v3355_v17 = vshll.u32 %v8780_v11, 16 }
 0x1a9   : > { %v6728_v3 = vcombine.low %v3300_v16, %v3310_v48  ;;  %v3319_v15 = vrot.slane %v3318_v51, 4  ;;  %v3341_v32 = vrot.slane %v3339_v62, 5  ;;  %v3347_v43 = vrot.slane %v3345_v53, 5  ;;  %v3083_v53 = vld [vmem:[#allocation2 + $0x9c] sm:$0xf] }
 0x1aa   : > { %v3351_v41 = vrot.slane %v3349_v5, 4  ;;  %v6614_v21 = vcombine.low %v8509_v56, %v8515_v0  ;;  %v3329_v49 = vrot.slane %v3328_v23, 4  ;;  %v3360_v16 = vshrl.u32 %v3080_v42, 16 }
 0x1ab   : > { %7409 = vmatprep.mubr.msk.bf16.mxu1 %vm1726_vm11, %v6728_v3  ;;  %v3324_v14 = vsel %vm8137_vm10, %v3319_v15, %v3323_v63  ;;  %v3342_v12 = vor.u32 %v3341_v32, %v3338_v36  ;;  %v3357_v10 = vrot.slane %v3355_v17, 5  ;;  %v3363_v51 = vshll.u32 %v3080_v42, 16  ;;  %v8801_v15 = vld [vmem:[#allocation2 + $0xa0] sm:$0xf] }
 0x1ac   : > { %v3352_v13 = vor.u32 %v3351_v41, %v3347_v43  ;;  %v3369_v29 = vshll.u32 %v8787_v31, 16  ;;  %v3334_v62 = vsel %vm8137_vm10, %v3329_v49, %v3333_v20  ;;  %v3362_v56 = vrot.slane %v3360_v16, 4 }
 0x1ad   : > { %v3343_v48 = vrot.slane %v3342_v12, 4  ;;  %v3373_v0 = vshrl.u32 %v8787_v31, 16  ;;  %v6729_v5 = vcombine.low %v3324_v14, %v3334_v62  ;;  %v3365_v3 = vrot.slane %v3363_v51, 5  ;;  %v8812_v14 = vld [vmem:[#allocation2 + $0xa4] sm:$0x1] }
 0x1ae   : > { %v3353_v63 = vrot.slane %v3352_v13, 4  ;;  %v3371_v36 = vrot.slane %v3369_v29, 5  ;;  %7308 = vmatmul.mubr.msk.bf16.gmra.mrb[48].mxu0 %vm1726_vm11, %v6614_v21  ;;  %v3379_v32 = vshll.u32 %v8795_v24, 16  ;;  %v6615_v20 = vcombine.low %v8517_v2, %v8526_v28  ;;  %v3086_v51 = vld [vmem:[#allocation2 + $0xa8] sm:$0xf] }
 0x1af   : > { %v3348_v23 = vsel %vm8137_vm10, %v3343_v48, %v3347_v43  ;;  %v3375_v42 = vrot.slane %v3373_v0, 4  ;;  %7410 = vmatmul.mubr.msk.bf16.gmra.mrb[0].mxu1 %vm1726_vm11, %v6729_v5  ;;  %v3366_v17 = vor.u32 %v3365_v3, %v3362_v56  ;;  %v3384_v49 = vshrl.u32 %v3083_v53, 16  ;;  %v8817_v48 = vld [vmem:[#allocation2 + $0xac] sm:$0xf] }
 0x1b0   : > { %v3358_v41 = vsel %vm8137_vm10, %v3353_v63, %v3357_v10  ;;  %v3387_v12 = vshll.u32 %v3083_v53, 16  ;;  %v3381_v13 = vrot.slane %v3379_v32, 5  ;;  %7311 = vmatprep.mubr.msk.bf16.mxu0 %vm1726_vm11, %v6615_v20  ;;  %v3393_v21 = vshll.u32 %v8801_v15, 16 }
 0x1b1   : > { %v6730_v16 = vcombine.low %v3348_v23, %v3358_v41  ;;  %v3376_v43 = vor.u32 %v3375_v42, %v3371_v36  ;;  %v3367_v29 = vrot.slane %v3366_v17, 4  ;;  %v3386_v2 = vrot.slane %v3384_v49, 4  ;;  %v8825_v23 = vld [vmem:[#allocation2 + $0xb0] sm:$0x1]  ;;  %v3089_v49 = vld [vmem:[#allocation2 + $0xb4] sm:$0xf] }
 0x1b2   : > { %v3389_v28 = vrot.slane %v3387_v12, 5  ;;  %v3397_v62 = vshrl.u32 %v8801_v15, 16  ;;  %v3395_v56 = vrot.slane %v3393_v21, 5  ;;  %v3403_v0 = vshll.u32 %v8812_v14, 16 }
 0x1b3   : > { %7413 = vmatprep.mubr.msk.bf16.mxu1 %vm1726_vm11, %v6730_v16  ;;  %v3377_v10 = vrot.slane %v3376_v43, 4  ;;  %v6616_v53 = vcombine.low %v8535_v47, %v8540_v55  ;;  %v3372_v5 = vsel %vm8137_vm10, %v3367_v29, %v3371_v36  ;;  %v3408_v42 = vshrl.u32 %v3086_v51, 16 }
 0x1b4   : > { %v3390_v63 = vor.u32 %v3389_v28, %v3386_v2  ;;  %v3399_v3 = vrot.slane %v3397_v62, 4  ;;  %v3405_v20 = vrot.slane %v3403_v0, 5  ;;  %v3411_v41 = vshll.u32 %v3086_v51, 16  ;;  %v8833_v2 = vld [vmem:[#allocation2 + $0xb8] sm:$0xf] }
 0x1b5   : > { %v3382_v32 = vsel %vm8137_vm10, %v3377_v10, %v3381_v13  ;;  %v3417_v17 = vshll.u32 %v8817_v48, 16  ;;  %v3410_v47 = vrot.slane %v3408_v42, 4  ;;  %v3421_v21 = vshrl.u32 %v8817_v48, 16 }
 0x1b6   : > { %v6731_v12 = vcombine.low %v3372_v5, %v3382_v32  ;;  %v3391_v16 = vrot.slane %v3390_v63, 4  ;;  %v3400_v43 = vor.u32 %v3399_v3, %v3395_v56  ;;  %7312 = vmatmul.mubr.msk.bf16.gmra.mrb[52].mxu0 %vm1726_vm11, %v6616_v53  ;;  %v3413_v55 = vrot.slane %v3411_v41, 5  ;;  %v8840_v5 = vld [vmem:[#allocation2 + $0xbc] sm:$0x1]  ;;  %v3092_v41 = vld [vmem:[#allocation2 + $0xc0] sm:$0xf] }
 0x1b7   : > { %v3419_v36 = vrot.slane %v3417_v17, 5  ;;  %v3427_v29 = vshll.u32 %v8825_v23, 16  ;;  %v6617_v28 = vcombine.low %v8550_v7, %v8555_v18  ;;  %v3432_v62 = vshrl.u32 %v3089_v49, 16 }
 0x1b8   : > { %7414 = vmatmul.mubr.msk.bf16.gmra.mrb[4].mxu1 %vm1726_vm11, %v6731_v12  ;;  %v3396_v13 = vsel %vm8137_vm10, %v3391_v16, %v3395_v56  ;;  %v3401_v51 = vrot.slane %v3400_v43, 4  ;;  %v3414_v10 = vor.u32 %v3413_v55, %v3410_v47  ;;  %v3423_v0 = vrot.slane %v3421_v21, 4  ;;  %v8847_v16 = vld [vmem:[#allocation2 + $0xc4] sm:$0xf] }
 0x1b9   : > { %v3429_v53 = vrot.slane %v3427_v29, 5  ;;  %v3435_v63 = vshll.u32 %v3089_v49, 16  ;;  %7315 = vmatprep.mubr.msk.bf16.mxu0 %vm1726_vm11, %v6617_v28  ;;  %v3434_v42 = vrot.slane %v3432_v62, 4  ;;  %v3441_v32 = vshll.u32 %v8833_v2, 16  ;;  %v8855_v62 = vld [vmem:[#allocation2 + $0xc8] sm:$0x1] }
 0x1ba   : > { %v3406_v3 = vsel %vm8137_vm10, %v3401_v51, %v3405_v20  ;;  %v3445_v56 = vshrl.u32 %v8833_v2, 16  ;;  %v3415_v7 = vrot.slane %v3414_v10, 4  ;;  %v3424_v18 = vor.u32 %v3423_v0, %v3419_v36 }
 0x1bb   : > { %v6732_v17 = vcombine.low %v3396_v13, %v3406_v3  ;;  %v3437_v12 = vrot.slane %v3435_v63, 5  ;;  %v3443_v43 = vrot.slane %v3441_v32, 5  ;;  %v3451_v49 = vshll.u32 %v8840_v5, 16 }
 0x1bc   : > { %v3447_v47 = vrot.slane %v3445_v56, 4  ;;  %v6618_v20 = vcombine.low %v8564_v39, %v8568_v35  ;;  %v3420_v55 = vsel %vm8137_vm10, %v3415_v7, %v3419_v36  ;;  %v3425_v21 = vrot.slane %v3424_v18, 4 }
 0x1bd   : > { %7417 = vmatprep.mubr.msk.bf16.mxu1 %vm1726_vm11, %v6732_v17  ;;  %v3438_v29 = vor.u32 %v3437_v12, %v3434_v42  ;;  %v3456_v13 = vshrl.u32 %v3092_v41, 16  ;;  %v3453_v28 = vrot.slane %v3451_v49, 5  ;;  %v3459_v10 = vshll.u32 %v3092_v41, 16 }
 0x1be   : > { %v3448_v51 = vor.u32 %v3447_v47, %v3443_v43  ;;  %v3465_v0 = vshll.u32 %v8847_v16, 16  ;;  %v3430_v63 = vsel %vm8137_vm10, %v3425_v21, %v3429_v53  ;;  %7316 = vmatmul.mubr.msk.bf16.gmra.mrb[56].mxu0 %vm1726_vm11, %v6618_v20  ;;  %v3469_v35 = vshrl.u32 %v8847_v16, 16  ;;  %v3773_v47 = vld [vmem:[#allocation2 + $0xc] sm:$0xe] }
 0x1bf   : > { %v3439_v3 = vrot.slane %v3438_v29, 4  ;;  %v3458_v39 = vrot.slane %v3456_v13, 4  ;;  %v6733_v36 = vcombine.low %v3420_v55, %v3430_v63  ;;  %v3461_v42 = vrot.slane %v3459_v10, 5 }
 0x1c0   : > { %v3449_v32 = vrot.slane %v3448_v51, 4  ;;  %v3467_v56 = vrot.slane %v3465_v0, 5  ;;  %v3471_v7 = vrot.slane %v3469_v35, 4  ;;  %v3475_v41 = vshll.u32 %v8855_v62, 16 }
 0x1c1   : > { %v3444_v17 = vsel %vm8137_vm10, %v3439_v3, %v3443_v43  ;;  %v6619_v18 = vcombine.low %v8571_v57, %v8580_v4  ;;  %7418 = vmatmul.mubr.msk.bf16.gmra.mrb[8].mxu1 %vm1726_vm11, %v6733_v36  ;;  %v3462_v12 = vor.u32 %v3461_v42, %v3458_v39  ;;  %v3774_v43 = vld [vmem:[#allocation2 + $0x18] sm:$0xe]  ;;  %v3839_v57 = vrot.slane %v8591_v38, 5  ;;  %v2232_v39 = vld [vmem:[#allocation2] sm:$0xe] }
 0x1c2   : > { %v3454_v53 = vsel %vm8137_vm10, %v3449_v32, %v3453_v28  ;;  %v3472_v20 = vor.u32 %v3471_v7, %v3467_v56  ;;  %v3477_v21 = vrot.slane %v3475_v41, 5  ;;  %v6752_v13 = vrot.slane %v3773_v47, 9  ;;  %v2233_v41 = vld [vmem:[#allocation2 + $0xc] sm:$0xe] }
 0x1c3   : > { %v6734_v49 = vcombine.low %v3444_v17, %v3454_v53  ;;  %7319 = vmatprep.mubr.msk.bf16.mxu0 %vm1726_vm11, %v6619_v18  ;;  %v3463_v55 = vrot.slane %v3462_v12, 4  ;;  %v6620_v51 = vcombine.low %v8600_v59, %v8602_v1  ;;  %v3846_v28 = vrot.slane %v8612_v34, 5  ;;  %v3775_v1 = vld [vmem:[#allocation2 + $0x24] sm:$0xe] }
 0x1c4   : > { %v3473_v4 = vrot.slane %v3472_v20, 4  ;;  %v3841_v10 = vrot.slane %v3839_v57, 4  ;;  %v3842_v0 = vrot.slane %v8593_v44, 5  ;;  %v6753_v63 = vrot.slane %v3774_v43, 9  ;;  %v3776_v43 = vld [vmem:[#allocation2 + $0x30] sm:$0xe] }
 0x1c5   : > { %7421 = vmatprep.mubr.msk.bf16.mxu1 %vm1726_vm11, %v6734_v49  ;;  %v3849_v3 = vrot.slane %v8617_v45, 5  ;;  %v3468_v35 = vsel %vm8137_vm10, %v3463_v55, %v3467_v56  ;;  %v3840_v36 = vsel %vm8871_vm1, %v6752_v13, %v3839_v57  ;;  %v3848_v59 = vrot.slane %v3846_v28, 4  ;;  %v7929_v49 = vld [vmem:[#allocation2 + $0x8] sm:$0x1]  ;;  %v7930_v55 = vld [vmem:[%s9998_s3 + $0xc] sm:$0xf] }
 0x1c6   : > { %v3478_v38 = vsel %vm8137_vm10, %v3473_v4, %v3477_v21  ;;  %7320 = vmatmul.mubr.msk.bf16.gmra.mrb[60].mxu0 %vm1726_vm11, %v6620_v51  ;;  %v3843_v44 = vsel %vm8871_vm1, %v3841_v10, %v3842_v0  ;;  %v4407_v45 = vsel %vm1775_vm7, %v8673_v50, 0  ;;  %v3853_v32 = vrot.slane %v8623_v6, 5  ;;  %v2234_v10 = vld [vmem:[#allocation2 + $0x18] sm:$0xe] }
 0x1c7   : > { %v6735_v34 = vcombine.low %v3468_v35, %v3478_v38  ;;  %v6769_v42 = vcombine.low %v3840_v36, %v3843_v44  ;;  %v3850_v56 = vsel %vm8871_vm1, %v3848_v59, %v3849_v3  ;;  %v2494_v17 = vsel %vm1775_vm7, %v8654_v22, 0  ;;  %v7932_v44 = vld [vmem:[#allocation2 + $0x20] sm:$0x1] }
 0x1c8   : > { %v6637_v7 = vrot.slane %v2232_v39, 9  ;;  %v3847_v18 = vsel %vm8871_vm1, %v6753_v63, %v3846_v28  ;;  %v6754_v53 = vrot.slane %v3775_v1, 9  ;;  %v3855_v12 = vrot.slane %v3853_v32, 4  ;;  %7324 = vmatpush3.bf16.msra.mxu0 %v2494_v17 }
 0x1c9   : > { %7422 = vmatmul.mubr.msk.bf16.gmra.mrb[12].mxu1 %vm1726_vm11, %v6735_v34  ;;  %v2285_v50 = vrot.slane %v8661_v26, 5  ;;  %v6770_v6 = vcombine.low %v3847_v18, %v3850_v56  ;;  %v3856_v47 = vrot.slane %v8633_v33, 5  ;;  %v2288_v20 = vrot.slane %v7929_v49, 5  ;;  %7856 = vmatprep.subr.msk.bf16.mxu0 %vm1775_vm7, %v7930_v55  ;;  %v7933_v55 = vld [vmem:[#allocation2 + $0x2c] sm:$0x1] }
 0x1ca   : > { %7427 = vmatprep.mubr.msk.bf16.mxu1 %vm1726_vm11, %v6769_v42  ;;  %v2292_v22 = vrot.slane %v8664_v40, 5  ;;  %v3854_v21 = vsel %vm8871_vm1, %v6754_v53, %v3853_v32  ;;  %v6638_v4 = vrot.slane %v2233_v41, 9  ;;  %v7931_v40 = vld [vmem:[#allocation2 + $0x14] sm:$0x1]  ;;  %v3860_v28 = vrot.slane %v8643_v52, 5 }
 0x1cb   : > { %v2286_v26 = vsel %vm8871_vm1, %v6637_v7, %v2285_v50  ;;  %v2287_v57 = vrot.slane %v2285_v50, 4  ;;  %v3857_v33 = vsel %vm8871_vm1, %v3855_v12, %v3856_v47  ;;  %v2295_v51 = vrot.slane %v7931_v40, 5  ;;  %v3777_v42 = vld [vmem:[#allocation2 + $0x3c] sm:$0xe]  ;;  %v2235_v7 = vld [vmem:[#allocation2 + $0x24] sm:$0xe] }
 0x1cc   : > { %v2294_v13 = vrot.slane %v2292_v22, 4  ;;  %v2293_v63 = vsel %vm8871_vm1, %v6638_v4, %v2292_v22  ;;  %v6755_v3 = vrot.slane %v3776_v43, 9  ;;  %v2299_v39 = vrot.slane %v8679_v19, 5  ;;  %v8931_v41 = vld [vmem:[%s9998_s3 + $0x1c] sm:$0xf] }
 0x1cd   : > { %v2289_v0 = vsel %vm8871_vm1, %v2287_v57, %v2288_v20  ;;  %v3862_v36 = vrot.slane %v3860_v28, 4  ;;  %v3863_v59 = vrot.slane %v8645_v25, 5  ;;  %v6639_v34 = vrot.slane %v2234_v10, 9  ;;  %v3778_v20 = vld [vmem:[#allocation2 + $0x48] sm:$0xe] }
 0x1ce   : > { %v6654_v35 = vcombine.low %v2286_v26, %v2289_v0  ;;  %v2296_v38 = vsel %vm8871_vm1, %v2294_v13, %v2295_v51  ;;  %v2301_v52 = vrot.slane %v2299_v39, 4  ;;  %v2302_v32 = vrot.slane %v7932_v44, 5  ;;  %v2236_v57 = vld [vmem:[#allocation2 + $0x30] sm:$0xe]  ;;  %v10050_v13 = vld [vmem:[#allocation9_spill] sm:$0xff]  ;;  %v10051_v0 = vld [vmem:[#allocation7_spill] sm:$0xff] }
 0x1cf   : > { %v6655_v1 = vcombine.low %v2293_v63, %v2296_v38  ;;  %v6771_v56 = vcombine.low %v3854_v21, %v3857_v33  ;;  %v3861_v17 = vsel %vm8871_vm1, %v6755_v3, %v3860_v28  ;;  %v3867_v19 = vrot.slane %v8682_v61, 5 }
 0x1d0   : > { %7325 = vmatprep.mubr.msk.bf16.mxu0 %vm1726_vm11, %v6654_v35  ;;  %v3864_v25 = vsel %vm8871_vm1, %v3862_v36, %v3863_v59  ;;  %v2300_v18 = vsel %vm8871_vm1, %v6639_v34, %v2299_v39  ;;  %v2303_v53 = vsel %vm8871_vm1, %v2301_v52, %v2302_v32  ;;  %v2306_v61 = vrot.slane %v8699_v58, 5  ;;  %v10049_v58 = vld [vmem:[#allocation5_spill] sm:$0xff]  ;;  %v7934_v35 = vld [vmem:[#allocation2 + $0x38] sm:$0x1]  ;;  %v3779_v36 = vld [vmem:[#allocation2 + $0x54] sm:$0xe] }
 0x1d1   : > { %7428 = vmatmul.mubr.msk.bf16.vlgmr.msra.gmra.mrb[16].mxu1 %vm1726_vm11, %v6770_v6  ;;  %7326 = vmatmul.mubr.msk.bf16.vlgmr.msra.gmra.mrb[32].mxu0 %vm1726_vm11, %v6655_v1  ;;  %v6656_v12 = vcombine.low %v2300_v18, %v2303_v53  ;;  %v6756_v50 = vrot.slane %v3777_v42, 9  ;;  %v3869_v47 = vrot.slane %v3867_v19, 4  ;;  %v10048_v6 = vld [vmem:[#allocation6_spill] sm:$0xff]  ;;  %v6640_v22 = vrot.slane %v2235_v7, 9  ;;  %v10052_v52 = vld [vmem:[#allocation8_spill] sm:$0xff] }
 0x1d2   : > { %7460 = vmatpush3.bf16.msra.mxu1 %v4407_v45  ;;  %7431 = vmatprep.mubr.msk.bf16.mxu1 %vm1726_vm11, %v6771_v56  ;;  %v3870_v49 = vrot.slane %v10048_v6, 5  ;;  %v2308_v43 = vrot.slane %v2306_v61, 4  ;;  %v2309_v21 = vrot.slane %v7933_v55, 5  ;;  %v3874_v26 = vrot.slane %v8695_v54, 5  ;;  %v2237_v32 = vld [vmem:[#allocation2 + $0x3c] sm:$0xe] }
 0x1d3   : > { %7861 = vmatprep.subr.msk.bf16.mxu1 %vm1775_vm7, %v8931_v41  ;;  %7358 = vmatpush3.bf16.msra.mxu0 %v10049_v58  ;;  %v6772_v45 = vcombine.low %v3861_v17, %v3864_v25  ;;  %v3868_v4 = vsel %vm8871_vm1, %v6756_v50, %v3867_v19  ;;  %v2313_v40 = vrot.slane %v10050_v13, 5  ;;  %v2307_v54 = vsel %vm8871_vm1, %v6640_v22, %v2306_v61  ;;  %v7935_v19 = vld [vmem:[#allocation2 + $0x40] sm:$0xf]  ;;  %v10053_v61 = vld [vmem:[#allocation10_spill] sm:$0xff] }
 0x1d4   : > { %7329 = vmatprep.mubr.msk.bf16.mxu0 %vm1726_vm11, %v6656_v12  ;;  %v3871_v33 = vsel %vm8871_vm1, %v3869_v47, %v3870_v49  ;;  %v2310_v51 = vsel %vm8871_vm1, %v2308_v43, %v2309_v21  ;;  %v6757_v28 = vrot.slane %v3778_v20, 9  ;;  %v3876_v10 = vrot.slane %v3874_v26, 4  ;;  %v3780_v50 = vld [vmem:[#allocation2 + $0x60] sm:$0xe]  ;;  %v7936_v49 = vld [vmem:[#allocation2 + $0x44] sm:$0x1] }
 0x1d5   : > { %v3877_v63 = vrot.slane %v10051_v0, 5  ;;  %v6641_v3 = vrot.slane %v2236_v57, 9  ;;  %v2315_v39 = vrot.slane %v2313_v40, 4  ;;  %v2316_v38 = vrot.slane %v7934_v35, 5  ;;  %v2238_v43 = vld [vmem:[#allocation2 + $0x48] sm:$0xe] }
 0x1d6   : > { %v6773_v59 = vcombine.low %v3868_v4, %v3871_v33  ;;  %v6657_v1 = vcombine.low %v2307_v54, %v2310_v51  ;;  %v3875_v34 = vsel %vm8871_vm1, %v6757_v28, %v3874_v26  ;;  %v3881_v44 = vrot.slane %v10052_v52, 5  ;;  %v7937_v57 = vld [vmem:[#allocation2 + $0x4c] sm:$0xf]  ;;  %v7938_v51 = vld [vmem:[#allocation2 + $0x50] sm:$0x1] }
 0x1d7   : > { %v3878_v42 = vsel %vm8871_vm1, %v3876_v10, %v3877_v63  ;;  %v2314_v56 = vsel %vm8871_vm1, %v6641_v3, %v2313_v40  ;;  %v2317_v17 = vsel %vm8871_vm1, %v2315_v39, %v2316_v38  ;;  %v2320_v7 = vrot.slane %v7935_v19, 5  ;;  %v3781_v10 = vld [vmem:[#allocation2 + $0x6c] sm:$0xe]  ;;  %v2239_v35 = vld [vmem:[#allocation2 + $0x54] sm:$0xe] }
 0x1d8   : > { %v6658_v25 = vcombine.low %v2314_v56, %v2317_v17  ;;  %v6758_v18 = vrot.slane %v3779_v36, 9  ;;  %v3883_v53 = vrot.slane %v3881_v44, 4  ;;  %v3884_v12 = vrot.slane %v10053_v61, 5  ;;  %v7940_v19 = vld [vmem:[#allocation2 + $0x5c] sm:$0x1] }
 0x1d9   : > { %7432 = vmatmul.mubr.msk.bf16.gmra.mrb[20].mxu1 %vm1726_vm11, %v6772_v45  ;;  %7330 = vmatmul.mubr.msk.bf16.gmra.mrb[36].mxu0 %vm1726_vm11, %v6657_v1  ;;  %v6642_v47 = vrot.slane %v2237_v32, 9  ;;  %v2322_v6 = vrot.slane %v2320_v7, 4  ;;  %v2323_v20 = vrot.slane %v7936_v49, 5  ;;  %v3888_v22 = vrot.slane %v8727_v27, 5 }
 0x1da   : > { %7435 = vmatprep.mubr.msk.bf16.mxu1 %vm1726_vm11, %v6773_v59  ;;  %v6774_v55 = vcombine.low %v3875_v34, %v3878_v42  ;;  %7333 = vmatprep.mubr.msk.bf16.mxu0 %vm1726_vm11, %v6658_v25  ;;  %v3882_v21 = vsel %vm8871_vm1, %v6758_v18, %v3881_v44  ;;  %v3885_v26 = vsel %vm8871_vm1, %v3883_v53, %v3884_v12  ;;  %v2327_v58 = vrot.slane %v7937_v57, 5  ;;  %v7939_v59 = vld [vmem:[#allocation2 + $0x58] sm:$0xf]  ;;  %v2240_v12 = vld [vmem:[#allocation2 + $0x60] sm:$0xe] }
 0x1db   : > { %v2321_v45 = vsel %vm8871_vm1, %v6642_v47, %v2320_v7  ;;  %v2324_v4 = vsel %vm8871_vm1, %v2322_v6, %v2323_v20  ;;  %v6759_v33 = vrot.slane %v3780_v50, 9  ;;  %v3890_v27 = vrot.slane %v3888_v22, 4  ;;  %v3782_v34 = vld [vmem:[#allocation2 + $0x78] sm:$0xe]  ;;  %v7941_v50 = vld [vmem:[#allocation2 + $0x64] sm:$0xf] }
 0x1dc   : > { %v3891_v13 = vrot.slane %v8735_v30, 5  ;;  %v6643_v40 = vrot.slane %v2238_v43, 9  ;;  %v2329_v54 = vrot.slane %v2327_v58, 4  ;;  %v2330_v28 = vrot.slane %v7938_v51, 5  ;;  %v10054_v42 = vld [vmem:[#allocation11_spill] sm:$0xff] }
 0x1dd   : > { %v6775_v0 = vcombine.low %v3882_v21, %v3885_v26  ;;  %v6659_v63 = vcombine.low %v2321_v45, %v2324_v4  ;;  %v3889_v3 = vsel %vm8871_vm1, %v6759_v33, %v3888_v22  ;;  %v3895_v39 = vrot.slane %v8741_v60, 5  ;;  %v7942_v21 = vld [vmem:[#allocation2 + $0x68] sm:$0x1]  ;;  %v3783_v57 = vld [vmem:[#allocation2 + $0x84] sm:$0xe] }
 0x1de   : > { %v3892_v38 = vsel %vm8871_vm1, %v3890_v27, %v3891_v13  ;;  %v2328_v36 = vsel %vm8871_vm1, %v6643_v40, %v2327_v58  ;;  %v2331_v30 = vsel %vm8871_vm1, %v2329_v54, %v2330_v28  ;;  %v2334_v1 = vrot.slane %v7939_v59, 5  ;;  %v7943_v40 = vld [vmem:[#allocation2 + $0x70] sm:$0xf]  ;;  %v7944_v59 = vld [vmem:[#allocation2 + $0x74] sm:$0x1] }
 0x1df   : > { %v6660_v52 = vcombine.low %v2328_v36, %v2331_v30  ;;  %v6760_v44 = vrot.slane %v3781_v10, 9  ;;  %v3897_v32 = vrot.slane %v3895_v39, 4  ;;  %v3898_v56 = vrot.slane %v10054_v42, 5 }
 0x1e0   : > { %v6644_v60 = vrot.slane %v2239_v35, 9  ;;  %v2336_v17 = vrot.slane %v2334_v1, 4  ;;  %v2337_v7 = vrot.slane %v7940_v19, 5  ;;  %v3902_v25 = vrot.slane %v8757_v37, 5 }
 0x1e1   : > { %7436 = vmatmul.mubr.msk.bf16.gmra.mrb[24].mxu1 %vm1726_vm11, %v6774_v55  ;;  %7334 = vmatmul.mubr.msk.bf16.gmra.mrb[40].mxu0 %vm1726_vm11, %v6659_v63  ;;  %v3896_v18 = vsel %vm8871_vm1, %v6760_v44, %v3895_v39  ;;  %v3899_v53 = vsel %vm8871_vm1, %v3897_v32, %v3898_v56  ;;  %v6761_v61 = vrot.slane %v3782_v34, 9  ;;  %v2341_v47 = vrot.slane %v7941_v50, 5  ;;  %v3784_v63 = vld [vmem:[#allocation2 + $0x90] sm:$0xe]  ;;  %v2241_v39 = vld [vmem:[#allocation2 + $0x6c] sm:$0xe] }
 0x1e2   : > { %7439 = vmatprep.mubr.msk.bf16.mxu1 %vm1726_vm11, %v6775_v0  ;;  %7337 = vmatprep.mubr.msk.bf16.mxu0 %vm1726_vm11, %v6660_v52  ;;  %v6777_v6 = vcombine.low %v3896_v18, %v3899_v53  ;;  %v2338_v49 = vsel %vm8871_vm1, %v2336_v17, %v2337_v7  ;;  %v3904_v20 = vrot.slane %v3902_v25, 4  ;;  %v3905_v37 = vrot.slane %v8765_v8, 5  ;;  %v7946_v17 = vld [vmem:[#allocation2 + $0x80] sm:$0x1]  ;;  %v3785_v7 = vld [vmem:[#allocation2 + $0x9c] sm:$0xe] }
 0x1e3   : > { %v6776_v22 = vcombine.low %v3889_v3, %v3892_v38  ;;  %v2335_v43 = vsel %vm8871_vm1, %v6644_v60, %v2334_v1  ;;  %v2343_v55 = vrot.slane %v2341_v47, 4  ;;  %v2344_v26 = vrot.slane %v7942_v21, 5  ;;  %v2242_v38 = vld [vmem:[#allocation2 + $0x78] sm:$0xe]  ;;  %v2243_v21 = vld [vmem:[#allocation2 + $0x84] sm:$0xe] }
 0x1e4   : > { %v9009_v58 = vsel %vm8871_vm1, %v6761_v61, %v3902_v25  ;;  %v9013_v45 = vsel %vm8871_vm1, %v3904_v20, %v3905_v37  ;;  %v6645_v4 = vrot.slane %v2240_v12, 9  ;;  %v3909_v33 = vrot.slane %v8772_v9, 5 }
 0x1e5   : > { %v6661_v8 = vcombine.low %v2335_v43, %v2338_v49  ;;  %v6778_v27 = vcombine.low %v9009_v58, %v9013_v45  ;;  %v2345_v13 = vsel %vm8871_vm1, %v2343_v55, %v2344_v26  ;;  %v2348_v54 = vrot.slane %v7943_v40, 5  ;;  %v3786_v43 = vld [vmem:[#allocation2 + $0xa8] sm:$0xe]  ;;  %v2244_v58 = vld [vmem:[#allocation2 + $0x90] sm:$0xe] }
 0x1e6   : > { %v2342_v51 = vsel %vm8871_vm1, %v6645_v4, %v2341_v47  ;;  %v6762_v28 = vrot.slane %v3783_v57, 9  ;;  %v3911_v10 = vrot.slane %v3909_v33, 4  ;;  %v3912_v0 = vrot.slane %v8780_v11, 5  ;;  %v7945_v11 = vld [vmem:[#allocation2 + $0x7c] sm:$0xf] }
 0x1e7   : > { %v6662_v3 = vcombine.low %v2342_v51, %v2345_v13  ;;  %v2350_v9 = vrot.slane %v2348_v54, 4  ;;  %v3916_v35 = vrot.slane %v8787_v31, 5  ;;  %v2351_v1 = vrot.slane %v7944_v59, 5  ;;  %v7947_v47 = vld [vmem:[#allocation2 + $0x88] sm:$0xf] }
 0x1e8   : > { %v3910_v36 = vsel %vm8871_vm1, %v6762_v28, %v3909_v33  ;;  %v3913_v30 = vsel %vm8871_vm1, %v3911_v10, %v3912_v0  ;;  %v2355_v34 = vrot.slane %v7945_v11, 5  ;;  %v6763_v52 = vrot.slane %v3784_v63, 9  ;;  %v7948_v33 = vld [vmem:[#allocation2 + $0x8c] sm:$0x1]  ;;  %v7949_v13 = vld [vmem:[#allocation2 + $0x94] sm:$0xf] }
 0x1e9   : > { %7440 = vmatmul.mubr.msk.bf16.gmra.mrb[28].mxu1 %vm1726_vm11, %v6776_v22  ;;  %7338 = vmatmul.mubr.msk.bf16.gmra.mrb[44].mxu0 %vm1726_vm11, %v6661_v8  ;;  %v6779_v31 = vcombine.low %v3910_v36, %v3913_v30  ;;  %v3918_v44 = vrot.slane %v3916_v35, 4  ;;  %v3919_v32 = vrot.slane %v8795_v24, 5  ;;  %v6646_v42 = vrot.slane %v2241_v39, 9  ;;  %v7950_v63 = vld [vmem:[#allocation2 + $0x98] sm:$0x1] }
 0x1ea   : > { %7443 = vmatprep.mubr.msk.bf16.mxu1 %vm1726_vm11, %v6777_v6  ;;  %7341 = vmatprep.mubr.msk.bf16.mxu0 %vm1726_vm11, %v6662_v3  ;;  %v6647_v56 = vrot.slane %v2242_v38, 9  ;;  %v2357_v60 = vrot.slane %v2355_v34, 4  ;;  %v2358_v19 = vrot.slane %v7946_v17, 5  ;;  %v2352_v25 = vsel %vm8871_vm1, %v2350_v9, %v2351_v1  ;;  %v3787_v39 = vld [vmem:[#allocation2 + $0xb4] sm:$0xe] }
 0x1eb   : > { %v9037_v18 = vsel %vm8871_vm1, %v6763_v52, %v3916_v35  ;;  %v9041_v53 = vsel %vm8871_vm1, %v3918_v44, %v3919_v32  ;;  %v3923_v61 = vrot.slane %v8801_v15, 5  ;;  %v2349_v24 = vsel %vm8871_vm1, %v6646_v42, %v2348_v54  ;;  %v7951_v59 = vld [vmem:[#allocation2 + $0xa0] sm:$0xf] }
 0x1ec   : > { %v6780_v12 = vcombine.low %v9037_v18, %v9041_v53  ;;  %v2359_v50 = vsel %vm8871_vm1, %v2357_v60, %v2358_v19  ;;  %v2362_v6 = vrot.slane %v7947_v47, 5  ;;  %v2356_v49 = vsel %vm8871_vm1, %v6647_v56, %v2355_v34  ;;  %v3788_v44 = vld [vmem:[#allocation2 + $0xc0] sm:$0xe]  ;;  %v7952_v19 = vld [vmem:[#allocation2 + $0xac] sm:$0xf] }
 0x1ed   : > { %v6764_v20 = vrot.slane %v3785_v7, 9  ;;  %v3925_v37 = vrot.slane %v3923_v61, 4  ;;  %v3926_v22 = vrot.slane %v8812_v14, 5  ;;  %v6663_v15 = vcombine.low %v2349_v24, %v2352_v25 }
 0x1ee   : > { %v6664_v55 = vcombine.low %v2356_v49, %v2359_v50  ;;  %v2364_v26 = vrot.slane %v2362_v6, 4  ;;  %v3930_v57 = vrot.slane %v8817_v48, 5  ;;  %v2365_v8 = vrot.slane %v7948_v33, 5  ;;  %v7953_v50 = vld [vmem:[#allocation2 + $0xa4] sm:$0x1] }
 0x1ef   : > { %v3924_v45 = vsel %vm8871_vm1, %v6764_v20, %v3923_v61  ;;  %v3927_v4 = vsel %vm8871_vm1, %v3925_v37, %v3926_v22  ;;  %v2369_v40 = vrot.slane %v7949_v13, 5  ;;  %v6765_v54 = vrot.slane %v3786_v43, 9  ;;  %v7954_v37 = vld [vmem:[#allocation2 + $0xb0] sm:$0x1] }
 0x1f0   : > { %v6781_v14 = vcombine.low %v3924_v45, %v3927_v4  ;;  %v3932_v51 = vrot.slane %v3930_v57, 4  ;;  %v3933_v48 = vrot.slane %v8825_v23, 5  ;;  %v6648_v28 = vrot.slane %v2243_v21, 9  ;;  %v7955_v21 = vld [vmem:[#allocation2 + $0xb8] sm:$0xf] }
 0x1f1   : > { %7444 = vmatmul.mubr.msk.bf16.gmra.mrb[0].mxu1 %vm1726_vm11, %v6778_v27  ;;  %7342 = vmatmul.mubr.msk.bf16.gmra.mrb[48].mxu0 %vm1726_vm11, %v6663_v15  ;;  %v6649_v10 = vrot.slane %v2244_v58, 9  ;;  %v2371_v0 = vrot.slane %v2369_v40, 4  ;;  %v2372_v3 = vrot.slane %v7950_v63, 5  ;;  %v2366_v27 = vsel %vm8871_vm1, %v2364_v26, %v2365_v8  ;;  %v7894_v63 = vld [vmem:[#allocation2 + $0xc] sm:$0xff]  }
 0x1f2   : > { %7447 = vmatprep.mubr.msk.bf16.mxu1 %vm1726_vm11, %v6779_v31  ;;  %7345 = vmatprep.mubr.msk.bf16.mxu0 %vm1726_vm11, %v6664_v55  ;;  %v3931_v9 = vsel %vm8871_vm1, %v6765_v54, %v3930_v57  ;;  %v3934_v35 = vsel %vm8871_vm1, %v3932_v51, %v3933_v48  ;;  %v3937_v23 = vrot.slane %v8833_v2, 5  ;;  %v2363_v38 = vsel %vm8871_vm1, %v6648_v28, %v2362_v6 }
 0x1f3   : > { %v6782_v36 = vcombine.low %v3931_v9, %v3934_v35  ;;  %v2373_v30 = vsel %vm8871_vm1, %v2371_v0, %v2372_v3  ;;  %v2376_v1 = vrot.slane %v7951_v59, 5  ;;  %v2370_v11 = vsel %vm8871_vm1, %v6649_v10, %v2369_v40  ;;  %v2247_v40 = vld [vmem:[#allocation2 + $0xb4] sm:$0xe]  ;;  %v7892_v0 = vld [vmem:[#allocation2 + $0x18] sm:$0xff]   ;;  %v7893_v3 = vld [vmem:[#allocation2 + $0x24] sm:$0xff]  }
 0x1f4   : > { %v6766_v34 = vrot.slane %v3787_v39, 9  ;;  %v3939_v31 = vrot.slane %v3937_v23, 4  ;;  %v3940_v52 = vrot.slane %v8840_v5, 5  ;;  %v6665_v32 = vcombine.low %v2363_v38, %v2366_v27  ;;  %v648_v5 = vld [vmem:[#allocation2 + $0xcc] sm:$0x1]  ;;  %v7896_v27 = vld [vmem:[#allocation2 + $0x18] sm:$0xff]  }
 0x1f5   : > { %v6666_v42 = vcombine.low %v2370_v11, %v2373_v30  ;;  %v3944_v2 = vrot.slane %v8847_v16, 5  ;;  %v2378_v17 = vrot.slane %v2376_v1, 4  ;;  %v2383_v7 = vrot.slane %v7952_v19, 5  ;;  %v2245_v16 = vld [vmem:[#allocation2 + $0x9c] sm:$0xe]  ;;  %v7895_v9 = vld [vmem:[#allocation2 + $0x30] sm:$0xff]  }
 0x1f6   : > { %v3938_v56 = vsel %vm8871_vm1, %v6766_v34, %v3937_v23  ;;  %v3941_v60 = vsel %vm8871_vm1, %v3939_v31, %v3940_v52  ;;  %v6767_v18 = vrot.slane %v3788_v44, 9  ;;  %v3947_v61 = vrot.slane %v8855_v62, 5  ;;  %v2246_v62 = vld [vmem:[#allocation2 + $0xa8] sm:$0xe]  ;;  %v9118_v35 = vld [vmem:[%s9998_s3 + $0x20] sm:$0xf] }
 0x1f7   : > { %v6783_v25 = vcombine.low %v3938_v56, %v3941_v60  ;;  %v3946_v53 = vrot.slane %v3944_v2, 4  ;;  %v2385_v24 = vrot.slane %v2383_v7, 4  ;;  %v2379_v47 = vrot.slane %v7953_v50, 5  ;;  %v7898_v23 = vld [vmem:[#allocation2 + $0x24] sm:$0xff]   ;;  %v9124_v38 = vld [vmem:[#allocation2 + $0x1c] sm:$0xf] }
 0x1f8   : > { %v3945_v6 = vsel %vm8871_vm1, %v6767_v18, %v3944_v2  ;;  %v649_v43 = vsel %vm8076_vm3, 0, %v648_v5  ;;  %v6650_v15 = vrot.slane %v2245_v16, 9  ;;  %v2390_v26 = vrot.slane %v7955_v21, 5  ;;  %v4605_v59 = vld [vmem:[#allocation2 + $0x24] sm:$0xf]  ;;  %v7900_v11 = vld [vmem:[#allocation2 + $0x30] sm:$0xff]  }
 0x1f9   : > { %7448 = vmatmul.mubr.msk.bf16.gmra.mrb[4].mxu1 %vm1726_vm11, %v6780_v12  ;;  %7346 = vmatmul.mubr.msk.bf16.gmra.mrb[52].mxu0 %vm1726_vm11, %v6665_v32  ;;  %v3948_v49 = vsel %vm8871_vm1, %v3946_v53, %v3947_v61  ;;  %v2386_v12 = vrot.slane %v7954_v37, 5  ;;  %v2380_v55 = vsel %vm8871_vm1, %v2378_v17, %v2379_v47  ;;  %650 = vst [vmem:[#allocation2 + $0xcc] sm:$0x1] %v649_v43  ;;  %v6651_v57 = vrot.slane %v2246_v62, 9  ;;  %v7899_v34 = vld [vmem:[#allocation2 + $0x48] sm:$0xff]   ;;  %v7902_v31 = vld [vmem:[#allocation2 + $0x3c] sm:$0xff]  }
 0x1fa   : > { %7451 = vmatprep.mubr.msk.bf16.mxu1 %vm1726_vm11, %v6781_v14  ;;  %7349 = vmatprep.mubr.msk.bf16.mxu0 %vm1726_vm11, %v6666_v42  ;;  %v6784_v20 = vcombine.low %v3945_v6, %v3948_v49  ;;  %v2377_v45 = vsel %vm8871_vm1, %v6650_v15, %v2376_v1  ;;  %v2392_v13 = vrot.slane %v2390_v26, 4  ;;  %v7956_v14 = vld [vmem:[#allocation2 + $0xbc] sm:$0x1]  ;;  %v6652_v51 = vrot.slane %v2247_v40, 9  ;;  %v9134_v60 = vld [vmem:[#allocation2 + $0x28] sm:$0xf] }
 0x1fb   : > { %v2387_v58 = vsel %vm8871_vm1, %v2385_v24, %v2386_v12  ;;  %v6667_v4 = vcombine.low %v2377_v45, %v2380_v55  ;;  %v2384_v33 = vsel %vm8871_vm1, %v6651_v57, %v2383_v7  ;;  %v2393_v54 = vrot.slane %v7956_v14, 5  ;;  %v7897_v1 = vld [vmem:[#allocation2 + $0x3c] sm:$0xff]   ;;  %v7901_v16 = vld [vmem:[#allocation2 + $0x54] sm:$0xff]   ;;  %v7904_v24 = vld [vmem:[#allocation2 + $0x48] sm:$0xff]  }
 0x1fc   : > { %v6668_v8 = vcombine.low %v2384_v33, %v2387_v58  ;;  %v2391_v28 = vsel %vm8871_vm1, %v6652_v51, %v2390_v26  ;;  %v5133_v39 = vsel %vm1775_vm7, %v8931_v41, 0  ;;  %v4602_v41 = vld [vmem:[#allocation2 + $0x18] sm:$0xf]  ;;  %v4664_v30 = vshrl.u32 %v9124_v38, 16  ;;  %v9136_v7 = vld [vmem:[#allocation2 + $0x20] sm:$0x1] }
 0x1fd   : > { %v2394_v48 = vsel %vm8871_vm1, %v2392_v13, %v2393_v54  ;;  %v4651_v52 = vshrl.u32 %v4602_v41, 16  ;;  %v4654_v44 = vshll.u32 %v4602_v41, 16  ;;  %v4675_v32 = vshrl.u32 %v4605_v59, 16  ;;  %v4608_v50 = vld [vmem:[#allocation2 + $0x30] sm:$0xf]  ;;  %v7903_v47 = vld [vmem:[#allocation2 + $0x60] sm:$0xff]  }
 0x1fe   : > { %v6669_v10 = vcombine.low %v2391_v28, %v2394_v48  ;;  %v4678_v42 = vshll.u32 %v4605_v59, 16  ;;  %v4666_v56 = vrot.slane %v4664_v30, 4  ;;  %v4684_v53 = vshll.u32 %v9134_v60, 16  ;;  %v7906_v6 = vld [vmem:[#allocation2 + $0x54] sm:$0xff]   ;;  %v4611_v45 = vld [vmem:[#allocation2 + $0x3c] sm:$0xf] }
 0x1ff   : > { %v4653_v17 = vrot.slane %v4651_v52, 4  ;;  %v4656_v19 = vrot.slane %v4654_v44, 5  ;;  %v4688_v61 = vshrl.u32 %v9134_v60, 16  ;;  %v4670_v62 = vshll.u32 %v9136_v7, 16  ;;  %v9149_v15 = vld [vmem:[#allocation2 + $0x34] sm:$0xf] }
 0x200   : > { %v4680_v18 = vrot.slane %v4678_v42, 5  ;;  %v9145_v12 = vrot.slane %v4684_v53, 5  ;;  %v4699_v55 = vshrl.u32 %v4608_v50, 16  ;;  %v4702_v21 = vshll.u32 %v4608_v50, 16  ;;  %v7905_v13 = vld [vmem:[#allocation2 + $0x6c] sm:$0xff]   ;;  %v7907_v48 = vld [vmem:[#allocation2 + $0x78] sm:$0xff]  }
 0x201   : > { %7452 = vmatmul.mubr.msk.bf16.gmra.mrb[8].mxu1 %vm1726_vm11, %v6782_v36  ;;  %7350 = vmatmul.mubr.msk.bf16.gmra.mrb[56].mxu0 %vm1726_vm11, %v6667_v4  ;;  %v4660_v36 = vshll.u32 %v9124_v38, 16  ;;  %v4657_v49 = vor.u32 %v4656_v19, %v4653_v17  ;;  %v4690_v22 = vrot.slane %v4688_v61, 4  ;;  %v4672_v57 = vrot.slane %v4670_v62, 5  ;;  %v7908_v28 = vld [vmem:[#allocation2 + $0x60] sm:$0xff]   ;;  %v9184_v44 = vld [vmem:[#allocation2 + $0x58] sm:$0xf] }
 0x202   : > { %7455 = vmatprep.mubr.msk.bf16.mxu1 %vm1726_vm11, %v6783_v25  ;;  %7353 = vmatprep.mubr.msk.bf16.mxu0 %vm1726_vm11, %v6668_v8  ;;  %v4677_v25 = vrot.slane %v4675_v32, 4  ;;  %v4708_v8 = vshll.u32 %v9149_v15, 16  ;;  %v4701_v14 = vrot.slane %v4699_v55, 4  ;;  %v4704_v54 = vrot.slane %v4702_v21, 5  ;;  %v9186_v17 = vld [vmem:[#allocation2 + $0x44] sm:$0x1] }
 0x203   : > { %v4662_v2 = vrot.slane %v4660_v36, 5  ;;  %v4658_v26 = vrot.slane %v4657_v49, 4  ;;  %v4691_v33 = vor.u32 %v4690_v22, %v9145_v12  ;;  %v4712_v51 = vshrl.u32 %v9149_v15, 16  ;;  %v4620_v62 = vld [vmem:[#allocation2 + $0x60] sm:$0xf] }
 0x204   : > { %v4681_v37 = vor.u32 %v4680_v18, %v4677_v25  ;;  %v9177_v59 = vrot.slane %v4708_v8, 5  ;;  %v4742_v22 = vshll.u32 %v9186_v17, 16  ;;  %v9201_v21 = vld [vmem:[#allocation2 + $0x64] sm:$0xf] }
 0x205   : > { %v4667_v5 = vor.u32 %v4666_v56, %v4662_v2  ;;  %v4692_v30 = vrot.slane %v4691_v33, 4  ;;  %v9206_v33 = vld [vmem:[#allocation2 + $0x50] sm:$0x1] }
 0x206   : > { %v9152_v4 = vrot.slane %v4681_v37, 4  ;;  %v7909_v37 = vld [vmem:[#allocation2 + $0x84] sm:$0xff]  }
 0x207   : > { %v4668_v43 = vrot.slane %v4667_v5, 4 }
 0x208   : > { %v4687_v36 = vsel %vm8137_vm10, %v9152_v4, %v9145_v12 }
 0x209   : > { %7456 = vmatmul.mubr.msk.bf16.gmra.mrb[12].mxu1 %vm1726_vm11, %v6784_v20  ;;  %7354 = vmatmul.mubr.msk.bf16.gmra.mrb[60].mxu0 %vm1726_vm11, %v6669_v10  ;;  %v9143_v20 = vld [vmem:[#allocation2 + $0x2c] sm:$0x1]  ;;  %v4673_v40 = vsel %vm8137_vm10, %v4668_v43, %v4672_v57  ;;  %v9159_v10 = vld [vmem:[#allocation2 + $0x40] sm:$0xf] }
 0x20a   : > { %7461 = vmatprep.mubr.msk.bf16.mxu1 %vm1726_vm11, %v7892_v0  ;;  %7359 = vmatprep.mubr.msk.bf16.mxu0 %vm1726_vm11, %v7894_v63  ;;  %v4694_v58 = vshll.u32 %v9143_v20, 16  ;;  %v4723_v0 = vshrl.u32 %v4611_v45, 16  ;;  %v4726_v63 = vshll.u32 %v4611_v45, 16  ;;  %v4736_v52 = vshrl.u32 %v9159_v10, 16 }
 0x20b   : > { %v5404_v46 = vrot.slane %v9143_v20, 5 }
 0x20c   : > { %v4725_v32 = vrot.slane %v4723_v0, 4  ;;  %v4728_v42 = vrot.slane %v4726_v63, 5  ;;  %v4738_v49 = vrot.slane %v4736_v52, 4 }
 0x20e   : > { %v4729_v12 = vor.u32 %v4728_v42, %v4725_v32 }
 0x211   : > { %7462 = vmatmul.mubr.msk.bf16.vlgmr.msra.gmra.mrb[16].mxu1 %vm1726_vm11, %v7893_v3  ;;  %7360 = vmatmul.mubr.msk.bf16.vlgmr.msra.gmra.mrb[32].mxu0 %vm1726_vm11, %v7896_v27  ;;  %v4663_v3 = vsel %vm8137_vm10, %v4658_v26, %v4662_v2  ;;  %v9165_v27 = vsel %vm1775_vm7, %v9118_v35, 0  ;;  %v7910_v26 = vld [vmem:[#allocation2 + $0x90] sm:$0xff]  }
 0x212   : > { %7494 = vmatpush3.bf16.msra.mxu1 %v5133_v39  ;;  %7465 = vmatprep.mubr.msk.bf16.mxu1 %vm1726_vm11, %v7895_v9  ;;  %v4696_v39 = vrot.slane %v4694_v58, 5  ;;  %v9167_v9 = vld [vmem:[#allocation2 + $0x38] sm:$0x1]  ;;  %v9171_v41 = vcombine.low %v4663_v3, %v4673_v40  ;;  %v4795_v40 = vshrl.u32 %v4620_v62, 16 }
 0x213   : > { %7363 = vmatprep.mubr.msk.bf16.mxu0 %vm1726_vm11, %v7898_v23  ;;  %7862 = vmatprep.subr.msk.bf16.mxu1 %vm1775_vm7, %v9118_v35  ;;  %v4614_v23 = vld [vmem:[#allocation2 + $0x48] sm:$0xf]  ;;  %v4617_v35 = vld [vmem:[#allocation2 + $0x54] sm:$0xf]  ;;  %v4718_v5 = vshll.u32 %v9167_v9, 16 }
 0x214   : > { %v4747_v2 = vshrl.u32 %v4614_v23, 16  ;;  %v4750_v56 = vshll.u32 %v4614_v23, 16  ;;  %v4771_v18 = vshrl.u32 %v4617_v35, 16  ;;  %v4774_v53 = vshll.u32 %v4617_v35, 16  ;;  %v4623_v23 = vld [vmem:[#allocation2 + $0x6c] sm:$0xf] }
 0x215   : > { %v4697_v61 = vsel %vm8137_vm10, %v4692_v30, %v4696_v39  ;;  %v9224_v39 = vrot.slane %v4742_v22, 5  ;;  %v4797_v42 = vrot.slane %v4795_v40, 4 }
 0x216   : > { %v4749_v43 = vrot.slane %v4747_v2, 4  ;;  %v4752_v55 = vrot.slane %v4750_v56, 5  ;;  %v4773_v45 = vrot.slane %v4771_v18, 4  ;;  %v4776_v4 = vrot.slane %v4774_v53, 5  ;;  %v7911_v53 = vld [vmem:[#allocation2 + $0x9c] sm:$0xff]  }
 0x217   : > { %v4822_v18 = vshll.u32 %v4623_v23, 16 }
 0x218   : > { %v4753_v30 = vor.u32 %v4752_v55, %v4749_v43  ;;  %v4777_v52 = vor.u32 %v4776_v4, %v4773_v45  ;;  %v4626_v55 = vld [vmem:[#allocation2 + $0x78] sm:$0xf] }
 0x219   : > { %7466 = vmatmul.mubr.msk.bf16.gmra.mrb[20].mxu1 %vm1726_vm11, %v7897_v1  ;;  %7364 = vmatmul.mubr.msk.bf16.gmra.mrb[36].mxu0 %vm1726_vm11, %v7900_v11  ;;  %v9179_v1 = vld [vmem:[#allocation2 + $0x4c] sm:$0xf]  ;;  %v4705_v11 = vor.u32 %v4704_v54, %v4701_v14  ;;  %v4798_v14 = vshll.u32 %v4620_v62, 16  ;;  %v9211_v54 = vcombine.low %v4687_v36, %v4697_v61  ;;  %v9226_v36 = vrot.slane %v4729_v12, 4 }
 0x21a   : > { %7469 = vmatprep.mubr.msk.bf16.mxu1 %vm1726_vm11, %v7899_v34  ;;  %7367 = vmatprep.mubr.msk.bf16.mxu0 %vm1726_vm11, %v7902_v31  ;;  %v4714_v34 = vrot.slane %v4712_v51, 4  ;;  %v4732_v31 = vshll.u32 %v9159_v10, 16  ;;  %v4756_v19 = vshll.u32 %v9179_v1, 16  ;;  %v4760_v25 = vshrl.u32 %v9179_v1, 16  ;;  %v7912_v62 = vld [vmem:[#allocation2 + $0xa8] sm:$0xff]  }
 0x21b   : > { %v9195_v50 = vrot.slane %v4705_v11, 4  ;;  %v9213_v51 = vrot.slane %v4718_v5, 5  ;;  %v4766_v11 = vshll.u32 %v9206_v33, 16  ;;  %v4800_v2 = vrot.slane %v4798_v14, 5 }
 0x21c   : > { %v9203_v57 = vrot.slane %v4756_v19, 5  ;;  %v4762_v58 = vrot.slane %v4760_v25, 4  ;;  %v4819_v25 = vshrl.u32 %v4623_v23, 16  ;;  %v4754_v12 = vrot.slane %v4753_v30, 4 }
 0x21d   : > { %v4711_v0 = vsel %vm8137_vm10, %v9195_v50, %v9177_v59  ;;  %v4768_v22 = vrot.slane %v4766_v11, 5  ;;  %v4801_v4 = vor.u32 %v4800_v2, %v4797_v42  ;;  %v4843_v23 = vshrl.u32 %v4626_v55, 16 }
 0x21e   : > { %v4763_v35 = vor.u32 %v4762_v58, %v9203_v57  ;;  %v4778_v58 = vrot.slane %v4777_v52, 4  ;;  %v4821_v14 = vrot.slane %v4819_v25, 4  ;;  %v4759_v42 = vsel %vm8137_vm10, %v4754_v12, %v9203_v57  ;;  %v9274_v25 = vld [vmem:[#allocation2 + $0x84] sm:$0xf] }
 0x221   : > { %7470 = vmatmul.mubr.msk.bf16.gmra.mrb[24].mxu1 %vm1726_vm11, %v7901_v16  ;;  %7368 = vmatmul.mubr.msk.bf16.gmra.mrb[40].mxu0 %vm1726_vm11, %v7904_v24  ;;  %v4780_v16 = vshll.u32 %v9184_v44, 16  ;;  %v4784_v24 = vshrl.u32 %v9184_v44, 16 }
 0x222   : > { %7473 = vmatprep.mubr.msk.bf16.mxu1 %vm1726_vm11, %v7903_v47  ;;  %7371 = vmatprep.mubr.msk.bf16.mxu0 %vm1726_vm11, %v7906_v6  ;;  %v4715_v47 = vor.u32 %v4714_v34, %v9177_v59  ;;  %v9198_v6 = vrot.slane %v4732_v31, 5  ;;  %v9230_v34 = vld [vmem:[#allocation2 + $0x70] sm:$0xf]  ;;  %v9232_v31 = vld [vmem:[#allocation2 + $0x5c] sm:$0x1] }
 0x223   : > { %v9208_v8 = vrot.slane %v4780_v16, 5  ;;  %v9241_v16 = vld [vmem:[#allocation2 + $0x68] sm:$0x1]  ;;  %v4790_v43 = vshll.u32 %v9232_v31, 16 }
 0x224   : > { %v9221_v63 = vrot.slane %v4715_v47, 4  ;;  %v4739_v3 = vor.u32 %v4738_v49, %v9198_v6  ;;  %v4832_v47 = vshrl.u32 %v9230_v34, 16  ;;  %v704_v49 = vld [vmem:[#allocation2 + $0xd4] sm:$0x1] }
 0x225   : > { %v4792_v30 = vrot.slane %v4790_v43, 5  ;;  %v4783_v57 = vsel %vm8137_vm10, %v4778_v58, %v9208_v8  ;;  %v9291_v43 = vld [vmem:[#allocation2 + $0x80] sm:$0x1] }
 0x226   : > { %v4721_v61 = vsel %vm8137_vm10, %v9221_v63, %v9213_v51  ;;  %v4740_v5 = vrot.slane %v4739_v3, 4  ;;  %v4824_v51 = vrot.slane %v4822_v18, 5  ;;  %v4834_v3 = vrot.slane %v4832_v47, 4 }
 0x229   : > { %7474 = vmatmul.mubr.msk.bf16.gmra.mrb[28].mxu1 %vm1726_vm11, %v7905_v13  ;;  %7372 = vmatmul.mubr.msk.bf16.gmra.mrb[44].mxu0 %vm1726_vm11, %v7908_v28  ;;  %v4786_v13 = vrot.slane %v4784_v24, 4  ;;  %v4808_v28 = vshrl.u32 %v9201_v21, 16  ;;  %v4828_v24 = vshll.u32 %v9230_v34, 16 }
 0x22a   : > { %7477 = vmatprep.mubr.msk.bf16.mxu1 %vm1726_vm11, %v7907_v48  ;;  %v4804_v48 = vshll.u32 %v9201_v21, 16 }
 0x22b   : > { %v4787_v32 = vor.u32 %v4786_v13, %v9208_v8  ;;  %v4810_v19 = vrot.slane %v4808_v28, 4  ;;  %v9251_v13 = vld [vmem:[#allocation2 + $0x7c] sm:$0xf]  ;;  %v9257_v28 = vld [vmem:[#allocation2 + $0x74] sm:$0x1]  ;;  %v9259_v63 = vrot.slane %v4828_v24, 5  ;;  %v4825_v24 = vor.u32 %v4824_v51, %v4821_v14 }
 0x22c   : > { %v9235_v56 = vrot.slane %v4804_v48, 5  ;;  %v705_v48 = vsel %vm8086_vm5, 0, %v704_v49  ;;  %v4852_v11 = vshll.u32 %v9251_v13, 16  ;;  %v4856_v52 = vshrl.u32 %v9251_v13, 16  ;;  %v9312_v14 = vld [vmem:[#allocation2 + $0x88] sm:$0xf] }
 0x22d   : > { %v4788_v45 = vrot.slane %v4787_v32, 4  ;;  %706 = vst [vmem:[#allocation2 + $0xd4] sm:$0x1] %v705_v48  ;;  %v4745_v32 = vsel %vm8137_vm10, %v4740_v5, %v9224_v39  ;;  %v4838_v47 = vshll.u32 %v9257_v28, 16  ;;  %v7913_v39 = vld [vmem:[#allocation2 + $0xb4] sm:$0xff]   ;;  %v7914_v5 = vld [vmem:[#allocation2 + $0xc0] sm:$0xff]   ;;  %v4835_v49 = vor.u32 %v4834_v3, %v9259_v63 }
 0x22e   : > { %v4811_v40 = vor.u32 %v4810_v19, %v9235_v56  ;;  %v9272_v19 = vrot.slane %v4801_v4, 4  ;;  %v9304_v8 = vcombine.low %v4711_v0, %v4721_v61  ;;  %v9314_v51 = vld [vmem:[#allocation2 + $0x90] sm:$0xf]  ;;  %v9325_v50 = vrot.slane %v4825_v24, 4  ;;  %v9329_v61 = vld [vmem:[#allocation2 + $0x94] sm:$0xf] }
 0x22f   : > { %v4793_v18 = vsel %vm8137_vm10, %v4788_v45, %v4792_v30  ;;  %v4867_v45 = vshrl.u32 %v9274_v25, 16  ;;  %v9327_v0 = vrot.slane %v4838_v47, 5  ;;  %v9331_v48 = vrot.slane %v4835_v49, 4  ;;  %v5332_v30 = vld [vmem:[#allocation2 + $0x48] sm:$0xe] }
 0x230   : > { %v5411_v49 = vrot.slane %v9167_v9, 5  ;;  %v5422_v3 = vrot.slane %v9179_v1, 5  ;;  %v6871_v9 = vrot.slane %v5332_v30, 9  ;;  %v5425_v1 = vrot.slane %v9206_v33, 5  ;;  %v5340_v47 = vld [vmem:[#allocation2 + $0xa8] sm:$0xe] }
 0x231   : > { %7478 = vmatmul.mubr.msk.bf16.gmra.mrb[0].mxu1 %vm1726_vm11, %v7909_v37  ;;  %v4735_v37 = vsel %vm8137_vm10, %v9226_v36, %v9198_v6  ;;  %v4846_v36 = vshll.u32 %v4626_v55, 16  ;;  %v9293_v55 = vrot.slane %v4852_v11, 5  ;;  %v9339_v11 = vrot.slane %v4867_v45, 4  ;;  %v5333_v6 = vld [vmem:[#allocation2 + $0x54] sm:$0xe] }
 0x232   : > { %7481 = vmatprep.mubr.msk.bf16.mxu1 %vm1726_vm11, %v7910_v26  ;;  %v4764_v26 = vrot.slane %v4763_v35, 4  ;;  %v4814_v35 = vshll.u32 %v9241_v16, 16  ;;  %v9306_v58 = vcombine.low %v4735_v37, %v4745_v32  ;;  %v5330_v37 = vld [vmem:[#allocation2 + $0x30] sm:$0xe]  ;;  %v5408_v32 = vrot.slane %v9149_v15, 5 }
 0x233   : > { %v9287_v12 = vrot.slane %v4846_v36, 5  ;;  %v5415_v45 = vrot.slane %v9159_v10, 5  ;;  %v9376_v30 = vsel %vm8871_vm1, %v6871_v9, %v5422_v3  ;;  %v9453_v24 = vld [vmem:[#allocation2 + $0xb0] sm:$0x1] }
 0x234   : > { %v4769_v2 = vsel %vm8137_vm10, %v4764_v26, %v4768_v22  ;;  %v9289_v22 = vrot.slane %v4814_v35, 5  ;;  %v9295_v26 = vrot.slane %v4856_v52, 4  ;;  %v9460_v52 = vld [vmem:[#allocation2 + $0xb8] sm:$0xf] }
 0x235   : > { %v9308_v4 = vcombine.low %v4759_v42, %v4769_v2  ;;  %v5331_v42 = vld [vmem:[#allocation2 + $0x3c] sm:$0xe]  ;;  %v7915_v2 = vld [vmem:[#allocation2 + $0xcc] sm:$0xff]   ;;  %v5417_v59 = vrot.slane %v5415_v45, 4 }
 0x236   : > { %v6870_v35 = vrot.slane %v5331_v42, 9  ;;  %v5424_v42 = vrot.slane %v5422_v3, 4 }
 0x238   : > { %v9383_v33 = vsel %vm8871_vm1, %v5424_v42, %v5425_v1  ;;  %v5443_v42 = vrot.slane %v9230_v34, 5  ;;  %v5446_v1 = vrot.slane %v9257_v28, 5 }
 0x239   : > { %7482 = vmatmul.mubr.msk.bf16.gmra.mrb[4].mxu1 %vm1726_vm11, %v7911_v53  ;;  %v9278_v53 = vrot.slane %v4811_v40, 4  ;;  %v9310_v40 = vcombine.low %v4783_v57, %v4793_v18  ;;  %v5410_v57 = vrot.slane %v5408_v32, 4  ;;  %v10086_v20 = vcombine.low %v9376_v30, %v9383_v33 }
 0x23a   : > { %7485 = vmatprep.mubr.msk.bf16.mxu1 %vm1726_vm11, %v7912_v62  ;;  %v9285_v62 = vrot.slane %v4843_v23, 4 }
 0x241   : > { %7486 = vmatmul.mubr.msk.bf16.gmra.mrb[8].mxu1 %vm1726_vm11, %v7913_v39  ;;  %v6869_v39 = vrot.slane %v5330_v37, 9  ;;  %v9357_v37 = vsel %vm8871_vm1, %v5410_v57, %v5411_v49  ;;  %v5429_v57 = vrot.slane %v9184_v44, 5  ;;  %v5336_v44 = vld [vmem:[#allocation2 + $0x78] sm:$0xe] }
 0x242   : > { %7489 = vmatprep.mubr.msk.bf16.mxu1 %vm1726_vm11, %v7914_v5  ;;  %v5418_v5 = vrot.slane %v9186_v17, 5 }
 0x243   : > { %v9352_v15 = vsel %vm8871_vm1, %v6869_v39, %v5408_v32  ;;  %v9365_v32 = vsel %vm8871_vm1, %v6870_v35, %v5415_v45  ;;  %v5334_v39 = vld [vmem:[#allocation2 + $0x60] sm:$0xe]  ;;  %v5335_v35 = vld [vmem:[#allocation2 + $0x6c] sm:$0xe]  ;;  %v5431_v3 = vrot.slane %v5429_v57, 4 }
 0x244   : > { %v9372_v17 = vsel %vm8871_vm1, %v5417_v59, %v5418_v5  ;;  %v5436_v59 = vrot.slane %v9201_v21, 5  ;;  %v6873_v45 = vrot.slane %v5334_v39, 9  ;;  %v6874_v10 = vrot.slane %v5335_v35, 9  ;;  %v5337_v39 = vld [vmem:[#allocation2 + $0x84] sm:$0xe] }
 0x245   : > { %v9405_v5 = vld [vmem:[#allocation2 + $0x8c] sm:$0x1]  ;;  %v6875_v35 = vrot.slane %v5336_v44, 9 }
 0x246   : > { %v5438_v49 = vrot.slane %v5436_v59, 4  ;;  %v9401_v21 = vsel %vm8871_vm1, %v6873_v45, %v5436_v59  ;;  %v5338_v45 = vld [vmem:[#allocation2 + $0x90] sm:$0xe]  ;;  %v6876_v59 = vrot.slane %v5337_v39, 9  ;;  %v5460_v39 = vrot.slane %v9405_v5, 5 }
 0x247   : > { %10059 = vst [vmem:[#allocation9_spill] sm:$0xff] %v9401_v21  ;;  %v5342_v21 = vld [vmem:[#allocation2 + $0xc0] sm:$0xe] }
 0x249   : > { %7490 = vmatmul.mubr.msk.bf16.gmra.mrb[12].mxu1 %vm1726_vm11, %v7915_v2  ;;  %v6872_v2 = vrot.slane %v5333_v6, 9  ;;  %v5439_v6 = vrot.slane %v9241_v16, 5  ;;  %v5450_v16 = vrot.slane %v9251_v13, 5  ;;  %v9419_v13 = vsel %vm8871_vm1, %v6874_v10, %v5443_v42 }
 0x24a   : > { %7495 = vmatprep.mubr.msk.bf16.mxu1 %vm1726_vm11, %v9171_v41  ;;  %v5432_v41 = vrot.slane %v9232_v31, 5  ;;  %10061 = vst [vmem:[#allocation8_spill] sm:$0xff] %v9419_v13  ;;  %v5457_v10 = vrot.slane %v9312_v14, 5 }
 0x24b   : > { %v9392_v9 = vsel %vm8871_vm1, %v6872_v2, %v5429_v57  ;;  %v9411_v34 = vsel %vm8871_vm1, %v5438_v49, %v5439_v6  ;;  %v5445_v57 = vrot.slane %v5443_v42, 4  ;;  %v5452_v28 = vrot.slane %v5450_v16, 4  ;;  %v9424_v49 = vld [vmem:[#allocation2 + $0xa0] sm:$0xf]  ;;  %v5339_v42 = vld [vmem:[#allocation2 + $0x9c] sm:$0xe] }
 0x24c   : > { %10057 = vst [vmem:[#allocation6_spill] sm:$0xff] %v9392_v9  ;;  %v9397_v31 = vsel %vm8871_vm1, %v5431_v3, %v5432_v41  ;;  %10060 = vst [vmem:[#allocation7_spill] sm:$0xff] %v9411_v34  ;;  %v9413_v41 = vld [vmem:[#allocation2 + $0x98] sm:$0x1]  ;;  %v5453_v3 = vrot.slane %v9291_v43, 5  ;;  %v9432_v44 = vsel %vm8871_vm1, %v6875_v35, %v5450_v16  ;;  %v5459_v35 = vrot.slane %v5457_v10, 4 }
 0x24d   : > { %10058 = vst [vmem:[#allocation5_spill] sm:$0xff] %v9397_v31  ;;  %v9428_v6 = vsel %vm8871_vm1, %v5445_v57, %v5446_v1  ;;  %10063 = vst [vmem:[#allocation11_spill] sm:$0xff] %v9432_v44  ;;  %v9440_v2 = vld [vmem:[#allocation2 + $0xac] sm:$0xf]  ;;  %v5464_v57 = vrot.slane %v9329_v61, 5  ;;  %v5467_v23 = vrot.slane %v9413_v41, 5  ;;  %v9457_v1 = vsel %vm8871_vm1, %v6876_v59, %v5457_v10 }
 0x24e   : > { %10062 = vst [vmem:[#allocation10_spill] sm:$0xff] %v9428_v6  ;;  %v9446_v16 = vsel %vm8871_vm1, %v5452_v28, %v5453_v3  ;;  %v6878_v3 = vrot.slane %v5339_v42, 9  ;;  %v5471_v18 = vrot.slane %v9424_v49, 5  ;;  %v5341_v59 = vld [vmem:[#allocation2 + $0xb4] sm:$0xe]  ;;  %v6879_v6 = vrot.slane %v5340_v47, 9 }
 0x24f   : > { %10064 = vst [vmem:[#allocation3_spill] sm:$0xff] %v9446_v16  ;;  %v5466_v28 = vrot.slane %v5464_v57, 4  ;;  %v5478_v16 = vrot.slane %v9440_v2, 5  ;;  %v9472_v10 = vld [vmem:[#allocation2 + $0xbc] sm:$0x1]  ;;  %v5481_v34 = vrot.slane %v9453_v24, 5 }
 0x250   : > { %v9474_v42 = vld [vmem:[#allocation2 + $0xc4] sm:$0xf]  ;;  %v5343_v31 = vld [vmem:[#allocation2 + $0xcc] sm:$0xe]  ;;  %v9489_v9 = vld [vmem:[#allocation2 + $0xc8] sm:$0x1] }
 0x251   : > { %7496 = vmatmul.mubr.msk.bf16.vlgmr.msra.gmra.mrb[16].mxu1 %vm1726_vm11, %v9211_v54  ;;  %v9438_v54 = vld [vmem:[#allocation2 + $0xa4] sm:$0x1]  ;;  %v5480_v13 = vrot.slane %v5478_v16, 4  ;;  %v9497_v47 = vsel %vm8871_vm1, %v6879_v6, %v5478_v16  ;;  %v5492_v6 = vrot.slane %v9474_v42, 5  ;;  %v9514_v16 = vld [vmem:[#allocation2 + $0xd4] sm:$0x1] }
 0x252   : > { %7528 = vmatpush3.bf16.msra.mxu1 %v9165_v27  ;;  %7499 = vmatprep.mubr.msk.bf16.mxu1 %vm1726_vm11, %v9304_v8  ;;  %v6877_v8 = vrot.slane %v5338_v45, 9  ;;  %v9464_v27 = vsel %vm8871_vm1, %v5459_v35, %v5460_v39  ;;  %v5474_v36 = vrot.slane %v9438_v54, 5  ;;  %v9480_v39 = vsel %vm8871_vm1, %v5466_v28, %v5467_v23 }
 0x253   : > { %10066 = vst [vmem:[#allocation12_spill] sm:$0xff] %v9480_v39  ;;  %v5473_v35 = vrot.slane %v5471_v18, 4  ;;  %v6880_v28 = vrot.slane %v5341_v59, 9  ;;  %v9508_v44 = vsel %vm8871_vm1, %v5480_v13, %v5481_v34  ;;  %v6882_v39 = vrot.slane %v5343_v31, 9  ;;  %v10087_v29 = vld [vmem:[#allocation6_spill] sm:$0xff] }
 0x254   : > { %v9468_v45 = vsel %vm8871_vm1, %v6877_v8, %v5464_v57  ;;  %v9486_v8 = vsel %vm8871_vm1, %v6878_v3, %v5471_v18  ;;  %v5485_v57 = vrot.slane %v9460_v52, 5  ;;  %v9502_v18 = vld [vmem:[#allocation2 + $0xd0] sm:$0xf]  ;;  %10069 = vst [vmem:[#allocation15_spill] sm:$0xff] %v9508_v44  ;;  %v5494_v3 = vrot.slane %v5492_v6, 4 }
 0x255   : > { %10065 = vst [vmem:[#allocation4_spill] sm:$0xff] %v9468_v45  ;;  %10067 = vst [vmem:[#allocation13_spill] sm:$0xff] %v9486_v8  ;;  %v9493_v23 = vsel %vm8871_vm1, %v5473_v35, %v5474_v36  ;;  %v5488_v36 = vrot.slane %v9472_v10, 5  ;;  %v6881_v35 = vrot.slane %v5342_v21, 9  ;;  %v5499_v34 = vrot.slane %v9502_v18, 5 }
 0x256   : > { %10068 = vst [vmem:[#allocation14_spill] sm:$0xff] %v9493_v23  ;;  %v5487_v59 = vrot.slane %v5485_v57, 4  ;;  %v5495_v23 = vrot.slane %v9489_v9, 5  ;;  %v5502_v13 = vrot.slane %v9514_v16, 5  ;;  %v10070_v8 = vshll.u32 %v9274_v25, 16 }
 0x257   : > { %v9533_v31 = vsel %vm8871_vm1, %v6881_v35, %v5492_v6  ;;  %v9543_v25 = vsel %vm8871_vm1, %v6882_v39, %v5499_v34  ;;  %v10077_v39 = vshll.u32 %v9329_v61, 16  ;;  %v10099_v33 = vcombine.low %v9457_v1, %v9464_v27 }
 0x258   : > { %v4872_v45 = vrot.slane %v10070_v8, 5  ;;  %v9539_v44 = vsel %vm8871_vm1, %v5494_v3, %v5495_v23  ;;  %v10073_v8 = vshll.u32 %v9312_v14, 16  ;;  %v10076_v23 = vshll.u32 %v9314_v51, 16 }
 0x259   : > { %7500 = vmatmul.mubr.msk.bf16.gmra.mrb[20].mxu1 %vm1726_vm11, %v9306_v58  ;;  %v9529_v58 = vsel %vm8871_vm1, %v5487_v59, %v5488_v36  ;;  %v10074_v36 = vshrl.u32 %v9312_v14, 16  ;;  %v10075_v59 = vshrl.u32 %v9314_v51, 16  ;;  %v6898_v21 = vcombine.low %v9533_v31, %v9539_v44 }
 0x25a   : > { %7503 = vmatprep.mubr.msk.bf16.mxu1 %vm1726_vm11, %v9308_v4  ;;  %v9525_v4 = vsel %vm8871_vm1, %v6880_v28, %v5485_v57  ;;  %10072 = vst [vmem:[#allocation17_spill] sm:$0xff] %v9529_v58  ;;  %v5501_v57 = vrot.slane %v5499_v34, 4  ;;  %v9547_v28 = vrot.slane %v10073_v8, 5  ;;  %v4896_v3 = vrot.slane %v10076_v23, 5 }
 0x25b   : > { %10071 = vst [vmem:[#allocation16_spill] sm:$0xff] %v9525_v4  ;;  %v4882_v6 = vrot.slane %v10074_v36, 4  ;;  %v4893_v35 = vrot.slane %v10075_v59, 4  ;;  %v9559_v58 = vrot.slane %v10077_v39, 5  ;;  %v10078_v34 = vshrl.u32 %v9329_v61, 16 }
 0x25c   : > { %v4635_v4 = vld [vmem:[#allocation2 + $0x9c] sm:$0xf]  ;;  %v9565_v14 = vsel %vm8871_vm1, %v5501_v57, %v5502_v13  ;;  %v10079_v36 = vsel %vm8137_vm10, %v9278_v53, %v9289_v22  ;;  %v10080_v51 = vsel %vm8137_vm10, %v9272_v19, %v9235_v56  ;;  %v4841_v61 = vsel %vm8137_vm10, %v9331_v48, %v9327_v0 }
 0x25d   : > { %v4906_v8 = vrot.slane %v10078_v34, 4  ;;  %v6841_v59 = vcombine.low %v10080_v51, %v10079_v36  ;;  %v10081_v13 = vor.u32 %v9287_v12, %v9285_v62  ;;  %v6899_v23 = vcombine.low %v9543_v25, %v9565_v14 }
 0x25e   : > { %v4831_v56 = vsel %vm8137_vm10, %v9325_v50, %v9259_v63  ;;  %v10082_v19 = vor.u32 %v9295_v26, %v9293_v55  ;;  %v4873_v62 = vor.u32 %v4872_v45, %v9339_v11  ;;  %v4883_v12 = vor.u32 %v4882_v6, %v9547_v28  ;;  %v4638_v45 = vld [vmem:[#allocation2 + $0xa8] sm:$0xf] }
 0x25f   : > { %v4850_v57 = vrot.slane %v10081_v13, 4  ;;  %v4915_v22 = vshrl.u32 %v4635_v4, 16  ;;  %v4918_v0 = vshll.u32 %v4635_v4, 16  ;;  %v6842_v48 = vcombine.low %v4831_v56, %v4841_v61 }
 0x260   : > { %v4860_v53 = vrot.slane %v10082_v19, 4  ;;  %v4897_v34 = vor.u32 %v4896_v3, %v4893_v35  ;;  %v4907_v36 = vor.u32 %v4906_v8, %v9559_v58  ;;  %v4886_v26 = vshll.u32 %v9405_v5, 16 }
 0x261   : > { %7504 = vmatmul.mubr.msk.bf16.gmra.mrb[24].mxu1 %vm1726_vm11, %v9310_v40  ;;  %v10083_v40 = vshll.u32 %v9291_v43, 16  ;;  %v4855_v63 = vsel %vm8137_vm10, %v4850_v57, %v9293_v55  ;;  %v4924_v50 = vshll.u32 %v9424_v49, 16  ;;  %v4928_v11 = vshrl.u32 %v9424_v49, 16 }
 0x262   : > { %7507 = vmatprep.mubr.msk.bf16.mxu1 %vm1726_vm11, %v6841_v59  ;;  %v4910_v43 = vshll.u32 %v9413_v41, 16  ;;  %v4948_v6 = vshll.u32 %v9440_v2, 16  ;;  %v4952_v35 = vshrl.u32 %v9440_v2, 16  ;;  %v4874_v3 = vrot.slane %v4873_v62, 4  ;;  %v4641_v2 = vld [vmem:[#allocation2 + $0xb4] sm:$0xf] }
 0x263   : > { %v4864_v39 = vrot.slane %v10083_v40, 5  ;;  %v4884_v8 = vrot.slane %v4883_v12, 4  ;;  %v4917_v51 = vrot.slane %v4915_v22, 4  ;;  %v4920_v55 = vrot.slane %v4918_v0, 5 }
 0x264   : > { %v4898_v59 = vrot.slane %v4897_v34, 4  ;;  %v4908_v5 = vrot.slane %v4907_v36, 4  ;;  %v4939_v61 = vshrl.u32 %v4638_v45, 16  ;;  %v4942_v13 = vshll.u32 %v4638_v45, 16 }
 0x265   : > { %v4865_v4 = vsel %vm8137_vm10, %v4860_v53, %v4864_v39  ;;  %v4888_v49 = vrot.slane %v4886_v26, 5  ;;  %v9612_v56 = vrot.slane %v4924_v50, 5  ;;  %v4930_v19 = vrot.slane %v4928_v11, 4  ;;  %v4644_v11 = vld [vmem:[#allocation2 + $0xc0] sm:$0xf] }
 0x266   : > { %v6843_v57 = vcombine.low %v4855_v63, %v4865_v4  ;;  %v4912_v41 = vrot.slane %v4910_v43, 5  ;;  %v9615_v53 = vrot.slane %v4948_v6, 5  ;;  %v4954_v40 = vrot.slane %v4952_v35, 4 }
 0x267   : > { %v4879_v62 = vsel %vm8137_vm10, %v4874_v3, %v9547_v28  ;;  %v4889_v12 = vsel %vm8137_vm10, %v4884_v8, %v4888_v49  ;;  %v4921_v22 = vor.u32 %v4920_v55, %v4917_v51  ;;  %v4934_v0 = vshll.u32 %v9438_v54, 16 }
 0x268   : > { %v4913_v39 = vsel %vm8137_vm10, %v4908_v5, %v4912_v41  ;;  %v4941_v34 = vrot.slane %v4939_v61, 4  ;;  %v4944_v36 = vrot.slane %v4942_v13, 5  ;;  %v4931_v63 = vor.u32 %v4930_v19, %v9612_v56  ;;  %v4647_v5 = vld [vmem:[#allocation2 + $0xcc] sm:$0xf] }
 0x269   : > { %7508 = vmatmul.mubr.msk.bf16.gmra.mrb[28].mxu1 %vm1726_vm11, %v6842_v48  ;;  %v4903_v48 = vsel %vm8137_vm10, %v4898_v59, %v9559_v58  ;;  %v4963_v26 = vshrl.u32 %v4641_v2, 16  ;;  %v4972_v28 = vshll.u32 %v9460_v52, 16  ;;  %v4976_v50 = vshrl.u32 %v9460_v52, 16 }
 0x26a   : > { %7511 = vmatprep.mubr.msk.bf16.mxu1 %vm1726_vm11, %v6843_v57  ;;  %v4955_v45 = vor.u32 %v4954_v40, %v9615_v53  ;;  %v4966_v54 = vshll.u32 %v4641_v2, 16  ;;  %v4996_v4 = vshll.u32 %v9474_v42, 16  ;;  %v5000_v58 = vshrl.u32 %v9474_v42, 16 }
 0x26b   : > { %v6844_v43 = vcombine.low %v4879_v62, %v4889_v12  ;;  %v6845_v6 = vcombine.low %v4903_v48, %v4913_v39  ;;  %v4922_v35 = vrot.slane %v4921_v22, 4  ;;  %v4936_v3 = vrot.slane %v4934_v0, 5 }
 0x26c   : > { %v4945_v8 = vor.u32 %v4944_v36, %v4941_v34  ;;  %v4958_v51 = vshll.u32 %v9453_v24, 16  ;;  %v4987_v55 = vshrl.u32 %v4644_v11, 16  ;;  %v4990_v59 = vshll.u32 %v4644_v11, 16 }
 0x26d   : > { %v4932_v61 = vrot.slane %v4931_v63, 4  ;;  %v4965_v52 = vrot.slane %v4963_v26, 4  ;;  %v4974_v13 = vrot.slane %v4972_v28, 5  ;;  %v4978_v57 = vrot.slane %v4976_v50, 4 }
 0x26e   : > { %v4956_v49 = vrot.slane %v4955_v45, 4  ;;  %v4968_v19 = vrot.slane %v4966_v54, 5  ;;  %v4998_v41 = vrot.slane %v4996_v4, 5  ;;  %v5002_v42 = vrot.slane %v5000_v58, 4 }
 0x26f   : > { %v5011_v40 = vshrl.u32 %v4647_v5, 16  ;;  %v5014_v2 = vshll.u32 %v4647_v5, 16  ;;  %v5020_v62 = vshll.u32 %v9502_v18, 16  ;;  %v5024_v24 = vshrl.u32 %v9502_v18, 16 }
 0x270   : > { %v4946_v12 = vrot.slane %v4945_v8, 4  ;;  %v4960_v22 = vrot.slane %v4958_v51, 5  ;;  %v4989_v0 = vrot.slane %v4987_v55, 4  ;;  %v4992_v48 = vrot.slane %v4990_v59, 5 }
 0x271   : > { %7512 = vmatmul.mubr.msk.bf16.gmra.mrb[0].mxu1 %vm1726_vm11, %v6844_v43  ;;  %v4927_v39 = vsel %vm8137_vm10, %v4922_v35, %v9612_v56  ;;  %v4937_v34 = vsel %vm8137_vm10, %v4932_v61, %v4936_v3  ;;  %v4979_v36 = vor.u32 %v4978_v57, %v4974_v13  ;;  %v4969_v26 = vor.u32 %v4968_v19, %v4965_v52 }
 0x272   : > { %7515 = vmatprep.mubr.msk.bf16.mxu1 %vm1726_vm11, %v6845_v6  ;;  %v4961_v63 = vsel %vm8137_vm10, %v4956_v49, %v4960_v22  ;;  %v4982_v28 = vshll.u32 %v9472_v10, 16  ;;  %v5003_v50 = vor.u32 %v5002_v42, %v4998_v41  ;;  %v5013_v18 = vrot.slane %v5011_v40, 4 }
 0x273   : > { %v5016_v11 = vrot.slane %v5014_v2, 5  ;;  %v5022_v45 = vrot.slane %v5020_v62, 5  ;;  %v5026_v54 = vrot.slane %v5024_v24, 4  ;;  %v6846_v4 = vcombine.low %v4927_v39, %v4937_v34  ;;  %v5885_v2 = vld [vmem:[%s10000_s5] sm:$0xf] }
 0x274   : > { %v4951_v56 = vsel %vm8137_vm10, %v4946_v12, %v9615_v53  ;;  %v4993_v58 = vor.u32 %v4992_v48, %v4989_v0  ;;  %v5006_v43 = vshll.u32 %v9489_v9, 16  ;;  %v4980_v35 = vrot.slane %v4979_v36, 4  ;;  %7863 = vmatprep.subr.msk.bf16.mxu0 %vm1775_vm7, %v5885_v2  ;;  %v5328_v12 = vld [vmem:[#allocation2 + $0x18] sm:$0xe] }
 0x275   : > { %v6847_v6 = vcombine.low %v4951_v56, %v4961_v63  ;;  %v4984_v3 = vrot.slane %v4982_v28, 5  ;;  %v5004_v8 = vrot.slane %v5003_v50, 4  ;;  %v4970_v10 = vrot.slane %v4969_v26, 4  ;;  %v5329_v28 = vld [vmem:[#allocation2 + $0x24] sm:$0xe]  ;;  %v10090_v56 = vld [vmem:[#allocation9_spill] sm:$0xff] }
 0x276   : > { %v5017_v51 = vor.u32 %v5016_v11, %v5013_v18  ;;  %v5027_v55 = vor.u32 %v5026_v54, %v5022_v45  ;;  %v5030_v59 = vshll.u32 %v9514_v16, 16  ;;  %v4994_v5 = vrot.slane %v4993_v58, 4  ;;  %v10088_v54 = vld [vmem:[#allocation5_spill] sm:$0xff]  ;;  %v10091_v58 = vld [vmem:[#allocation7_spill] sm:$0xff] }
 0x277   : > { %v5008_v61 = vrot.slane %v5006_v43, 5  ;;  %v4985_v53 = vsel %vm8137_vm10, %v4980_v35, %v4984_v3  ;;  %v5394_v52 = vrot.slane %v9124_v38, 5  ;;  %v4975_v57 = vsel %vm8137_vm10, %v4970_v10, %v4974_v13  ;;  %v10094_v43 = vld [vmem:[#allocation10_spill] sm:$0xff]  ;;  %v10100_v35 = vld [vmem:[#allocation4_spill] sm:$0xff]  ;;  %v10103_v10 = vld [vmem:[#allocation13_spill] sm:$0xff] }
 0x278   : > { %v5018_v49 = vrot.slane %v5017_v51, 4  ;;  %v5028_v19 = vrot.slane %v5027_v55, 4  ;;  %v5032_v42 = vrot.slane %v5030_v59, 5  ;;  %v6848_v40 = vcombine.low %v4975_v57, %v4985_v53  ;;  %v10101_v3 = vld [vmem:[#allocation12_spill] sm:$0xff]  ;;  %v10104_v51 = vld [vmem:[#allocation14_spill] sm:$0xff]  ;;  %v10106_v59 = vld [vmem:[#allocation15_spill] sm:$0xff] }
 0x279   : > { %7516 = vmatmul.mubr.msk.bf16.gmra.mrb[4].mxu1 %vm1726_vm11, %v6846_v4  ;;  %v5009_v9 = vsel %vm8137_vm10, %v5004_v8, %v5008_v61  ;;  %v4999_v16 = vsel %vm8137_vm10, %v4994_v5, %v4998_v41  ;;  %v5942_v24 = vsel %vm1775_vm7, %v5885_v2, 0  ;;  %v5396_v38 = vrot.slane %v5394_v52, 4  ;;  %v10108_v61 = vld [vmem:[#allocation16_spill] sm:$0xff]  ;;  %v10109_v53 = vld [vmem:[#allocation17_spill] sm:$0xff] }
 0x27a   : > { %7519 = vmatprep.mubr.msk.bf16.mxu1 %vm1726_vm11, %v6847_v6  ;;  %v6849_v62 = vcombine.low %v4999_v16, %v5009_v9  ;;  %7562 = vmatpush3.bf16.msra.mxu0 %v5942_v24  ;;  %v5023_v13 = vsel %vm8137_vm10, %v5018_v49, %v5022_v45  ;;  %v5033_v41 = vsel %vm8137_vm10, %v5028_v19, %v5032_v42  ;;  %v5397_v22 = vrot.slane %v9136_v7, 5  ;;  %v10097_v6 = vld [vmem:[#allocation3_spill] sm:$0xff] }
 0x27b   : > { %v5401_v0 = vrot.slane %v9134_v60, 5  ;;  %v6850_v48 = vcombine.low %v5023_v13, %v5033_v41  ;;  %v6867_v39 = vrot.slane %v5328_v12, 9  ;;  %v6868_v7 = vrot.slane %v5329_v28, 9 }
 0x27c   : > { %v5398_v34 = vsel %vm8871_vm1, %v5396_v38, %v5397_v22  ;;  %v10084_v11 = vcombine.low %v9352_v15, %v9357_v37  ;;  %v10085_v45 = vcombine.low %v9365_v32, %v9372_v17  ;;  %v10089_v4 = vcombine.low %v10087_v29, %v10088_v54  ;;  %v10093_v37 = vld [vmem:[#allocation8_spill] sm:$0xff]  ;;  %v10096_v17 = vld [vmem:[#allocation11_spill] sm:$0xff] }
 0x27d   : > { %v5395_v36 = vsel %vm8871_vm1, %v6867_v39, %v5394_v52  ;;  %v5403_v26 = vrot.slane %v5401_v0, 4  ;;  %v5402_v50 = vsel %vm8871_vm1, %v6868_v7, %v5401_v0  ;;  %v10092_v15 = vcombine.low %v10090_v56, %v10091_v58  ;;  %v9788_v7 = vld [vmem:[%s9999_s4] ss:$0 sm:$0xff] }
 0x27e   : > { %v6884_v63 = vcombine.low %v5395_v36, %v5398_v34  ;;  %v10095_v32 = vcombine.low %v10093_v37, %v10094_v43  ;;  %v10098_v30 = vcombine.low %v10096_v17, %v10097_v6  ;;  %v10102_v8 = vcombine.low %v10100_v35, %v10101_v3 }
 0x27f   : > { %v5405_v60 = vsel %vm8871_vm1, %v5403_v26, %v5404_v46  ;;  %v10105_v55 = vcombine.low %v10103_v10, %v10104_v51  ;;  %v10107_v5 = vcombine.low %v9497_v47, %v10106_v59  ;;  %v10110_v1 = vcombine.low %v10108_v61, %v10109_v53 }
 0x280   : > { %v6885_v18 = vcombine.low %v5402_v50, %v5405_v60 }
 0x281   : > { %7520 = vmatmul.mubr.msk.bf16.gmra.mrb[8].mxu1 %vm1726_vm11, %v6848_v40 }
 0x282   : > { %7523 = vmatprep.mubr.msk.bf16.mxu1 %vm1726_vm11, %v6849_v62 }
 0x289   : > { %7524 = vmatmul.mubr.msk.bf16.gmra.mrb[12].mxu1 %vm1726_vm11, %v6850_v48 }
 0x28a   : > { %7529 = vmatprep.mubr.msk.bf16.mxu1 %vm1726_vm11, %v6884_v63 }
 0x291   : > { %7530 = vmatmul.mubr.msk.bf16.vlgmr.msra.gmra.mrb[16].mxu1 %vm1726_vm11, %v6885_v18 }
 0x292   : > { %7533 = vmatprep.mubr.msk.bf16.mxu1 %vm1726_vm11, %v10084_v11 }
 0x299   : > { %7534 = vmatmul.mubr.msk.bf16.gmra.mrb[20].mxu1 %vm1726_vm11, %v10085_v45 }
 0x29a   : > { %7537 = vmatprep.mubr.msk.bf16.mxu1 %vm1726_vm11, %v10086_v20 }
 0x2a1   : > { %7538 = vmatmul.mubr.msk.bf16.gmra.mrb[24].mxu1 %vm1726_vm11, %v10089_v4 }
 0x2a2   : > { %7541 = vmatprep.mubr.msk.bf16.mxu1 %vm1726_vm11, %v10092_v15 }
 0x2a9   : > { %7542 = vmatmul.mubr.msk.bf16.gmra.mrb[28].mxu1 %vm1726_vm11, %v10095_v32 }
 0x2aa   : > { %7545 = vmatprep.mubr.msk.bf16.mxu1 %vm1726_vm11, %v10098_v30 }
 0x2b1   : > { %7546 = vmatmul.mubr.msk.bf16.gmra.mrb[0].mxu1 %vm1726_vm11, %v10099_v33 }
 0x2b2   : > { %7549 = vmatprep.mubr.msk.bf16.mxu1 %vm1726_vm11, %v10102_v8 }
 0x2b9   : > { %7550 = vmatmul.mubr.msk.bf16.gmra.mrb[4].mxu1 %vm1726_vm11, %v10105_v55 }
 0x2ba   : > { %7553 = vmatprep.mubr.msk.bf16.mxu1 %vm1726_vm11, %v10107_v5 }
 0x2c1   : > { %7554 = vmatmul.mubr.msk.bf16.gmra.mrb[8].mxu1 %vm1726_vm11, %v10110_v1 }
 0x2c2   : > { %7557 = vmatprep.mubr.msk.bf16.mxu1 %vm1726_vm11, %v6898_v21 }
 0x2c4   : > { %v9741_v27 = vpop.f32.mrb[48].mxu0 }
 0x2c5   : > { %v9743_v9 = vpop.f32.mrb[49].mxu0 }
 0x2c6   : > { %v9745_v52 = vpop.f32.mrb[50].mxu0 }
 0x2c7   : > { %v9747_v57 = vpop.f32.mrb[51].mxu0 }
 0x2c9   : > { %7558 = vmatmul.mubr.msk.bf16.gmra.mrb[12].mxu1 %vm1726_vm11, %v6899_v23 }
 0x2cc   : > { %v9753_v47 = vpop.f32.mrb[52].mxu0 }
 0x2cd   : > { %v9755_v49 = vpop.f32.mrb[53].mxu0 }
 0x2ce   : > { %v9757_v44 = vpop.f32.mrb[54].mxu0 }
 0x2cf   : > { %v9759_v31 = vpop.f32.mrb[55].mxu0 }
 0x2d4   : > { %v9761_v21 = vpop.f32.mrb[56].mxu0 }
 0x2d5   : > { %v9763_v19 = vpop.f32.mrb[57].mxu0 }
 0x2d6   : > { %v9765_v42 = vpop.f32.mrb[58].mxu0 }
 0x2d7   : > { %v9767_v40 = vpop.f32.mrb[59].mxu0 }
 0x2dc   : > { %v9769_v16 = vpop.f32.mrb[60].mxu0 }
 0x2dd   : > { %v9771_v25 = vpop.f32.mrb[61].mxu0 }
 0x2de   : > { %v9773_v14 = vpop.f32.mrb[62].mxu0 }
 0x2df   : > { %v9775_v23 = vpop.f32.mrb[63].mxu0 }
 0x2e4   : > { %v7361_v2 = vpop.f32.mrb[32].mxu0 }
 0x2e5   : > { %v2888_v62 = vpop.f32.mrb[33].mxu0 }
 0x2e6   : > { %v7362_v24 = vpop.f32.mrb[34].mxu0 }
 0x2e7   : > { %v2891_v38 = vpop.f32.mrb[35].mxu0 }
 0x2ec   : > { %v7365_v13 = vpop.f32.mrb[36].mxu0 }
 0x2ed   : > { %v2904_v41 = vpop.f32.mrb[37].mxu0 }
 0x2ee   : > { %v7366_v12 = vpop.f32.mrb[38].mxu0 }
 0x2ef   : > { %v2907_v22 = vpop.f32.mrb[39].mxu0 }
 0x2f4   : > { %v7369_v0 = vpop.f32.mrb[40].mxu0 }
 0x2f5   : > { %v2920_v48 = vpop.f32.mrb[41].mxu0 }
 0x2f6   : > { %v7370_v39 = vpop.f32.mrb[42].mxu0 }
 0x2f7   : > { %v2923_v34 = vpop.f32.mrb[43].mxu0 }
 0x2fc   : > { %v9777_v36 = vpop.f32.mrb[44].mxu0 }
 0x2fd   : > { %v9779_v63 = vpop.f32.mrb[45].mxu0 }
 0x2fe   : > { %v9781_v26 = vpop.f32.mrb[46].mxu0 }
 0x2ff   : > { %v9783_v28 = vpop.f32.mrb[47].mxu0 }
 0x364   : > { %v7531_v46 = vpop.f32.mrb[16].mxu1 }
 0x365   : > { %v7597_v60 = vadd.f32 %v7531_v46, %v7361_v2  ;;  %v5639_v50 = vpop.f32.mrb[17].mxu1 }
 0x366   : > { %v7598_v18 = vadd.f32 %v5639_v50, %v2888_v62  ;;  %v7532_v11 = vpop.f32.mrb[18].mxu1 }
 0x367   : > { %v5807_v45 = vadd.f32 %v7597_v60, %v9788_v7  ;;  %v7599_v20 = vadd.f32 %v7532_v11, %v7362_v24  ;;  %v5642_v29 = vpop.f32.mrb[19].mxu1 }
 0x368   : > { %v5805_v54 = vadd.f32 %v7598_v18, %v9788_v7  ;;  %v7600_v4 = vadd.f32 %v5642_v29, %v2891_v38 }
 0x369   : > { %v5808_v56 = vadd.f32 %v7599_v20, %v9788_v7  ;;  %v5839_v15 = vmax.f32 %v5807_v45, 0.0 }
 0x36a   : > { %v5806_v58 = vadd.f32 %v7600_v4, %v9788_v7  ;;  %v5837_v43 = vmax.f32 %v5805_v54, 0.0 }
 0x36b   : > { %v5840_v37 = vmax.f32 %v5808_v56, 0.0 }
 0x36c   : > { %v5838_v32 = vmax.f32 %v5806_v58, 0.0  ;;  %v7535_v17 = vpop.f32.mrb[20].mxu1 }
 0x36d   : > { %v5870_v6 = vpack.c.bf16 %v5840_v37, %v5839_v15  ;;  %v7601_v30 = vadd.f32 %v7535_v17, %v7365_v13  ;;  %v5655_v33 = vpop.f32.mrb[21].mxu1 }
 0x36e   : > { %v5869_v35 = vpack.c.bf16 %v5838_v32, %v5837_v43  ;;  %v7602_v3 = vadd.f32 %v5655_v33, %v2904_v41  ;;  %v7536_v8 = vpop.f32.mrb[22].mxu1 }
 0x36f   : > { %v5811_v10 = vadd.f32 %v7601_v30, %v9788_v7  ;;  %v7603_v51 = vadd.f32 %v7536_v8, %v7366_v12  ;;  %v5658_v55 = vpop.f32.mrb[23].mxu1 }
 0x370   : > { %v5809_v59 = vadd.f32 %v7602_v3, %v9788_v7  ;;  %v7604_v5 = vadd.f32 %v5658_v55, %v2907_v22  ;;  %7563 = vmatprep.mubr.msk.bf16.mxu0 %vm1726_vm11, %v5869_v35 }
 0x371   : > { %v5812_v61 = vadd.f32 %v7603_v51, %v9788_v7  ;;  %7564 = vmatmul.mubr.msk.bf16.vlgmr.msra.gmra.mrb[64].mxu0 %vm1726_vm11, %v5870_v6  ;;  %v5843_v1 = vmax.f32 %v5811_v10, 0.0 }
 0x372   : > { %v5810_v53 = vadd.f32 %v7604_v5, %v9788_v7  ;;  %v5841_v62 = vmax.f32 %v5809_v59, 0.0 }
 0x373   : > { %v5844_v2 = vmax.f32 %v5812_v61, 0.0 }
 0x374   : > { %v5842_v24 = vmax.f32 %v5810_v53, 0.0  ;;  %v7539_v38 = vpop.f32.mrb[24].mxu1 }
 0x375   : > { %v5872_v13 = vpack.c.bf16 %v5844_v2, %v5843_v1  ;;  %v7605_v41 = vadd.f32 %v7539_v38, %v7369_v0  ;;  %v5671_v12 = vpop.f32.mrb[25].mxu1 }
 0x376   : > { %v5871_v46 = vpack.c.bf16 %v5842_v24, %v5841_v62  ;;  %v7606_v60 = vadd.f32 %v5671_v12, %v2920_v48  ;;  %v7540_v50 = vpop.f32.mrb[26].mxu1 }
 0x377   : > { %v5815_v22 = vadd.f32 %v7605_v41, %v9788_v7  ;;  %v7607_v18 = vadd.f32 %v7540_v50, %v7370_v39  ;;  %v5674_v11 = vpop.f32.mrb[27].mxu1 }
 0x378   : > { %v5813_v45 = vadd.f32 %v7606_v60, %v9788_v7  ;;  %v7608_v20 = vadd.f32 %v5674_v11, %v2923_v34  ;;  %7567 = vmatprep.mubr.msk.bf16.mxu0 %vm1726_vm11, %v5871_v46 }
 0x379   : > { %v5816_v29 = vadd.f32 %v7607_v18, %v9788_v7  ;;  %7568 = vmatmul.mubr.msk.bf16.gmra.mrb[68].mxu0 %vm1726_vm11, %v5872_v13  ;;  %v5847_v0 = vmax.f32 %v5815_v22, 0.0 }
 0x37a   : > { %v5814_v54 = vadd.f32 %v7608_v20, %v9788_v7  ;;  %v5845_v56 = vmax.f32 %v5813_v45, 0.0 }
 0x37b   : > { %v5848_v4 = vmax.f32 %v5816_v29, 0.0 }
 0x37c   : > { %v5846_v48 = vmax.f32 %v5814_v54, 0.0  ;;  %v7543_v58 = vpop.f32.mrb[28].mxu1 }
 0x37d   : > { %v5874_v15 = vpack.c.bf16 %v5848_v4, %v5847_v0  ;;  %v7609_v39 = vadd.f32 %v7543_v58, %v9777_v36  ;;  %v5687_v37 = vpop.f32.mrb[29].mxu1 }
 0x37e   : > { %v5873_v43 = vpack.c.bf16 %v5846_v48, %v5845_v56  ;;  %v7610_v34 = vadd.f32 %v5687_v37, %v9779_v63  ;;  %v7544_v32 = vpop.f32.mrb[30].mxu1 }
 0x37f   : > { %v5819_v17 = vadd.f32 %v7609_v39, %v9788_v7  ;;  %v7611_v6 = vadd.f32 %v7544_v32, %v9781_v26  ;;  %v5690_v30 = vpop.f32.mrb[31].mxu1 }
 0x380   : > { %v5817_v33 = vadd.f32 %v7610_v34, %v9788_v7  ;;  %v7612_v35 = vadd.f32 %v5690_v30, %v9783_v28  ;;  %7571 = vmatprep.mubr.msk.bf16.mxu0 %vm1726_vm11, %v5873_v43 }
 0x381   : > { %v5820_v3 = vadd.f32 %v7611_v6, %v9788_v7  ;;  %7572 = vmatmul.mubr.msk.bf16.gmra.mrb[72].mxu0 %vm1726_vm11, %v5874_v15  ;;  %v5851_v8 = vmax.f32 %v5819_v17, 0.0 }
 0x382   : > { %v5818_v36 = vadd.f32 %v7612_v35, %v9788_v7  ;;  %v5849_v10 = vmax.f32 %v5817_v33, 0.0 }
 0x383   : > { %v5852_v63 = vmax.f32 %v5820_v3, 0.0 }
 0x384   : > { %v5850_v51 = vmax.f32 %v5818_v36, 0.0  ;;  %v7547_v55 = vpop.f32.mrb[0].mxu1 }
 0x385   : > { %v5876_v59 = vpack.c.bf16 %v5852_v63, %v5851_v8  ;;  %v7613_v26 = vadd.f32 %v7547_v55, %v9741_v27  ;;  %v5703_v5 = vpop.f32.mrb[1].mxu1 }
 0x386   : > { %v5875_v61 = vpack.c.bf16 %v5850_v51, %v5849_v10  ;;  %v7614_v28 = vadd.f32 %v5703_v5, %v9743_v9  ;;  %v7548_v53 = vpop.f32.mrb[2].mxu1 }
 0x387   : > { %v5823_v1 = vadd.f32 %v7613_v26, %v9788_v7  ;;  %v7615_v2 = vadd.f32 %v7548_v53, %v9745_v52  ;;  %v5706_v62 = vpop.f32.mrb[3].mxu1 }
 0x388   : > { %v5821_v24 = vadd.f32 %v7614_v28, %v9788_v7  ;;  %v7616_v38 = vadd.f32 %v5706_v62, %v9747_v57  ;;  %7575 = vmatprep.mubr.msk.bf16.mxu0 %vm1726_vm11, %v5875_v61 }
 0x389   : > { %v5824_v13 = vadd.f32 %v7615_v2, %v9788_v7  ;;  %7576 = vmatmul.mubr.msk.bf16.gmra.mrb[76].mxu0 %vm1726_vm11, %v5876_v59  ;;  %v5855_v41 = vmax.f32 %v5823_v1, 0.0 }
 0x38a   : > { %v5822_v27 = vadd.f32 %v7616_v38, %v9788_v7  ;;  %v5853_v12 = vmax.f32 %v5821_v24, 0.0 }
 0x38b   : > { %v5856_v9 = vmax.f32 %v5824_v13, 0.0 }
 0x38c   : > { %v5854_v46 = vmax.f32 %v5822_v27, 0.0  ;;  %v7551_v60 = vpop.f32.mrb[4].mxu1 }
 0x38d   : > { %v5878_v50 = vpack.c.bf16 %v5856_v9, %v5855_v41  ;;  %v7617_v52 = vadd.f32 %v7551_v60, %v9753_v47  ;;  %v5719_v22 = vpop.f32.mrb[5].mxu1 }
 0x38e   : > { %v5877_v18 = vpack.c.bf16 %v5854_v46, %v5853_v12  ;;  %v7618_v57 = vadd.f32 %v5719_v22, %v9755_v49  ;;  %v7552_v11 = vpop.f32.mrb[6].mxu1  ;;  %v9867_v22 = vld [vmem:[%s10001_s6] ss:$0 sm:$0xff] }
 0x38f   : > { %v5827_v45 = vadd.f32 %v7617_v52, %v9788_v7  ;;  %v7619_v20 = vadd.f32 %v7552_v11, %v9757_v44  ;;  %v5722_v29 = vpop.f32.mrb[7].mxu1 }
 0x390   : > { %v5825_v54 = vadd.f32 %v7618_v57, %v9788_v7  ;;  %v7620_v0 = vadd.f32 %v5722_v29, %v9759_v31  ;;  %7579 = vmatprep.mubr.msk.bf16.mxu0 %vm1726_vm11, %v5877_v18 }
 0x391   : > { %v5828_v4 = vadd.f32 %v7619_v20, %v9788_v7  ;;  %7580 = vmatmul.mubr.msk.bf16.gmra.mrb[80].mxu0 %vm1726_vm11, %v5878_v50  ;;  %v5859_v56 = vmax.f32 %v5827_v45, 0.0 }
 0x392   : > { %v5826_v47 = vadd.f32 %v7620_v0, %v9788_v7  ;;  %v5857_v48 = vmax.f32 %v5825_v54, 0.0 }
 0x393   : > { %v5860_v49 = vmax.f32 %v5828_v4, 0.0 }
 0x394   : > { %v5858_v58 = vmax.f32 %v5826_v47, 0.0  ;;  %v7555_v15 = vpop.f32.mrb[8].mxu1 }
 0x395   : > { %v5880_v39 = vpack.c.bf16 %v5860_v49, %v5859_v56  ;;  %v7621_v44 = vadd.f32 %v7555_v15, %v9761_v21  ;;  %v5735_v37 = vpop.f32.mrb[9].mxu1 }
 0x396   : > { %v5879_v43 = vpack.c.bf16 %v5858_v58, %v5857_v48  ;;  %v7622_v31 = vadd.f32 %v5735_v37, %v9763_v19  ;;  %v7556_v34 = vpop.f32.mrb[10].mxu1 }
 0x397   : > { %v5831_v32 = vadd.f32 %v7621_v44, %v9788_v7  ;;  %v7623_v17 = vadd.f32 %v7556_v34, %v9765_v42  ;;  %v5738_v6 = vpop.f32.mrb[11].mxu1 }
 0x398   : > { %v5829_v30 = vadd.f32 %v7622_v31, %v9788_v7  ;;  %v7624_v33 = vadd.f32 %v5738_v6, %v9767_v40  ;;  %7583 = vmatprep.mubr.msk.bf16.mxu0 %vm1726_vm11, %v5879_v43 }
 0x399   : > { %v5832_v35 = vadd.f32 %v7623_v17, %v9788_v7  ;;  %7584 = vmatmul.mubr.msk.bf16.gmra.mrb[84].mxu0 %vm1726_vm11, %v5880_v39  ;;  %v5863_v3 = vmax.f32 %v5831_v32, 0.0 }
 0x39a   : > { %v5830_v21 = vadd.f32 %v7624_v33, %v9788_v7  ;;  %v5861_v36 = vmax.f32 %v5829_v30, 0.0 }
 0x39b   : > { %v5864_v19 = vmax.f32 %v5832_v35, 0.0 }
 0x39c   : > { %v5862_v8 = vmax.f32 %v5830_v21, 0.0  ;;  %v7559_v63 = vpop.f32.mrb[12].mxu1 }
 0x39d   : > { %v5882_v10 = vpack.c.bf16 %v5864_v19, %v5863_v3  ;;  %v7625_v42 = vadd.f32 %v7559_v63, %v9769_v16  ;;  %v5751_v51 = vpop.f32.mrb[13].mxu1 }
 0x39e   : > { %v5881_v55 = vpack.c.bf16 %v5862_v8, %v5861_v36  ;;  %v7626_v40 = vadd.f32 %v5751_v51, %v9771_v25  ;;  %v7560_v59 = vpop.f32.mrb[14].mxu1 }
 0x39f   : > { %v5835_v26 = vadd.f32 %v7625_v42, %v9788_v7  ;;  %v7627_v5 = vadd.f32 %v7560_v59, %v9773_v14  ;;  %v5754_v61 = vpop.f32.mrb[15].mxu1  ;;  %v6138_v14 = vpop.permute.xlu0 %6137 }
 0x3a0   : > { %v5833_v28 = vadd.f32 %v7626_v40, %v9788_v7  ;;  %v7628_v53 = vadd.f32 %v5754_v61, %v9775_v23  ;;  %7587 = vmatprep.mubr.msk.bf16.mxu0 %vm1726_vm11, %v5881_v55  ;;  %v6142_v23 = vpop.permute.xlu1 %6141 }
 0x3a1   : > { %v5836_v1 = vadd.f32 %v7627_v5, %v9788_v7  ;;  %7588 = vmatmul.mubr.msk.bf16.gmra.mrb[88].mxu0 %vm1726_vm11, %v5882_v10  ;;  %v5867_v2 = vmax.f32 %v5835_v26, 0.0 }
 0x3a2   : > { %v5834_v16 = vadd.f32 %v7628_v53, %v9788_v7  ;;  %v5865_v62 = vmax.f32 %v5833_v28, 0.0 }
 0x3a3   : > { %v5868_v25 = vmax.f32 %v5836_v1, 0.0  ;;  %v6140_v27 = vpop.permute.xlu0 %6139 }
 0x3a4   : > { %v5866_v24 = vmax.f32 %v5834_v16, 0.0  ;;  %v6144_v41 = vpop.permute.xlu1 %6143 }
 0x3a5   : > { %v5884_v38 = vpack.c.bf16 %v5868_v25, %v5867_v2 }
 0x3a6   : > { %v5883_v13 = vpack.c.bf16 %v5866_v24, %v5865_v62 }
 0x3a7   : > { %v6150_v9 = vpop.permute.xlu0 %6149 }
 0x3a8   : > { %7591 = vmatprep.mubr.msk.bf16.mxu0 %vm1726_vm11, %v5883_v13  ;;  %v6152_v12 = vpop.permute.xlu1 %6151 }
 0x3a9   : > { %7592 = vmatmul.mubr.msk.bf16.gmra.mrb[92].mxu0 %vm1726_vm11, %v5884_v38 }
 0x3ab   : > { %v6146_v46 = vpop.permute.xlu0 %6145 }
 0x3ac   : > { %v6148_v60 = vpop.permute.xlu1 %6147 }
 0x3af   : > { %v9858_v7 = vpop.permute.xlu0 %6157 }
 0x3b0   : > { %v9860_v50 = vpop.permute.xlu1 %6159 }
 0x3b3   : > { %v9862_v52 = vpop.permute.xlu0 %6153 }
 0x3b4   : > { %v9869_v18 = vpop.permute.xlu1 %6155 }
 0x3b7   : > { %v9875_v47 = vpop.permute.xlu0 %6165 }
 0x3b8   : > { %v9883_v15 = vpop.permute.xlu1 %6167 }
 0x3bb   : > { %v9888_v33 = vpop.permute.xlu0 %6161 }
 0x3bc   : > { %v6164_v63 = vpop.permute.xlu1 %6163 }
 0x3bf   : > { %v9899_v61 = vpop.permute.xlu0 %6173 }
 0x3c0   : > { %v9904_v62 = vpop.permute.xlu1 %6175 }
 0x444   : > { %v7565_v57 = vpop.f32.mrb[64].mxu0 }
 0x445   : > { %v5987_v11 = vadd.f32 %v7565_v57, %v9867_v22  ;;  %v5978_v45 = vpop.f32.mrb[65].mxu0 }
 0x446   : > { %v5979_v20 = vadd.f32 %v9867_v22, %v5978_v45  ;;  %v7566_v29 = vpop.f32.mrb[66].mxu0 }
 0x447   : > { %v6235_v54 = vadd.f32 %v6142_v23, %v5987_v11  ;;  %v5990_v0 = vadd.f32 %v7566_v29, %v9867_v22  ;;  %v5981_v4 = vpop.f32.mrb[67].mxu0 }
 0x448   : > { %v6233_v56 = vadd.f32 %v6138_v14, %v5979_v20  ;;  %v5982_v49 = vadd.f32 %v9867_v22, %v5981_v4  ;;  %v6172_v20 = vpop.permute.xlu1 %6171 }
 0x449   : > { %v6267_v48 = vmax.f32 %v6235_v54, 0.0  ;;  %v6236_v58 = vadd.f32 %v6144_v41, %v5990_v0 }
 0x44a   : > { %v6265_v39 = vmax.f32 %v6233_v56, 0.0  ;;  %v6234_v44 = vadd.f32 %v6140_v27, %v5982_v49 }
 0x44b   : > { %v7004_v37 = vpack.c.bf16 %v6267_v48, %v6267_v48  ;;  %v6268_v43 = vmax.f32 %v6236_v58, 0.0 }
 0x44c   : > { %v7002_v31 = vpack.c.bf16 %v6265_v39, %v6265_v39  ;;  %v6266_v34 = vmax.f32 %v6234_v44, 0.0  ;;  %v7569_v32 = vpop.f32.mrb[68].mxu0 }
 0x44d   : > { %6428 = vst.msk [vmem:[%s9881_s26 + $0x8] sm:$0xf] %vm6425_vm2, %v7004_v37  ;;  %v7005_v17 = vpack.c.bf16 %v6268_v43, %v6268_v43  ;;  %v6003_v6 = vadd.f32 %v7569_v32, %v9867_v22  ;;  %v5994_v30 = vpop.f32.mrb[69].mxu0  ;;  %v6184_v32 = vpop.permute.xlu1 %6183 }
 0x44e   : > { %6426 = vst.msk [vmem:[%s9881_s26] sm:$0xf] %vm6425_vm2, %v7002_v31  ;;  %v7003_v35 = vpack.c.bf16 %v6266_v34, %v6266_v34  ;;  %v5995_v21 = vadd.f32 %v9867_v22, %v5994_v30  ;;  %v7570_v3 = vpop.f32.mrb[70].mxu0 }
 0x44f   : > { %6429 = vst.msk [vmem:[%s9881_s26 + $0xc] sm:$0xf] %vm6425_vm2, %v7005_v17  ;;  %v6239_v19 = vadd.f32 %v6150_v9, %v6003_v6  ;;  %v6006_v36 = vadd.f32 %v7570_v3, %v9867_v22  ;;  %v5997_v8 = vpop.f32.mrb[71].mxu0 }
 0x450   : > { %6427 = vst.msk [vmem:[%s9881_s26 + $0x4] sm:$0xf] %vm6425_vm2, %v7003_v35  ;;  %v6237_v10 = vadd.f32 %v6146_v46, %v5995_v21  ;;  %v5998_v42 = vadd.f32 %v9867_v22, %v5997_v8 }
 0x451   : > { %v6271_v51 = vmax.f32 %v6239_v19, 0.0  ;;  %v6240_v55 = vadd.f32 %v6152_v12, %v6006_v36 }
 0x452   : > { %v6269_v40 = vmax.f32 %v6237_v10, 0.0  ;;  %v6238_v59 = vadd.f32 %v6148_v60, %v5998_v42  ;;  %v6170_v60 = vpop.permute.xlu0 %6169 }
 0x453   : > { %v7008_v26 = vpack.c.bf16 %v6271_v51, %v6271_v51  ;;  %v6272_v5 = vmax.f32 %v6240_v55, 0.0 }
 0x454   : > { %v7006_v28 = vpack.c.bf16 %v6269_v40, %v6269_v40  ;;  %v6270_v53 = vmax.f32 %v6238_v59, 0.0  ;;  %v7573_v1 = vpop.f32.mrb[72].mxu0  ;;  %v6180_v40 = vpop.permute.xlu1 %6179 }
 0x455   : > { %6432 = vst.msk [vmem:[%s9881_s26 + $0x18] sm:$0xf] %vm6425_vm2, %v7008_v26  ;;  %v7009_v16 = vpack.c.bf16 %v6272_v5, %v6272_v5  ;;  %v6019_v2 = vadd.f32 %v7573_v1, %v9867_v22  ;;  %v6010_v25 = vpop.f32.mrb[73].mxu0 }
 0x456   : > { %6430 = vst.msk [vmem:[%s9881_s26 + $0x10] sm:$0xf] %vm6425_vm2, %v7006_v28  ;;  %v7007_v24 = vpack.c.bf16 %v6270_v53, %v6270_v53  ;;  %v6011_v38 = vadd.f32 %v9867_v22, %v6010_v25  ;;  %v7574_v13 = vpop.f32.mrb[74].mxu0  ;;  %v6182_v44 = vpop.permute.xlu0 %6181 }
 0x457   : > { %6433 = vst.msk [vmem:[%s9881_s26 + $0x1c] sm:$0xf] %vm6425_vm2, %v7009_v16  ;;  %v6243_v14 = vadd.f32 %v9858_v7, %v6019_v2  ;;  %v6022_v23 = vadd.f32 %v7574_v13, %v9867_v22  ;;  %v6013_v27 = vpop.f32.mrb[75].mxu0 }
 0x458   : > { %6431 = vst.msk [vmem:[%s9881_s26 + $0x14] sm:$0xf] %vm6425_vm2, %v7007_v24  ;;  %v6241_v41 = vadd.f32 %v9862_v52, %v6011_v38  ;;  %v6014_v9 = vadd.f32 %v9867_v22, %v6013_v27  ;;  %v6192_v27 = vpop.permute.xlu1 %6191 }
 0x459   : > { %v6275_v12 = vmax.f32 %v6243_v14, 0.0  ;;  %v6244_v46 = vadd.f32 %v9860_v50, %v6022_v23 }
 0x45a   : > { %v6273_v57 = vmax.f32 %v6241_v41, 0.0  ;;  %v6242_v11 = vadd.f32 %v9869_v18, %v6014_v9  ;;  %v6178_v8 = vpop.permute.xlu0 %6177 }
 0x45b   : > { %v7012_v7 = vpack.c.bf16 %v6275_v12, %v6275_v12  ;;  %v6276_v45 = vmax.f32 %v6244_v46, 0.0 }
 0x45c   : > { %v7010_v29 = vpack.c.bf16 %v6273_v57, %v6273_v57  ;;  %v6274_v54 = vmax.f32 %v6242_v11, 0.0  ;;  %v7577_v0 = vpop.f32.mrb[76].mxu0 }
 0x45d   : > { %6436 = vst.msk [vmem:[%s9881_s26 + $0x28] sm:$0xf] %vm6425_vm2, %v7012_v7  ;;  %v7013_v52 = vpack.c.bf16 %v6276_v45, %v6276_v45  ;;  %v6035_v4 = vadd.f32 %v7577_v0, %v9867_v22  ;;  %v6026_v56 = vpop.f32.mrb[77].mxu0 }
 0x45e   : > { %6434 = vst.msk [vmem:[%s9881_s26 + $0x20] sm:$0xf] %vm6425_vm2, %v7010_v29  ;;  %v7011_v50 = vpack.c.bf16 %v6274_v54, %v6274_v54  ;;  %v6027_v49 = vadd.f32 %v9867_v22, %v6026_v56  ;;  %v7578_v48 = vpop.f32.mrb[78].mxu0 }
 0x45f   : > { %6437 = vst.msk [vmem:[%s9881_s26 + $0x2c] sm:$0xf] %vm6425_vm2, %v7013_v52  ;;  %v6247_v18 = vadd.f32 %v9875_v47, %v6035_v4  ;;  %v6038_v58 = vadd.f32 %v7578_v48, %v9867_v22  ;;  %v6029_v39 = vpop.f32.mrb[79].mxu0  ;;  %v6188_v4 = vpop.permute.xlu1 %6187 }
 0x460   : > { %6435 = vst.msk [vmem:[%s9881_s26 + $0x24] sm:$0xf] %vm6425_vm2, %v7011_v50  ;;  %v6245_v37 = vadd.f32 %v9888_v33, %v6027_v49  ;;  %v6030_v43 = vadd.f32 %v9867_v22, %v6029_v39 }
 0x461   : > { %v6279_v31 = vmax.f32 %v6247_v18, 0.0  ;;  %v6248_v34 = vadd.f32 %v9883_v15, %v6038_v58 }
 0x462   : > { %v6277_v17 = vmax.f32 %v6245_v37, 0.0  ;;  %v6246_v6 = vadd.f32 %v6164_v63, %v6030_v43 }
 0x463   : > { %v7016_v47 = vpack.c.bf16 %v6279_v31, %v6279_v31  ;;  %v6280_v30 = vmax.f32 %v6248_v34, 0.0 }
 0x464   : > { %v7014_v35 = vpack.c.bf16 %v6277_v17, %v6277_v17  ;;  %v6278_v21 = vmax.f32 %v6246_v6, 0.0  ;;  %v7581_v3 = vpop.f32.mrb[80].mxu0 }
 0x465   : > { %6440 = vst.msk [vmem:[%s9881_s26 + $0x38] sm:$0xf] %vm6425_vm2, %v7016_v47  ;;  %v7017_v19 = vpack.c.bf16 %v6280_v30, %v6280_v30  ;;  %v6051_v33 = vadd.f32 %v7581_v3, %v9867_v22  ;;  %v6042_v36 = vpop.f32.mrb[81].mxu0 }
 0x466   : > { %6438 = vst.msk [vmem:[%s9881_s26 + $0x30] sm:$0xf] %vm6425_vm2, %v7014_v35  ;;  %v7015_v15 = vpack.c.bf16 %v6278_v21, %v6278_v21  ;;  %v6043_v10 = vadd.f32 %v9867_v22, %v6042_v36  ;;  %v7582_v42 = vpop.f32.mrb[82].mxu0  ;;  %v6196_v35 = vpop.permute.xlu1 %6195 }
 0x467   : > { %6441 = vst.msk [vmem:[%s9881_s26 + $0x3c] sm:$0xf] %vm6425_vm2, %v7017_v19  ;;  %v6251_v63 = vadd.f32 %v9899_v61, %v6051_v33  ;;  %v6054_v51 = vadd.f32 %v7582_v42, %v9867_v22  ;;  %v6045_v55 = vpop.f32.mrb[83].mxu0  ;;  %v6190_v61 = vpop.permute.xlu0 %6189 }
 0x468   : > { %6439 = vst.msk [vmem:[%s9881_s26 + $0x34] sm:$0xf] %vm6425_vm2, %v7015_v15  ;;  %v6249_v59 = vadd.f32 %v6170_v60, %v6043_v10  ;;  %v6046_v26 = vadd.f32 %v9867_v22, %v6045_v55 }
 0x469   : > { %v6283_v5 = vmax.f32 %v6251_v63, 0.0  ;;  %v6252_v28 = vadd.f32 %v9904_v62, %v6054_v51 }
 0x46a   : > { %v6281_v53 = vmax.f32 %v6249_v59, 0.0  ;;  %v6250_v1 = vadd.f32 %v6172_v20, %v6046_v26 }
 0x46b   : > { %v7020_v16 = vpack.c.bf16 %v6283_v5, %v6283_v5  ;;  %v6284_v2 = vmax.f32 %v6252_v28, 0.0  ;;  %v6186_v20 = vpop.permute.xlu0 %6185 }
 0x46c   : > { %v7018_v25 = vpack.c.bf16 %v6281_v53, %v6281_v53  ;;  %v6282_v24 = vmax.f32 %v6250_v1, 0.0  ;;  %v7585_v38 = vpop.f32.mrb[84].mxu0  ;;  %v6200_v53 = vpop.permute.xlu1 %6199 }
 0x46d   : > { %6444 = vst.msk [vmem:[%s9881_s26 + $0x48] sm:$0xf] %vm6425_vm2, %v7020_v16  ;;  %v7021_v13 = vpack.c.bf16 %v6284_v2, %v6284_v2  ;;  %v6067_v14 = vadd.f32 %v7585_v38, %v9867_v22  ;;  %v6058_v23 = vpop.f32.mrb[85].mxu0 }
 0x46e   : > { %6442 = vst.msk [vmem:[%s9881_s26 + $0x40] sm:$0xf] %vm6425_vm2, %v7018_v25  ;;  %v7019_v62 = vpack.c.bf16 %v6282_v24, %v6282_v24  ;;  %v6059_v41 = vadd.f32 %v9867_v22, %v6058_v23  ;;  %v7586_v9 = vpop.f32.mrb[86].mxu0 }
 0x46f   : > { %6445 = vst.msk [vmem:[%s9881_s26 + $0x4c] sm:$0xf] %vm6425_vm2, %v7021_v13  ;;  %v6255_v12 = vadd.f32 %v6182_v44, %v6067_v14  ;;  %v6070_v46 = vadd.f32 %v7586_v9, %v9867_v22  ;;  %v6061_v60 = vpop.f32.mrb[87].mxu0 }
 0x470   : > { %6443 = vst.msk [vmem:[%s9881_s26 + $0x44] sm:$0xf] %vm6425_vm2, %v7019_v62  ;;  %v6253_v57 = vadd.f32 %v6178_v8, %v6059_v41  ;;  %v6062_v11 = vadd.f32 %v9867_v22, %v6061_v60 }
 0x471   : > { %v6287_v7 = vmax.f32 %v6255_v12, 0.0  ;;  %v6256_v45 = vadd.f32 %v6184_v32, %v6070_v46  ;;  %v6194_v32 = vpop.permute.xlu0 %6193 }
 0x472   : > { %v6285_v29 = vmax.f32 %v6253_v57, 0.0  ;;  %v6254_v54 = vadd.f32 %v6180_v40, %v6062_v11 }
 0x473   : > { %v7024_v0 = vpack.c.bf16 %v6287_v7, %v6287_v7  ;;  %v6288_v52 = vmax.f32 %v6256_v45, 0.0 }
 0x474   : > { %v7022_v56 = vpack.c.bf16 %v6285_v29, %v6285_v29  ;;  %v6286_v50 = vmax.f32 %v6254_v54, 0.0  ;;  %v7589_v49 = vpop.f32.mrb[88].mxu0 }
 0x475   : > { %6448 = vst.msk [vmem:[%s9881_s26 + $0x58] sm:$0xf] %vm6425_vm2, %v7024_v0  ;;  %v7025_v48 = vpack.c.bf16 %v6288_v52, %v6288_v52  ;;  %v6083_v18 = vadd.f32 %v7589_v49, %v9867_v22  ;;  %v6074_v58 = vpop.f32.mrb[89].mxu0  ;;  %v6198_v51 = vpop.permute.xlu0 %6197 }
 0x476   : > { %6446 = vst.msk [vmem:[%s9881_s26 + $0x50] sm:$0xf] %vm6425_vm2, %v7022_v56  ;;  %v7023_v39 = vpack.c.bf16 %v6286_v50, %v6286_v50  ;;  %v6075_v44 = vadd.f32 %v9867_v22, %v6074_v58  ;;  %v7590_v37 = vpop.f32.mrb[90].mxu0 }
 0x477   : > { %6449 = vst.msk [vmem:[%s9881_s26 + $0x5c] sm:$0xf] %vm6425_vm2, %v7025_v48  ;;  %v6259_v43 = vadd.f32 %v6190_v61, %v6083_v18  ;;  %v6086_v31 = vadd.f32 %v7590_v37, %v9867_v22  ;;  %v6077_v34 = vpop.f32.mrb[91].mxu0 }
 0x478   : > { %6447 = vst.msk [vmem:[%s9881_s26 + $0x54] sm:$0xf] %vm6425_vm2, %v7023_v39  ;;  %v6257_v17 = vadd.f32 %v6186_v20, %v6075_v44  ;;  %v6078_v6 = vadd.f32 %v9867_v22, %v6077_v34 }
 0x479   : > { %v6291_v47 = vmax.f32 %v6259_v43, 0.0  ;;  %v6260_v30 = vadd.f32 %v6192_v27, %v6086_v31 }
 0x47a   : > { %v6289_v21 = vmax.f32 %v6257_v17, 0.0  ;;  %v6258_v3 = vadd.f32 %v6188_v4, %v6078_v6 }
 0x47b   : > { %v7028_v19 = vpack.c.bf16 %v6291_v47, %v6291_v47  ;;  %v6292_v33 = vmax.f32 %v6260_v30, 0.0 }
 0x47c   : > { %v7026_v36 = vpack.c.bf16 %v6289_v21, %v6289_v21  ;;  %v6290_v8 = vmax.f32 %v6258_v3, 0.0  ;;  %v7593_v15 = vpop.f32.mrb[92].mxu0 }
 0x47d   : > { %6452 = vst.msk [vmem:[%s9881_s26 + $0x68] sm:$0xf] %vm6425_vm2, %v7028_v19  ;;  %v7029_v10 = vpack.c.bf16 %v6292_v33, %v6292_v33  ;;  %v6099_v42 = vadd.f32 %v7593_v15, %v9867_v22  ;;  %v6090_v63 = vpop.f32.mrb[93].mxu0 }
 0x47e   : > { %6450 = vst.msk [vmem:[%s9881_s26 + $0x60] sm:$0xf] %vm6425_vm2, %v7026_v36  ;;  %v7027_v55 = vpack.c.bf16 %v6290_v8, %v6290_v8  ;;  %v6091_v40 = vadd.f32 %v9867_v22, %v6090_v63  ;;  %v7594_v59 = vpop.f32.mrb[94].mxu0 }
 0x47f   : > { %6453 = vst.msk [vmem:[%s9881_s26 + $0x6c] sm:$0xf] %vm6425_vm2, %v7029_v10  ;;  %v6263_v26 = vadd.f32 %v6198_v51, %v6099_v42  ;;  %v6102_v5 = vadd.f32 %v7594_v59, %v9867_v22  ;;  %v6093_v28 = vpop.f32.mrb[95].mxu0 }
 0x480   : > { %6451 = vst.msk [vmem:[%s9881_s26 + $0x64] sm:$0xf] %vm6425_vm2, %v7027_v55  ;;  %v6261_v1 = vadd.f32 %v6194_v32, %v6091_v40  ;;  %v6094_v16 = vadd.f32 %v9867_v22, %v6093_v28 }
 0x481   : > { %v6295_v2 = vmax.f32 %v6263_v26, 0.0  ;;  %v6264_v61 = vadd.f32 %v6200_v53, %v6102_v5 }
 0x482   : > { %v6293_v25 = vmax.f32 %v6261_v1, 0.0  ;;  %v6262_v24 = vadd.f32 %v6196_v35, %v6094_v16 }
 0x483   : > { %v7032_v38 = vpack.c.bf16 %v6295_v2, %v6295_v2  ;;  %v6296_v13 = vmax.f32 %v6264_v61, 0.0 }
 0x484   : > { %v7030_v14 = vpack.c.bf16 %v6293_v25, %v6293_v25  ;;  %v6294_v23 = vmax.f32 %v6262_v24, 0.0 }
 0x485   : > { %6456 = vst.msk [vmem:[%s9881_s26 + $0x78] sm:$0xf] %vm6425_vm2, %v7032_v38  ;;  %v7033_v27 = vpack.c.bf16 %v6296_v13, %v6296_v13 }
 0x486   : > { %6454 = vst.msk [vmem:[%s9881_s26 + $0x70] sm:$0xf] %vm6425_vm2, %v7030_v14  ;;  %v7031_v62 = vpack.c.bf16 %v6294_v23, %v6294_v23 }
 0x487   : > { %6457 = vst.msk [vmem:[%s9881_s26 + $0x7c] sm:$0xf] %vm6425_vm2, %v7033_v27 }
 0x488   : > { %6455 = vst.msk [vmem:[%s9881_s26 + $0x74] sm:$0xf] %vm6425_vm2, %v7031_v62 }
 0x489 PF: > { %s17_s24 = sadd.s32 1, %s7963_s24  }
 0x48a   : > { %p14_p4 = scmp.ge.s32.totalorder %s17_s24, 4  }
 0x48c   :  { %16 = sbr.rel (!%p14_p4) target bundleno = 1 (0x1), region = 89 }

// kernel: block_forward.3
= control target key start
LH: loop header
LB: loop body
LE: loop exit
PB: predicated region body
PF: predicated region fallthrough
CT: control target
= control target key end

     0   :  { %15 = vsyncpa [#allocation4], 0  ;;  %s10515_s0 = inlined_call_operand.vmem [shape: bf16[2,16,16,32], index: 0, kind: input, shape index: {}]   ;;  %s10516_s1 = inlined_call_operand.vmem [shape: bf16[32,8], index: 1, kind: input, shape index: {}]   ;;  %s10517_s2 = inlined_call_operand.vmem [shape: f32[1,8], index: 2, kind: input, shape index: {}]   ;;  %s10518_s3 = inlined_call_operand.vmem [shape: bf16[3,3,8,8], index: 3, kind: input, shape index: {}]   ;;  %s10519_s4 = inlined_call_operand.vmem [shape: f32[1,8], index: 4, kind: input, shape index: {}]   ;;  %s10520_s5 = inlined_call_operand.vmem [shape: bf16[8,32], index: 5, kind: input, shape index: {}]   ;;  %s10521_s6 = inlined_call_operand.vmem [shape: f32[1,32], index: 6, kind: input, shape index: {}]   ;;  %s10522_s7 = inlined_call_operand.vmem [shape: bf16[32,16], index: 7, kind: input, shape index: {}]   ;;  %s10523_s8 = inlined_call_operand.hbm [shape: f32[2,16,16,32], index: 8, kind: output, shape index: {0}]   ;;  %s10524_s9 = inlined_call_operand.vmem [shape: f32[2,16,16,16], index: 9, kind: output, shape index: {1}]  }
   0x1   :  { %17 = vsyncpa [#allocation4 + $0x1], 0  ;;  %s8427_s30 = smov 0   ;;  %s8429_s10 = smov 0  }
   0x2   :  { %s8431_s11 = smov 0   ;;  %s8433_s12 = smov 0  }
   0x3 LB: > { %s8448_s13 = sadd.s32 4294967295, %s8371_s12   ;;  %s6753_s14 = sadd.s32 4294967294, %s8371_s12   ;;  %s8371_s12 = sphi %s8433_s12, %s10626_s12   ;;  %s8367_s11 = sphi %s8431_s11, %s10625_s11   ;;  %s8363_s10 = sphi %s8429_s10, %s10624_s10   ;;  %s8359_s30 = sphi %s8427_s30, %s10623_s30  }
   0x4   : > { %s8452_s15 = sadd.s32 1, %s8371_s12   ;;  %s203_s16 = sadd.s32 1, %s8367_s11 }
   0x5   : > { %s200_s17 = ssub.s32 %s8371_s12, %s8452_s15  ;;  %p213_p0 = scmp.ne.s32.totalorder %s8367_s11, %s8363_s10 }
   0x6   : > { %p201_p1 = scmp.eq.s32.totalorder %s200_s17, 0  ;;  %p214_p2 = scmp.eq.s32.totalorder %s8448_s13, 1 }
   0x7   : > { %p219_p3 = scmp.ne.s32.totalorder %s8363_s10, %s8359_s30  ;;  %p220_p4 = scmp.eq.s32.totalorder %s6753_s14, 1 }
   0x8   : > { %s8463_s18 = scalar_select %p201_p1, %s8367_s11, %s203_s16  }
   0x9   : > { %p8465_p5 = por %p214_p2, %p213_p0  ;;  %p8469_p6 = por %p220_p4, %p219_p3 }
   0xa   : > { %p6756_p7 = scmp.ge.s32.totalorder %s8371_s12, 1  ;;  %p293_p8 = scmp.lt.s32.totalorder %s8371_s12, 3 }
   0xc   : > { %p294_p9 = pnand %p6756_p7, %p293_p8 }
   0xe   : > { %297 = sbr.rel (%p294_p9) target bundleno = 1385 (0x569), region = 52 }
  0x15   : > { %v8175_v0 = vld [vmem:[%s10516_s1] sm:$0xff]   ;;  %p334_p10 = scmp.lt.s32.totalorder %s8448_s13, 1  ;;  %v8176_v1 = vld [vmem:[%s10516_s1 + $0x8] sm:$0xff]   ;;  %vm480_vm0 = vcmask 261120   ;;  %vm757_vm1 = vcmask 57344   ;;  %v10547_v18 = vmov 0 }
  0x16   : > { %7455 = vmatprep.subr.bf16.mxu0 %v8175_v0  ;;  %vm764_vm2 = vsmask.f32 256  ;;  %v772_v19 = vld [vmem:[#allocation2 + $0x18] sm:$0x1]  ;;  %vm820_vm4 = vsmask.f32 7938 }
  0x17   : > { %s8483_s25 = scalar_select %p334_p10, %s8448_s13, 1  ;;  %7456 = vmatpush3.bf16.msra.mxu0 %v8175_v0  ;;  %vm8525_vm3 = vmand %vm757_vm1, %vm764_vm2  ;;  %v10550_v21 = vmov 0  ;;  %v769_v22 = vld [vmem:[#allocation2 + $0xc] sm:$0x1]  ;;  %v828_v24 = vld [vmem:[#allocation2 + $0x20] sm:$0x1] }
  0x18   : > { %7457 = vmatprep.subr.bf16.mxu0 %v8176_v1  ;;  %v10548_v18 = vsel %vm8525_vm3, 4294967295, %v10547_v18  ;;  %v773_v20 = vsel %vm8525_vm3, 0, %v772_v19  ;;  %vm8533_vm5 = vmand %vm757_vm1, %vm820_vm4  ;;  %v770_v23 = vsel %vm8525_vm3, 0, %v769_v22  ;;  %v825_v26 = vld [vmem:[#allocation2 + $0x14] sm:$0x1]  ;;  %vm754_vm6 = vcmask 60416  }
  0x19   : > { %s7214_s26 = sshll.u32 %s8483_s25, 7  ;;  %10549 = vst [vmem:[#allocation6_spill] sm:$0xff] %v10548_v18  ;;  %v10551_v21 = vsel %vm8533_vm5, 4294967295, %v10550_v21  ;;  %774 = vst [vmem:[#allocation2 + $0x18] sm:$0x1] %v773_v20  ;;  %v829_v25 = vsel %vm8533_vm5, 0, %v828_v24 }
  0x1a   : > { %s8489_s29 = scalar_lea.vmem %s10515_s0, %s7214_s26  ;;  %10552 = vst [vmem:[#allocation7_spill] sm:$0xff] %v10551_v21  ;;  %771 = vst [vmem:[#allocation2 + $0xc] sm:$0x1] %v770_v23  ;;  %v826_v27 = vsel %vm8533_vm5, 0, %v825_v26  ;;  %v778_v28 = vld [vmem:[#allocation2 + $0x30] sm:$0x1] }
  0x1b   : > { %v345_v2 = vld [vmem:[%s8489_s29] sm:$0xff]   ;;  %v347_v3 = vld [vmem:[%s8489_s29 + $0x8] sm:$0xff]   ;;  %v349_v4 = vld [vmem:[%s8489_s29 + $0x10] sm:$0xff]   ;;  %7458 = vmatpush3.bf16.msra.mxu0 %v8176_v1  ;;  %830 = vst [vmem:[#allocation2 + $0x20] sm:$0x1] %v829_v25  ;;  %v779_v29 = vsel %vm8525_vm3, 0, %v778_v28 }
  0x1c   : > { %7459 = vmatprep.mubr.msk.bf16.mxu0 %vm480_vm0, %v345_v2  ;;  %v351_v5 = vld [vmem:[%s8489_s29 + $0x18] sm:$0xff]   ;;  %v353_v6 = vld [vmem:[%s8489_s29 + $0x20] sm:$0xff]   ;;  %v355_v7 = vld [vmem:[%s8489_s29 + $0x28] sm:$0xff]   ;;  %827 = vst [vmem:[#allocation2 + $0x14] sm:$0x1] %v826_v27  ;;  %v8373_v32 = vmov 0  }
  0x1d   : > { %v357_v8 = vld [vmem:[%s8489_s29 + $0x30] sm:$0xff]   ;;  %v359_v9 = vld [vmem:[%s8489_s29 + $0x38] sm:$0xff]   ;;  %v361_v10 = vld [vmem:[%s8489_s29 + $0x40] sm:$0xff]   ;;  %780 = vst [vmem:[#allocation2 + $0x30] sm:$0x1] %v779_v29  ;;  %vm1944_vm7 = vcmask 1043456  }
  0x1e   : > { %7460 = vmatmul.mubr.msk.bf16.vlgmr.msra.gmra.mrb[0].mxu0 %vm480_vm0, %v347_v3  ;;  %v363_v11 = vld [vmem:[%s8489_s29 + $0x48] sm:$0xff]   ;;  %v365_v12 = vld [vmem:[%s8489_s29 + $0x50] sm:$0xff]   ;;  %v367_v13 = vld [vmem:[%s8489_s29 + $0x58] sm:$0xff]   ;;  %755 = vst.msk [vmem:[#allocation2] sm:$0xf] %vm754_vm6, %v8373_v32  ;;  %vm1895_vm11 = vcmask 64512  }
  0x1f   : > { %7463 = vmatprep.mubr.msk.bf16.mxu0 %vm480_vm0, %v349_v4  ;;  %v369_v14 = vld [vmem:[%s8489_s29 + $0x60] sm:$0xff]   ;;  %v371_v15 = vld [vmem:[%s8489_s29 + $0x68] sm:$0xff]   ;;  %v373_v16 = vld [vmem:[%s8489_s29 + $0x70] sm:$0xff]   ;;  %756 = vst.msk [vmem:[#allocation2 + $0x4] sm:$0xf] %vm754_vm6, %v8373_v32  ;;  %vm2449_vm15 = vcmask 1042432  }
  0x20   : > { %v375_v17 = vld [vmem:[%s8489_s29 + $0x78] sm:$0xff]   ;;  %v775_v30 = vld [vmem:[#allocation2 + $0x24] sm:$0x1]  ;;  %758 = vst.msk [vmem:[#allocation2 + $0x8] sm:$0x1] %vm757_vm1, %v8373_v32  ;;  %vm8647_vm13 = vmand %vm754_vm6, %vm820_vm4  ;;  %s324_s22 = sand.u32 1, %s8363_s10  }
  0x21   : > { %v776_v31 = vsel %vm8525_vm3, 0, %v775_v30  ;;  %760 = vst.msk [vmem:[#allocation2 + $0xcc] sm:$0xf] %vm754_vm6, %v8373_v32  ;;  %761 = vst.msk [vmem:[#allocation2 + $0xd0] sm:$0xf] %vm754_vm6, %v8373_v32  ;;  %s6757_s26 = sshll.u32 %s324_s22, 8 }
  0x22   : > { %777 = vst [vmem:[#allocation2 + $0x24] sm:$0x1] %v776_v31  ;;  %762 = vst.msk [vmem:[#allocation2 + $0xd4] sm:$0x1] %vm757_vm1, %v8373_v32  ;;  %v834_v33 = vld [vmem:[#allocation2 + $0x38] sm:$0x1] }
  0x23   : > { %v835_v34 = vsel %vm8533_vm5, 0, %v834_v33  ;;  %v831_v35 = vld [vmem:[#allocation2 + $0x2c] sm:$0x1]  ;;  %v784_v37 = vld [vmem:[#allocation2 + $0x48] sm:$0x1]  ;;  %vm2450_vm1 = vcmask 1046532  }
  0x24   : > { %836 = vst [vmem:[#allocation2 + $0x38] sm:$0x1] %v835_v34  ;;  %v832_v36 = vsel %vm8533_vm5, 0, %v831_v35  ;;  %v785_v39 = vsel %vm8525_vm3, 0, %v784_v37  ;;  %v781_v40 = vld [vmem:[#allocation2 + $0x3c] sm:$0x1] }
  0x25   : > { %833 = vst [vmem:[#allocation2 + $0x2c] sm:$0x1] %v832_v36  ;;  %v766_v38 = vld [vmem:[#allocation2] sm:$0x1]  ;;  %786 = vst [vmem:[#allocation2 + $0x48] sm:$0x1] %v785_v39 }
  0x26   : > { %7464 = vmatmul.mubr.msk.bf16.gmra.mrb[4].mxu0 %vm480_vm0, %v351_v5  ;;  %v767_v41 = vsel %vm8525_vm3, 0, %v766_v38  ;;  %v782_v42 = vsel %vm8525_vm3, 0, %v781_v40  ;;  %v840_v43 = vld [vmem:[#allocation2 + $0x50] sm:$0x1]  ;;  %v837_v45 = vld [vmem:[#allocation2 + $0x44] sm:$0x1] }
  0x27   : > { %7467 = vmatprep.mubr.msk.bf16.mxu0 %vm480_vm0, %v353_v6  ;;  %768 = vst [vmem:[#allocation2] sm:$0x1] %v767_v41  ;;  %783 = vst [vmem:[#allocation2 + $0x3c] sm:$0x1] %v782_v42  ;;  %v841_v44 = vsel %vm8533_vm5, 0, %v840_v43  ;;  %v838_v46 = vsel %vm8533_vm5, 0, %v837_v45 }
  0x28   : > { %842 = vst [vmem:[#allocation2 + $0x50] sm:$0x1] %v841_v44  ;;  %v6943_v47 = vld [vmem:[%s10518_s3 + $0xc] sm:$0xf]  ;;  %v822_v48 = vld [vmem:[#allocation2 + $0x8] sm:$0x1] }
  0x29   : > { %839 = vst [vmem:[#allocation2 + $0x44] sm:$0x1] %v838_v46  ;;  %8126 = vmatprep.subr.msk.bf16.mxu1 %vm1944_vm7, %v6943_v47  ;;  %v3021_v49 = vsel %vm1944_vm7, %v6943_v47, 0  ;;  %v823_v50 = vsel %vm8533_vm5, 0, %v822_v48  ;;  %v790_v51 = vld [vmem:[#allocation2 + $0x60] sm:$0x1] }
  0x2a   : > { %7594 = vmatpush3.bf16.msra.mxu1 %v3021_v49  ;;  %824 = vst [vmem:[#allocation2 + $0x8] sm:$0x1] %v823_v50  ;;  %v791_v53 = vsel %vm8525_vm3, 0, %v790_v51  ;;  %v787_v54 = vld [vmem:[#allocation2 + $0x54] sm:$0x1]  ;;  %s10269_s27 = scalar_lea.vmem [#allocation3], %s6757_s26 }
  0x2b   : > { %792 = vst [vmem:[#allocation2 + $0x60] sm:$0x1] %v791_v53  ;;  %v788_v56 = vsel %vm8525_vm3, 0, %v787_v54  ;;  %v846_v57 = vld [vmem:[#allocation2 + $0x68] sm:$0x1]  ;;  %s6663_s17 = sshll.u32 %s10269_s27, 4  ;;  %s10400_s17 = int_to_ptr.vmem [resolvable:$true] %s6663_s17 }
  0x2c   : > { %v1410_v58 = vld [vmem:[#allocation2 + $0x4] sm:$0xf]  ;;  %789 = vst [vmem:[#allocation2 + $0x54] sm:$0x1] %v788_v56  ;;  %v847_v60 = vsel %vm8533_vm5, 0, %v846_v57  ;;  %s10404_s21 = scalar_lea.sflag [#allocation4], %s324_s22 }
  0x2d   : > { %v843_v61 = vld [vmem:[#allocation2 + $0x5c] sm:$0x1]  ;;  %848 = vst [vmem:[#allocation2 + $0x68] sm:$0x1] %v847_v60  ;;  %v6829_v0 = vld [vmem:[%s10518_s3 + $0x4] sm:$0xf] }
  0x2e   : > { %7468 = vmatmul.mubr.msk.bf16.gmra.mrb[8].mxu0 %vm480_vm0, %v355_v7  ;;  %v1409_v52 = vld [vmem:[#allocation2] sm:$0xf]  ;;  %v844_v63 = vsel %vm8533_vm5, 0, %v843_v61  ;;  %8123 = vmatprep.subr.msk.bf16.mxu0 %vm1944_vm7, %v6829_v0  ;;  %v1946_v2 = vsel %vm1944_vm7, %v6829_v0, 0  ;;  %v1471_v4 = vshll.u32 %v1410_v58, 16  ;;  %v1475_v6 = vshrl.u32 %v1410_v58, 16 }
  0x2f   : > { %7471 = vmatprep.mubr.msk.bf16.mxu0 %vm480_vm0, %v357_v8  ;;  %v1462_v55 = vshrl.u32 %v1409_v52, 16  ;;  %v1465_v59 = vshll.u32 %v1409_v52, 16  ;;  %845 = vst [vmem:[#allocation2 + $0x5c] sm:$0x1] %v844_v63  ;;  %7492 = vmatpush3.bf16.msra.mxu0 %v1946_v2  ;;  %vm1458_vm8 = vsmask.f32 3328 }
  0x30   : > { %v1473_v8 = vrot.slane %v1471_v4, 5  ;;  %vm1459_vm9 = vsmask.f32 7440  ;;  %v8600_v22 = vld [vmem:[%s10518_s3 + $0x10] sm:$0xf]  ;;  %s8309_s23 = scalar_lea.vmem %s10400_s17, 4096 }
  0x31   : > { %v1464_v62 = vrot.slane %v1462_v55, 4  ;;  %v1467_v1 = vrot.slane %v1465_v59, 5  ;;  %v1442_v3 = vld [vmem:[#allocation2 + $0x8] sm:$0x1]  ;;  %vm8591_vm10 = vmor %vm1458_vm8, %vm1459_vm9  ;;  %v852_v23 = vld [vmem:[#allocation2 + $0x80] sm:$0x1]  ;;  %8127 = vmatprep.subr.msk.bf16.mxu1 %vm1944_vm7, %v8600_v22  ;;  %p8310_p11 = scmp.ne.s32.totalorder %s10400_s17, %s8309_s23 }
  0x32   : > { %v1481_v7 = vshll.u32 %v1442_v3, 16  ;;  %v853_v24 = vsel %vm8533_vm5, 0, %v852_v23  ;;  %v849_v26 = vld [vmem:[#allocation2 + $0x74] sm:$0x1]  ;;  %v802_v29 = vld [vmem:[#allocation2 + $0x90] sm:$0x1] }
  0x33   : > { %v1468_v5 = vor.u32 %v1467_v1, %v1464_v62  ;;  %854 = vst [vmem:[#allocation2 + $0x80] sm:$0x1] %v853_v24  ;;  %v850_v28 = vsel %vm8533_vm5, 0, %v849_v26  ;;  %v803_v30 = vsel %vm8525_vm3, 0, %v802_v29  ;;  %v799_v31 = vld [vmem:[#allocation2 + $0x84] sm:$0x1]  ;;  %p8311_p12 = pnand %p8310_p11, %p8465_p5 }
  0x34   : > { %851 = vst [vmem:[#allocation2 + $0x74] sm:$0x1] %v850_v28  ;;  %804 = vst [vmem:[#allocation2 + $0x90] sm:$0x1] %v803_v30  ;;  %v858_v32 = vld [vmem:[#allocation2 + $0x98] sm:$0x1] }
  0x35   : > { %v800_v33 = vsel %vm8525_vm3, 0, %v799_v31  ;;  %v859_v34 = vsel %vm8533_vm5, 0, %v858_v32  ;;  %v855_v35 = vld [vmem:[#allocation2 + $0x8c] sm:$0x1]  ;;  %v808_v37 = vld [vmem:[#allocation2 + $0xa8] sm:$0x1]  ;;  %p8312_p13 = pneg %p8311_p12 }
  0x36   : > { %7472 = vmatmul.mubr.msk.bf16.gmra.mrb[12].mxu0 %vm480_vm0, %v359_v9  ;;  %v796_v9 = vld [vmem:[#allocation2 + $0x78] sm:$0x1]  ;;  %801 = vst [vmem:[#allocation2 + $0x84] sm:$0x1] %v800_v33  ;;  %860 = vst [vmem:[#allocation2 + $0x98] sm:$0x1] %v859_v34 }
  0x37   : > { %7475 = vmatprep.mubr.msk.bf16.mxu0 %vm480_vm0, %v361_v10  ;;  %v1469_v10 = vrot.slane %v1468_v5, 4  ;;  %v856_v36 = vsel %vm8533_vm5, 0, %v855_v35  ;;  %v809_v38 = vsel %vm8525_vm3, 0, %v808_v37  ;;  %v805_v39 = vld [vmem:[#allocation2 + $0x9c] sm:$0x1] }
  0x38   : > { %857 = vst [vmem:[#allocation2 + $0x8c] sm:$0x1] %v856_v36  ;;  %810 = vst [vmem:[#allocation2 + $0xa8] sm:$0x1] %v809_v38  ;;  %v864_v40 = vld [vmem:[#allocation2 + $0xb0] sm:$0x1] }
  0x39   : > { %v1474_v19 = vsel %vm8591_vm10, %v1469_v10, %v1473_v8  ;;  %v806_v41 = vsel %vm8525_vm3, 0, %v805_v39  ;;  %v865_v42 = vsel %vm8533_vm5, 0, %v864_v40  ;;  %v861_v43 = vld [vmem:[#allocation2 + $0xa4] sm:$0x1]  ;;  %v814_v45 = vld [vmem:[#allocation2 + $0xc0] sm:$0x1] }
  0x3a   : > { %807 = vst [vmem:[#allocation2 + $0x9c] sm:$0x1] %v806_v41  ;;  %866 = vst [vmem:[#allocation2 + $0xb0] sm:$0x1] %v865_v42  ;;  %v862_v44 = vsel %vm8533_vm5, 0, %v861_v43  ;;  %v815_v46 = vsel %vm8525_vm3, 0, %v814_v45 }
  0x3b   : > { %863 = vst [vmem:[#allocation2 + $0xa4] sm:$0x1] %v862_v44  ;;  %816 = vst [vmem:[#allocation2 + $0xc0] sm:$0x1] %v815_v46  ;;  %v811_v47 = vld [vmem:[#allocation2 + $0xb4] sm:$0x1] }
  0x3c   : > { %v812_v48 = vsel %vm8525_vm3, 0, %v811_v47  ;;  %v870_v49 = vld [vmem:[#allocation2 + $0xc8] sm:$0x1]  ;;  %v867_v51 = vld [vmem:[#allocation2 + $0xbc] sm:$0x1] }
  0x3d   : > { %813 = vst [vmem:[#allocation2 + $0xb4] sm:$0x1] %v812_v48  ;;  %v871_v50 = vsel %vm8533_vm5, 0, %v870_v49  ;;  %v868_v52 = vsel %vm8533_vm5, 0, %v867_v51  ;;  %v8638_v53 = vld [vmem:[%s10517_s2] ss:$0 sm:$0xff] }
  0x3e   : > { %7476 = vmatmul.mubr.msk.bf16.gmra.mrb[16].mxu0 %vm480_vm0, %v363_v11  ;;  %v1477_v11 = vrot.slane %v1475_v6, 4  ;;  %872 = vst [vmem:[#allocation2 + $0xc8] sm:$0x1] %v871_v50  ;;  %869 = vst [vmem:[#allocation2 + $0xbc] sm:$0x1] %v868_v52 }
  0x3f   : > { %7479 = vmatprep.mubr.msk.bf16.mxu0 %vm480_vm0, %v365_v12  ;;  %v797_v12 = vsel %vm8525_vm3, 0, %v796_v9  ;;  %vm972_vm12 = vsmask.f32 4368  ;;  %v1297_v29 = vld [vmem:[#allocation2 + $0xc] sm:$0xf] }
  0x40   : > { %798 = vst [vmem:[#allocation2 + $0x78] sm:$0x1] %v797_v12  ;;  %vm8654_vm14 = vmor %vm764_vm2, %vm972_vm12  ;;  %v1308_v36 = vld [vmem:[#allocation2 + $0x20] sm:$0x1]  ;;  %v1301_v42 = vld [vmem:[#allocation2 + $0x14] sm:$0x1] }
  0x41   : > { %vm9297_vm2 = vmor %vm2449_vm15, %vm2450_vm1 }
  0x46   : > { %7480 = vmatmul.mubr.msk.bf16.gmra.mrb[20].mxu0 %vm480_vm0, %v367_v13  ;;  %v793_v13 = vld [vmem:[#allocation2 + $0x6c] sm:$0x1] }
  0x47   : > { %7483 = vmatprep.mubr.msk.bf16.mxu0 %vm480_vm0, %v369_v14  ;;  %v794_v14 = vsel %vm8525_vm3, 0, %v793_v13 }
  0x48   : > { %795 = vst [vmem:[#allocation2 + $0x6c] sm:$0x1] %v794_v14 }
  0x4e   : > { %7484 = vmatmul.mubr.msk.bf16.gmra.mrb[24].mxu0 %vm480_vm0, %v371_v15  ;;  %v1478_v15 = vor.u32 %v1477_v11, %v1473_v8 }
  0x4f   : > { %7487 = vmatprep.mubr.msk.bf16.mxu0 %vm480_vm0, %v373_v16  ;;  %v1483_v16 = vrot.slane %v1481_v7, 5 }
  0x50   : > { %v1479_v20 = vrot.slane %v1478_v15, 4 }
  0x52   : > { %v1484_v25 = vsel %vm8591_vm10, %v1479_v20, %v1483_v16 }
  0x53   : > { %v6830_v27 = vcombine.low %v1474_v19, %v1484_v25  ;;  %v1304_v19 = vld [vmem:[#allocation2 + $0x18] sm:$0xf] }
  0x56   : > { %7488 = vmatmul.mubr.msk.bf16.gmra.mrb[28].mxu0 %vm480_vm0, %v375_v17 }
  0x57   : > { %7493 = vmatprep.mubr.msk.bf16.mxu0 %vm1895_vm11, %v6830_v27 }
  0xf1   : > { %v7461_v54 = vpop.f32.mrb[0].mxu0 }
  0xf2   : > { %v572_v55 = vadd.f32 %v7461_v54, %v8638_v53  ;;  %v563_v56 = vpop.f32.mrb[1].mxu0 }
  0xf3   : > { %v564_v57 = vadd.f32 %v8638_v53, %v563_v56  ;;  %v7462_v58 = vpop.f32.mrb[2].mxu0 }
  0xf4   : > { %v692_v59 = vmax.f32 %v572_v55, 0.0  ;;  %v575_v60 = vadd.f32 %v7462_v58, %v8638_v53  ;;  %v566_v61 = vpop.f32.mrb[3].mxu0 }
  0xf5   : > { %v690_v62 = vmax.f32 %v564_v57, 0.0  ;;  %v567_v63 = vadd.f32 %v8638_v53, %v566_v61 }
  0xf6   : > { %v7218_v0 = vpack.c.bf16 %v692_v59, %v692_v59  ;;  %v693_v1 = vmax.f32 %v575_v60, 0.0 }
  0xf7   : > { %v7216_v2 = vpack.c.bf16 %v690_v62, %v690_v62  ;;  %v691_v3 = vmax.f32 %v567_v63, 0.0  ;;  %v1318_v62 = vld [vmem:[#allocation2 + $0x30] sm:$0xf] }
  0xf8   : > { %v992_v4 = vshrl.u32 %v7218_v0, 16  ;;  %v7219_v5 = vpack.c.bf16 %v693_v1, %v693_v1  ;;  %v995_v6 = vshll.u32 %v7218_v0, 16 }
  0xf9   : > { %v975_v7 = vshrl.u32 %v7216_v2, 16  ;;  %v978_v8 = vshll.u32 %v7216_v2, 16  ;;  %v7217_v9 = vpack.c.bf16 %v691_v3, %v691_v3  ;;  %v7465_v10 = vpop.f32.mrb[4].mxu0  ;;  %v3747_v3 = vsel %vm1944_vm7, %v8600_v22, 0 }
  0xfa   : > { %v994_v11 = vrot.slane %v992_v4, 7  ;;  %v1000_v12 = vshrl.u32 %v7219_v5, 16  ;;  %v1003_v13 = vshll.u32 %v7219_v5, 16  ;;  %v588_v14 = vadd.f32 %v7465_v10, %v8638_v53  ;;  %v579_v15 = vpop.f32.mrb[5].mxu0 }
  0xfb   : > { %v977_v20 = vrot.slane %v975_v7, 7  ;;  %v983_v23 = vshrl.u32 %v7217_v9, 16  ;;  %v986_v24 = vshll.u32 %v7217_v9, 16  ;;  %v580_v25 = vadd.f32 %v8638_v53, %v579_v15  ;;  %v7466_v26 = vpop.f32.mrb[6].mxu0 }
  0xfc   : > { %v997_v27 = vor.u32 %v995_v6, %v994_v11  ;;  %v998_v28 = vrot.slane %v994_v11, 4  ;;  %v1002_v30 = vrot.slane %v1000_v12, 7  ;;  %v696_v31 = vmax.f32 %v588_v14, 0.0  ;;  %v582_v32 = vpop.f32.mrb[7].mxu0  ;;  %v1311_v6 = vld [vmem:[#allocation2 + $0x24] sm:$0xf] }
  0xfd   : > { %v980_v33 = vor.u32 %v978_v8, %v977_v20  ;;  %v981_v34 = vrot.slane %v977_v20, 4  ;;  %v985_v37 = vrot.slane %v983_v23, 7  ;;  %v694_v38 = vmax.f32 %v580_v25, 0.0 }
  0xfe   : > { %v1305_v39 = vsel %vm8647_vm13, %v997_v27, %v1304_v19  ;;  %v1005_v40 = vor.u32 %v1003_v13, %v1002_v30  ;;  %v1007_v41 = vrot.slane %v1002_v30, 4  ;;  %v7222_v43 = vpack.c.bf16 %v696_v31, %v696_v31  ;;  %v1322_v30 = vld [vmem:[#allocation2 + $0x38] sm:$0x1]  ;;  %v1315_v31 = vld [vmem:[#allocation2 + $0x2c] sm:$0x1] }
  0xff   : > { %1306 = vst [vmem:[#allocation2 + $0x18] sm:$0xf] %v1305_v39  ;;  %v1298_v44 = vsel %vm8647_vm13, %v980_v33, %v1297_v29  ;;  %v988_v45 = vor.u32 %v986_v24, %v985_v37  ;;  %v990_v46 = vrot.slane %v985_v37, 4  ;;  %v7220_v47 = vpack.c.bf16 %v694_v38, %v694_v38 }
 0x100   : > { %1299 = vst [vmem:[#allocation2 + $0xc] sm:$0xf] %v1298_v44  ;;  %v1006_v48 = vsel %vm8654_vm14, %v998_v28, %v1005_v40  ;;  %v1309_v49 = vsel %vm8525_vm3, %v1007_v41, %v1308_v36  ;;  %v1026_v50 = vshrl.u32 %v7222_v43, 16  ;;  %v1029_v54 = vshll.u32 %v7222_v43, 16  ;;  %v1332_v41 = vld [vmem:[#allocation2 + $0x48] sm:$0xf] }
 0x101   : > { %1307 = vst.msk [vmem:[#allocation2 + $0x1c] sm:$0xf] %vm754_vm6, %v1006_v48  ;;  %1310 = vst [vmem:[#allocation2 + $0x20] sm:$0x1] %v1309_v49  ;;  %v989_v51 = vsel %vm8654_vm14, %v981_v34, %v988_v45  ;;  %v1302_v52 = vsel %vm8525_vm3, %v990_v46, %v1301_v42  ;;  %v1009_v55 = vshrl.u32 %v7220_v47, 16  ;;  %v7469_v56 = vpop.f32.mrb[8].mxu0  ;;  %v591_v58 = vadd.f32 %v7466_v26, %v8638_v53 }
 0x102   : > { %1300 = vst.msk [vmem:[#allocation2 + $0x10] sm:$0xf] %vm754_vm6, %v989_v51  ;;  %1303 = vst [vmem:[#allocation2 + $0x14] sm:$0x1] %v1302_v52  ;;  %v8672_v57 = vrot.slane %v1026_v50, 7  ;;  %v583_v59 = vadd.f32 %v8638_v53, %v582_v32  ;;  %v604_v60 = vadd.f32 %v7469_v56, %v8638_v53  ;;  %v595_v61 = vpop.f32.mrb[9].mxu0 }
 0x103   : > { %v8677_v63 = vrot.slane %v1009_v55, 7  ;;  %v1012_v0 = vshll.u32 %v7220_v47, 16  ;;  %v596_v1 = vadd.f32 %v8638_v53, %v595_v61  ;;  %v7470_v2 = vpop.f32.mrb[10].mxu0  ;;  %v697_v7 = vmax.f32 %v591_v58, 0.0  ;;  %v1325_v56 = vld [vmem:[#allocation2 + $0x3c] sm:$0xf] }
 0x104   : > { %v1031_v4 = vor.u32 %v1029_v54, %v8672_v57  ;;  %v1032_v5 = vrot.slane %v8672_v57, 4  ;;  %v695_v8 = vmax.f32 %v583_v59, 0.0  ;;  %v598_v9 = vpop.f32.mrb[11].mxu0  ;;  %v700_v12 = vmax.f32 %v604_v60, 0.0 }
 0x105   : > { %v1014_v10 = vor.u32 %v1012_v0, %v8677_v63  ;;  %v1015_v11 = vrot.slane %v8677_v63, 4  ;;  %v698_v13 = vmax.f32 %v596_v1, 0.0  ;;  %v7223_v15 = vpack.c.bf16 %v697_v7, %v697_v7 }
 0x106   : > { %v1319_v14 = vsel %vm8647_vm13, %v1031_v4, %v1318_v62  ;;  %v7221_v19 = vpack.c.bf16 %v695_v8, %v695_v8  ;;  %v607_v22 = vadd.f32 %v7470_v2, %v8638_v53  ;;  %v7226_v23 = vpack.c.bf16 %v700_v12, %v700_v12 }
 0x107   : > { %1320 = vst [vmem:[#allocation2 + $0x30] sm:$0xf] %v1319_v14  ;;  %v1312_v20 = vsel %vm8647_vm13, %v1014_v10, %v1311_v6  ;;  %v7224_v24 = vpack.c.bf16 %v698_v13, %v698_v13  ;;  %v599_v25 = vadd.f32 %v8638_v53, %v598_v9  ;;  %v1034_v26 = vshrl.u32 %v7223_v15, 16  ;;  %v7025_v10 = vld [vmem:[%s10518_s3 + $0x14] sm:$0xf] }
 0x108   : > { %1313 = vst [vmem:[#allocation2 + $0x24] sm:$0xf] %v1312_v20  ;;  %v1037_v27 = vshll.u32 %v7223_v15, 16  ;;  %v1017_v28 = vshrl.u32 %v7221_v19, 16  ;;  %v1020_v29 = vshll.u32 %v7221_v19, 16  ;;  %v1060_v32 = vshrl.u32 %v7226_v23, 16 }
 0x109   : > { %v1063_v33 = vshll.u32 %v7226_v23, 16  ;;  %v1043_v34 = vshrl.u32 %v7224_v24, 16  ;;  %v1046_v36 = vshll.u32 %v7224_v24, 16  ;;  %v7473_v37 = vpop.f32.mrb[12].mxu0  ;;  %v8193_v38 = vld [vmem:[#allocation2 + $0xc] sm:$0xff]   ;;  %v1036_v39 = vrot.slane %v1034_v26, 7 }
 0x10a   : > { %v1019_v40 = vrot.slane %v1017_v28, 7  ;;  %v701_v42 = vmax.f32 %v607_v22, 0.0  ;;  %v699_v43 = vmax.f32 %v599_v25, 0.0  ;;  %v611_v44 = vpop.f32.mrb[13].mxu0  ;;  %v8194_v45 = vld [vmem:[#allocation2 + $0x18] sm:$0xff]   ;;  %v8692_v46 = vrot.slane %v1060_v32, 7  ;;  %7595 = vmatprep.mubr.msk.bf16.mxu1 %vm1895_vm11, %v8193_v38 }
 0x10b   : > { %v8694_v47 = vrot.slane %v1043_v34, 7  ;;  %v620_v48 = vadd.f32 %v7473_v37, %v8638_v53  ;;  %v612_v49 = vadd.f32 %v8638_v53, %v611_v44  ;;  %v7474_v50 = vpop.f32.mrb[14].mxu0  ;;  %v1039_v51 = vor.u32 %v1037_v27, %v1036_v39  ;;  %7596 = vmatmul.mubr.msk.bf16.vlgmr.msra.gmra.mrb[0].mxu1 %vm1895_vm11, %v8194_v45  ;;  %v1336_v19 = vld [vmem:[#allocation2 + $0x50] sm:$0x1]  ;;  %v1329_v28 = vld [vmem:[#allocation2 + $0x44] sm:$0x1] }
 0x10c   : > { %v1041_v52 = vrot.slane %v1036_v39, 4  ;;  %v1022_v54 = vor.u32 %v1020_v29, %v1019_v40  ;;  %v1024_v55 = vrot.slane %v1019_v40, 4  ;;  %v614_v57 = vpop.f32.mrb[15].mxu0  ;;  %v1065_v58 = vor.u32 %v1063_v33, %v8692_v46  ;;  %7628 = vmatpush3.bf16.msra.mxu1 %v3747_v3  ;;  %v1441_v44 = vld [vmem:[%s10518_s3] sm:$0xf] }
 0x10d   : > { %v1066_v59 = vrot.slane %v8692_v46, 4  ;;  %v1048_v60 = vor.u32 %v1046_v36, %v8694_v47  ;;  %v1049_v61 = vrot.slane %v8694_v47, 4  ;;  %v1040_v62 = vsel %vm8654_vm14, %v1032_v5, %v1039_v51  ;;  %8128 = vmatprep.subr.msk.bf16.mxu1 %vm1944_vm7, %v7025_v10  ;;  %8124 = vmatprep.subr.msk.bf16.mxu0 %vm1944_vm7, %v1441_v44 }
 0x10e   : > { %v1323_v63 = vsel %vm8525_vm3, %v1041_v52, %v1322_v30  ;;  %v1023_v0 = vsel %vm8654_vm14, %v1015_v11, %v1022_v54  ;;  %v1316_v1 = vsel %vm8525_vm3, %v1024_v55, %v1315_v31  ;;  %1321 = vst.msk [vmem:[#allocation2 + $0x34] sm:$0xf] %vm754_vm6, %v1040_v62  ;;  %v1333_v2 = vsel %vm8647_vm13, %v1065_v58, %v1332_v41 }
 0x10f   : > { %1324 = vst [vmem:[#allocation2 + $0x38] sm:$0x1] %v1323_v63  ;;  %1314 = vst.msk [vmem:[#allocation2 + $0x28] sm:$0xf] %vm754_vm6, %v1023_v0  ;;  %v1326_v3 = vsel %vm8647_vm13, %v1048_v60, %v1325_v56  ;;  %v7227_v4 = vpack.c.bf16 %v701_v42, %v701_v42  ;;  %v7225_v5 = vpack.c.bf16 %v699_v43, %v699_v43  ;;  %v704_v6 = vmax.f32 %v620_v48, 0.0 }
 0x110   : > { %1317 = vst [vmem:[#allocation2 + $0x2c] sm:$0x1] %v1316_v1  ;;  %1334 = vst [vmem:[#allocation2 + $0x48] sm:$0xf] %v1333_v2  ;;  %v702_v7 = vmax.f32 %v612_v49, 0.0  ;;  %v623_v8 = vadd.f32 %v7474_v50, %v8638_v53  ;;  %v615_v9 = vadd.f32 %v8638_v53, %v614_v57 }
 0x111   : > { %1327 = vst [vmem:[#allocation2 + $0x3c] sm:$0xf] %v1326_v3  ;;  %v1068_v11 = vshrl.u32 %v7227_v4, 16  ;;  %v1071_v12 = vshll.u32 %v7227_v4, 16  ;;  %v1051_v13 = vshrl.u32 %v7225_v5, 16  ;;  %v1054_v14 = vshll.u32 %v7225_v5, 16 }
 0x112   : > { %v7477_v15 = vpop.f32.mrb[16].mxu0  ;;  %v7230_v22 = vpack.c.bf16 %v704_v6, %v704_v6  ;;  %v7228_v20 = vpack.c.bf16 %v702_v7, %v702_v7  ;;  %v705_v23 = vmax.f32 %v623_v8, 0.0  ;;  %v703_v24 = vmax.f32 %v615_v9, 0.0  ;;  %v1346_v42 = vld [vmem:[#allocation2 + $0x60] sm:$0xf] }
 0x113   : > { %v627_v25 = vpop.f32.mrb[17].mxu0  ;;  %v1070_v26 = vrot.slane %v1068_v11, 7  ;;  %v1053_v27 = vrot.slane %v1051_v13, 7  ;;  %v636_v29 = vadd.f32 %v7477_v15, %v8638_v53  ;;  %v1339_v43 = vld [vmem:[#allocation2 + $0x54] sm:$0xf] }
 0x114   : > { %v628_v30 = vadd.f32 %v8638_v53, %v627_v25  ;;  %v7478_v31 = vpop.f32.mrb[18].mxu0  ;;  %v1094_v32 = vshrl.u32 %v7230_v22, 16  ;;  %v1097_v33 = vshll.u32 %v7230_v22, 16  ;;  %v1077_v34 = vshrl.u32 %v7228_v20, 16  ;;  %v1411_v60 = vld [vmem:[#allocation2 + $0xc] sm:$0xf] }
 0x115   : > { %v1080_v36 = vshll.u32 %v7228_v20, 16  ;;  %v630_v37 = vpop.f32.mrb[19].mxu0  ;;  %v1073_v38 = vor.u32 %v1071_v12, %v1070_v26  ;;  %v1075_v39 = vrot.slane %v1070_v26, 4  ;;  %v1056_v40 = vor.u32 %v1054_v14, %v1053_v27  ;;  %v8196_v55 = vld [vmem:[#allocation2 + $0x30] sm:$0xff]   ;;  %v1350_v8 = vld [vmem:[#allocation2 + $0x68] sm:$0x1] }
 0x116   : > { %v1058_v41 = vrot.slane %v1053_v27, 4  ;;  %v1096_v45 = vrot.slane %v1094_v32, 7  ;;  %v1079_v46 = vrot.slane %v1077_v34, 7  ;;  %v7231_v47 = vpack.c.bf16 %v705_v23, %v705_v23  ;;  %v8195_v49 = vld [vmem:[#allocation2 + $0x24] sm:$0xff]   ;;  %v1343_v13 = vld [vmem:[#allocation2 + $0x5c] sm:$0x1] }
 0x117   : > { %v7229_v48 = vpack.c.bf16 %v703_v24, %v703_v24  ;;  %v1074_v50 = vsel %vm8654_vm14, %v1066_v59, %v1073_v38  ;;  %v1337_v51 = vsel %vm8525_vm3, %v1075_v39, %v1336_v19  ;;  %v1057_v52 = vsel %vm8654_vm14, %v1049_v61, %v1056_v40  ;;  %7599 = vmatprep.mubr.msk.bf16.mxu1 %vm1895_vm11, %v8195_v49  ;;  %v1353_v38 = vld [vmem:[#allocation2 + $0x6c] sm:$0xf]  ;;  %v1443_v39 = vld [vmem:[#allocation2 + $0x14] sm:$0x1] }
 0x118   : > { %v1330_v54 = vsel %vm8525_vm3, %v1058_v41, %v1329_v28  ;;  %1335 = vst.msk [vmem:[#allocation2 + $0x4c] sm:$0xf] %vm754_vm6, %v1074_v50  ;;  %1338 = vst [vmem:[#allocation2 + $0x50] sm:$0x1] %v1337_v51  ;;  %v1099_v56 = vor.u32 %v1097_v33, %v1096_v45  ;;  %v1100_v57 = vrot.slane %v1096_v45, 4  ;;  %v1082_v58 = vor.u32 %v1080_v36, %v1079_v46 }
 0x119   : > { %1328 = vst.msk [vmem:[#allocation2 + $0x40] sm:$0xf] %vm754_vm6, %v1057_v52  ;;  %1331 = vst [vmem:[#allocation2 + $0x44] sm:$0x1] %v1330_v54  ;;  %v1083_v59 = vrot.slane %v1079_v46, 4  ;;  %v1102_v62 = vshrl.u32 %v7231_v47, 16  ;;  %7600 = vmatmul.mubr.msk.bf16.gmra.mrb[4].mxu1 %vm1895_vm11, %v8196_v55  ;;  %v639_v10 = vadd.f32 %v7478_v31, %v8638_v53  ;;  %v631_v11 = vadd.f32 %v8638_v53, %v630_v37 }
 0x11a   : > { %v1105_v63 = vshll.u32 %v7231_v47, 16  ;;  %v1085_v61 = vshrl.u32 %v7229_v48, 16  ;;  %v1088_v0 = vshll.u32 %v7229_v48, 16  ;;  %v8742_v1 = vpop.f32.mrb[20].mxu0  ;;  %v1347_v2 = vsel %vm8647_vm13, %v1099_v56, %v1346_v42  ;;  %v1412_v31 = vld [vmem:[#allocation2 + $0x10] sm:$0xf] }
 0x11b   : > { %v1340_v3 = vsel %vm8647_vm13, %v1082_v58, %v1339_v43  ;;  %v708_v4 = vmax.f32 %v636_v29, 0.0  ;;  %v706_v5 = vmax.f32 %v628_v30, 0.0  ;;  %v8748_v6 = vpop.f32.mrb[21].mxu0  ;;  %1348 = vst [vmem:[#allocation2 + $0x60] sm:$0xf] %v1347_v2  ;;  %v1104_v7 = vrot.slane %v1102_v62, 7 }
 0x11c   : > { %1341 = vst [vmem:[#allocation2 + $0x54] sm:$0xf] %v1340_v3  ;;  %v1087_v9 = vrot.slane %v1085_v61, 7  ;;  %v8752_v12 = vpop.f32.mrb[22].mxu0  ;;  %v1486_v19 = vshrl.u32 %v1411_v60, 16  ;;  %v1489_v22 = vshll.u32 %v1411_v60, 16 }
 0x11d   : > { %v7234_v14 = vpack.c.bf16 %v708_v4, %v708_v4  ;;  %v7232_v15 = vpack.c.bf16 %v706_v5, %v706_v5  ;;  %v8754_v20 = vpop.f32.mrb[23].mxu0  ;;  %v1107_v23 = vor.u32 %v1105_v63, %v1104_v7  ;;  %v1109_v24 = vrot.slane %v1104_v7, 4  ;;  %v1360_v37 = vld [vmem:[#allocation2 + $0x78] sm:$0xf]  ;;  %v1414_v63 = vld [vmem:[#allocation2 + $0x1c] sm:$0xf] }
 0x11e   : > { %v1090_v25 = vor.u32 %v1088_v0, %v1087_v9  ;;  %v1092_v26 = vrot.slane %v1087_v9, 4  ;;  %v709_v43 = vmax.f32 %v639_v10, 0.0  ;;  %v707_v44 = vmax.f32 %v631_v11, 0.0  ;;  %v1413_v62 = vld [vmem:[#allocation2 + $0x18] sm:$0xf] }
 0x11f   : > { %v1128_v27 = vshrl.u32 %v7234_v14, 16  ;;  %v1131_v28 = vshll.u32 %v7234_v14, 16  ;;  %v1111_v29 = vshrl.u32 %v7232_v15, 16  ;;  %v1114_v30 = vshll.u32 %v7232_v15, 16  ;;  %v8198_v45 = vld [vmem:[#allocation2 + $0x48] sm:$0xff]  }
 0x120   : > { %v1108_v32 = vsel %vm8654_vm14, %v1100_v57, %v1107_v23  ;;  %v1351_v33 = vsel %vm8525_vm3, %v1109_v24, %v1350_v8  ;;  %v1091_v34 = vsel %vm8654_vm14, %v1083_v59, %v1090_v25  ;;  %v1344_v36 = vsel %vm8525_vm3, %v1092_v26, %v1343_v13  ;;  %v8197_v40 = vld [vmem:[#allocation2 + $0x3c] sm:$0xff]   ;;  %v1357_v13 = vld [vmem:[#allocation2 + $0x74] sm:$0x1] }
 0x121   : > { %1349 = vst.msk [vmem:[#allocation2 + $0x64] sm:$0xf] %vm754_vm6, %v1108_v32  ;;  %1352 = vst [vmem:[#allocation2 + $0x68] sm:$0x1] %v1351_v33  ;;  %v8766_v41 = vrot.slane %v1128_v27, 7  ;;  %v8768_v42 = vrot.slane %v1111_v29, 7  ;;  %7603 = vmatprep.mubr.msk.bf16.mxu1 %vm1895_vm11, %v8197_v40  ;;  %v7235_v57 = vpack.c.bf16 %v709_v43, %v709_v43  ;;  %v7233_v58 = vpack.c.bf16 %v707_v44, %v707_v44 }
 0x122   : > { %1342 = vst.msk [vmem:[#allocation2 + $0x58] sm:$0xf] %vm754_vm6, %v1091_v34  ;;  %1345 = vst [vmem:[#allocation2 + $0x5c] sm:$0x1] %v1344_v36  ;;  %v1488_v46 = vrot.slane %v1486_v19, 4  ;;  %v1491_v47 = vrot.slane %v1489_v22, 5  ;;  %7604 = vmatmul.mubr.msk.bf16.gmra.mrb[8].mxu1 %vm1895_vm11, %v8198_v45 }
 0x123   : > { %v1495_v48 = vshll.u32 %v1412_v31, 16  ;;  %v1499_v49 = vshrl.u32 %v1412_v31, 16  ;;  %v8771_v50 = vpop.f32.mrb[24].mxu0  ;;  %v1133_v51 = vor.u32 %v1131_v28, %v8766_v41  ;;  %v1134_v52 = vrot.slane %v8766_v41, 4  ;;  %v1364_v11 = vld [vmem:[#allocation2 + $0x80] sm:$0x1] }
 0x124   : > { %v1116_v54 = vor.u32 %v1114_v30, %v8768_v42  ;;  %v1117_v55 = vrot.slane %v8768_v42, 4  ;;  %v8778_v56 = vpop.f32.mrb[25].mxu0  ;;  %v1492_v59 = vor.u32 %v1491_v47, %v1488_v46  ;;  %v1505_v4 = vshll.u32 %v1443_v39, 16 }
 0x125   : > { %v1497_v60 = vrot.slane %v1495_v48, 5  ;;  %v8780_v61 = vpop.f32.mrb[26].mxu0  ;;  %v1361_v0 = vsel %vm8647_vm13, %v1133_v51, %v1360_v37  ;;  %v1501_v3 = vrot.slane %v1499_v49, 4  ;;  %v1136_v7 = vshrl.u32 %v7235_v57, 16  ;;  %v1444_v37 = vld [vmem:[#allocation2 + $0x20] sm:$0x1] }
 0x126   : > { %v1354_v2 = vsel %vm8647_vm13, %v1116_v54, %v1353_v38  ;;  %v8786_v5 = vpop.f32.mrb[27].mxu0  ;;  %1362 = vst [vmem:[#allocation2 + $0x78] sm:$0xf] %v1361_v0  ;;  %v1139_v8 = vshll.u32 %v7235_v57, 16  ;;  %v1119_v9 = vshrl.u32 %v7233_v58, 16  ;;  %v1122_v10 = vshll.u32 %v7233_v58, 16 }
 0x127   : > { %1355 = vst [vmem:[#allocation2 + $0x6c] sm:$0xf] %v1354_v2  ;;  %v1493_v14 = vrot.slane %v1492_v59, 4  ;;  %v1502_v15 = vor.u32 %v1501_v3, %v1497_v60  ;;  %v1507_v19 = vrot.slane %v1505_v4, 5  ;;  %v1510_v22 = vshrl.u32 %v1413_v62, 16 }
 0x128   : > { %v1138_v23 = vrot.slane %v1136_v7, 7  ;;  %v1121_v24 = vrot.slane %v1119_v9, 7  ;;  %v1513_v25 = vshll.u32 %v1413_v62, 16  ;;  %v1519_v26 = vshll.u32 %v1414_v63, 16  ;;  %v8200_v38 = vld [vmem:[#allocation2 + $0x60] sm:$0xff]  }
 0x129   : > { %v1498_v27 = vsel %vm8591_vm10, %v1493_v14, %v1497_v60  ;;  %v1503_v28 = vrot.slane %v1502_v15, 4  ;;  %v1512_v29 = vrot.slane %v1510_v22, 4  ;;  %v1523_v30 = vshrl.u32 %v1414_v63, 16  ;;  %v8199_v31 = vld [vmem:[#allocation2 + $0x54] sm:$0xff]   ;;  %v8790_v39 = vpop.f32.mrb[28].mxu0 }
 0x12a   : > { %v1141_v32 = vor.u32 %v1139_v8, %v1138_v23  ;;  %v1143_v33 = vrot.slane %v1138_v23, 4  ;;  %v1124_v34 = vor.u32 %v1122_v10, %v1121_v24  ;;  %v1126_v36 = vrot.slane %v1121_v24, 4  ;;  %7607 = vmatprep.mubr.msk.bf16.mxu1 %vm1895_vm11, %v8199_v31  ;;  %v8795_v44 = vpop.f32.mrb[29].mxu0  ;;  %v1415_v49 = vld [vmem:[#allocation2 + $0x24] sm:$0xf] }
 0x12b   : > { %v1508_v40 = vsel %vm8591_vm10, %v1503_v28, %v1507_v19  ;;  %v1515_v41 = vrot.slane %v1513_v25, 5  ;;  %v1521_v42 = vrot.slane %v1519_v26, 5  ;;  %v1525_v43 = vrot.slane %v1523_v30, 4  ;;  %7608 = vmatmul.mubr.msk.bf16.gmra.mrb[12].mxu1 %vm1895_vm11, %v8200_v38  ;;  %v8806_v51 = vpop.f32.mrb[30].mxu0  ;;  %v1445_v23 = vld [vmem:[#allocation2 + $0x2c] sm:$0x1] }
 0x12c   : > { %v1142_v45 = vsel %vm8654_vm14, %v1134_v52, %v1141_v32  ;;  %v1365_v46 = vsel %vm8525_vm3, %v1143_v33, %v1364_v11  ;;  %v1125_v47 = vsel %vm8654_vm14, %v1117_v55, %v1124_v34  ;;  %v1358_v48 = vsel %vm8525_vm3, %v1126_v36, %v1357_v13  ;;  %v8810_v59 = vpop.f32.mrb[31].mxu0  ;;  %v1374_v31 = vld [vmem:[#allocation2 + $0x90] sm:$0xf] }
 0x12d   : > { %1363 = vst.msk [vmem:[#allocation2 + $0x7c] sm:$0xf] %vm754_vm6, %v1142_v45  ;;  %1366 = vst [vmem:[#allocation2 + $0x80] sm:$0x1] %v1365_v46  ;;  %v6831_v52 = vcombine.low %v1498_v27, %v1508_v40  ;;  %v1516_v54 = vor.u32 %v1515_v41, %v1512_v29  ;;  %v1526_v57 = vor.u32 %v1525_v43, %v1521_v42  ;;  %v1529_v58 = vshll.u32 %v1444_v37, 16 }
 0x12e   : > { %1356 = vst.msk [vmem:[#allocation2 + $0x70] sm:$0xf] %vm754_vm6, %v1125_v47  ;;  %1359 = vst [vmem:[#allocation2 + $0x74] sm:$0x1] %v1358_v48  ;;  %v652_v55 = vadd.f32 %v8742_v1, %v8638_v53  ;;  %v644_v60 = vadd.f32 %v8638_v53, %v8748_v6  ;;  %v655_v62 = vadd.f32 %v8752_v12, %v8638_v53  ;;  %v1534_v4 = vshrl.u32 %v1415_v49, 16 }
 0x12f   : > { %v647_v63 = vadd.f32 %v8638_v53, %v8754_v20  ;;  %7494 = vmatmul.mubr.msk.bf16.vlgmr.msra.gmra.mrb[32].mxu0 %vm1895_vm11, %v6831_v52  ;;  %v1517_v0 = vrot.slane %v1516_v54, 4  ;;  %v1527_v2 = vrot.slane %v1526_v57, 4  ;;  %v1531_v3 = vrot.slane %v1529_v58, 5  ;;  %v1416_v1 = vld [vmem:[#allocation2 + $0x28] sm:$0xf] }
 0x130   : > { %v712_v7 = vmax.f32 %v652_v55, 0.0  ;;  %v710_v8 = vmax.f32 %v644_v60, 0.0  ;;  %v713_v9 = vmax.f32 %v655_v62, 0.0  ;;  %v1536_v11 = vrot.slane %v1534_v4, 4  ;;  %v1367_v45 = vld [vmem:[#allocation2 + $0x84] sm:$0xf] }
 0x131   : > { %v711_v10 = vmax.f32 %v647_v63, 0.0  ;;  %v1522_v6 = vsel %vm8591_vm10, %v1517_v0, %v1521_v42  ;;  %v1532_v12 = vsel %vm8591_vm10, %v1527_v2, %v1531_v3  ;;  %v1537_v13 = vshll.u32 %v1415_v49, 16  ;;  %v1378_v55 = vld [vmem:[#allocation2 + $0x98] sm:$0x1]  ;;  %v1371_v60 = vld [vmem:[#allocation2 + $0x8c] sm:$0x1] }
 0x132   : > { %v6832_v20 = vcombine.low %v1522_v6, %v1532_v12  ;;  %v7238_v14 = vpack.c.bf16 %v712_v7, %v712_v7  ;;  %v7236_v15 = vpack.c.bf16 %v710_v8, %v710_v8  ;;  %v7239_v19 = vpack.c.bf16 %v713_v9, %v713_v9  ;;  %v1417_v3 = vld [vmem:[#allocation2 + $0x30] sm:$0xf] }
 0x133   : > { %v7237_v22 = vpack.c.bf16 %v711_v10, %v711_v10  ;;  %v1539_v24 = vrot.slane %v1537_v13, 5  ;;  %v1543_v25 = vshll.u32 %v1416_v1, 16  ;;  %v1547_v26 = vshrl.u32 %v1416_v1, 16  ;;  %v1418_v10 = vld [vmem:[#allocation2 + $0x34] sm:$0xf] }
 0x134   : > { %7497 = vmatprep.mubr.msk.bf16.mxu0 %vm1895_vm11, %v6832_v20  ;;  %v1162_v27 = vshrl.u32 %v7238_v14, 16  ;;  %v1165_v28 = vshll.u32 %v7238_v14, 16  ;;  %v1145_v29 = vshrl.u32 %v7236_v15, 16  ;;  %v1148_v30 = vshll.u32 %v7236_v15, 16  ;;  %v8202_v43 = vld [vmem:[#allocation2 + $0x78] sm:$0xff]  }
 0x135   : > { %v1170_v32 = vshrl.u32 %v7239_v19, 16  ;;  %v1173_v33 = vshll.u32 %v7239_v19, 16  ;;  %v1153_v34 = vshrl.u32 %v7237_v22, 16  ;;  %v1156_v36 = vshll.u32 %v7237_v22, 16  ;;  %v8201_v37 = vld [vmem:[#allocation2 + $0x6c] sm:$0xff]  }
 0x136   : > { %v1164_v38 = vrot.slane %v1162_v27, 7  ;;  %v1147_v40 = vrot.slane %v1145_v29, 7  ;;  %v1540_v41 = vor.u32 %v1539_v24, %v1536_v11  ;;  %v1545_v42 = vrot.slane %v1543_v25, 5  ;;  %7611 = vmatprep.mubr.msk.bf16.mxu1 %vm1895_vm11, %v8201_v37  ;;  %v1446_v1 = vld [vmem:[#allocation2 + $0x38] sm:$0x1] }
 0x137   : > { %v1172_v46 = vrot.slane %v1170_v32, 7  ;;  %v1155_v47 = vrot.slane %v1153_v34, 7  ;;  %v1549_v48 = vrot.slane %v1547_v26, 4  ;;  %v1553_v49 = vshll.u32 %v1445_v23, 16  ;;  %7612 = vmatmul.mubr.msk.bf16.gmra.mrb[16].mxu1 %vm1895_vm11, %v8202_v43 }
 0x138   : > { %v1167_v52 = vor.u32 %v1165_v28, %v1164_v38  ;;  %v1168_v54 = vrot.slane %v1164_v38, 4  ;;  %v1150_v57 = vor.u32 %v1148_v30, %v1147_v40  ;;  %v1151_v58 = vrot.slane %v1147_v40, 4  ;;  %v1419_v30 = vld [vmem:[#allocation2 + $0x3c] sm:$0xf] }
 0x139   : > { %v1175_v62 = vor.u32 %v1173_v33, %v1172_v46  ;;  %v1177_v63 = vrot.slane %v1172_v46, 4  ;;  %v1158_v0 = vor.u32 %v1156_v36, %v1155_v47  ;;  %v1160_v2 = vrot.slane %v1155_v47, 4 }
 0x13a   : > { %v1375_v4 = vsel %vm8647_vm13, %v1167_v52, %v1374_v31  ;;  %v1368_v7 = vsel %vm8647_vm13, %v1150_v57, %v1367_v45  ;;  %v1541_v8 = vrot.slane %v1540_v41, 4  ;;  %v1550_v9 = vor.u32 %v1549_v48, %v1545_v42 }
 0x13b   : > { %1376 = vst [vmem:[#allocation2 + $0x90] sm:$0xf] %v1375_v4  ;;  %1369 = vst [vmem:[#allocation2 + $0x84] sm:$0xf] %v1368_v7  ;;  %v1176_v6 = vsel %vm8654_vm14, %v1168_v54, %v1175_v62  ;;  %v1379_v12 = vsel %vm8525_vm3, %v1177_v63, %v1378_v55  ;;  %v1159_v11 = vsel %vm8654_vm14, %v1151_v58, %v1158_v0  ;;  %v1555_v15 = vrot.slane %v1553_v49, 5 }
 0x13c   : > { %v1372_v13 = vsel %vm8525_vm3, %v1160_v2, %v1371_v60  ;;  %1377 = vst.msk [vmem:[#allocation2 + $0x94] sm:$0xf] %vm754_vm6, %v1176_v6  ;;  %1380 = vst [vmem:[#allocation2 + $0x98] sm:$0x1] %v1379_v12  ;;  %v1546_v20 = vsel %vm8591_vm10, %v1541_v8, %v1545_v42  ;;  %v1551_v14 = vrot.slane %v1550_v9, 4  ;;  %v1558_v19 = vshrl.u32 %v1417_v3, 16 }
 0x13d   : > { %1370 = vst.msk [vmem:[#allocation2 + $0x88] sm:$0xf] %vm754_vm6, %v1159_v11  ;;  %1373 = vst [vmem:[#allocation2 + $0x8c] sm:$0x1] %v1372_v13  ;;  %v1561_v22 = vshll.u32 %v1417_v3, 16  ;;  %v1567_v23 = vshll.u32 %v1418_v10, 16  ;;  %v668_v28 = vadd.f32 %v8771_v50, %v8638_v53  ;;  %v660_v29 = vadd.f32 %v8638_v53, %v8778_v56 }
 0x13e   : > { %v1571_v24 = vshrl.u32 %v1418_v10, 16  ;;  %v1577_v25 = vshll.u32 %v1446_v1, 16  ;;  %v1556_v26 = vsel %vm8591_vm10, %v1551_v14, %v1555_v15  ;;  %v1560_v27 = vrot.slane %v1558_v19, 4  ;;  %v1381_v63 = vld [vmem:[#allocation2 + $0x9c] sm:$0xf] }
 0x13f   : > { %v6833_v31 = vcombine.low %v1546_v20, %v1556_v26  ;;  %v1563_v32 = vrot.slane %v1561_v22, 5  ;;  %v1569_v33 = vrot.slane %v1567_v23, 5  ;;  %v716_v37 = vmax.f32 %v668_v28, 0.0  ;;  %v8859_v9 = vld [vmem:[#allocation2 + $0x40] sm:$0xf] }
 0x140   : > { %v1573_v34 = vrot.slane %v1571_v24, 4  ;;  %v1579_v36 = vrot.slane %v1577_v25, 5  ;;  %v714_v38 = vmax.f32 %v660_v29, 0.0  ;;  %v671_v40 = vadd.f32 %v8780_v61, %v8638_v53  ;;  %v1447_v13 = vld [vmem:[#allocation2 + $0x44] sm:$0x1] }
 0x141   : > { %7498 = vmatmul.mubr.msk.bf16.gmra.mrb[36].mxu0 %vm1895_vm11, %v6833_v31  ;;  %v1564_v41 = vor.u32 %v1563_v32, %v1560_v27  ;;  %v663_v50 = vadd.f32 %v8638_v53, %v8786_v5  ;;  %v1582_v43 = vshrl.u32 %v1419_v30, 16  ;;  %v7242_v56 = vpack.c.bf16 %v716_v37, %v716_v37  ;;  %v1388_v5 = vld [vmem:[#allocation2 + $0xa8] sm:$0xf]  ;;  %v1392_v28 = vld [vmem:[#allocation2 + $0xb0] sm:$0x1] }
 0x142   : > { %v1574_v42 = vor.u32 %v1573_v34, %v1569_v33  ;;  %v7240_v45 = vpack.c.bf16 %v714_v38, %v714_v38  ;;  %v717_v46 = vmax.f32 %v671_v40, 0.0  ;;  %v1585_v47 = vshll.u32 %v1419_v30, 16  ;;  %v1385_v29 = vld [vmem:[#allocation2 + $0xa4] sm:$0x1]  ;;  %v8870_v37 = vld [vmem:[#allocation2 + $0x48] sm:$0xf] }
 0x143   : > { %v1565_v48 = vrot.slane %v1564_v41, 4  ;;  %v715_v52 = vmax.f32 %v663_v50, 0.0  ;;  %v1584_v54 = vrot.slane %v1582_v43, 4  ;;  %v1196_v57 = vshrl.u32 %v7242_v56, 16  ;;  %v8204_v3 = vld [vmem:[#allocation2 + $0x90] sm:$0xff]  }
 0x144   : > { %v1575_v49 = vrot.slane %v1574_v42, 4  ;;  %v1199_v58 = vshll.u32 %v7242_v56, 16  ;;  %v1179_v55 = vshrl.u32 %v7240_v45, 16  ;;  %v1182_v61 = vshll.u32 %v7240_v45, 16  ;;  %v8203_v60 = vld [vmem:[#allocation2 + $0x84] sm:$0xff]  }
 0x145   : > { %v1570_v62 = vsel %vm8591_vm10, %v1565_v48, %v1569_v33  ;;  %v7243_v0 = vpack.c.bf16 %v717_v46, %v717_v46  ;;  %v7241_v2 = vpack.c.bf16 %v715_v52, %v715_v52  ;;  %v1198_v7 = vrot.slane %v1196_v57, 7  ;;  %7615 = vmatprep.mubr.msk.bf16.mxu1 %vm1895_vm11, %v8203_v60  ;;  %v8872_v38 = vld [vmem:[#allocation2 + $0x4c] sm:$0xf]  ;;  %v1448_v43 = vld [vmem:[#allocation2 + $0x50] sm:$0x1] }
 0x146   : > { %v1580_v53 = vsel %vm8591_vm10, %v1575_v49, %v1579_v36  ;;  %v1181_v8 = vrot.slane %v1179_v55, 7  ;;  %v1587_v10 = vrot.slane %v1585_v47, 5  ;;  %7616 = vmatmul.mubr.msk.bf16.gmra.mrb[20].mxu1 %vm1895_vm11, %v8204_v3  ;;  %v1591_v25 = vshll.u32 %v8859_v9, 16 }
 0x147   : > { %v6834_v4 = vcombine.low %v1570_v62, %v1580_v53  ;;  %v1204_v1 = vshrl.u32 %v7243_v0, 16  ;;  %v1207_v6 = vshll.u32 %v7243_v0, 16  ;;  %v1187_v12 = vshrl.u32 %v7241_v2, 16  ;;  %v8895_v0 = vld [vmem:[#allocation2 + $0x54] sm:$0xf] }
 0x148   : > { %v1190_v11 = vshll.u32 %v7241_v2, 16  ;;  %v1201_v20 = vor.u32 %v1199_v58, %v1198_v7  ;;  %v1202_v14 = vrot.slane %v1198_v7, 4  ;;  %v1184_v15 = vor.u32 %v1182_v61, %v1181_v8  ;;  %v8252_v61 = vld [vmem:[%s10517_s2] ss:$0 sm:$0xff] }
 0x149   : > { %7501 = vmatprep.mubr.msk.bf16.mxu0 %vm1895_vm11, %v6834_v4  ;;  %v1185_v19 = vrot.slane %v1181_v8, 4  ;;  %v1206_v22 = vrot.slane %v1204_v1, 7  ;;  %v1189_v23 = vrot.slane %v1187_v12, 7  ;;  %v1588_v24 = vor.u32 %v1587_v10, %v1584_v54 }
 0x14a   : > { %v1389_v26 = vsel %vm8647_vm13, %v1201_v20, %v1388_v5  ;;  %v1382_v27 = vsel %vm8647_vm13, %v1184_v15, %v1381_v63  ;;  %v1595_v30 = vshrl.u32 %v8859_v9, 16  ;;  %v1601_v31 = vshll.u32 %v1447_v13, 16 }
 0x14b   : > { %1390 = vst [vmem:[#allocation2 + $0xa8] sm:$0xf] %v1389_v26  ;;  %1383 = vst [vmem:[#allocation2 + $0x9c] sm:$0xf] %v1382_v27  ;;  %v1209_v32 = vor.u32 %v1207_v6, %v1206_v22  ;;  %v1211_v33 = vrot.slane %v1206_v22, 4  ;;  %v1192_v34 = vor.u32 %v1190_v11, %v1189_v23  ;;  %v1194_v36 = vrot.slane %v1189_v23, 4 }
 0x14c   : > { %v1589_v40 = vrot.slane %v1588_v24, 4  ;;  %v1593_v41 = vrot.slane %v1591_v25, 5  ;;  %v1597_v42 = vrot.slane %v1595_v30, 4  ;;  %v1603_v50 = vrot.slane %v1601_v31, 5  ;;  %v1402_v30 = vld [vmem:[#allocation2 + $0xc0] sm:$0xf] }
 0x14d   : > { %v1210_v56 = vsel %vm8654_vm14, %v1202_v14, %v1209_v32  ;;  %v1393_v45 = vsel %vm8525_vm3, %v1211_v33, %v1392_v28  ;;  %v1193_v46 = vsel %vm8654_vm14, %v1185_v19, %v1192_v34  ;;  %v1386_v47 = vsel %vm8525_vm3, %v1194_v36, %v1385_v29 }
 0x14e   : > { %1391 = vst.msk [vmem:[#allocation2 + $0xac] sm:$0xf] %vm754_vm6, %v1210_v56  ;;  %1394 = vst [vmem:[#allocation2 + $0xb0] sm:$0x1] %v1393_v45  ;;  %v1594_v48 = vsel %vm8591_vm10, %v1589_v40, %v1593_v41  ;;  %v1598_v49 = vor.u32 %v1597_v42, %v1593_v41  ;;  %v1606_v52 = vshrl.u32 %v8870_v37, 16  ;;  %v1609_v54 = vshll.u32 %v8870_v37, 16 }
 0x14f   : > { %1384 = vst.msk [vmem:[#allocation2 + $0xa0] sm:$0xf] %vm754_vm6, %v1193_v46  ;;  %1387 = vst [vmem:[#allocation2 + $0xa4] sm:$0x1] %v1386_v47  ;;  %v1615_v57 = vshll.u32 %v8872_v38, 16  ;;  %v1619_v58 = vshrl.u32 %v8872_v38, 16  ;;  %v684_v60 = vadd.f32 %v8252_v61, %v8790_v39  ;;  %v676_v63 = vadd.f32 %v8252_v61, %v8795_v44 }
 0x150   : > { %v1625_v55 = vshll.u32 %v1448_v43, 16  ;;  %v1599_v62 = vrot.slane %v1598_v49, 4  ;;  %v1608_v53 = vrot.slane %v1606_v52, 4  ;;  %v1611_v5 = vrot.slane %v1609_v54, 5  ;;  %v8907_v42 = vld [vmem:[#allocation2 + $0x58] sm:$0xf] }
 0x151   : > { %v1617_v2 = vrot.slane %v1615_v57, 5  ;;  %v1621_v3 = vrot.slane %v1619_v58, 4  ;;  %v720_v7 = vmax.f32 %v684_v60, 0.0  ;;  %v718_v1 = vmax.f32 %v676_v63, 0.0  ;;  %v1395_v56 = vld [vmem:[#allocation2 + $0xb4] sm:$0xf] }
 0x152   : > { %v1627_v4 = vrot.slane %v1625_v55, 5  ;;  %v1604_v8 = vsel %vm8591_vm10, %v1599_v62, %v1603_v50  ;;  %v1612_v10 = vor.u32 %v1611_v5, %v1608_v53  ;;  %v687_v6 = vadd.f32 %v8252_v61, %v8806_v51  ;;  %v1406_v52 = vld [vmem:[#allocation2 + $0xc8] sm:$0x1]  ;;  %v1449_v55 = vld [vmem:[#allocation2 + $0x5c] sm:$0x1] }
 0x153   : > { %v6835_v12 = vcombine.low %v1594_v48, %v1604_v8  ;;  %v1622_v39 = vor.u32 %v1621_v3, %v1617_v2  ;;  %v7246_v11 = vpack.c.bf16 %v720_v7, %v720_v7  ;;  %v679_v13 = vadd.f32 %v8252_v61, %v8810_v59  ;;  %v1399_v63 = vld [vmem:[#allocation2 + $0xbc] sm:$0x1]  ;;  %v8919_v3 = vld [vmem:[#allocation2 + $0x60] sm:$0xf] }
 0x154   : > { %v1613_v20 = vrot.slane %v1612_v10, 4  ;;  %v7244_v44 = vpack.c.bf16 %v718_v1, %v718_v1  ;;  %v721_v14 = vmax.f32 %v687_v6, 0.0  ;;  %v1630_v15 = vshrl.u32 %v8895_v0, 16  ;;  %v8921_v1 = vld [vmem:[#allocation2 + $0x64] sm:$0xf] }
 0x155   : > { %7502 = vmatmul.mubr.msk.bf16.gmra.mrb[40].mxu0 %vm1895_vm11, %v6835_v12  ;;  %v1623_v19 = vrot.slane %v1622_v39, 4  ;;  %v1230_v22 = vshrl.u32 %v7246_v11, 16  ;;  %v1233_v23 = vshll.u32 %v7246_v11, 16  ;;  %v719_v24 = vmax.f32 %v679_v13, 0.0  ;;  %v8206_v33 = vld [vmem:[#allocation2 + $0xa8] sm:$0xff]  }
 0x156   : > { %v1618_v25 = vsel %vm8591_vm10, %v1613_v20, %v1617_v2  ;;  %v1213_v51 = vshrl.u32 %v7244_v44, 16  ;;  %v1216_v26 = vshll.u32 %v7244_v44, 16  ;;  %v7247_v27 = vpack.c.bf16 %v721_v14, %v721_v14  ;;  %v8205_v28 = vld [vmem:[#allocation2 + $0x9c] sm:$0xff]   ;;  %v1450_v11 = vld [vmem:[#allocation2 + $0x68] sm:$0x1] }
 0x157   : > { %v1628_v59 = vsel %vm8591_vm10, %v1623_v19, %v1627_v4  ;;  %v1232_v29 = vrot.slane %v1230_v22, 7  ;;  %v7245_v31 = vpack.c.bf16 %v719_v24, %v719_v24  ;;  %v1632_v32 = vrot.slane %v1630_v15, 4  ;;  %7619 = vmatprep.mubr.msk.bf16.mxu1 %vm1895_vm11, %v8205_v28  ;;  %v8933_v15 = vld [vmem:[#allocation2 + $0x6c] sm:$0xf]  ;;  %v8941_v28 = vld [vmem:[#allocation2 + $0x78] sm:$0xf] }
 0x158   : > { %v6836_v34 = vcombine.low %v1618_v25, %v1628_v59  ;;  %v1215_v36 = vrot.slane %v1213_v51, 7  ;;  %v1238_v40 = vshrl.u32 %v7247_v27, 16  ;;  %v1241_v41 = vshll.u32 %v7247_v27, 16  ;;  %7620 = vmatmul.mubr.msk.bf16.gmra.mrb[24].mxu1 %vm1895_vm11, %v8206_v33  ;;  %v8939_v27 = vld [vmem:[#allocation2 + $0x70] sm:$0xf] }
 0x159   : > { %v1235_v50 = vor.u32 %v1233_v23, %v1232_v29  ;;  %v1236_v43 = vrot.slane %v1232_v29, 4  ;;  %v1221_v45 = vshrl.u32 %v7245_v31, 16  ;;  %v1224_v46 = vshll.u32 %v7245_v31, 16  ;;  %v1451_v31 = vld [vmem:[#allocation2 + $0x74] sm:$0x1] }
 0x15a   : > { %7505 = vmatprep.mubr.msk.bf16.mxu0 %vm1895_vm11, %v6836_v34  ;;  %v1218_v47 = vor.u32 %v1216_v26, %v1215_v36  ;;  %v1219_v48 = vrot.slane %v1215_v36, 4  ;;  %v1240_v49 = vrot.slane %v1238_v40, 7  ;;  %v1633_v54 = vshll.u32 %v8895_v0, 16 }
 0x15b   : > { %v1403_v57 = vsel %vm8647_vm13, %v1235_v50, %v1402_v30  ;;  %v1223_v58 = vrot.slane %v1221_v45, 7  ;;  %v1639_v61 = vshll.u32 %v8907_v42, 16  ;;  %v1643_v60 = vshrl.u32 %v8907_v42, 16  ;;  %v8950_v45 = vld [vmem:[#allocation2 + $0x7c] sm:$0xf] }
 0x15c   : > { %1404 = vst [vmem:[#allocation2 + $0xc0] sm:$0xf] %v1403_v57  ;;  %v1396_v62 = vsel %vm8647_vm13, %v1218_v47, %v1395_v56  ;;  %v1243_v53 = vor.u32 %v1241_v41, %v1240_v49  ;;  %v1245_v5 = vrot.slane %v1240_v49, 4  ;;  %v1635_v2 = vrot.slane %v1633_v54, 5 }
 0x15d   : > { %1397 = vst [vmem:[#allocation2 + $0xb4] sm:$0xf] %v1396_v62  ;;  %v1226_v4 = vor.u32 %v1224_v46, %v1223_v58  ;;  %v1228_v7 = vrot.slane %v1223_v58, 4  ;;  %v1641_v8 = vrot.slane %v1639_v61, 5  ;;  %v1645_v10 = vrot.slane %v1643_v60, 4 }
 0x15e   : > { %v1244_v6 = vsel %vm8654_vm14, %v1236_v43, %v1243_v53  ;;  %v1407_v16 = vsel %vm8525_vm3, %v1245_v5, %v1406_v52  ;;  %v1636_v12 = vor.u32 %v1635_v2, %v1632_v32  ;;  %v1649_v39 = vshll.u32 %v1449_v55, 16  ;;  %v1452_v52 = vld [vmem:[#allocation2 + $0x80] sm:$0x1] }
 0x15f   : > { %1405 = vst.msk [vmem:[#allocation2 + $0xc4] sm:$0xf] %vm754_vm6, %v1244_v6  ;;  %1408 = vst [vmem:[#allocation2 + $0xc8] sm:$0x1] %v1407_v16  ;;  %v1227_v13 = vsel %vm8654_vm14, %v1219_v48, %v1226_v4  ;;  %v1400_v20 = vsel %vm8525_vm3, %v1228_v7, %v1399_v63  ;;  %v1646_v44 = vor.u32 %v1645_v10, %v1641_v8  ;;  %v1654_v14 = vshrl.u32 %v8919_v3, 16 }
 0x160   : > { %1398 = vst.msk [vmem:[#allocation2 + $0xb8] sm:$0xf] %vm754_vm6, %v1227_v13  ;;  %1401 = vst [vmem:[#allocation2 + $0xbc] sm:$0x1] %v1400_v20  ;;  %v1637_v19 = vrot.slane %v1636_v12, 4  ;;  %v1651_v22 = vrot.slane %v1649_v39, 5 }
 0x161   : > { %v1657_v23 = vshll.u32 %v8919_v3, 16  ;;  %v1663_v24 = vshll.u32 %v8921_v1, 16  ;;  %v1647_v25 = vrot.slane %v1646_v44, 4  ;;  %v1656_v35 = vrot.slane %v1654_v14, 4 }
 0x162   : > { %v1667_v51 = vshrl.u32 %v8921_v1, 16  ;;  %v1673_v26 = vshll.u32 %v1450_v11, 16  ;;  %v1642_v59 = vsel %vm8591_vm10, %v1637_v19, %v1641_v8  ;;  %v1678_v32 = vshrl.u32 %v8933_v15, 16  ;;  %v8959_v8 = vld [vmem:[#allocation2 + $0x84] sm:$0xf] }
 0x163   : > { %v1659_v29 = vrot.slane %v1657_v23, 5  ;;  %v1665_v30 = vrot.slane %v1663_v24, 5  ;;  %v1652_v33 = vsel %vm8591_vm10, %v1647_v25, %v1651_v22  ;;  %v1681_v40 = vshll.u32 %v8933_v15, 16  ;;  %v8964_v11 = vld [vmem:[#allocation2 + $0x88] sm:$0xf] }
 0x164   : > { %v1669_v34 = vrot.slane %v1667_v51, 4  ;;  %v1675_v36 = vrot.slane %v1673_v26, 5  ;;  %v6837_v41 = vcombine.low %v1642_v59, %v1652_v33  ;;  %v1680_v43 = vrot.slane %v1678_v32, 4  ;;  %v1453_v24 = vld [vmem:[#allocation2 + $0x8c] sm:$0x1] }
 0x165   : > { %v1660_v50 = vor.u32 %v1659_v29, %v1656_v35  ;;  %v1687_v56 = vshll.u32 %v8939_v27, 16  ;;  %v1683_v47 = vrot.slane %v1681_v40, 5  ;;  %v1691_v48 = vshrl.u32 %v8939_v27, 16  ;;  %v8974_v29 = vld [vmem:[#allocation2 + $0x90] sm:$0xf] }
 0x166   : > { %v1670_v46 = vor.u32 %v1669_v34, %v1665_v30  ;;  %v1697_v49 = vshll.u32 %v1451_v31, 16  ;;  %7506 = vmatmul.mubr.msk.bf16.gmra.mrb[44].mxu0 %vm1895_vm11, %v6837_v41  ;;  %v1702_v58 = vshrl.u32 %v8941_v28, 16  ;;  %v1705_v55 = vshll.u32 %v8941_v28, 16  ;;  %v8208_v10 = vld [vmem:[#allocation2 + $0xc0] sm:$0xff]   ;;  %v8979_v34 = vld [vmem:[#allocation2 + $0x94] sm:$0xf] }
 0x167   : > { %v1661_v54 = vrot.slane %v1660_v50, 4  ;;  %v1689_v57 = vrot.slane %v1687_v56, 5  ;;  %v1684_v60 = vor.u32 %v1683_v47, %v1680_v43  ;;  %v1693_v62 = vrot.slane %v1691_v48, 4  ;;  %v8207_v5 = vld [vmem:[#allocation2 + $0xb4] sm:$0xff]  }
 0x168   : > { %v1671_v61 = vrot.slane %v1670_v46, 4  ;;  %v1699_v53 = vrot.slane %v1697_v49, 5  ;;  %v1704_v2 = vrot.slane %v1702_v58, 4  ;;  %v1707_v4 = vrot.slane %v1705_v55, 5  ;;  %7623 = vmatprep.mubr.msk.bf16.mxu1 %vm1895_vm11, %v8207_v5  ;;  %v1454_v47 = vld [vmem:[#allocation2 + $0x98] sm:$0x1] }
 0x169   : > { %v1666_v63 = vsel %vm8591_vm10, %v1661_v54, %v1665_v30  ;;  %v1711_v7 = vshll.u32 %v8950_v45, 16  ;;  %v1685_v16 = vrot.slane %v1684_v60, 4  ;;  %v1694_v12 = vor.u32 %v1693_v62, %v1689_v57  ;;  %7624 = vmatmul.mubr.msk.bf16.gmra.mrb[28].mxu1 %vm1895_vm11, %v8208_v10  ;;  %v8988_v58 = vld [vmem:[#allocation2 + $0x9c] sm:$0xf] }
 0x16a   : > { %v1676_v6 = vsel %vm8591_vm10, %v1671_v61, %v1675_v36  ;;  %v1715_v39 = vshrl.u32 %v8950_v45, 16  ;;  %v1708_v20 = vor.u32 %v1707_v4, %v1704_v2  ;;  %v1721_v14 = vshll.u32 %v1452_v52, 16 }
 0x16b   : > { %v6838_v13 = vcombine.low %v1666_v63, %v1676_v6  ;;  %v1713_v44 = vrot.slane %v1711_v7, 5  ;;  %v1690_v19 = vsel %vm8591_vm10, %v1685_v16, %v1689_v57  ;;  %v1695_v22 = vrot.slane %v1694_v12, 4  ;;  %v8994_v7 = vld [vmem:[#allocation2 + $0xa8] sm:$0xf] }
 0x16c   : > { %v1717_v23 = vrot.slane %v1715_v39, 4  ;;  %v1726_v25 = vshrl.u32 %v8959_v8, 16  ;;  %v1709_v35 = vrot.slane %v1708_v20, 4  ;;  %v1723_v51 = vrot.slane %v1721_v14, 5  ;;  %v1455_v20 = vld [vmem:[#allocation2 + $0xa4] sm:$0x1] }
 0x16d   : > { %7509 = vmatprep.mubr.msk.bf16.mxu0 %vm1895_vm11, %v6838_v13  ;;  %v1729_v26 = vshll.u32 %v8959_v8, 16  ;;  %v1735_v59 = vshll.u32 %v8964_v11, 16  ;;  %v1700_v30 = vsel %vm8591_vm10, %v1695_v22, %v1699_v53  ;;  %v1739_v33 = vshrl.u32 %v8964_v11, 16  ;;  %v8992_v53 = vld [vmem:[#allocation2 + $0xa0] sm:$0xf] }
 0x16e   : > { %v1718_v31 = vor.u32 %v1717_v23, %v1713_v44  ;;  %v1728_v32 = vrot.slane %v1726_v25, 4  ;;  %v6839_v36 = vcombine.low %v1690_v19, %v1700_v30  ;;  %v1714_v40 = vsel %vm8591_vm10, %v1709_v35, %v1713_v44  ;;  %v9004_v25 = vld [vmem:[#allocation2 + $0xac] sm:$0xf]  ;;  %v1456_v30 = vld [vmem:[#allocation2 + $0xb0] sm:$0x1] }
 0x16f   : > { %v1731_v41 = vrot.slane %v1729_v26, 5  ;;  %v1737_v50 = vrot.slane %v1735_v59, 5  ;;  %v1741_v56 = vrot.slane %v1739_v33, 4  ;;  %v1745_v46 = vshll.u32 %v1453_v24, 16 }
 0x170   : > { %v1719_v43 = vrot.slane %v1718_v31, 4  ;;  %v1750_v48 = vshrl.u32 %v8974_v29, 16  ;;  %7510 = vmatmul.mubr.msk.bf16.gmra.mrb[48].mxu0 %vm1895_vm11, %v6839_v36  ;;  %v1753_v52 = vshll.u32 %v8974_v29, 16  ;;  %v1759_v54 = vshll.u32 %v8979_v34, 16  ;;  %v3216_v31 = vld [vmem:[#allocation2 + $0xc] sm:$0xf] }
 0x171   : > { %v1732_v49 = vor.u32 %v1731_v41, %v1728_v32  ;;  %v1763_v57 = vshrl.u32 %v8979_v34, 16  ;;  %v1742_v61 = vor.u32 %v1741_v56, %v1737_v50  ;;  %v1747_v60 = vrot.slane %v1745_v46, 5 }
 0x172   : > { %v1724_v55 = vsel %vm8591_vm10, %v1719_v43, %v1723_v51  ;;  %v1752_v62 = vrot.slane %v1750_v48, 4  ;;  %v1755_v2 = vrot.slane %v1753_v52, 5  ;;  %v1761_v4 = vrot.slane %v1759_v54, 5  ;;  %v9015_v52 = vld [vmem:[#allocation2 + $0x10] sm:$0xf] }
 0x173   : > { %v6840_v5 = vcombine.low %v1714_v40, %v1724_v55  ;;  %v1733_v63 = vrot.slane %v1732_v49, 4  ;;  %v1743_v10 = vrot.slane %v1742_v61, 4  ;;  %v1765_v6 = vrot.slane %v1763_v57, 4 }
 0x174   : > { %v1769_v16 = vshll.u32 %v1454_v47, 16  ;;  %v1774_v12 = vshrl.u32 %v8988_v58, 16  ;;  %v1756_v13 = vor.u32 %v1755_v2, %v1752_v62  ;;  %v1777_v44 = vshll.u32 %v8988_v58, 16 }
 0x175   : > { %7513 = vmatprep.mubr.msk.bf16.mxu0 %vm1895_vm11, %v6840_v5  ;;  %v1738_v39 = vsel %vm8591_vm10, %v1733_v63, %v1737_v50  ;;  %v1783_v14 = vshll.u32 %v8992_v53, 16  ;;  %v1748_v19 = vsel %vm8591_vm10, %v1743_v10, %v1747_v60  ;;  %v1766_v22 = vor.u32 %v1765_v6, %v1761_v4  ;;  %v9017_v60 = vld [vmem:[#allocation2 + $0x14] sm:$0x1] }
 0x176   : > { %v1771_v23 = vrot.slane %v1769_v16, 5  ;;  %v1776_v24 = vrot.slane %v1774_v12, 4  ;;  %v6841_v35 = vcombine.low %v1738_v39, %v1748_v19  ;;  %v1757_v51 = vrot.slane %v1756_v13, 4  ;;  %v9024_v12 = vld [vmem:[#allocation2 + $0xb4] sm:$0xf] }
 0x177   : > { %v1779_v26 = vrot.slane %v1777_v44, 5  ;;  %v1785_v59 = vrot.slane %v1783_v14, 5  ;;  %v1767_v32 = vrot.slane %v1766_v22, 4  ;;  %v1787_v33 = vshrl.u32 %v8992_v53, 16  ;;  %v9026_v14 = vld [vmem:[#allocation2 + $0xb8] sm:$0xf] }
 0x178   : > { %v1793_v36 = vshll.u32 %v1455_v20, 16  ;;  %v1798_v40 = vshrl.u32 %v8994_v7, 16  ;;  %7514 = vmatmul.mubr.msk.bf16.gmra.mrb[52].mxu0 %vm1895_vm11, %v6841_v35  ;;  %v1762_v41 = vsel %vm8591_vm10, %v1757_v51, %v1761_v4  ;;  %v1801_v43 = vshll.u32 %v8994_v7, 16  ;;  %v1457_v35 = vld [vmem:[#allocation2 + $0xbc] sm:$0x1] }
 0x179   : > { %v1780_v50 = vor.u32 %v1779_v26, %v1776_v24  ;;  %v1807_v56 = vshll.u32 %v9004_v25, 16  ;;  %v1772_v46 = vsel %vm8591_vm10, %v1767_v32, %v1771_v23  ;;  %v1789_v47 = vrot.slane %v1787_v33, 4  ;;  %v3219_v51 = vld [vmem:[#allocation2 + $0x18] sm:$0xf] }
 0x17a   : > { %v1795_v48 = vrot.slane %v1793_v36, 5  ;;  %v1800_v49 = vrot.slane %v1798_v40, 4  ;;  %v6842_v54 = vcombine.low %v1762_v41, %v1772_v46  ;;  %v1803_v55 = vrot.slane %v1801_v43, 5  ;;  %v9036_v46 = vld [vmem:[#allocation2 + $0x1c] sm:$0xf] }
 0x17b   : > { %v1781_v57 = vrot.slane %v1780_v50, 4  ;;  %v1809_v61 = vrot.slane %v1807_v56, 5  ;;  %v1790_v62 = vor.u32 %v1789_v47, %v1785_v59  ;;  %v1811_v5 = vshrl.u32 %v9004_v25, 16 }
 0x17c   : > { %v1817_v63 = vshll.u32 %v1456_v30, 16  ;;  %v3265_v2 = vshrl.u32 %v3216_v31, 16  ;;  %7517 = vmatprep.mubr.msk.bf16.mxu0 %vm1895_vm11, %v6842_v54  ;;  %v1804_v10 = vor.u32 %v1803_v55, %v1800_v49  ;;  %v3268_v6 = vshll.u32 %v3216_v31, 16 }
 0x17d   : > { %v1786_v4 = vsel %vm8591_vm10, %v1781_v57, %v1785_v59  ;;  %v3274_v16 = vshll.u32 %v9015_v52, 16  ;;  %v1791_v39 = vrot.slane %v1790_v62, 4  ;;  %v1813_v13 = vrot.slane %v1811_v5, 4  ;;  %v9041_v57 = vld [vmem:[#allocation2 + $0x20] sm:$0x1] }
 0x17e   : > { %v1819_v20 = vrot.slane %v1817_v63, 5  ;;  %v3267_v44 = vrot.slane %v3265_v2, 4  ;;  %v1805_v19 = vrot.slane %v1804_v10, 4  ;;  %v3270_v22 = vrot.slane %v3268_v6, 5  ;;  %v3222_v6 = vld [vmem:[#allocation2 + $0x24] sm:$0xf] }
 0x17f   : > { %v3276_v23 = vrot.slane %v3274_v16, 5  ;;  %v3278_v24 = vshrl.u32 %v9015_v52, 16  ;;  %v1796_v26 = vsel %vm8591_vm10, %v1791_v39, %v1795_v48  ;;  %v1814_v59 = vor.u32 %v1813_v13, %v1809_v61 }
 0x180   : > { %v3284_v30 = vshll.u32 %v9017_v60, 16  ;;  %v1822_v31 = vshrl.u32 %v9024_v12, 16  ;;  %v6843_v32 = vcombine.low %v1786_v4, %v1796_v26  ;;  %v1810_v33 = vsel %vm8591_vm10, %v1805_v19, %v1809_v61  ;;  %v9047_v19 = vld [vmem:[#allocation2 + $0x28] sm:$0xf] }
 0x181   : > { %v3271_v36 = vor.u32 %v3270_v22, %v3267_v44  ;;  %v3280_v40 = vrot.slane %v3278_v24, 4  ;;  %v1815_v41 = vrot.slane %v1814_v59, 4  ;;  %v1825_v56 = vshll.u32 %v9024_v12, 16 }
 0x182   : > { %v3286_v50 = vrot.slane %v3284_v30, 5  ;;  %v1824_v43 = vrot.slane %v1822_v31, 4  ;;  %7518 = vmatmul.mubr.msk.bf16.gmra.mrb[56].mxu0 %vm1895_vm11, %v6843_v32  ;;  %v1831_v49 = vshll.u32 %v9026_v14, 16  ;;  %v1835_v54 = vshrl.u32 %v9026_v14, 16 }
 0x183   : > { %v3272_v47 = vrot.slane %v3271_v36, 4  ;;  %v3281_v48 = vor.u32 %v3280_v40, %v3276_v23  ;;  %v1820_v55 = vsel %vm8591_vm10, %v1815_v41, %v1819_v20  ;;  %v1827_v61 = vrot.slane %v1825_v56, 5  ;;  %v8253_v40 = vld [vmem:[%s10518_s3 + $0x14] sm:$0xf] }
 0x184   : > { %v1841_v62 = vshll.u32 %v1457_v35, 16  ;;  %v3289_v5 = vshrl.u32 %v3219_v51, 16  ;;  %v6844_v63 = vcombine.low %v1810_v33, %v1820_v55  ;;  %v1833_v10 = vrot.slane %v1831_v49, 5  ;;  %v3225_v55 = vld [vmem:[#allocation2 + $0x30] sm:$0xf] }
 0x185   : > { %v3277_v2 = vsel %vm8591_vm10, %v3272_v47, %v3276_v23  ;;  %v3282_v4 = vrot.slane %v3281_v48, 4  ;;  %v1828_v16 = vor.u32 %v1827_v61, %v1824_v43  ;;  %v1837_v39 = vrot.slane %v1835_v54, 4  ;;  %v9054_v23 = vld [vmem:[#allocation2 + $0x2c] sm:$0x1] }
 0x186   : > { %v1843_v13 = vrot.slane %v1841_v62, 5  ;;  %v3291_v44 = vrot.slane %v3289_v5, 4  ;;  %7521 = vmatprep.mubr.msk.bf16.mxu0 %vm1895_vm11, %v6844_v63  ;;  %v3292_v22 = vshll.u32 %v3219_v51, 16  ;;  %v3298_v24 = vshll.u32 %v9036_v46, 16 }
 0x187   : > { %v3287_v20 = vsel %vm8591_vm10, %v3282_v4, %v3286_v50  ;;  %v3302_v35 = vshrl.u32 %v9036_v46, 16  ;;  %v1829_v59 = vrot.slane %v1828_v16, 4  ;;  %v1838_v30 = vor.u32 %v1837_v39, %v1833_v10 }
 0x188   : > { %v6977_v26 = vcombine.low %v3277_v2, %v3287_v20  ;;  %v3308_v31 = vshll.u32 %v9041_v57, 16  ;;  %v3294_v32 = vrot.slane %v3292_v22, 5  ;;  %v3300_v33 = vrot.slane %v3298_v24, 5  ;;  %v9069_v2 = vld [vmem:[#allocation2 + $0x34] sm:$0xf] }
 0x189   : > { %v3304_v36 = vrot.slane %v3302_v35, 4  ;;  %v4217_v51 = vsel %vm1944_vm7, %v8253_v40, 0  ;;  %v1834_v41 = vsel %vm8591_vm10, %v1829_v59, %v1833_v10  ;;  %v1839_v50 = vrot.slane %v1838_v30, 4  ;;  %v9080_v35 = vld [vmem:[%s10518_s3 + $0x8] sm:$0xf] }
 0x18a   : > { %7629 = vmatprep.mubr.msk.bf16.mxu1 %vm1895_vm11, %v6977_v26  ;;  %v3310_v43 = vrot.slane %v3308_v31, 5  ;;  %v3313_v56 = vshrl.u32 %v3222_v6, 16  ;;  %v3295_v47 = vor.u32 %v3294_v32, %v3291_v44  ;;  %v3316_v49 = vshll.u32 %v3222_v6, 16  ;;  %v9071_v44 = vld [vmem:[#allocation2 + $0x38] sm:$0x1] }
 0x18b   : > { %v3305_v48 = vor.u32 %v3304_v36, %v3300_v33  ;;  %v3322_v54 = vshll.u32 %v9047_v19, 16  ;;  %v1844_v61 = vsel %vm8591_vm10, %v1839_v50, %v1843_v13  ;;  %v3326_v5 = vshrl.u32 %v9047_v19, 16  ;;  %v8254_v13 = vld [vmem:[%s10518_s3] sm:$0xf]  ;;  %v9087_v32 = vld [vmem:[#allocation2 + $0x4] sm:$0xf] }
 0x18c   : > { %v3315_v62 = vrot.slane %v3313_v56, 4  ;;  %v3332_v63 = vshll.u32 %v9054_v23, 16  ;;  %v6845_v4 = vcombine.low %v1834_v41, %v1844_v61  ;;  %v3296_v10 = vrot.slane %v3295_v47, 4  ;;  %v8255_v31 = vld [vmem:[#allocation2] sm:$0xf] }
 0x18d   : > { %v3306_v16 = vrot.slane %v3305_v48, 4  ;;  %v3318_v39 = vrot.slane %v3316_v49, 5  ;;  %v3324_v6 = vrot.slane %v3322_v54, 5  ;;  %v3328_v20 = vrot.slane %v3326_v5, 4  ;;  %v8257_v50 = vld [vmem:[#allocation2 + $0xc] sm:$0xf] }
 0x18e   : > { %v3334_v22 = vrot.slane %v3332_v63, 5  ;;  %v2238_v24 = vsel %vm1944_vm7, %v8254_v13, 0  ;;  %7522 = vmatmul.mubr.msk.bf16.gmra.mrb[60].mxu0 %vm1895_vm11, %v6845_v4  ;;  %v3301_v26 = vsel %vm8591_vm10, %v3296_v10, %v3300_v33  ;;  %v6862_v36 = vcombine.low %v8255_v31, %v9087_v32  ;;  %v9090_v56 = vld [vmem:[#allocation2 + $0x10] sm:$0xf]  ;;  %v3228_v49 = vld [vmem:[#allocation2 + $0x3c] sm:$0xf] }
 0x18f   : > { %v3311_v59 = vsel %vm8591_vm10, %v3306_v16, %v3310_v43  ;;  %v3319_v30 = vor.u32 %v3318_v39, %v3315_v62  ;;  %v3329_v41 = vor.u32 %v3328_v20, %v3324_v6  ;;  %7526 = vmatpush3.bf16.msra.mxu0 %v2238_v24  ;;  %v6863_v47 = vcombine.low %v8257_v50, %v9090_v56  ;;  %v9099_v62 = vld [vmem:[%s10518_s3 + $0x18] sm:$0xf]  ;;  %v9108_v39 = vld [vmem:[#allocation2 + $0x40] sm:$0xf] }
 0x190   : > { %v6978_v40 = vcombine.low %v3301_v26, %v3311_v59  ;;  %v3337_v48 = vshrl.u32 %v3225_v55, 16  ;;  %7527 = vmatprep.mubr.msk.bf16.mxu0 %vm1895_vm11, %v6862_v36  ;;  %v3340_v43 = vshll.u32 %v3225_v55, 16  ;;  %v3346_v54 = vshll.u32 %v9069_v2, 16  ;;  %8125 = vmatprep.subr.msk.bf16.mxu0 %vm1944_vm7, %v9080_v35  ;;  %v8259_v10 = vld [vmem:[#allocation2 + $0x18] sm:$0xf] }
 0x191   : > { %v3320_v33 = vrot.slane %v3319_v30, 4  ;;  %v3350_v61 = vshrl.u32 %v9069_v2, 16  ;;  %v3330_v5 = vrot.slane %v3329_v41, 4  ;;  %v3356_v4 = vshll.u32 %v9071_v44, 16  ;;  %v9105_v55 = vld [vmem:[#allocation2 + $0x1c] sm:$0xf] }
 0x192   : > { %7630 = vmatmul.mubr.msk.bf16.vlgmr.msra.gmra.mrb[0].mxu1 %vm1895_vm11, %v6978_v40  ;;  %v3339_v63 = vrot.slane %v3337_v48, 4  ;;  %v6864_v16 = vcombine.low %v8259_v10, %v9105_v55  ;;  %v3342_v13 = vrot.slane %v3340_v43, 5  ;;  %v3348_v24 = vrot.slane %v3346_v54, 5  ;;  %v9112_v59 = vld [vmem:[#allocation2 + $0x44] sm:$0x1] }
 0x193   : > { %7662 = vmatpush3.bf16.msra.mxu1 %v4217_v51  ;;  %v3325_v20 = vsel %vm8591_vm10, %v3320_v33, %v3324_v6  ;;  %v3352_v26 = vrot.slane %v3350_v61, 4  ;;  %10559 = vst [vmem:[#allocation8_spill] sm:$0xff] %v9112_v59  ;;  %v3335_v30 = vsel %vm8591_vm10, %v3330_v5, %v3334_v22  ;;  %v3358_v31 = vrot.slane %v3356_v4, 5  ;;  %v3231_v6 = vld [vmem:[#allocation2 + $0x48] sm:$0xf] }
 0x194   : > { %v3361_v36 = vshrl.u32 %v3228_v49, 16  ;;  %v3364_v40 = vshll.u32 %v3228_v49, 16  ;;  %8129 = vmatprep.subr.msk.bf16.mxu1 %vm1944_vm7, %v9099_v62  ;;  %v6979_v41 = vcombine.low %v3325_v20, %v3335_v30  ;;  %v3343_v50 = vor.u32 %v3342_v13, %v3339_v63  ;;  %v9121_v10 = vld [vmem:[#allocation2 + $0x4c] sm:$0xf]  ;;  %v8261_v63 = vld [vmem:[#allocation2 + $0x24] sm:$0xf] }
 0x195   : > { %v3353_v51 = vor.u32 %v3352_v26, %v3348_v24  ;;  %v3370_v48 = vshll.u32 %v9108_v39, 16  ;;  %v3374_v54 = vshrl.u32 %v9108_v39, 16  ;;  %v3380_v61 = vshll.u32 %v9112_v59, 16  ;;  %v9125_v4 = vld [vmem:[#allocation2 + $0x28] sm:$0xf] }
 0x196   : > { %v3363_v33 = vrot.slane %v3361_v36, 4  ;;  %v3366_v43 = vrot.slane %v3364_v40, 5  ;;  %7633 = vmatprep.mubr.msk.bf16.mxu1 %vm1895_vm11, %v6979_v41  ;;  %7528 = vmatmul.mubr.msk.bf16.vlgmr.msra.gmra.mrb[32].mxu0 %vm1895_vm11, %v6863_v47  ;;  %v3344_v22 = vrot.slane %v3343_v50, 4  ;;  %v6865_v20 = vcombine.low %v8261_v63, %v9125_v4  ;;  %v9129_v36 = vld [vmem:[#allocation2 + $0x50] sm:$0x1] }
 0x197   : > { %v3354_v49 = vrot.slane %v3353_v51, 4  ;;  %v3372_v5 = vrot.slane %v3370_v48, 5  ;;  %7531 = vmatprep.mubr.msk.bf16.mxu0 %vm1895_vm11, %v6864_v16  ;;  %v3376_v26 = vrot.slane %v3374_v54, 4  ;;  %v3382_v30 = vrot.slane %v3380_v61, 5  ;;  %10560 = vst [vmem:[#allocation9_spill] sm:$0xff] %v9129_v36 }
 0x198   : > { %v3367_v13 = vor.u32 %v3366_v43, %v3363_v33  ;;  %v3385_v40 = vshrl.u32 %v3231_v6, 16  ;;  %v3349_v41 = vsel %vm8591_vm10, %v3344_v22, %v3348_v24  ;;  %v3388_v50 = vshll.u32 %v3231_v6, 16  ;;  %v3234_v48 = vld [vmem:[#allocation2 + $0x54] sm:$0xf]  ;;  %v9138_v59 = vld [vmem:[#allocation2 + $0x58] sm:$0xf] }
 0x199   : > { %v3359_v47 = vsel %vm8591_vm10, %v3354_v49, %v3358_v31  ;;  %v3394_v51 = vshll.u32 %v9121_v10, 16  ;;  %v3377_v18 = vor.u32 %v3376_v26, %v3372_v5  ;;  %v3398_v54 = vshrl.u32 %v9121_v10, 16  ;;  %10561 = vst [vmem:[#allocation10_spill] sm:$0xff] %v9138_v59  ;;  %v8263_v6 = vld [vmem:[#allocation2 + $0x30] sm:$0xf] }
 0x19a   : > { %v6980_v21 = vcombine.low %v3349_v41, %v3359_v47  ;;  %v3368_v63 = vrot.slane %v3367_v13, 4  ;;  %v3387_v16 = vrot.slane %v3385_v40, 4  ;;  %v3390_v33 = vrot.slane %v3388_v50, 5  ;;  %v9143_v22 = vld [vmem:[#allocation2 + $0x34] sm:$0xf] }
 0x19b   : > { %v3396_v43 = vrot.slane %v3394_v51, 5  ;;  %v3404_v61 = vshll.u32 %v9129_v36, 16  ;;  %v3378_v31 = vrot.slane %v3377_v18, 4  ;;  %10562 = vst [vmem:[#allocation11_spill] sm:$0xff] %v9143_v22  ;;  %v6866_v49 = vcombine.low %v8263_v6, %v9143_v22  ;;  %v9146_v47 = vld [vmem:[#allocation2 + $0x5c] sm:$0x1] }
 0x19c   : > { %7634 = vmatmul.mubr.msk.bf16.gmra.mrb[4].mxu1 %vm1895_vm11, %v6980_v21  ;;  %v3373_v24 = vsel %vm8591_vm10, %v3368_v63, %v3372_v5  ;;  %v3409_v13 = vshrl.u32 %v3234_v48, 16  ;;  %v3391_v26 = vor.u32 %v3390_v33, %v3387_v16  ;;  %v3400_v40 = vrot.slane %v3398_v54, 4  ;;  %10563 = vst [vmem:[#allocation12_spill] sm:$0xff] %v9146_v47  ;;  %v3237_v5 = vld [vmem:[#allocation2 + $0x60] sm:$0xf] }
 0x19d   : > { %v3406_v41 = vrot.slane %v3404_v61, 5  ;;  %v3412_v50 = vshll.u32 %v3234_v48, 16  ;;  %v3383_v51 = vsel %vm8591_vm10, %v3378_v31, %v3382_v30  ;;  %v3418_v36 = vshll.u32 %v9138_v59, 16  ;;  %v9153_v33 = vld [vmem:[#allocation2 + $0x64] sm:$0xf] }
 0x19e   : > { %v3411_v21 = vrot.slane %v3409_v13, 4  ;;  %v3422_v18 = vshrl.u32 %v9138_v59, 16  ;;  %v6981_v63 = vcombine.low %v3373_v24, %v3383_v51  ;;  %7532 = vmatmul.mubr.msk.bf16.gmra.mrb[36].mxu0 %vm1895_vm11, %v6865_v20  ;;  %v3392_v6 = vrot.slane %v3391_v26, 4  ;;  %v8265_v61 = vld [vmem:[#allocation2 + $0x3c] sm:$0xf] }
 0x19f   : > { %v3401_v22 = vor.u32 %v3400_v40, %v3396_v43  ;;  %v3414_v16 = vrot.slane %v3412_v50, 5  ;;  %7535 = vmatprep.mubr.msk.bf16.mxu0 %vm1895_vm11, %v6866_v49  ;;  %v3420_v48 = vrot.slane %v3418_v36, 5  ;;  %v3428_v30 = vshll.u32 %v9146_v47, 16  ;;  %v9161_v51 = vld [vmem:[#allocation2 + $0x68] sm:$0x1] }
 0x1a0   : > { %v3424_v54 = vrot.slane %v3422_v18, 4  ;;  %v6867_v31 = vcombine.low %v8265_v61, %v8859_v9  ;;  %7637 = vmatprep.mubr.msk.bf16.mxu1 %vm1895_vm11, %v6981_v63  ;;  %v3397_v24 = vsel %vm8591_vm10, %v3392_v6, %v3396_v43  ;;  %v3433_v26 = vshrl.u32 %v3237_v5, 16  ;;  %v3240_v61 = vld [vmem:[#allocation2 + $0x6c] sm:$0xf]  ;;  %v9167_v6 = vld [vmem:[#allocation2 + $0x70] sm:$0xf] }
 0x1a1   : > { %v3402_v20 = vrot.slane %v3401_v22, 4  ;;  %v3415_v13 = vor.u32 %v3414_v16, %v3411_v21  ;;  %v3430_v50 = vrot.slane %v3428_v30, 5  ;;  %v3436_v49 = vshll.u32 %v3237_v5, 16 }
 0x1a2   : > { %v3425_v40 = vor.u32 %v3424_v54, %v3420_v48  ;;  %v3442_v36 = vshll.u32 %v9153_v33, 16  ;;  %v3435_v9 = vrot.slane %v3433_v26, 4  ;;  %v3446_v63 = vshrl.u32 %v9153_v33, 16 }
 0x1a3   : > { %v3407_v18 = vsel %vm8591_vm10, %v3402_v20, %v3406_v41  ;;  %v3416_v47 = vrot.slane %v3415_v13, 4  ;;  %v3438_v22 = vrot.slane %v3436_v49, 5  ;;  %v3452_v54 = vshll.u32 %v9161_v51, 16  ;;  %v9177_v20 = vld [vmem:[#allocation2 + $0x74] sm:$0x1] }
 0x1a4   : > { %v6982_v59 = vcombine.low %v3397_v24, %v3407_v18  ;;  %v3426_v43 = vrot.slane %v3425_v40, 4  ;;  %v3444_v21 = vrot.slane %v3442_v36, 5  ;;  %v3448_v5 = vrot.slane %v3446_v63, 4  ;;  %10564 = vst [vmem:[#allocation13_spill] sm:$0xff] %v9177_v20  ;;  %v3243_v36 = vld [vmem:[#allocation2 + $0x78] sm:$0xf] }
 0x1a5   : > { %v3421_v16 = vsel %vm8591_vm10, %v3416_v47, %v3420_v48  ;;  %v6868_v41 = vcombine.low %v8870_v37, %v8872_v38  ;;  %v3439_v24 = vor.u32 %v3438_v22, %v3435_v9  ;;  %v3457_v13 = vshrl.u32 %v3240_v61, 16 }
 0x1a6   : > { %7638 = vmatmul.mubr.msk.bf16.gmra.mrb[8].mxu1 %vm1895_vm11, %v6982_v59  ;;  %v3431_v30 = vsel %vm8591_vm10, %v3426_v43, %v3430_v50  ;;  %v3460_v26 = vshll.u32 %v3240_v61, 16  ;;  %7536 = vmatmul.mubr.msk.bf16.gmra.mrb[40].mxu0 %vm1895_vm11, %v6867_v31  ;;  %v3449_v47 = vor.u32 %v3448_v5, %v3444_v21  ;;  %v3454_v48 = vrot.slane %v3452_v54, 5  ;;  %v9183_v50 = vld [vmem:[#allocation2 + $0x7c] sm:$0xf]  ;;  %v9191_v5 = vld [vmem:[#allocation2 + $0x80] sm:$0x1] }
 0x1a7   : > { %v6983_v40 = vcombine.low %v3421_v16, %v3431_v30  ;;  %v3466_v49 = vshll.u32 %v9167_v6, 16  ;;  %v3440_v18 = vrot.slane %v3439_v24, 4  ;;  %7539 = vmatprep.mubr.msk.bf16.mxu0 %vm1895_vm11, %v6868_v41  ;;  %v3459_v37 = vrot.slane %v3457_v13, 4 }
 0x1a8   : > { %v3462_v38 = vrot.slane %v3460_v26, 5  ;;  %v3470_v59 = vshrl.u32 %v9167_v6, 16  ;;  %v3450_v9 = vrot.slane %v3449_v47, 4  ;;  %v3476_v31 = vshll.u32 %v9177_v20, 16  ;;  %v3246_v26 = vld [vmem:[#allocation2 + $0x84] sm:$0xf] }
 0x1a9   : > { %7641 = vmatprep.mubr.msk.bf16.mxu1 %vm1895_vm11, %v6983_v40  ;;  %v3468_v63 = vrot.slane %v3466_v49, 5  ;;  %v6869_v61 = vcombine.low %v8895_v0, %v8907_v42  ;;  %v3445_v43 = vsel %vm8591_vm10, %v3440_v18, %v3444_v21  ;;  %v3481_v54 = vshrl.u32 %v3243_v36, 16 }
 0x1aa   : > { %v3463_v22 = vor.u32 %v3462_v38, %v3459_v37  ;;  %v3472_v16 = vrot.slane %v3470_v59, 4  ;;  %v3455_v41 = vsel %vm8591_vm10, %v3450_v9, %v3454_v48  ;;  %v3478_v30 = vrot.slane %v3476_v31, 5  ;;  %v9198_v37 = vld [vmem:[#allocation2 + $0x88] sm:$0xf] }
 0x1ab   : > { %v3484_v24 = vshll.u32 %v3243_v36, 16  ;;  %v3490_v13 = vshll.u32 %v9183_v50, 16  ;;  %v6984_v40 = vcombine.low %v3445_v43, %v3455_v41  ;;  %v3483_v0 = vrot.slane %v3481_v54, 4 }
 0x1ac   : > { %v3464_v47 = vrot.slane %v3463_v22, 4  ;;  %v3473_v49 = vor.u32 %v3472_v16, %v3468_v63  ;;  %v3494_v21 = vshrl.u32 %v9183_v50, 16  ;;  %v3500_v18 = vshll.u32 %v9191_v5, 16  ;;  %v9206_v22 = vld [vmem:[#allocation2 + $0x8c] sm:$0x1] }
 0x1ad   : > { %v3486_v42 = vrot.slane %v3484_v24, 5  ;;  %v3492_v20 = vrot.slane %v3490_v13, 5  ;;  %v6870_v38 = vcombine.low %v8919_v3, %v8921_v1  ;;  %v3505_v59 = vshrl.u32 %v3246_v26, 16  ;;  %v3249_v3 = vld [vmem:[#allocation2 + $0x90] sm:$0xf] }
 0x1ae   : > { %7642 = vmatmul.mubr.msk.bf16.gmra.mrb[12].mxu1 %vm1895_vm11, %v6984_v40  ;;  %v3469_v48 = vsel %vm8591_vm10, %v3464_v47, %v3468_v63  ;;  %v3474_v36 = vrot.slane %v3473_v49, 4  ;;  %7540 = vmatmul.mubr.msk.bf16.gmra.mrb[44].mxu0 %vm1895_vm11, %v6869_v61  ;;  %v3496_v31 = vrot.slane %v3494_v21, 4  ;;  %v3502_v43 = vrot.slane %v3500_v18, 5  ;;  %v9213_v47 = vld [vmem:[#allocation2 + $0x94] sm:$0xf] }
 0x1af   : > { %v3487_v9 = vor.u32 %v3486_v42, %v3483_v0  ;;  %v3508_v16 = vshll.u32 %v3246_v26, 16  ;;  %7543 = vmatprep.mubr.msk.bf16.mxu0 %vm1895_vm11, %v6870_v38  ;;  %v3507_v41 = vrot.slane %v3505_v59, 4  ;;  %v3514_v63 = vshll.u32 %v9198_v37, 16  ;;  %v9221_v59 = vld [vmem:[#allocation2 + $0x98] sm:$0x1] }
 0x1b0   : > { %v3479_v54 = vsel %vm8591_vm10, %v3474_v36, %v3478_v30  ;;  %v3518_v24 = vshrl.u32 %v9198_v37, 16  ;;  %v3497_v61 = vor.u32 %v3496_v31, %v3492_v20  ;;  %v3524_v26 = vshll.u32 %v9206_v22, 16 }
 0x1b1   : > { %v6985_v1 = vcombine.low %v3469_v48, %v3479_v54  ;;  %v3488_v13 = vrot.slane %v3487_v9, 4  ;;  %v3510_v40 = vrot.slane %v3508_v16, 5  ;;  %v3516_v49 = vrot.slane %v3514_v63, 5  ;;  %v3252_v63 = vld [vmem:[#allocation2 + $0x9c] sm:$0xf] }
 0x1b2   : > { %v3520_v0 = vrot.slane %v3518_v24, 4  ;;  %v6871_v30 = vcombine.low %v8933_v15, %v8939_v27  ;;  %v3498_v21 = vrot.slane %v3497_v61, 4  ;;  %v3529_v48 = vshrl.u32 %v3249_v3, 16 }
 0x1b3   : > { %7645 = vmatprep.mubr.msk.bf16.mxu1 %vm1895_vm11, %v6985_v1  ;;  %v3493_v42 = vsel %vm8591_vm10, %v3488_v13, %v3492_v20  ;;  %v3511_v18 = vor.u32 %v3510_v40, %v3507_v41  ;;  %v3526_v38 = vrot.slane %v3524_v26, 5  ;;  %v3532_v9 = vshll.u32 %v3249_v3, 16  ;;  %v9227_v13 = vld [vmem:[#allocation2 + $0xa0] sm:$0xf] }
 0x1b4   : > { %v3521_v36 = vor.u32 %v3520_v0, %v3516_v49  ;;  %v3538_v31 = vshll.u32 %v9213_v47, 16  ;;  %v3503_v16 = vsel %vm8591_vm10, %v3498_v21, %v3502_v43  ;;  %v3531_v15 = vrot.slane %v3529_v48, 4 }
 0x1b5   : > { %v3512_v54 = vrot.slane %v3511_v18, 4  ;;  %v3542_v27 = vshrl.u32 %v9213_v47, 16  ;;  %v6986_v24 = vcombine.low %v3493_v42, %v3503_v16  ;;  %v3534_v1 = vrot.slane %v3532_v9, 5  ;;  %v9238_v42 = vld [vmem:[#allocation2 + $0xa4] sm:$0x1] }
 0x1b6   : > { %v3522_v20 = vrot.slane %v3521_v36, 4  ;;  %v3540_v41 = vrot.slane %v3538_v31, 5  ;;  %7544 = vmatmul.mubr.msk.bf16.gmra.mrb[48].mxu0 %vm1895_vm11, %v6871_v30  ;;  %v3548_v40 = vshll.u32 %v9221_v59, 16  ;;  %v6872_v43 = vcombine.low %v8941_v28, %v8950_v45  ;;  %v3255_v9 = vld [vmem:[#allocation2 + $0xa8] sm:$0xf] }
 0x1b7   : > { %v3517_v61 = vsel %vm8591_vm10, %v3512_v54, %v3516_v49  ;;  %v3544_v3 = vrot.slane %v3542_v27, 4  ;;  %7646 = vmatmul.mubr.msk.bf16.gmra.mrb[16].mxu1 %vm1895_vm11, %v6986_v24  ;;  %v3535_v26 = vor.u32 %v3534_v1, %v3531_v15  ;;  %v3553_v21 = vshrl.u32 %v3252_v63, 16  ;;  %v9243_v54 = vld [vmem:[#allocation2 + $0xac] sm:$0xf] }
 0x1b8   : > { %v3527_v0 = vsel %vm8591_vm10, %v3522_v20, %v3526_v38  ;;  %v3556_v18 = vshll.u32 %v3252_v63, 16  ;;  %v3550_v36 = vrot.slane %v3548_v40, 5  ;;  %7547 = vmatprep.mubr.msk.bf16.mxu0 %vm1895_vm11, %v6872_v43  ;;  %v3562_v30 = vshll.u32 %v9227_v13, 16 }
 0x1b9   : > { %v6987_v48 = vcombine.low %v3517_v61, %v3527_v0  ;;  %v3545_v49 = vor.u32 %v3544_v3, %v3540_v41  ;;  %v3536_v31 = vrot.slane %v3535_v26, 4  ;;  %v3555_v28 = vrot.slane %v3553_v21, 4  ;;  %v9251_v61 = vld [vmem:[#allocation2 + $0xb0] sm:$0x1]  ;;  %v3258_v21 = vld [vmem:[#allocation2 + $0xb4] sm:$0xf] }
 0x1ba   : > { %v3558_v45 = vrot.slane %v3556_v18, 5  ;;  %v3566_v16 = vshrl.u32 %v9227_v13, 16  ;;  %v3564_v15 = vrot.slane %v3562_v30, 5  ;;  %v3572_v27 = vshll.u32 %v9238_v42, 16 }
 0x1bb   : > { %7649 = vmatprep.mubr.msk.bf16.mxu1 %vm1895_vm11, %v6987_v48  ;;  %v3546_v38 = vrot.slane %v3545_v49, 4  ;;  %v6873_v63 = vcombine.low %v8959_v8, %v8964_v11  ;;  %v3541_v24 = vsel %vm8591_vm10, %v3536_v31, %v3540_v41  ;;  %v3577_v3 = vshrl.u32 %v3255_v9, 16 }
 0x1bc   : > { %v3559_v20 = vor.u32 %v3558_v45, %v3555_v28  ;;  %v3568_v1 = vrot.slane %v3566_v16, 4  ;;  %v3574_v43 = vrot.slane %v3572_v27, 5  ;;  %v3580_v0 = vshll.u32 %v3255_v9, 16  ;;  %v9259_v28 = vld [vmem:[#allocation2 + $0xb8] sm:$0xf] }
 0x1bd   : > { %v3551_v40 = vsel %vm8591_vm10, %v3546_v38, %v3550_v36  ;;  %v3586_v26 = vshll.u32 %v9243_v54, 16  ;;  %v3579_v8 = vrot.slane %v3577_v3, 4  ;;  %v3590_v30 = vshrl.u32 %v9243_v54, 16 }
 0x1be   : > { %v6988_v18 = vcombine.low %v3541_v24, %v3551_v40  ;;  %v3560_v48 = vrot.slane %v3559_v20, 4  ;;  %v3569_v49 = vor.u32 %v3568_v1, %v3564_v15  ;;  %7548 = vmatmul.mubr.msk.bf16.gmra.mrb[52].mxu0 %vm1895_vm11, %v6873_v63  ;;  %v3582_v11 = vrot.slane %v3580_v0, 5  ;;  %v9266_v24 = vld [vmem:[#allocation2 + $0xbc] sm:$0x1]  ;;  %v3261_v0 = vld [vmem:[#allocation2 + $0xc0] sm:$0xf] }
 0x1bf   : > { %v3588_v41 = vrot.slane %v3586_v26, 5  ;;  %v3596_v31 = vshll.u32 %v9251_v61, 16  ;;  %v6874_v45 = vcombine.low %v8974_v29, %v8979_v34  ;;  %v3601_v16 = vshrl.u32 %v3258_v21, 16 }
 0x1c0   : > { %7650 = vmatmul.mubr.msk.bf16.gmra.mrb[20].mxu1 %vm1895_vm11, %v6988_v18  ;;  %v3565_v36 = vsel %vm8591_vm10, %v3560_v48, %v3564_v15  ;;  %v3570_v9 = vrot.slane %v3569_v49, 4  ;;  %v3583_v38 = vor.u32 %v3582_v11, %v3579_v8  ;;  %v3592_v27 = vrot.slane %v3590_v30, 4  ;;  %v9273_v48 = vld [vmem:[#allocation2 + $0xc4] sm:$0xf] }
 0x1c1   : > { %v3598_v63 = vrot.slane %v3596_v31, 5  ;;  %v3604_v20 = vshll.u32 %v3258_v21, 16  ;;  %7551 = vmatprep.mubr.msk.bf16.mxu0 %vm1895_vm11, %v6874_v45  ;;  %v3603_v3 = vrot.slane %v3601_v16, 4  ;;  %v3610_v40 = vshll.u32 %v9259_v28, 16  ;;  %v9281_v16 = vld [vmem:[#allocation2 + $0xc8] sm:$0x1] }
 0x1c2   : > { %v3575_v1 = vsel %vm8591_vm10, %v3570_v9, %v3574_v43  ;;  %v3614_v15 = vshrl.u32 %v9259_v28, 16  ;;  %v3584_v29 = vrot.slane %v3583_v38, 4  ;;  %v3593_v34 = vor.u32 %v3592_v27, %v3588_v41 }
 0x1c3   : > { %v6989_v26 = vcombine.low %v3565_v36, %v3575_v1  ;;  %v3606_v18 = vrot.slane %v3604_v20, 5  ;;  %v3612_v49 = vrot.slane %v3610_v40, 5  ;;  %v3620_v21 = vshll.u32 %v9266_v24, 16 }
 0x1c4   : > { %v3616_v8 = vrot.slane %v3614_v15, 4  ;;  %v6875_v43 = vcombine.low %v8988_v58, %v8992_v53  ;;  %v3589_v11 = vsel %vm8591_vm10, %v3584_v29, %v3588_v41  ;;  %v3594_v30 = vrot.slane %v3593_v34, 4 }
 0x1c5   : > { %7653 = vmatprep.mubr.msk.bf16.mxu1 %vm1895_vm11, %v6989_v26  ;;  %v3607_v31 = vor.u32 %v3606_v18, %v3603_v3  ;;  %v3625_v36 = vshrl.u32 %v3261_v0, 16  ;;  %v3622_v45 = vrot.slane %v3620_v21, 5  ;;  %v3628_v38 = vshll.u32 %v3261_v0, 16 }
 0x1c6   : > { %v3617_v9 = vor.u32 %v3616_v8, %v3612_v49  ;;  %v3634_v27 = vshll.u32 %v9273_v48, 16  ;;  %v3599_v20 = vsel %vm8591_vm10, %v3594_v30, %v3598_v63  ;;  %7552 = vmatmul.mubr.msk.bf16.gmra.mrb[56].mxu0 %vm1895_vm11, %v6875_v43  ;;  %v3638_v53 = vshrl.u32 %v9273_v48, 16  ;;  %v3942_v8 = vld [vmem:[#allocation2 + $0xc] sm:$0xe] }
 0x1c7   : > { %v3608_v1 = vrot.slane %v3607_v31, 4  ;;  %v3627_v58 = vrot.slane %v3625_v36, 4  ;;  %v6990_v41 = vcombine.low %v3589_v11, %v3599_v20  ;;  %v3630_v3 = vrot.slane %v3628_v38, 5 }
 0x1c8   : > { %v3618_v40 = vrot.slane %v3617_v9, 4  ;;  %v3636_v15 = vrot.slane %v3634_v27, 5  ;;  %v3640_v29 = vrot.slane %v3638_v53, 4  ;;  %v3644_v0 = vshll.u32 %v9281_v16, 16 }
 0x1c9   : > { %v3613_v26 = vsel %vm8591_vm10, %v3608_v1, %v3612_v49  ;;  %v6876_v34 = vcombine.low %v8994_v7, %v9004_v25  ;;  %7654 = vmatmul.mubr.msk.bf16.gmra.mrb[24].mxu1 %vm1895_vm11, %v6990_v41  ;;  %v3631_v18 = vor.u32 %v3630_v3, %v3627_v58  ;;  %v3943_v49 = vld [vmem:[#allocation2 + $0x18] sm:$0xe]  ;;  %v4008_v7 = vrot.slane %v9015_v52, 5  ;;  %v2401_v58 = vld [vmem:[#allocation2] sm:$0xe] }
 0x1ca   : > { %v3623_v63 = vsel %vm8591_vm10, %v3618_v40, %v3622_v45  ;;  %v3641_v43 = vor.u32 %v3640_v29, %v3636_v15  ;;  %v3646_v30 = vrot.slane %v3644_v0, 5  ;;  %v7009_v36 = vrot.slane %v3942_v8, 9  ;;  %v2402_v0 = vld [vmem:[#allocation2 + $0xc] sm:$0xe] }
 0x1cb   : > { %v6991_v21 = vcombine.low %v3613_v26, %v3623_v63  ;;  %7555 = vmatprep.mubr.msk.bf16.mxu0 %vm1895_vm11, %v6876_v34  ;;  %v3632_v11 = vrot.slane %v3631_v18, 4  ;;  %v6877_v9 = vcombine.low %v9024_v12, %v9026_v14  ;;  %v4015_v45 = vrot.slane %v9036_v46, 5  ;;  %v3944_v14 = vld [vmem:[#allocation2 + $0x24] sm:$0xe] }
 0x1cc   : > { %v3642_v25 = vrot.slane %v3641_v43, 4  ;;  %v4010_v38 = vrot.slane %v4008_v7, 4  ;;  %v4011_v27 = vrot.slane %v9017_v60, 5  ;;  %v7010_v20 = vrot.slane %v3943_v49, 9  ;;  %v3945_v49 = vld [vmem:[#allocation2 + $0x30] sm:$0xe] }
 0x1cd   : > { %7657 = vmatprep.mubr.msk.bf16.mxu1 %vm1895_vm11, %v6991_v21  ;;  %v4018_v1 = vrot.slane %v9041_v57, 5  ;;  %v3637_v53 = vsel %vm8591_vm10, %v3632_v11, %v3636_v15  ;;  %v4009_v41 = vsel %vm9297_vm2, %v7009_v36, %v4008_v7  ;;  %v4017_v12 = vrot.slane %v4015_v45, 4  ;;  %v8266_v21 = vld [vmem:[#allocation2 + $0x8] sm:$0x1] }
 0x1ce   : > { %v3647_v52 = vsel %vm8591_vm10, %v3642_v25, %v3646_v30  ;;  %7556 = vmatmul.mubr.msk.bf16.gmra.mrb[60].mxu0 %vm1895_vm11, %v6877_v9  ;;  %v4012_v60 = vsel %vm9297_vm2, %v4010_v38, %v4011_v27  ;;  %v4576_v57 = vsel %vm1944_vm7, %v9099_v62, 0  ;;  %v4022_v40 = vrot.slane %v9047_v19, 5  ;;  %v8267_v9 = vld [vmem:[#allocation2 + $0x14] sm:$0x1]  ;;  %v2403_v38 = vld [vmem:[#allocation2 + $0x18] sm:$0xe] }
 0x1cf   : > { %v6992_v46 = vcombine.low %v3637_v53, %v3647_v52  ;;  %v7026_v3 = vcombine.low %v4009_v41, %v4012_v60  ;;  %v4019_v15 = vsel %vm9297_vm2, %v4017_v12, %v4018_v1  ;;  %v2663_v26 = vsel %vm1944_vm7, %v9080_v35, 0 }
 0x1d0   : > { %v6894_v29 = vrot.slane %v2401_v58, 9  ;;  %v4016_v34 = vsel %vm9297_vm2, %v7010_v20, %v4015_v45  ;;  %v7011_v63 = vrot.slane %v3944_v14, 9  ;;  %v4024_v18 = vrot.slane %v4022_v40, 4  ;;  %7560 = vmatpush3.bf16.msra.mxu0 %v2663_v26  ;;  %v2404_v26 = vld [vmem:[#allocation2 + $0x24] sm:$0xe] }
 0x1d1   : > { %7658 = vmatmul.mubr.msk.bf16.gmra.mrb[28].mxu1 %vm1895_vm11, %v6992_v46  ;;  %v2454_v62 = vrot.slane %v9087_v32, 5  ;;  %v7027_v19 = vcombine.low %v4016_v34, %v4019_v15  ;;  %v4025_v8 = vrot.slane %v9054_v23, 5  ;;  %v2457_v43 = vrot.slane %v8266_v21, 5  ;;  %v8268_v46 = vld [vmem:[#allocation2 + $0x20] sm:$0x1] }
 0x1d2   : > { %7663 = vmatprep.mubr.msk.bf16.mxu1 %vm1895_vm11, %v7026_v3  ;;  %v2461_v35 = vrot.slane %v9090_v56, 5  ;;  %v4023_v11 = vsel %vm9297_vm2, %v7011_v63, %v4022_v40  ;;  %v6895_v25 = vrot.slane %v2402_v0, 9  ;;  %v2464_v45 = vrot.slane %v8267_v9, 5  ;;  %v3946_v40 = vld [vmem:[#allocation2 + $0x3c] sm:$0xe] }
 0x1d3   : > { %v2455_v30 = vsel %vm9297_vm2, %v6894_v29, %v2454_v62  ;;  %v2456_v7 = vrot.slane %v2454_v62, 4  ;;  %v4026_v32 = vsel %vm9297_vm2, %v4024_v18, %v4025_v8  ;;  %v4029_v23 = vrot.slane %v9069_v2, 5  ;;  %v9353_v29 = vld [vmem:[%s10518_s3 + $0x1c] sm:$0xf]  ;;  %v3947_v21 = vld [vmem:[#allocation2 + $0x48] sm:$0xe] }
 0x1d4   : > { %v2463_v36 = vrot.slane %v2461_v35, 4  ;;  %v2462_v27 = vsel %vm9297_vm2, %v6895_v25, %v2461_v35  ;;  %v7012_v20 = vrot.slane %v3945_v49, 9  ;;  %v2468_v1 = vrot.slane %v9105_v55, 5  ;;  %v8269_v49 = vld [vmem:[#allocation2 + $0x2c] sm:$0x1] }
 0x1d5   : > { %v2458_v56 = vsel %vm9297_vm2, %v2456_v7, %v2457_v43  ;;  %v4031_v52 = vrot.slane %v4029_v23, 4  ;;  %v4032_v41 = vrot.slane %v9071_v44, 5  ;;  %v6896_v14 = vrot.slane %v2403_v38, 9  ;;  %v2405_v7 = vld [vmem:[#allocation2 + $0x30] sm:$0xe] }
 0x1d6   : > { %v6911_v58 = vcombine.low %v2455_v30, %v2458_v56  ;;  %v2465_v53 = vsel %vm9297_vm2, %v2463_v36, %v2464_v45  ;;  %v2470_v2 = vrot.slane %v2468_v1, 4  ;;  %v2471_v60 = vrot.slane %v8268_v46, 5  ;;  %v10569_v38 = vld [vmem:[#allocation9_spill] sm:$0xff]  ;;  %v2406_v46 = vld [vmem:[#allocation2 + $0x3c] sm:$0xe] }
 0x1d7   : > { %v6912_v12 = vcombine.low %v2462_v27, %v2465_v53  ;;  %v7028_v3 = vcombine.low %v4023_v11, %v4026_v32  ;;  %v4030_v15 = vsel %vm9297_vm2, %v7012_v20, %v4029_v23  ;;  %v4036_v55 = vrot.slane %v9108_v39, 5  ;;  %v10568_v32 = vld [vmem:[#allocation11_spill] sm:$0xff]  ;;  %v3948_v53 = vld [vmem:[#allocation2 + $0x54] sm:$0xe] }
 0x1d8   : > { %7561 = vmatprep.mubr.msk.bf16.mxu0 %vm1895_vm11, %v6911_v58  ;;  %v4033_v44 = vsel %vm9297_vm2, %v4031_v52, %v4032_v41  ;;  %v2469_v0 = vsel %vm9297_vm2, %v6896_v14, %v2468_v1  ;;  %v2472_v34 = vsel %vm9297_vm2, %v2470_v2, %v2471_v60  ;;  %v2475_v39 = vrot.slane %v9125_v4, 5  ;;  %v8270_v1 = vld [vmem:[#allocation2 + $0x38] sm:$0x1] }
 0x1d9   : > { %7664 = vmatmul.mubr.msk.bf16.vlgmr.msra.gmra.mrb[0].mxu1 %vm1895_vm11, %v7027_v19  ;;  %7562 = vmatmul.mubr.msk.bf16.vlgmr.msra.gmra.mrb[32].mxu0 %vm1895_vm11, %v6912_v12  ;;  %v6913_v63 = vcombine.low %v2469_v0, %v2472_v34  ;;  %v7013_v18 = vrot.slane %v3946_v40, 9  ;;  %v4038_v62 = vrot.slane %v4036_v55, 4  ;;  %v10567_v19 = vld [vmem:[#allocation8_spill] sm:$0xff]  ;;  %v6897_v43 = vrot.slane %v2404_v26, 9  ;;  %v10570_v14 = vld [vmem:[#allocation10_spill] sm:$0xff] }
 0x1da   : > { %7696 = vmatpush3.bf16.msra.mxu1 %v4576_v57  ;;  %7667 = vmatprep.mubr.msk.bf16.mxu1 %vm1895_vm11, %v7028_v3  ;;  %v4039_v8 = vrot.slane %v10567_v19, 5  ;;  %v2477_v35 = vrot.slane %v2475_v39, 4  ;;  %v2478_v11 = vrot.slane %v8269_v49, 5  ;;  %v4043_v30 = vrot.slane %v9121_v10, 5  ;;  %v10571_v34 = vld [vmem:[#allocation12_spill] sm:$0xff] }
 0x1db   : > { %8130 = vmatprep.subr.msk.bf16.mxu1 %vm1944_vm7, %v9353_v29  ;;  %v7029_v4 = vcombine.low %v4030_v15, %v4033_v44  ;;  %7565 = vmatprep.mubr.msk.bf16.mxu0 %vm1895_vm11, %v6913_v63  ;;  %v4037_v57 = vsel %vm9297_vm2, %v7013_v18, %v4036_v55  ;;  %v2482_v36 = vrot.slane %v10568_v32, 5  ;;  %v2476_v9 = vsel %vm9297_vm2, %v6897_v43, %v2475_v39  ;;  %v8271_v15 = vld [vmem:[#allocation2 + $0x40] sm:$0xf]  ;;  %v8272_v19 = vld [vmem:[#allocation2 + $0x44] sm:$0x1] }
 0x1dc   : > { %v4040_v25 = vsel %vm9297_vm2, %v4038_v62, %v4039_v8  ;;  %v2479_v10 = vsel %vm9297_vm2, %v2477_v35, %v2478_v11  ;;  %v7014_v45 = vrot.slane %v3947_v21, 9  ;;  %v4045_v23 = vrot.slane %v4043_v30, 4  ;;  %v3949_v63 = vld [vmem:[#allocation2 + $0x60] sm:$0xe]  ;;  %v2407_v43 = vld [vmem:[#allocation2 + $0x48] sm:$0xe] }
 0x1dd   : > { %v4046_v56 = vrot.slane %v10569_v38, 5  ;;  %v6898_v27 = vrot.slane %v2405_v7, 9  ;;  %v2484_v20 = vrot.slane %v2482_v36, 4  ;;  %v2485_v58 = vrot.slane %v8270_v1, 5  ;;  %v2408_v1 = vld [vmem:[#allocation2 + $0x54] sm:$0xe] }
 0x1de   : > { %v7030_v52 = vcombine.low %v4037_v57, %v4040_v25  ;;  %v6914_v41 = vcombine.low %v2476_v9, %v2479_v10  ;;  %v4044_v12 = vsel %vm9297_vm2, %v7014_v45, %v4043_v30  ;;  %v4050_v2 = vrot.slane %v10570_v14, 5  ;;  %v8273_v30 = vld [vmem:[#allocation2 + $0x4c] sm:$0xf]  ;;  %v8274_v10 = vld [vmem:[#allocation2 + $0x50] sm:$0x1] }
 0x1df   : > { %v4047_v60 = vsel %vm9297_vm2, %v4045_v23, %v4046_v56  ;;  %v2483_v40 = vsel %vm9297_vm2, %v6898_v27, %v2482_v36  ;;  %v2486_v3 = vsel %vm9297_vm2, %v2484_v20, %v2485_v58  ;;  %v2489_v55 = vrot.slane %v8271_v15, 5  ;;  %v3950_v23 = vld [vmem:[#allocation2 + $0x6c] sm:$0xe]  ;;  %v8276_v15 = vld [vmem:[#allocation2 + $0x5c] sm:$0x1] }
 0x1e0   : > { %v6915_v26 = vcombine.low %v2483_v40, %v2486_v3  ;;  %v7015_v44 = vrot.slane %v3948_v53, 9  ;;  %v4052_v0 = vrot.slane %v4050_v2, 4  ;;  %v4053_v39 = vrot.slane %v10571_v34, 5 }
 0x1e1   : > { %7668 = vmatmul.mubr.msk.bf16.gmra.mrb[4].mxu1 %vm1895_vm11, %v7029_v4  ;;  %7566 = vmatmul.mubr.msk.bf16.gmra.mrb[36].mxu0 %vm1895_vm11, %v6914_v41  ;;  %v6899_v18 = vrot.slane %v2406_v46, 9  ;;  %v2491_v62 = vrot.slane %v2489_v55, 4  ;;  %v2492_v8 = vrot.slane %v8272_v19, 5  ;;  %v4057_v21 = vrot.slane %v9153_v33, 5 }
 0x1e2   : > { %7671 = vmatprep.mubr.msk.bf16.mxu1 %vm1895_vm11, %v7030_v52  ;;  %v7031_v35 = vcombine.low %v4044_v12, %v4047_v60  ;;  %7569 = vmatprep.mubr.msk.bf16.mxu0 %vm1895_vm11, %v6915_v26  ;;  %v4051_v49 = vsel %vm9297_vm2, %v7015_v44, %v4050_v2  ;;  %v4054_v11 = vsel %vm9297_vm2, %v4052_v0, %v4053_v39  ;;  %v2496_v7 = vrot.slane %v8273_v30, 5  ;;  %v8275_v52 = vld [vmem:[#allocation2 + $0x58] sm:$0xf]  ;;  %v10572_v60 = vld [vmem:[#allocation13_spill] sm:$0xff]  ;;  %v2409_v39 = vld [vmem:[#allocation2 + $0x60] sm:$0xe] }
 0x1e3   : > { %v2490_v4 = vsel %vm9297_vm2, %v6899_v18, %v2489_v55  ;;  %v2493_v57 = vsel %vm9297_vm2, %v2491_v62, %v2492_v8  ;;  %v7016_v25 = vrot.slane %v3949_v63, 9  ;;  %v4059_v33 = vrot.slane %v4057_v21, 4  ;;  %v3951_v12 = vld [vmem:[#allocation2 + $0x78] sm:$0xe]  ;;  %v8277_v63 = vld [vmem:[#allocation2 + $0x64] sm:$0xf] }
 0x1e4   : > { %v4060_v32 = vrot.slane %v9161_v51, 5  ;;  %v6900_v36 = vrot.slane %v2407_v43, 9  ;;  %v2498_v9 = vrot.slane %v2496_v7, 4  ;;  %v2499_v45 = vrot.slane %v8274_v10, 5  ;;  %v3952_v30 = vld [vmem:[#allocation2 + $0x84] sm:$0xe] }
 0x1e5   : > { %v7032_v38 = vcombine.low %v4051_v49, %v4054_v11  ;;  %v6916_v56 = vcombine.low %v2490_v4, %v2493_v57  ;;  %v4058_v27 = vsel %vm9297_vm2, %v7016_v25, %v4057_v21  ;;  %v4064_v20 = vrot.slane %v9167_v6, 5  ;;  %v8278_v49 = vld [vmem:[#allocation2 + $0x68] sm:$0x1] }
 0x1e6   : > { %v4061_v58 = vsel %vm9297_vm2, %v4059_v33, %v4060_v32  ;;  %v2497_v53 = vsel %vm9297_vm2, %v6900_v36, %v2496_v7  ;;  %v2500_v51 = vsel %vm9297_vm2, %v2498_v9, %v2499_v45  ;;  %v2503_v41 = vrot.slane %v8275_v52, 5  ;;  %v8279_v36 = vld [vmem:[#allocation2 + $0x70] sm:$0xf]  ;;  %v8280_v52 = vld [vmem:[#allocation2 + $0x74] sm:$0x1] }
 0x1e7   : > { %v6917_v14 = vcombine.low %v2497_v53, %v2500_v51  ;;  %v7017_v2 = vrot.slane %v3950_v23, 9  ;;  %v4066_v46 = vrot.slane %v4064_v20, 4  ;;  %v4067_v40 = vrot.slane %v10572_v60, 5 }
 0x1e8   : > { %v6901_v6 = vrot.slane %v2408_v1, 9  ;;  %v2505_v3 = vrot.slane %v2503_v41, 4  ;;  %v2506_v55 = vrot.slane %v8276_v15, 5  ;;  %v4071_v26 = vrot.slane %v9183_v50, 5 }
 0x1e9   : > { %7672 = vmatmul.mubr.msk.bf16.gmra.mrb[8].mxu1 %vm1895_vm11, %v7031_v35  ;;  %7570 = vmatmul.mubr.msk.bf16.gmra.mrb[40].mxu0 %vm1895_vm11, %v6916_v56  ;;  %v4065_v44 = vsel %vm9297_vm2, %v7017_v2, %v4064_v20  ;;  %v4068_v0 = vsel %vm9297_vm2, %v4066_v46, %v4067_v40  ;;  %v7018_v34 = vrot.slane %v3951_v12, 9  ;;  %v2510_v18 = vrot.slane %v8277_v63, 5  ;;  %v3953_v56 = vld [vmem:[#allocation2 + $0x90] sm:$0xe]  ;;  %v2410_v20 = vld [vmem:[#allocation2 + $0x6c] sm:$0xe] }
 0x1ea   : > { %7675 = vmatprep.mubr.msk.bf16.mxu1 %vm1895_vm11, %v7032_v38  ;;  %7573 = vmatprep.mubr.msk.bf16.mxu0 %vm1895_vm11, %v6917_v14  ;;  %v7034_v62 = vcombine.low %v4065_v44, %v4068_v0  ;;  %v2507_v19 = vsel %vm9297_vm2, %v2505_v3, %v2506_v55  ;;  %v4073_v8 = vrot.slane %v4071_v26, 4  ;;  %v4074_v50 = vrot.slane %v9191_v5, 5  ;;  %v8282_v3 = vld [vmem:[#allocation2 + $0x80] sm:$0x1]  ;;  %v3954_v55 = vld [vmem:[#allocation2 + $0x9c] sm:$0xe] }
 0x1eb   : > { %v7033_v21 = vcombine.low %v4058_v27, %v4061_v58  ;;  %v2504_v43 = vsel %vm9297_vm2, %v6901_v6, %v2503_v41  ;;  %v2512_v35 = vrot.slane %v2510_v18, 4  ;;  %v2513_v11 = vrot.slane %v8278_v49, 5  ;;  %v2411_v58 = vld [vmem:[#allocation2 + $0x78] sm:$0xe]  ;;  %v2412_v49 = vld [vmem:[#allocation2 + $0x84] sm:$0xe] }
 0x1ec   : > { %v9430_v7 = vsel %vm9297_vm2, %v7018_v34, %v4071_v26  ;;  %v9434_v4 = vsel %vm9297_vm2, %v4073_v8, %v4074_v50  ;;  %v6902_v57 = vrot.slane %v2409_v39, 9  ;;  %v4078_v25 = vrot.slane %v9198_v37, 5 }
 0x1ed   : > { %v6918_v5 = vcombine.low %v2504_v43, %v2507_v19  ;;  %v7035_v33 = vcombine.low %v9430_v7, %v9434_v4  ;;  %v2514_v32 = vsel %vm9297_vm2, %v2512_v35, %v2513_v11  ;;  %v2517_v9 = vrot.slane %v8279_v36, 5  ;;  %v3955_v43 = vld [vmem:[#allocation2 + $0xa8] sm:$0xe]  ;;  %v2413_v7 = vld [vmem:[#allocation2 + $0x90] sm:$0xe] }
 0x1ee   : > { %v2511_v10 = vsel %vm9297_vm2, %v6902_v57, %v2510_v18  ;;  %v7019_v45 = vrot.slane %v3952_v30, 9  ;;  %v4080_v23 = vrot.slane %v4078_v25, 4  ;;  %v4081_v38 = vrot.slane %v9206_v22, 5  ;;  %v8281_v22 = vld [vmem:[#allocation2 + $0x7c] sm:$0xf] }
 0x1ef   : > { %v6919_v27 = vcombine.low %v2511_v10, %v2514_v32  ;;  %v2519_v37 = vrot.slane %v2517_v9, 4  ;;  %v4085_v1 = vrot.slane %v9213_v47, 5  ;;  %v2520_v41 = vrot.slane %v8280_v52, 5  ;;  %v8283_v18 = vld [vmem:[#allocation2 + $0x88] sm:$0xf] }
 0x1f0   : > { %v4079_v53 = vsel %vm9297_vm2, %v7019_v45, %v4078_v25  ;;  %v4082_v51 = vsel %vm9297_vm2, %v4080_v23, %v4081_v38  ;;  %v2524_v12 = vrot.slane %v8281_v22, 5  ;;  %v7020_v14 = vrot.slane %v3953_v56, 9  ;;  %v8284_v25 = vld [vmem:[#allocation2 + $0x8c] sm:$0x1]  ;;  %v8285_v32 = vld [vmem:[#allocation2 + $0x94] sm:$0xf] }
 0x1f1   : > { %7676 = vmatmul.mubr.msk.bf16.gmra.mrb[12].mxu1 %vm1895_vm11, %v7033_v21  ;;  %7574 = vmatmul.mubr.msk.bf16.gmra.mrb[44].mxu0 %vm1895_vm11, %v6918_v5  ;;  %v7036_v47 = vcombine.low %v4079_v53, %v4082_v51  ;;  %v4087_v2 = vrot.slane %v4085_v1, 4  ;;  %v4088_v46 = vrot.slane %v9221_v59, 5  ;;  %v6903_v60 = vrot.slane %v2410_v20, 9  ;;  %v8286_v56 = vld [vmem:[#allocation2 + $0x98] sm:$0x1] }
 0x1f2   : > { %7679 = vmatprep.mubr.msk.bf16.mxu1 %vm1895_vm11, %v7034_v62  ;;  %7577 = vmatprep.mubr.msk.bf16.mxu0 %vm1895_vm11, %v6919_v27  ;;  %v6904_v40 = vrot.slane %v2411_v58, 9  ;;  %v2526_v6 = vrot.slane %v2524_v12, 4  ;;  %v2527_v15 = vrot.slane %v8282_v3, 5  ;;  %v2521_v26 = vsel %vm9297_vm2, %v2519_v37, %v2520_v41  ;;  %v3956_v20 = vld [vmem:[#allocation2 + $0xb4] sm:$0xe] }
 0x1f3   : > { %v9458_v44 = vsel %vm9297_vm2, %v7020_v14, %v4085_v1  ;;  %v9462_v0 = vsel %vm9297_vm2, %v4087_v2, %v4088_v46  ;;  %v4092_v34 = vrot.slane %v9227_v13, 5  ;;  %v2518_v59 = vsel %vm9297_vm2, %v6903_v60, %v2517_v9  ;;  %v8287_v52 = vld [vmem:[#allocation2 + $0xa0] sm:$0xf] }
 0x1f4   : > { %v7037_v39 = vcombine.low %v9458_v44, %v9462_v0  ;;  %v2528_v63 = vsel %vm9297_vm2, %v2526_v6, %v2527_v15  ;;  %v2531_v62 = vrot.slane %v8283_v18, 5  ;;  %v2525_v19 = vsel %vm9297_vm2, %v6904_v40, %v2524_v12  ;;  %v3957_v2 = vld [vmem:[#allocation2 + $0xc0] sm:$0xe]  ;;  %v8288_v15 = vld [vmem:[#allocation2 + $0xac] sm:$0xf] }
 0x1f5   : > { %v7021_v8 = vrot.slane %v3954_v55, 9  ;;  %v4094_v50 = vrot.slane %v4092_v34, 4  ;;  %v4095_v21 = vrot.slane %v9238_v42, 5  ;;  %v6920_v13 = vcombine.low %v2518_v59, %v2521_v26 }
 0x1f6   : > { %v6921_v35 = vcombine.low %v2525_v19, %v2528_v63  ;;  %v2533_v11 = vrot.slane %v2531_v62, 4  ;;  %v4099_v30 = vrot.slane %v9243_v54, 5  ;;  %v2534_v5 = vrot.slane %v8284_v25, 5  ;;  %v8289_v63 = vld [vmem:[#allocation2 + $0xa4] sm:$0x1] }
 0x1f7   : > { %v4093_v4 = vsel %vm9297_vm2, %v7021_v8, %v4092_v34  ;;  %v4096_v57 = vsel %vm9297_vm2, %v4094_v50, %v4095_v21  ;;  %v2538_v36 = vrot.slane %v8285_v32, 5  ;;  %v7022_v9 = vrot.slane %v3955_v43, 9  ;;  %v8290_v50 = vld [vmem:[#allocation2 + $0xb0] sm:$0x1] }
 0x1f8   : > { %v7038_v42 = vcombine.low %v4093_v4, %v4096_v57  ;;  %v4101_v10 = vrot.slane %v4099_v30, 4  ;;  %v4102_v54 = vrot.slane %v9251_v61, 5  ;;  %v6905_v45 = vrot.slane %v2412_v49, 9  ;;  %v8291_v49 = vld [vmem:[#allocation2 + $0xb8] sm:$0xf] }
 0x1f9   : > { %7680 = vmatmul.mubr.msk.bf16.gmra.mrb[16].mxu1 %vm1895_vm11, %v7035_v33  ;;  %7578 = vmatmul.mubr.msk.bf16.gmra.mrb[48].mxu0 %vm1895_vm11, %v6920_v13  ;;  %v6906_v23 = vrot.slane %v2413_v7, 9  ;;  %v2540_v38 = vrot.slane %v2538_v36, 4  ;;  %v2541_v27 = vrot.slane %v8286_v56, 5  ;;  %v2535_v33 = vsel %vm9297_vm2, %v2533_v11, %v2534_v5  ;;  %v8219_v56 = vld [vmem:[#allocation2 + $0x24] sm:$0xff]  }
 0x1fa   : > { %7683 = vmatprep.mubr.msk.bf16.mxu1 %vm1895_vm11, %v7036_v47  ;;  %7581 = vmatprep.mubr.msk.bf16.mxu0 %vm1895_vm11, %v6921_v35  ;;  %v4100_v37 = vsel %vm9297_vm2, %v7022_v9, %v4099_v30  ;;  %v4103_v1 = vsel %vm9297_vm2, %v4101_v10, %v4102_v54  ;;  %v4106_v61 = vrot.slane %v9259_v28, 5  ;;  %v2532_v58 = vsel %vm9297_vm2, %v6905_v45, %v2531_v62 }
 0x1fb   : > { %v7039_v53 = vcombine.low %v4100_v37, %v4103_v1  ;;  %v2542_v51 = vsel %vm9297_vm2, %v2540_v38, %v2541_v27  ;;  %v2545_v41 = vrot.slane %v8287_v52, 5  ;;  %v2539_v22 = vsel %vm9297_vm2, %v6906_v23, %v2538_v36  ;;  %v2416_v36 = vld [vmem:[#allocation2 + $0xb4] sm:$0xe]  ;;  %v8218_v38 = vld [vmem:[#allocation2 + $0x18] sm:$0xff]   ;;  %v9546_v1 = vld [vmem:[#allocation2 + $0x28] sm:$0xf] }
 0x1fc   : > { %v7023_v12 = vrot.slane %v3956_v20, 9  ;;  %v4108_v47 = vrot.slane %v4106_v61, 4  ;;  %v4109_v14 = vrot.slane %v9266_v24, 5  ;;  %v6922_v46 = vcombine.low %v2532_v58, %v2535_v33  ;;  %v817_v24 = vld [vmem:[#allocation2 + $0xcc] sm:$0x1]  ;;  %v8220_v20 = vld [vmem:[#allocation2 + $0x30] sm:$0xff]  }
 0x1fd   : > { %v6923_v60 = vcombine.low %v2539_v22, %v2542_v51  ;;  %v4113_v28 = vrot.slane %v9273_v48, 5  ;;  %v2547_v3 = vrot.slane %v2545_v41, 4  ;;  %v2552_v55 = vrot.slane %v8288_v15, 5  ;;  %v2414_v48 = vld [vmem:[#allocation2 + $0x9c] sm:$0xe]  ;;  %v8222_v58 = vld [vmem:[#allocation2 + $0x48] sm:$0xff]  }
 0x1fe   : > { %v4107_v40 = vsel %vm9297_vm2, %v7023_v12, %v4106_v61  ;;  %v4110_v6 = vsel %vm9297_vm2, %v4108_v47, %v4109_v14  ;;  %v7024_v44 = vrot.slane %v3957_v2, 9  ;;  %v4116_v34 = vrot.slane %v9281_v16, 5  ;;  %v2415_v16 = vld [vmem:[#allocation2 + $0xa8] sm:$0xe]  ;;  %v9538_v33 = vld [vmem:[%s10518_s3 + $0x20] sm:$0xf] }
 0x1ff   : > { %v7040_v26 = vcombine.low %v4107_v40, %v4110_v6  ;;  %v4115_v0 = vrot.slane %v4113_v28, 4  ;;  %v2554_v59 = vrot.slane %v2552_v55, 4  ;;  %v2548_v18 = vrot.slane %v8289_v63, 5  ;;  %v9544_v37 = vld [vmem:[#allocation2 + $0x1c] sm:$0xf]  ;;  %v8223_v6 = vld [vmem:[#allocation2 + $0x54] sm:$0xff]  }
 0x200   : > { %v4114_v62 = vsel %vm9297_vm2, %v7024_v44, %v4113_v28  ;;  %v818_v43 = vsel %vm8525_vm3, 0, %v817_v24  ;;  %v6907_v13 = vrot.slane %v2414_v48, 9  ;;  %v2559_v11 = vrot.slane %v8291_v49, 5  ;;  %v8221_v61 = vld [vmem:[#allocation2 + $0x3c] sm:$0xff]   ;;  %v4774_v52 = vld [vmem:[#allocation2 + $0x24] sm:$0xf] }
 0x201   : > { %7684 = vmatmul.mubr.msk.bf16.gmra.mrb[20].mxu1 %vm1895_vm11, %v7037_v39  ;;  %7582 = vmatmul.mubr.msk.bf16.gmra.mrb[52].mxu0 %vm1895_vm11, %v6922_v46  ;;  %v4117_v19 = vsel %vm9297_vm2, %v4115_v0, %v4116_v34  ;;  %v2555_v39 = vrot.slane %v8290_v50, 5  ;;  %v2549_v35 = vsel %vm9297_vm2, %v2547_v3, %v2548_v18  ;;  %819 = vst [vmem:[#allocation2 + $0xcc] sm:$0x1] %v818_v43  ;;  %v6908_v30 = vrot.slane %v2415_v16, 9  ;;  %v9556_v34 = vld [vmem:[#allocation2 + $0x34] sm:$0xf] }
 0x202   : > { %7687 = vmatprep.mubr.msk.bf16.mxu1 %vm1895_vm11, %v7038_v42  ;;  %7585 = vmatprep.mubr.msk.bf16.mxu0 %vm1895_vm11, %v6923_v60  ;;  %v7041_v8 = vcombine.low %v4114_v62, %v4117_v19  ;;  %v2546_v4 = vsel %vm9297_vm2, %v6907_v13, %v2545_v41  ;;  %v2561_v32 = vrot.slane %v2559_v11, 4  ;;  %v8292_v42 = vld [vmem:[#allocation2 + $0xbc] sm:$0x1]  ;;  %v6909_v10 = vrot.slane %v2416_v36, 9  ;;  %v8224_v24 = vld [vmem:[#allocation2 + $0x60] sm:$0xff]  }
 0x203   : > { %v2556_v7 = vsel %vm9297_vm2, %v2554_v59, %v2555_v39  ;;  %v6924_v57 = vcombine.low %v2546_v4, %v2549_v35  ;;  %v2553_v25 = vsel %vm9297_vm2, %v6908_v30, %v2552_v55  ;;  %v2562_v9 = vrot.slane %v8292_v42, 5  ;;  %v4777_v55 = vld [vmem:[#allocation2 + $0x30] sm:$0xf]  ;;  %v9558_v59 = vld [vmem:[#allocation2 + $0x2c] sm:$0x1] }
 0x204   : > { %v6925_v5 = vcombine.low %v2553_v25, %v2556_v7  ;;  %v2560_v45 = vsel %vm9297_vm2, %v6909_v10, %v2559_v11  ;;  %v5302_v27 = vsel %vm1944_vm7, %v9353_v29, 0  ;;  %v4771_v29 = vld [vmem:[#allocation2 + $0x18] sm:$0xf]  ;;  %v4833_v51 = vshrl.u32 %v9544_v37, 16  ;;  %v4780_v13 = vld [vmem:[#allocation2 + $0x3c] sm:$0xf] }
 0x205   : > { %v2563_v54 = vsel %vm9297_vm2, %v2561_v32, %v2562_v9  ;;  %v4853_v41 = vshll.u32 %v9546_v1, 16  ;;  %v4857_v22 = vshrl.u32 %v9546_v1, 16  ;;  %v4820_v12 = vshrl.u32 %v4771_v29, 16  ;;  %v9566_v49 = vld [vmem:[#allocation2 + $0x38] sm:$0x1]  ;;  %v8225_v32 = vld [vmem:[#allocation2 + $0x6c] sm:$0xff]  }
 0x206   : > { %v6926_v23 = vcombine.low %v2560_v45, %v2563_v54  ;;  %v4823_v47 = vshll.u32 %v4771_v29, 16  ;;  %v4844_v14 = vshrl.u32 %v4774_v52, 16  ;;  %v4847_v2 = vshll.u32 %v4774_v52, 16  ;;  %v8226_v54 = vld [vmem:[#allocation2 + $0x78] sm:$0xff]  }
 0x207   : > { %v4835_v60 = vrot.slane %v4833_v51, 4  ;;  %v4855_v28 = vrot.slane %v4853_v41, 5  ;;  %v4859_v40 = vrot.slane %v4857_v22, 4  ;;  %v4822_v3 = vrot.slane %v4820_v12, 4  ;;  %v9590_v51 = vld [vmem:[#allocation2 + $0x58] sm:$0xf] }
 0x208   : > { %v4825_v15 = vrot.slane %v4823_v47, 5  ;;  %v4846_v44 = vrot.slane %v4844_v14, 4  ;;  %v4849_v0 = vrot.slane %v4847_v2, 5  ;;  %v4868_v18 = vshrl.u32 %v4777_v55, 16  ;;  %v9596_v22 = vld [vmem:[#allocation2 + $0x44] sm:$0x1] }
 0x209   : > { %7688 = vmatmul.mubr.msk.bf16.gmra.mrb[24].mxu1 %vm1895_vm11, %v7039_v53  ;;  %7586 = vmatmul.mubr.msk.bf16.gmra.mrb[56].mxu0 %vm1895_vm11, %v6924_v57  ;;  %v4829_v53 = vshll.u32 %v9544_v37, 16  ;;  %v4860_v63 = vor.u32 %v4859_v40, %v4855_v28  ;;  %v4871_v62 = vshll.u32 %v4777_v55, 16  ;;  %v4881_v50 = vshrl.u32 %v9556_v34, 16  ;;  %v4783_v14 = vld [vmem:[#allocation2 + $0x48] sm:$0xf] }
 0x20a   : > { %7691 = vmatprep.mubr.msk.bf16.mxu1 %vm1895_vm11, %v7040_v26  ;;  %7589 = vmatprep.mubr.msk.bf16.mxu0 %vm1895_vm11, %v6925_v5  ;;  %v9554_v26 = vld [vmem:[#allocation2 + $0x20] sm:$0x1]  ;;  %v4826_v19 = vor.u32 %v4825_v15, %v4822_v3  ;;  %v4850_v39 = vor.u32 %v4849_v0, %v4846_v44  ;;  %v4863_v21 = vshll.u32 %v9558_v59, 16  ;;  %v4870_v11 = vrot.slane %v4868_v18, 4  ;;  %v9602_v40 = vld [vmem:[#allocation2 + $0x64] sm:$0xf] }
 0x20b   : > { %v4831_v46 = vrot.slane %v4829_v53, 5  ;;  %v4839_v16 = vshll.u32 %v9554_v26, 16  ;;  %v4861_v35 = vrot.slane %v4860_v63, 4  ;;  %v4873_v30 = vrot.slane %v4871_v62, 5  ;;  %v9570_v5 = vld [vmem:[#allocation2 + $0x40] sm:$0xf] }
 0x20c   : > { %v4827_v7 = vrot.slane %v4826_v19, 4  ;;  %v4883_v25 = vrot.slane %v4881_v50, 4  ;;  %v4851_v36 = vrot.slane %v4850_v39, 4  ;;  %v4865_v42 = vrot.slane %v4863_v21, 5  ;;  %v4786_v15 = vld [vmem:[#allocation2 + $0x54] sm:$0xf] }
 0x20d   : > { %v4836_v48 = vor.u32 %v4835_v60, %v4831_v46  ;;  %v4841_v4 = vrot.slane %v4839_v16, 5  ;;  %v4892_v9 = vshrl.u32 %v4780_v13, 16  ;;  %v4895_v10 = vshll.u32 %v4780_v13, 16  ;;  %v4789_v63 = vld [vmem:[#allocation2 + $0x60] sm:$0xf]  ;;  %v8227_v18 = vld [vmem:[#allocation2 + $0x84] sm:$0xff]  }
 0x20e   : > { %v9586_v29 = vsel %vm1944_vm7, %v9538_v33, 0  ;;  %v4905_v53 = vshrl.u32 %v9570_v5, 16  ;;  %v4856_v41 = vsel %vm8591_vm10, %v4851_v36, %v4855_v28  ;;  %v4949_v28 = vshll.u32 %v9590_v51, 16  ;;  %v8228_v50 = vld [vmem:[#allocation2 + $0x90] sm:$0xff]  }
 0x20f   : > { %v4837_v43 = vrot.slane %v4836_v48, 4  ;;  %v4894_v12 = vrot.slane %v4892_v9, 4  ;;  %v4897_v47 = vrot.slane %v4895_v10, 5  ;;  %v4953_v55 = vshrl.u32 %v9590_v51, 16  ;;  %v4792_v9 = vld [vmem:[#allocation2 + $0x6c] sm:$0xf] }
 0x210   : > { %v4907_v0 = vrot.slane %v4905_v53, 4  ;;  %v4916_v48 = vshrl.u32 %v4783_v14, 16  ;;  %v4919_v19 = vshll.u32 %v4783_v14, 16  ;;  %v4973_v16 = vshll.u32 %v9602_v40, 16 }
 0x211   : > { %7692 = vmatmul.mubr.msk.bf16.gmra.mrb[28].mxu1 %vm1895_vm11, %v7041_v8  ;;  %7590 = vmatmul.mubr.msk.bf16.gmra.mrb[60].mxu0 %vm1895_vm11, %v6926_v23  ;;  %v4877_v8 = vshll.u32 %v9556_v34, 16  ;;  %v4842_v45 = vsel %vm8591_vm10, %v4837_v43, %v4841_v4  ;;  %v4887_v23 = vshll.u32 %v9566_v49, 16  ;;  %v4898_v62 = vor.u32 %v4897_v47, %v4894_v12 }
 0x212   : > { %7697 = vmatprep.mubr.msk.bf16.mxu1 %vm1895_vm11, %v8218_v38  ;;  %v4866_v38 = vsel %vm8591_vm10, %v4861_v35, %v4865_v42  ;;  %v4940_v43 = vshrl.u32 %v4786_v15, 16  ;;  %v4943_v13 = vshll.u32 %v4786_v15, 16  ;;  %v9614_v35 = vld [vmem:[#allocation2 + $0x50] sm:$0x1]  ;;  %v4967_v4 = vshll.u32 %v4789_v63, 16  ;;  %v8229_v15 = vld [vmem:[#allocation2 + $0x9c] sm:$0xff]  }
 0x213   : > { %v9568_v57 = vrot.slane %v4877_v8, 5  ;;  %v9598_v2 = vcombine.low %v4856_v41, %v4866_v38  ;;  %v4977_v8 = vshrl.u32 %v9602_v40, 16  ;;  %v4918_v42 = vrot.slane %v4916_v48, 4  ;;  %v9631_v38 = vld [vmem:[#allocation2 + $0x70] sm:$0xf]  ;;  %v8230_v48 = vld [vmem:[#allocation2 + $0xa8] sm:$0xff]  }
 0x214   : > { %v4945_v53 = vrot.slane %v4943_v13, 5  ;;  %v4969_v47 = vrot.slane %v4967_v4, 5  ;;  %v5573_v17 = vrot.slane %v9558_v59, 5 }
 0x219   : > { %7698 = vmatmul.mubr.msk.bf16.vlgmr.msra.gmra.mrb[0].mxu1 %vm1895_vm11, %v8219_v56  ;;  %v4874_v56 = vor.u32 %v4873_v30, %v4870_v11  ;;  %v9616_v11 = vrot.slane %v4949_v28, 5  ;;  %v4955_v30 = vrot.slane %v4953_v55, 4 }
 0x21a   : > { %7730 = vmatpush3.bf16.msra.mxu1 %v5302_v27  ;;  %7701 = vmatprep.mubr.msk.bf16.mxu1 %vm1895_vm11, %v8220_v20  ;;  %v4901_v27 = vshll.u32 %v9570_v5, 16  ;;  %v9579_v20 = vld [vmem:[#allocation2 + $0x4c] sm:$0xf] }
 0x21b   : > { %8131 = vmatprep.subr.msk.bf16.mxu1 %vm1944_vm7, %v9538_v33  ;;  %v4889_v33 = vrot.slane %v4887_v23, 5  ;;  %v4929_v60 = vshrl.u32 %v9579_v20, 16  ;;  %v4979_v23 = vrot.slane %v4977_v8, 4  ;;  %v4956_v41 = vor.u32 %v4955_v30, %v9616_v11 }
 0x21c   : > { %v9604_v3 = vrot.slane %v4901_v27, 5 }
 0x21d   : > { %v4931_v21 = vrot.slane %v4929_v60, 4  ;;  %v4991_v60 = vshll.u32 %v4792_v9, 16 }
 0x21f   : > { %v4993_v30 = vrot.slane %v4991_v60, 5 }
 0x221   : > { %7702 = vmatmul.mubr.msk.bf16.gmra.mrb[4].mxu1 %vm1895_vm11, %v8221_v61  ;;  %v4832_v61 = vsel %vm8591_vm10, %v4827_v7, %v4831_v46  ;;  %v4925_v46 = vshll.u32 %v9579_v20, 16  ;;  %v4964_v7 = vshrl.u32 %v4789_v63, 16 }
 0x222   : > { %7705 = vmatprep.mubr.msk.bf16.mxu1 %vm1895_vm11, %v8222_v58  ;;  %v4884_v58 = vor.u32 %v4883_v25, %v9568_v57  ;;  %v9592_v52 = vcombine.low %v4832_v61, %v4842_v45  ;;  %v9629_v45 = vrot.slane %v4973_v16, 5  ;;  %v4942_v61 = vrot.slane %v4940_v43, 4  ;;  %v4795_v16 = vld [vmem:[#allocation2 + $0x78] sm:$0xf]  ;;  %v9652_v43 = vld [vmem:[#allocation2 + $0x7c] sm:$0xf] }
 0x223   : > { %v9611_v39 = vrot.slane %v4925_v46, 5  ;;  %v4966_v12 = vrot.slane %v4964_v7, 4  ;;  %v4988_v46 = vshrl.u32 %v4792_v9, 16 }
 0x224   : > { %v4885_v44 = vrot.slane %v4884_v58, 4  ;;  %v9635_v58 = vld [vmem:[#allocation2 + $0x5c] sm:$0x1]  ;;  %v4946_v8 = vor.u32 %v4945_v53, %v4942_v61 }
 0x225   : > { %v4932_v27 = vor.u32 %v4931_v21, %v9611_v39  ;;  %v4970_v21 = vor.u32 %v4969_v47, %v4966_v12  ;;  %v4990_v13 = vrot.slane %v4988_v46, 4  ;;  %v9666_v47 = vld [vmem:[#allocation2 + $0x84] sm:$0xf] }
 0x226   : > { %v4890_v10 = vsel %vm8591_vm10, %v4885_v44, %v4889_v33  ;;  %v9640_v33 = vld [vmem:[#allocation2 + $0x68] sm:$0x1]  ;;  %v4980_v44 = vor.u32 %v4979_v23, %v9629_v45  ;;  %v4947_v53 = vrot.slane %v4946_v8, 4 }
 0x229   : > { %7706 = vmatmul.mubr.msk.bf16.gmra.mrb[8].mxu1 %vm1895_vm11, %v8223_v6  ;;  %v4875_v6 = vrot.slane %v4874_v56, 4  ;;  %v4921_v56 = vrot.slane %v4919_v19, 5  ;;  %v4959_v19 = vshll.u32 %v9635_v58, 16 }
 0x22a   : > { %7709 = vmatprep.mubr.msk.bf16.mxu1 %vm1895_vm11, %v8224_v24  ;;  %v4911_v24 = vshll.u32 %v9596_v22, 16 }
 0x22b   : > { %v4880_v25 = vsel %vm8591_vm10, %v4875_v6, %v9568_v57  ;;  %v4935_v57 = vshll.u32 %v9614_v35, 16  ;;  %v4997_v6 = vshll.u32 %v9631_v38, 16  ;;  %v4922_v63 = vor.u32 %v4921_v56, %v4918_v42  ;;  %v9659_v42 = vld [vmem:[#allocation2 + $0x74] sm:$0x1] }
 0x22c   : > { %v9623_v36 = vrot.slane %v4911_v24, 5  ;;  %v9638_v14 = vcombine.low %v4880_v25, %v4890_v10  ;;  %v873_v24 = vld [vmem:[#allocation2 + $0xd4] sm:$0x1]  ;;  %v5012_v10 = vshrl.u32 %v4795_v16, 16  ;;  %v4961_v56 = vrot.slane %v4959_v19, 5 }
 0x22d   : > { %v9655_v7 = vrot.slane %v4997_v6, 5  ;;  %v874_v25 = vsel %vm8533_vm5, 0, %v873_v24  ;;  %v4923_v23 = vrot.slane %v4922_v63, 4  ;;  %v4994_v6 = vor.u32 %v4993_v30, %v4990_v13  ;;  %v9703_v13 = vld [vmem:[#allocation2 + $0x90] sm:$0xf] }
 0x22e   : > { %875 = vst [vmem:[#allocation2 + $0xd4] sm:$0x1] %v874_v25 }
 0x22f   : > { %v4928_v63 = vsel %vm8591_vm10, %v4923_v23, %v9611_v39  ;;  %v9710_v4 = vrot.slane %v4994_v6, 4  ;;  %v5501_v23 = vld [vmem:[#allocation2 + $0x48] sm:$0xe] }
 0x231   : > { %7710 = vmatmul.mubr.msk.bf16.gmra.mrb[12].mxu1 %vm1895_vm11, %v8225_v32  ;;  %v4908_v32 = vor.u32 %v4907_v0, %v9604_v3  ;;  %v5001_v0 = vshrl.u32 %v9631_v38, 16 }
 0x232   : > { %7713 = vmatprep.mubr.msk.bf16.mxu1 %vm1895_vm11, %v8226_v54  ;;  %v9627_v54 = vrot.slane %v4898_v62, 4  ;;  %v4937_v62 = vrot.slane %v4935_v57, 5  ;;  %v5025_v57 = vshrl.u32 %v9652_v43, 16 }
 0x233   : > { %v4909_v55 = vrot.slane %v4908_v32, 4  ;;  %v4981_v32 = vrot.slane %v4980_v44, 4  ;;  %v5003_v9 = vrot.slane %v5001_v0, 4  ;;  %v8231_v44 = vld [vmem:[#allocation2 + $0xb4] sm:$0xff]  }
 0x234   : > { %v4904_v28 = vsel %vm8591_vm10, %v9627_v54, %v9604_v3  ;;  %v4983_v3 = vshll.u32 %v9640_v33, 16  ;;  %v5015_v54 = vshll.u32 %v4795_v16, 16  ;;  %v9687_v19 = vrot.slane %v5025_v57, 4 }
 0x235   : > { %v4914_v61 = vsel %vm8591_vm10, %v4909_v55, %v9623_v36  ;;  %v5004_v36 = vor.u32 %v5003_v9, %v9655_v7  ;;  %v9676_v55 = vrot.slane %v5012_v10, 4  ;;  %v5036_v16 = vshrl.u32 %v9666_v47, 16 }
 0x236   : > { %v4985_v12 = vrot.slane %v4983_v3, 5  ;;  %v9678_v24 = vrot.slane %v5015_v54, 5  ;;  %v9691_v8 = vcombine.low %v4904_v28, %v4914_v61  ;;  %v9701_v3 = vld [vmem:[#allocation2 + $0x88] sm:$0xf]  ;;  %v5577_v61 = vrot.slane %v9556_v34, 5 }
 0x237   : > { %v9716_v9 = vrot.slane %v5004_v36, 4  ;;  %v5584_v36 = vrot.slane %v9570_v5, 5  ;;  %v5587_v10 = vrot.slane %v9596_v22, 5 }
 0x238   : > { %v4986_v0 = vsel %vm8591_vm10, %v4981_v32, %v4985_v12  ;;  %v9714_v32 = vld [vmem:[#allocation2 + $0x94] sm:$0xf] }
 0x239   : > { %7714 = vmatmul.mubr.msk.bf16.gmra.mrb[16].mxu1 %vm1895_vm11, %v8227_v18  ;;  %v4933_v18 = vrot.slane %v4932_v27, 4  ;;  %v5021_v27 = vshll.u32 %v9652_v43, 16 }
 0x23a   : > { %7717 = vmatprep.mubr.msk.bf16.mxu1 %vm1895_vm11, %v8228_v50  ;;  %v4957_v50 = vrot.slane %v4956_v41, 4  ;;  %v4971_v41 = vrot.slane %v4970_v21, 4  ;;  %v4952_v21 = vsel %vm8591_vm10, %v4947_v53, %v9616_v11  ;;  %v5499_v11 = vld [vmem:[#allocation2 + $0x30] sm:$0xe]  ;;  %v5500_v53 = vld [vmem:[#allocation2 + $0x3c] sm:$0xe] }
 0x23b   : > { %v4938_v46 = vsel %vm8591_vm10, %v4933_v18, %v4937_v62  ;;  %v9683_v18 = vld [vmem:[#allocation2 + $0x80] sm:$0x1]  ;;  %v9685_v62 = vrot.slane %v5021_v27, 5  ;;  %v9724_v27 = vrot.slane %v5036_v16, 4  ;;  %v7126_v6 = vrot.slane %v5499_v11, 9 }
 0x23c   : > { %v4962_v60 = vsel %vm8591_vm10, %v4957_v50, %v4961_v56  ;;  %v9693_v50 = vcombine.low %v4928_v63, %v4938_v46  ;;  %v4976_v39 = vsel %vm8591_vm10, %v4971_v41, %v9629_v45  ;;  %v8233_v41 = vld [vmem:[#allocation2 + $0xcc] sm:$0xff]   ;;  %v7127_v63 = vrot.slane %v5500_v53, 9  ;;  %v5509_v45 = vld [vmem:[#allocation2 + $0xa8] sm:$0xe] }
 0x23d   : > { %v9706_v30 = vcombine.low %v4952_v21, %v4962_v60  ;;  %v9708_v28 = vcombine.low %v4976_v39, %v4986_v0  ;;  %v5580_v0 = vrot.slane %v9566_v49, 5  ;;  %v9737_v34 = vsel %vm9297_vm2, %v7126_v6, %v5577_v61  ;;  %v5502_v21 = vld [vmem:[#allocation2 + $0x54] sm:$0xe]  ;;  %v5503_v6 = vld [vmem:[#allocation2 + $0x60] sm:$0xe] }
 0x23e   : > { %v5591_v16 = vrot.slane %v9579_v20, 5  ;;  %v5586_v11 = vrot.slane %v5584_v36, 4  ;;  %v7128_v49 = vrot.slane %v5501_v23, 9  ;;  %v5594_v20 = vrot.slane %v9614_v35, 5  ;;  %v9845_v60 = vld [vmem:[#allocation2 + $0xb8] sm:$0xf] }
 0x23f   : > { %v7136_v54 = vrot.slane %v5509_v45, 9 }
 0x240   : > { %v5593_v53 = vrot.slane %v5591_v16, 4  ;;  %v9757_v22 = vsel %vm9297_vm2, %v5586_v11, %v5587_v10  ;;  %v9761_v23 = vsel %vm9297_vm2, %v7128_v49, %v5591_v16  ;;  %v5605_v10 = vrot.slane %v9602_v40, 5 }
 0x241   : > { %7718 = vmatmul.mubr.msk.bf16.gmra.mrb[20].mxu1 %vm1895_vm11, %v8229_v15  ;;  %v5007_v15 = vshll.u32 %v9659_v42, 16  ;;  %v7130_v11 = vrot.slane %v5503_v6, 9  ;;  %v5506_v6 = vld [vmem:[#allocation2 + $0x84] sm:$0xe] }
 0x242   : > { %7721 = vmatprep.mubr.msk.bf16.mxu1 %vm1895_vm11, %v8230_v48  ;;  %v8232_v48 = vld [vmem:[#allocation2 + $0xc0] sm:$0xff]   ;;  %v9768_v35 = vsel %vm9297_vm2, %v5593_v53, %v5594_v20  ;;  %v5612_v53 = vrot.slane %v9631_v38, 5  ;;  %v5615_v20 = vrot.slane %v9659_v42, 5 }
 0x243   : > { %v9712_v25 = vrot.slane %v5007_v15, 5  ;;  %v9786_v40 = vsel %vm9297_vm2, %v7130_v11, %v5605_v10  ;;  %v5507_v11 = vld [vmem:[#allocation2 + $0x90] sm:$0xe]  ;;  %v10599_v59 = vcombine.low %v9761_v23, %v9768_v35 }
 0x249   : > { %7722 = vmatmul.mubr.msk.bf16.gmra.mrb[24].mxu1 %vm1895_vm11, %v8231_v44  ;;  %v5579_v44 = vrot.slane %v5577_v61, 4  ;;  %v9750_v61 = vsel %vm9297_vm2, %v7127_v63, %v5584_v36  ;;  %v5607_v36 = vrot.slane %v5605_v10, 4  ;;  %v9790_v63 = vld [vmem:[#allocation2 + $0x8c] sm:$0x1]  ;;  %v7133_v10 = vrot.slane %v5506_v6, 9 }
 0x24a   : > { %7725 = vmatprep.mubr.msk.bf16.mxu1 %vm1895_vm11, %v8232_v48  ;;  %v5629_v6 = vrot.slane %v9790_v63, 5  ;;  %v9838_v48 = vld [vmem:[#allocation2 + $0xb0] sm:$0x1] }
 0x24b   : > { %v9742_v39 = vsel %vm9297_vm2, %v5579_v44, %v5580_v0  ;;  %v5598_v44 = vrot.slane %v9590_v51, 5  ;;  %v5504_v0 = vld [vmem:[#allocation2 + $0x6c] sm:$0xe]  ;;  %v5505_v51 = vld [vmem:[#allocation2 + $0x78] sm:$0xe] }
 0x24c   : > { %v7131_v5 = vrot.slane %v5504_v0, 9  ;;  %v7132_v0 = vrot.slane %v5505_v51, 9 }
 0x24d   : > { %v5600_v16 = vrot.slane %v5598_v44, 4 }
 0x251   : > { %7726 = vmatmul.mubr.msk.bf16.gmra.mrb[28].mxu1 %vm1895_vm11, %v8233_v41  ;;  %v7129_v41 = vrot.slane %v5502_v21, 9  ;;  %v5608_v21 = vrot.slane %v9640_v33, 5  ;;  %v5619_v33 = vrot.slane %v9652_v43, 5  ;;  %v9804_v43 = vsel %vm9297_vm2, %v7131_v5, %v5612_v53 }
 0x252   : > { %7731 = vmatprep.mubr.msk.bf16.mxu1 %vm1895_vm11, %v9592_v52  ;;  %v5601_v52 = vrot.slane %v9635_v58, 5  ;;  %10576 = vst [vmem:[#allocation11_spill] sm:$0xff] %v9804_v43  ;;  %v5626_v5 = vrot.slane %v9701_v3, 5  ;;  %v5512_v43 = vld [vmem:[#allocation2 + $0xcc] sm:$0xe] }
 0x253   : > { %v9777_v49 = vsel %vm9297_vm2, %v7129_v41, %v5598_v44  ;;  %v9796_v38 = vsel %vm9297_vm2, %v5607_v36, %v5608_v21  ;;  %v5614_v44 = vrot.slane %v5612_v53, 4  ;;  %v5621_v42 = vrot.slane %v5619_v33, 4  ;;  %v9809_v36 = vld [vmem:[#allocation2 + $0xa0] sm:$0xf]  ;;  %v5508_v53 = vld [vmem:[#allocation2 + $0x9c] sm:$0xe] }
 0x254   : > { %v9782_v58 = vsel %vm9297_vm2, %v5600_v16, %v5601_v52  ;;  %10575 = vst [vmem:[#allocation8_spill] sm:$0xff] %v9796_v38  ;;  %v9798_v52 = vld [vmem:[#allocation2 + $0x98] sm:$0x1]  ;;  %v5622_v16 = vrot.slane %v9683_v18, 5  ;;  %v9817_v51 = vsel %vm9297_vm2, %v7132_v0, %v5619_v33  ;;  %v9825_v41 = vld [vmem:[#allocation2 + $0xac] sm:$0xf] }
 0x255   : > { %v9813_v21 = vsel %vm9297_vm2, %v5614_v44, %v5615_v20  ;;  %10578 = vst [vmem:[#allocation10_spill] sm:$0xff] %v9817_v51  ;;  %v5633_v44 = vrot.slane %v9714_v32, 5  ;;  %v5628_v0 = vrot.slane %v5626_v5, 4  ;;  %v5636_v56 = vrot.slane %v9798_v52, 5  ;;  %v9874_v38 = vld [vmem:[#allocation2 + $0xc8] sm:$0x1] }
 0x256   : > { %10577 = vst [vmem:[#allocation9_spill] sm:$0xff] %v9813_v21  ;;  %v9831_v33 = vsel %vm9297_vm2, %v5621_v42, %v5622_v16  ;;  %v9842_v20 = vsel %vm9297_vm2, %v7133_v10, %v5626_v5  ;;  %v7135_v16 = vrot.slane %v5508_v53, 9  ;;  %v5640_v15 = vrot.slane %v9809_v36, 5  ;;  %v5510_v10 = vld [vmem:[#allocation2 + $0xb4] sm:$0xe] }
 0x257   : > { %10579 = vst [vmem:[#allocation12_spill] sm:$0xff] %v9831_v33  ;;  %v5635_v42 = vrot.slane %v5633_v44, 4  ;;  %v5647_v12 = vrot.slane %v9825_v41, 5  ;;  %v9857_v5 = vld [vmem:[#allocation2 + $0xbc] sm:$0x1]  ;;  %v5650_v51 = vrot.slane %v9838_v48, 5  ;;  %v10600_v31 = vcombine.low %v9777_v49, %v9782_v58 }
 0x258   : > { %v9859_v53 = vld [vmem:[#allocation2 + $0xc4] sm:$0xf]  ;;  %v5511_v21 = vld [vmem:[#allocation2 + $0xc0] sm:$0xe] }
 0x259   : > { %7732 = vmatmul.mubr.msk.bf16.vlgmr.msra.gmra.mrb[0].mxu1 %vm1895_vm11, %v9598_v2  ;;  %v9823_v2 = vld [vmem:[#allocation2 + $0xa4] sm:$0x1]  ;;  %v5649_v33 = vrot.slane %v5647_v12, 4  ;;  %v9882_v45 = vsel %vm9297_vm2, %v7136_v54, %v5647_v12  ;;  %v5661_v54 = vrot.slane %v9859_v53, 5  ;;  %v9899_v12 = vld [vmem:[#allocation2 + $0xd4] sm:$0x1] }
 0x25a   : > { %7764 = vmatpush3.bf16.msra.mxu1 %v9586_v29  ;;  %7735 = vmatprep.mubr.msk.bf16.mxu1 %vm1895_vm11, %v9638_v14  ;;  %v7134_v14 = vrot.slane %v5507_v11, 9  ;;  %v9849_v29 = vsel %vm9297_vm2, %v5628_v0, %v5629_v6  ;;  %v5643_v46 = vrot.slane %v9823_v2, 5  ;;  %v9865_v6 = vsel %vm9297_vm2, %v5635_v42, %v5636_v56 }
 0x25b   : > { %10581 = vst [vmem:[#allocation6_spill] sm:$0xff] %v9865_v6  ;;  %v5642_v0 = vrot.slane %v5640_v15, 4  ;;  %v7137_v42 = vrot.slane %v5510_v10, 9  ;;  %v9893_v57 = vsel %vm9297_vm2, %v5649_v33, %v5650_v51  ;;  %v7139_v6 = vrot.slane %v5512_v43, 9 }
 0x25c   : > { %v9853_v11 = vsel %vm9297_vm2, %v7134_v14, %v5633_v44  ;;  %v9871_v14 = vsel %vm9297_vm2, %v7135_v16, %v5640_v15  ;;  %v5654_v44 = vrot.slane %v9845_v60, 5  ;;  %v9887_v15 = vld [vmem:[#allocation2 + $0xd0] sm:$0xf]  ;;  %10584 = vst [vmem:[#allocation15_spill] sm:$0xff] %v9893_v57  ;;  %v5663_v16 = vrot.slane %v5661_v54, 4  ;;  %v10606_v23 = vld [vmem:[#allocation10_spill] sm:$0xff] }
 0x25d   : > { %10580 = vst [vmem:[#allocation13_spill] sm:$0xff] %v9853_v11  ;;  %10582 = vst [vmem:[#allocation7_spill] sm:$0xff] %v9871_v14  ;;  %v9878_v56 = vsel %vm9297_vm2, %v5642_v0, %v5643_v46  ;;  %v5657_v46 = vrot.slane %v9857_v5, 5  ;;  %v7138_v0 = vrot.slane %v5511_v21, 9  ;;  %v5668_v51 = vrot.slane %v9887_v15, 5 }
 0x25e   : > { %10583 = vst [vmem:[#allocation14_spill] sm:$0xff] %v9878_v56  ;;  %v5656_v10 = vrot.slane %v5654_v44, 4  ;;  %v5664_v56 = vrot.slane %v9874_v38, 5  ;;  %v5671_v33 = vrot.slane %v9899_v12, 5  ;;  %v10585_v14 = vshll.u32 %v9666_v47, 16  ;;  %v10607_v35 = vld [vmem:[#allocation12_spill] sm:$0xff] }
 0x25f   : > { %v9918_v43 = vsel %vm9297_vm2, %v7138_v0, %v5661_v54  ;;  %v9928_v47 = vsel %vm9297_vm2, %v7139_v6, %v5668_v51  ;;  %v4804_v21 = vld [vmem:[#allocation2 + $0x9c] sm:$0xf]  ;;  %v10592_v6 = vshll.u32 %v9714_v32, 16 }
 0x260   : > { %v5041_v11 = vrot.slane %v10585_v14, 5  ;;  %v9924_v57 = vsel %vm9297_vm2, %v5663_v16, %v5664_v56  ;;  %v10588_v14 = vshll.u32 %v9701_v3, 16  ;;  %v10591_v16 = vshll.u32 %v9703_v13, 16 }
 0x261   : > { %7736 = vmatmul.mubr.msk.bf16.gmra.mrb[4].mxu1 %vm1895_vm11, %v9691_v8  ;;  %v9914_v8 = vsel %vm9297_vm2, %v5656_v10, %v5657_v46  ;;  %v10589_v46 = vshrl.u32 %v9701_v3, 16  ;;  %v10590_v10 = vshrl.u32 %v9703_v13, 16  ;;  %v5010_v13 = vsel %vm8591_vm10, %v9716_v9, %v9712_v25 }
 0x262   : > { %7739 = vmatprep.mubr.msk.bf16.mxu1 %vm1895_vm11, %v9693_v50  ;;  %v9910_v50 = vsel %vm9297_vm2, %v7137_v42, %v5654_v44  ;;  %10587 = vst [vmem:[#allocation17_spill] sm:$0xff] %v9914_v8  ;;  %v5670_v44 = vrot.slane %v5668_v51, 4  ;;  %v9932_v42 = vrot.slane %v10588_v14, 5  ;;  %v5065_v8 = vrot.slane %v10591_v16, 5 }
 0x263   : > { %10586 = vst [vmem:[#allocation16_spill] sm:$0xff] %v9910_v50  ;;  %v5051_v54 = vrot.slane %v10589_v46, 4  ;;  %v5062_v0 = vrot.slane %v10590_v10, 4  ;;  %v9944_v51 = vrot.slane %v10592_v6, 5  ;;  %v10593_v14 = vshrl.u32 %v9714_v32, 16 }
 0x264   : > { %v9950_v3 = vsel %vm9297_vm2, %v5670_v44, %v5671_v33  ;;  %v6054_v46 = vld [vmem:[%s10520_s5] sm:$0xf]  ;;  %v10594_v10 = vor.u32 %v9678_v24, %v9676_v55  ;;  %v5000_v44 = vsel %vm8591_vm10, %v9710_v4, %v9655_v7  ;;  %v10595_v25 = vor.u32 %v9687_v19, %v9685_v62 }
 0x265   : > { %v5075_v50 = vrot.slane %v10593_v14, 4  ;;  %8132 = vmatprep.subr.msk.bf16.mxu0 %vm1944_vm7, %v6054_v46  ;;  %v6111_v33 = vsel %vm1944_vm7, %v6054_v46, 0  ;;  %v5042_v24 = vor.u32 %v5041_v11, %v9724_v27  ;;  %v5052_v9 = vor.u32 %v5051_v54, %v9932_v42  ;;  %v4807_v11 = vld [vmem:[#allocation2 + $0xa8] sm:$0xf] }
 0x266   : > { %v5019_v16 = vrot.slane %v10594_v10, 4  ;;  %v5029_v55 = vrot.slane %v10595_v25, 4  ;;  %7798 = vmatpush3.bf16.msra.mxu0 %v6111_v33  ;;  %v5084_v6 = vshrl.u32 %v4804_v21, 16  ;;  %v5087_v14 = vshll.u32 %v4804_v21, 16 }
 0x267   : > { %v10596_v46 = vshll.u32 %v9683_v18, 16  ;;  %v5066_v32 = vor.u32 %v5065_v8, %v5062_v0  ;;  %v5076_v7 = vor.u32 %v5075_v50, %v9944_v51  ;;  %v5055_v4 = vshll.u32 %v9790_v63, 16 }
 0x268   : > { %v5024_v19 = vsel %vm8591_vm10, %v5019_v16, %v9685_v62  ;;  %v5097_v27 = vshrl.u32 %v9809_v36, 16  ;;  %v5079_v18 = vshll.u32 %v9798_v52, 16  ;;  %v5117_v8 = vshll.u32 %v9825_v41, 16 }
 0x269   : > { %7740 = vmatmul.mubr.msk.bf16.gmra.mrb[8].mxu1 %vm1895_vm11, %v9706_v30  ;;  %v7099_v30 = vcombine.low %v5000_v44, %v5010_v13  ;;  %v5033_v10 = vrot.slane %v10596_v46, 5  ;;  %v5121_v50 = vshrl.u32 %v9825_v41, 16  ;;  %v5043_v54 = vrot.slane %v5042_v24, 4  ;;  %v4810_v41 = vld [vmem:[#allocation2 + $0xb4] sm:$0xf] }
 0x26a   : > { %7743 = vmatprep.mubr.msk.bf16.mxu1 %vm1895_vm11, %v9708_v28  ;;  %v5093_v28 = vshll.u32 %v9809_v36, 16  ;;  %v5053_v0 = vrot.slane %v5052_v9, 4  ;;  %v5086_v13 = vrot.slane %v5084_v6, 4  ;;  %v5089_v62 = vrot.slane %v5087_v14, 5 }
 0x26b   : > { %v5034_v21 = vsel %vm8591_vm10, %v5029_v55, %v5033_v10  ;;  %v5067_v16 = vrot.slane %v5066_v32, 4  ;;  %v5077_v63 = vrot.slane %v5076_v7, 4  ;;  %v5108_v33 = vshrl.u32 %v4807_v11, 16 }
 0x26c   : > { %v5111_v44 = vshll.u32 %v4807_v11, 16  ;;  %v7100_v25 = vcombine.low %v5024_v19, %v5034_v21  ;;  %v5057_v36 = vrot.slane %v5055_v4, 5  ;;  %v9993_v46 = vrot.slane %v5093_v28, 5  ;;  %v4813_v11 = vld [vmem:[#allocation2 + $0xc0] sm:$0xf] }
 0x26d   : > { %v5099_v56 = vrot.slane %v5097_v27, 4  ;;  %v5081_v52 = vrot.slane %v5079_v18, 5  ;;  %v9996_v55 = vrot.slane %v5117_v8, 5  ;;  %v5123_v10 = vrot.slane %v5121_v50, 4 }
 0x26e   : > { %v5048_v32 = vsel %vm8591_vm10, %v5043_v54, %v9932_v42  ;;  %v5058_v24 = vsel %vm8591_vm10, %v5053_v0, %v5057_v36  ;;  %v5090_v9 = vor.u32 %v5089_v62, %v5086_v13  ;;  %v5103_v6 = vshll.u32 %v9823_v2, 16 }
 0x26f   : > { %v5072_v14 = vsel %vm8591_vm10, %v5067_v16, %v9944_v51  ;;  %v5110_v7 = vrot.slane %v5108_v33, 4  ;;  %v5113_v19 = vrot.slane %v5111_v44, 5  ;;  %v5100_v4 = vor.u32 %v5099_v56, %v9993_v46 }
 0x270   : > { %v5132_v28 = vshrl.u32 %v4810_v41, 16  ;;  %v5141_v42 = vshll.u32 %v9845_v60, 16  ;;  %v5145_v27 = vshrl.u32 %v9845_v60, 16  ;;  %v5124_v21 = vor.u32 %v5123_v10, %v9996_v55 }
 0x271   : > { %7744 = vmatmul.mubr.msk.bf16.gmra.mrb[12].mxu1 %vm1895_vm11, %v7099_v30  ;;  %v5082_v30 = vsel %vm8591_vm10, %v5077_v63, %v5081_v52  ;;  %v5135_v2 = vshll.u32 %v4810_v41, 16  ;;  %v5165_v18 = vshll.u32 %v9859_v53, 16  ;;  %v5169_v51 = vshrl.u32 %v9859_v53, 16  ;;  %v4816_v63 = vld [vmem:[#allocation2 + $0xcc] sm:$0xf] }
 0x272   : > { %7747 = vmatprep.mubr.msk.bf16.mxu1 %vm1895_vm11, %v7100_v25  ;;  %v7101_v8 = vcombine.low %v5048_v32, %v5058_v24  ;;  %v7102_v50 = vcombine.low %v5072_v14, %v5082_v30  ;;  %v5091_v54 = vrot.slane %v5090_v9, 4  ;;  %v5105_v0 = vrot.slane %v5103_v6, 5 }
 0x273   : > { %v5114_v13 = vor.u32 %v5113_v19, %v5110_v7  ;;  %v5127_v56 = vshll.u32 %v9838_v48, 16  ;;  %v5156_v62 = vshrl.u32 %v4813_v11, 16  ;;  %v5159_v16 = vshll.u32 %v4813_v11, 16 }
 0x274   : > { %v5101_v33 = vrot.slane %v5100_v4, 4  ;;  %v5134_v60 = vrot.slane %v5132_v28, 4  ;;  %v5143_v44 = vrot.slane %v5141_v42, 5  ;;  %v5147_v25 = vrot.slane %v5145_v27, 4 }
 0x275   : > { %v5125_v36 = vrot.slane %v5124_v21, 4  ;;  %v5137_v52 = vrot.slane %v5135_v2, 5  ;;  %v5167_v10 = vrot.slane %v5165_v18, 5  ;;  %v5171_v53 = vrot.slane %v5169_v51, 4 }
 0x276   : > { %v5180_v41 = vshrl.u32 %v4816_v63, 16  ;;  %v5183_v32 = vshll.u32 %v4816_v63, 16  ;;  %v5189_v24 = vshll.u32 %v9887_v15, 16  ;;  %v5193_v48 = vshrl.u32 %v9887_v15, 16 }
 0x277   : > { %v5115_v9 = vrot.slane %v5114_v13, 4  ;;  %v5129_v6 = vrot.slane %v5127_v56, 5  ;;  %v5158_v14 = vrot.slane %v5156_v62, 4  ;;  %v5161_v30 = vrot.slane %v5159_v16, 5 }
 0x278   : > { %v5096_v7 = vsel %vm8591_vm10, %v5091_v54, %v9993_v46  ;;  %v5106_v19 = vsel %vm8591_vm10, %v5101_v33, %v5105_v0  ;;  %v5148_v4 = vor.u32 %v5147_v25, %v5143_v44  ;;  %v5138_v42 = vor.u32 %v5137_v52, %v5134_v60 }
 0x279   : > { %7748 = vmatmul.mubr.msk.bf16.gmra.mrb[16].mxu1 %vm1895_vm11, %v7101_v8  ;;  %v5130_v28 = vsel %vm8591_vm10, %v5125_v36, %v5129_v6  ;;  %v5151_v27 = vshll.u32 %v9857_v5, 16  ;;  %v5172_v11 = vor.u32 %v5171_v53, %v5167_v10  ;;  %v5182_v15 = vrot.slane %v5180_v41, 4 }
 0x27a   : > { %7751 = vmatprep.mubr.msk.bf16.mxu1 %vm1895_vm11, %v7102_v50  ;;  %v5185_v21 = vrot.slane %v5183_v32, 5  ;;  %v5191_v2 = vrot.slane %v5189_v24, 5  ;;  %v5195_v18 = vrot.slane %v5193_v48, 4  ;;  %v7103_v51 = vcombine.low %v5096_v7, %v5106_v19 }
 0x27b   : > { %v5120_v46 = vsel %vm8591_vm10, %v5115_v9, %v9996_v55  ;;  %v5162_v8 = vor.u32 %v5161_v30, %v5158_v14  ;;  %v5175_v50 = vshll.u32 %v9874_v38, 16  ;;  %v5149_v0 = vrot.slane %v5148_v4, 4 }
 0x27c   : > { %v7104_v54 = vcombine.low %v5120_v46, %v5130_v28  ;;  %v5153_v13 = vrot.slane %v5151_v27, 5  ;;  %v5173_v56 = vrot.slane %v5172_v11, 4  ;;  %v5139_v5 = vrot.slane %v5138_v42, 4  ;;  %v5498_v42 = vld [vmem:[#allocation2 + $0x24] sm:$0xe]  ;;  %v10604_v46 = vld [vmem:[#allocation9_spill] sm:$0xff] }
 0x27d   : > { %v5186_v62 = vor.u32 %v5185_v21, %v5182_v15  ;;  %v5196_v16 = vor.u32 %v5195_v18, %v5191_v2  ;;  %v5199_v63 = vshll.u32 %v9899_v12, 16  ;;  %v5163_v33 = vrot.slane %v5162_v8, 4 }
 0x27e   : > { %v5177_v60 = vrot.slane %v5175_v50, 5  ;;  %v5154_v55 = vsel %vm8591_vm10, %v5149_v0, %v5153_v13  ;;  %v5563_v25 = vrot.slane %v9544_v37, 5  ;;  %v5144_v36 = vsel %vm8591_vm10, %v5139_v5, %v5143_v44  ;;  %v5497_v44 = vld [vmem:[#allocation2 + $0x18] sm:$0xe]  ;;  %v10610_v13 = vld [vmem:[#allocation13_spill] sm:$0xff] }
 0x27f   : > { %v5187_v52 = vrot.slane %v5186_v62, 4  ;;  %v5197_v53 = vrot.slane %v5196_v16, 4  ;;  %v5201_v41 = vrot.slane %v5199_v63, 5  ;;  %v7105_v32 = vcombine.low %v5144_v36, %v5154_v55  ;;  %v10614_v55 = vld [vmem:[#allocation14_spill] sm:$0xff] }
 0x280   : > { %v5178_v38 = vsel %vm8591_vm10, %v5173_v56, %v5177_v60  ;;  %v5168_v12 = vsel %vm8591_vm10, %v5163_v33, %v5167_v10  ;;  %v5565_v48 = vrot.slane %v5563_v25, 4  ;;  %v5566_v6 = vrot.slane %v9554_v26, 5  ;;  %v10611_v56 = vld [vmem:[#allocation6_spill] sm:$0xff]  ;;  %v10613_v60 = vld [vmem:[#allocation7_spill] sm:$0xff] }
 0x281   : > { %7752 = vmatmul.mubr.msk.bf16.gmra.mrb[20].mxu1 %vm1895_vm11, %v7103_v51  ;;  %v7106_v24 = vcombine.low %v5168_v12, %v5178_v38  ;;  %v5192_v9 = vsel %vm8591_vm10, %v5187_v52, %v5191_v2  ;;  %v5202_v37 = vsel %vm8591_vm10, %v5197_v53, %v5201_v41  ;;  %v5570_v14 = vrot.slane %v9546_v1, 5  ;;  %v10601_v2 = vld [vmem:[#allocation8_spill] sm:$0xff]  ;;  %v10603_v51 = vld [vmem:[#allocation11_spill] sm:$0xff] }
 0x282   : > { %7755 = vmatprep.mubr.msk.bf16.mxu1 %vm1895_vm11, %v7104_v54  ;;  %v7107_v30 = vcombine.low %v5192_v9, %v5202_v37  ;;  %v7124_v7 = vrot.slane %v5497_v44, 9  ;;  %v5567_v10 = vsel %vm9297_vm2, %v5565_v48, %v5566_v6  ;;  %v7125_v26 = vrot.slane %v5498_v42, 9  ;;  %v10618_v41 = vld [vmem:[#allocation16_spill] sm:$0xff]  ;;  %v8234_v42 = vld [vmem:[%s10522_s7] sm:$0xff]  }
 0x283   : > { %v5572_v28 = vrot.slane %v5570_v14, 4  ;;  %v10597_v15 = vcombine.low %v9737_v34, %v9742_v39  ;;  %v10598_v21 = vcombine.low %v9750_v61, %v9757_v22  ;;  %v10602_v34 = vcombine.low %v9786_v40, %v10601_v2  ;;  %7831 = vmatprep.subr.bf16.mxu0 %v8234_v42 }
 0x284   : > { %v5564_v19 = vsel %vm9297_vm2, %v7124_v7, %v5563_v25  ;;  %v5571_v27 = vsel %vm9297_vm2, %v7125_v26, %v5570_v14  ;;  %v10605_v8 = vcombine.low %v10603_v51, %v10604_v46  ;;  %v10608_v50 = vcombine.low %v10606_v23, %v10607_v35  ;;  %v10177_v26 = vld [vmem:[%s10519_s4] ss:$0 sm:$0xff] }
 0x285   : > { %v7141_v4 = vcombine.low %v5564_v19, %v5567_v10  ;;  %v5574_v1 = vsel %vm9297_vm2, %v5572_v28, %v5573_v17  ;;  %v10609_v0 = vcombine.low %v9842_v20, %v9849_v29  ;;  %v10612_v5 = vcombine.low %v10610_v13, %v10611_v56  ;;  %v10616_v20 = vld [vmem:[#allocation15_spill] sm:$0xff] }
 0x286   : > { %v7142_v11 = vcombine.low %v5571_v27, %v5574_v1  ;;  %v10615_v38 = vcombine.low %v10613_v60, %v10614_v55  ;;  %v10617_v29 = vcombine.low %v9882_v45, %v10616_v20  ;;  %v10622_v44 = vcombine.low %v9928_v47, %v9950_v3 }
 0x289   : > { %7756 = vmatmul.mubr.msk.bf16.gmra.mrb[24].mxu1 %vm1895_vm11, %v7105_v32  ;;  %v10619_v32 = vld [vmem:[#allocation17_spill] sm:$0xff] }
 0x28a   : > { %7759 = vmatprep.mubr.msk.bf16.mxu1 %vm1895_vm11, %v7106_v24  ;;  %v10620_v12 = vcombine.low %v10618_v41, %v10619_v32  ;;  %v10621_v24 = vcombine.low %v9918_v43, %v9924_v57 }
 0x291   : > { %7760 = vmatmul.mubr.msk.bf16.gmra.mrb[28].mxu1 %vm1895_vm11, %v7107_v30 }
 0x292   : > { %7765 = vmatprep.mubr.msk.bf16.mxu1 %vm1895_vm11, %v7141_v4 }
 0x299   : > { %7766 = vmatmul.mubr.msk.bf16.vlgmr.msra.gmra.mrb[0].mxu1 %vm1895_vm11, %v7142_v11 }
 0x29a   : > { %7769 = vmatprep.mubr.msk.bf16.mxu1 %vm1895_vm11, %v10597_v15 }
 0x2a1   : > { %7770 = vmatmul.mubr.msk.bf16.gmra.mrb[4].mxu1 %vm1895_vm11, %v10598_v21 }
 0x2a2   : > { %7773 = vmatprep.mubr.msk.bf16.mxu1 %vm1895_vm11, %v10599_v59 }
 0x2a9   : > { %7774 = vmatmul.mubr.msk.bf16.gmra.mrb[8].mxu1 %vm1895_vm11, %v10600_v31 }
 0x2aa   : > { %7777 = vmatprep.mubr.msk.bf16.mxu1 %vm1895_vm11, %v10602_v34 }
 0x2ac   : > { %v7563_v39 = vpop.f32.mrb[32].mxu0 }
 0x2ad   : > { %v2699_v18 = vpop.f32.mrb[33].mxu0 }
 0x2ae   : > { %v7564_v61 = vpop.f32.mrb[34].mxu0 }
 0x2af   : > { %v2702_v22 = vpop.f32.mrb[35].mxu0 }
 0x2b1   : > { %7778 = vmatmul.mubr.msk.bf16.gmra.mrb[12].mxu1 %vm1895_vm11, %v10605_v8 }
 0x2b2   : > { %7781 = vmatprep.mubr.msk.bf16.mxu1 %vm1895_vm11, %v10608_v50 }
 0x2b4   : > { %v7567_v49 = vpop.f32.mrb[36].mxu0 }
 0x2b5   : > { %v2715_v58 = vpop.f32.mrb[37].mxu0 }
 0x2b6   : > { %v7568_v54 = vpop.f32.mrb[38].mxu0 }
 0x2b7   : > { %v10093_v40 = vpop.f32.mrb[39].mxu0 }
 0x2b9   : > { %7782 = vmatmul.mubr.msk.bf16.gmra.mrb[16].mxu1 %vm1895_vm11, %v10609_v0 }
 0x2ba   : > { %7785 = vmatprep.mubr.msk.bf16.mxu1 %vm1895_vm11, %v10612_v5 }
 0x2bc   : > { %v10103_v62 = vpop.f32.mrb[40].mxu0 }
 0x2bd   : > { %v10105_v16 = vpop.f32.mrb[41].mxu0 }
 0x2be   : > { %v10107_v63 = vpop.f32.mrb[42].mxu0 }
 0x2bf   : > { %v10109_v33 = vpop.f32.mrb[43].mxu0 }
 0x2c1   : > { %7786 = vmatmul.mubr.msk.bf16.gmra.mrb[20].mxu1 %vm1895_vm11, %v10615_v38 }
 0x2c2   : > { %7789 = vmatprep.mubr.msk.bf16.mxu1 %vm1895_vm11, %v10617_v29 }
 0x2c4   : > { %v10119_v25 = vpop.f32.mrb[44].mxu0 }
 0x2c5   : > { %v10121_v36 = vpop.f32.mrb[45].mxu0 }
 0x2c6   : > { %v10123_v52 = vpop.f32.mrb[46].mxu0 }
 0x2c7   : > { %v10125_v53 = vpop.f32.mrb[47].mxu0 }
 0x2c9   : > { %7790 = vmatmul.mubr.msk.bf16.gmra.mrb[24].mxu1 %vm1895_vm11, %v10620_v12 }
 0x2ca   : > { %7793 = vmatprep.mubr.msk.bf16.mxu1 %vm1895_vm11, %v10621_v24 }
 0x2cc   : > { %v10135_v45 = vpop.f32.mrb[48].mxu0 }
 0x2cd   : > { %v10137_v48 = vpop.f32.mrb[49].mxu0 }
 0x2ce   : > { %v10139_v9 = vpop.f32.mrb[50].mxu0 }
 0x2cf   : > { %v10141_v37 = vpop.f32.mrb[51].mxu0 }
 0x2d1   : > { %7794 = vmatmul.mubr.msk.bf16.gmra.mrb[28].mxu1 %vm1895_vm11, %v10622_v44 }
 0x2d4   : > { %v10147_v6 = vpop.f32.mrb[52].mxu0 }
 0x2d5   : > { %v10149_v14 = vpop.f32.mrb[53].mxu0 }
 0x2d6   : > { %v10151_v57 = vpop.f32.mrb[54].mxu0 }
 0x2d7   : > { %v10153_v43 = vpop.f32.mrb[55].mxu0 }
 0x2dc   : > { %v10155_v30 = vpop.f32.mrb[56].mxu0 }
 0x2dd   : > { %v10157_v7 = vpop.f32.mrb[57].mxu0 }
 0x2de   : > { %v10159_v10 = vpop.f32.mrb[58].mxu0 }
 0x2df   : > { %v10161_v19 = vpop.f32.mrb[59].mxu0 }
 0x2e4   : > { %v10163_v4 = vpop.f32.mrb[60].mxu0 }
 0x2e5   : > { %v10165_v47 = vpop.f32.mrb[61].mxu0 }
 0x2e6   : > { %v10167_v3 = vpop.f32.mrb[62].mxu0 }
 0x2e7   : > { %v10169_v28 = vpop.f32.mrb[63].mxu0 }
 0x36c   : > { %v7767_v17 = vpop.f32.mrb[0].mxu1 }
 0x36d   : > { %v7867_v1 = vadd.f32 %v7767_v17, %v7563_v39  ;;  %v5808_v27 = vpop.f32.mrb[1].mxu1 }
 0x36e   : > { %v7868_v11 = vadd.f32 %v5808_v27, %v2699_v18  ;;  %v7768_v15 = vpop.f32.mrb[2].mxu1 }
 0x36f   : > { %v5976_v21 = vadd.f32 %v7867_v1, %v10177_v26  ;;  %v7869_v59 = vadd.f32 %v7768_v15, %v7564_v61  ;;  %v5811_v31 = vpop.f32.mrb[3].mxu1 }
 0x370   : > { %v5974_v2 = vadd.f32 %v7868_v11, %v10177_v26  ;;  %v7870_v34 = vadd.f32 %v5811_v31, %v2702_v22  ;;  %v8235_v22 = vld [vmem:[%s10522_s7 + $0x8] sm:$0xff]  }
 0x371   : > { %v5977_v51 = vadd.f32 %v7869_v59, %v10177_v26  ;;  %v6008_v8 = vmax.f32 %v5976_v21, 0.0 }
 0x372   : > { %v5975_v46 = vadd.f32 %v7870_v34, %v10177_v26  ;;  %v6006_v35 = vmax.f32 %v5974_v2, 0.0 }
 0x373   : > { %v6009_v23 = vmax.f32 %v5977_v51, 0.0 }
 0x374   : > { %v6007_v50 = vmax.f32 %v5975_v46, 0.0  ;;  %v7771_v0 = vpop.f32.mrb[4].mxu1 }
 0x375   : > { %v6039_v39 = vpack.c.bf16 %v6009_v23, %v6008_v8  ;;  %v7871_v13 = vadd.f32 %v7771_v0, %v7567_v49  ;;  %v5824_v18 = vpop.f32.mrb[5].mxu1 }
 0x376   : > { %v6038_v56 = vpack.c.bf16 %v6007_v50, %v6006_v35  ;;  %v7872_v5 = vadd.f32 %v5824_v18, %v2715_v58  ;;  %v7772_v60 = vpop.f32.mrb[6].mxu1 }
 0x377   : > { %v5980_v61 = vadd.f32 %v7871_v13, %v10177_v26  ;;  %v7873_v55 = vadd.f32 %v7772_v60, %v7568_v54  ;;  %v5827_v38 = vpop.f32.mrb[7].mxu1 }
 0x378   : > { %v5978_v20 = vadd.f32 %v7872_v5, %v10177_v26  ;;  %v7874_v29 = vadd.f32 %v5827_v38, %v10093_v40  ;;  %7799 = vmatprep.mubr.msk.bf16.mxu0 %vm1895_vm11, %v6038_v56 }
 0x379   : > { %v5981_v49 = vadd.f32 %v7873_v55, %v10177_v26  ;;  %7800 = vmatmul.mubr.msk.bf16.vlgmr.msra.gmra.mrb[64].mxu0 %vm1895_vm11, %v6039_v39  ;;  %v6012_v41 = vmax.f32 %v5980_v61, 0.0 }
 0x37a   : > { %v5979_v58 = vadd.f32 %v7874_v29, %v10177_v26  ;;  %7832 = vmatpush3.bf16.msra.mxu0 %v8234_v42  ;;  %v6010_v32 = vmax.f32 %v5978_v20, 0.0 }
 0x37b   : > { %v6013_v54 = vmax.f32 %v5981_v49, 0.0  ;;  %7833 = vmatprep.subr.bf16.mxu0 %v8235_v22 }
 0x37c   : > { %v6011_v12 = vmax.f32 %v5979_v58, 0.0  ;;  %v7775_v24 = vpop.f32.mrb[8].mxu1 }
 0x37d   : > { %v6041_v44 = vpack.c.bf16 %v6013_v54, %v6012_v41  ;;  %v7875_v17 = vadd.f32 %v7775_v24, %v10103_v62  ;;  %v5840_v1 = vpop.f32.mrb[9].mxu1 }
 0x37e   : > { %v6040_v40 = vpack.c.bf16 %v6011_v12, %v6010_v32  ;;  %v7876_v27 = vadd.f32 %v5840_v1, %v10105_v16  ;;  %v7776_v11 = vpop.f32.mrb[10].mxu1  ;;  %7834 = vmatpush3.bf16.msra.mxu0 %v8235_v22 }
 0x37f   : > { %v5984_v15 = vadd.f32 %v7875_v17, %v10177_v26  ;;  %v7877_v21 = vadd.f32 %v7776_v11, %v10107_v63  ;;  %v5843_v42 = vpop.f32.mrb[11].mxu1 }
 0x380   : > { %v5982_v59 = vadd.f32 %v7876_v27, %v10177_v26  ;;  %v7878_v31 = vadd.f32 %v5843_v42, %v10109_v33  ;;  %7803 = vmatprep.mubr.msk.bf16.mxu0 %vm1895_vm11, %v6040_v40 }
 0x381   : > { %v5985_v2 = vadd.f32 %v7877_v21, %v10177_v26  ;;  %7804 = vmatmul.mubr.msk.bf16.gmra.mrb[68].mxu0 %vm1895_vm11, %v6041_v44  ;;  %v6016_v16 = vmax.f32 %v5984_v15, 0.0 }
 0x382   : > { %v5983_v62 = vadd.f32 %v7878_v31, %v10177_v26  ;;  %v6014_v51 = vmax.f32 %v5982_v59, 0.0 }
 0x383   : > { %v6017_v34 = vmax.f32 %v5985_v2, 0.0 }
 0x384   : > { %v6015_v46 = vmax.f32 %v5983_v62, 0.0  ;;  %v7779_v8 = vpop.f32.mrb[12].mxu1 }
 0x385   : > { %v6043_v23 = vpack.c.bf16 %v6017_v34, %v6016_v16  ;;  %v7879_v63 = vadd.f32 %v7779_v8, %v10119_v25  ;;  %v5856_v35 = vpop.f32.mrb[13].mxu1 }
 0x386   : > { %v6042_v50 = vpack.c.bf16 %v6015_v46, %v6014_v51  ;;  %v7880_v33 = vadd.f32 %v5856_v35, %v10121_v36  ;;  %v7780_v0 = vpop.f32.mrb[14].mxu1 }
 0x387   : > { %v5988_v39 = vadd.f32 %v7879_v63, %v10177_v26  ;;  %v7881_v13 = vadd.f32 %v7780_v0, %v10123_v52  ;;  %v5859_v18 = vpop.f32.mrb[15].mxu1 }
 0x388   : > { %v5986_v56 = vadd.f32 %v7880_v33, %v10177_v26  ;;  %v7882_v5 = vadd.f32 %v5859_v18, %v10125_v53  ;;  %7807 = vmatprep.mubr.msk.bf16.mxu0 %vm1895_vm11, %v6042_v50 }
 0x389   : > { %v5989_v60 = vadd.f32 %v7881_v13, %v10177_v26  ;;  %7808 = vmatmul.mubr.msk.bf16.gmra.mrb[72].mxu0 %vm1895_vm11, %v6043_v23  ;;  %v6020_v61 = vmax.f32 %v5988_v39, 0.0 }
 0x38a   : > { %v5987_v25 = vadd.f32 %v7882_v5, %v10177_v26  ;;  %v6018_v55 = vmax.f32 %v5986_v56, 0.0 }
 0x38b   : > { %v6021_v36 = vmax.f32 %v5989_v60, 0.0 }
 0x38c   : > { %v6019_v38 = vmax.f32 %v5987_v25, 0.0  ;;  %v7783_v22 = vpop.f32.mrb[16].mxu1 }
 0x38d   : > { %v6045_v20 = vpack.c.bf16 %v6021_v36, %v6020_v61  ;;  %v7883_v52 = vadd.f32 %v7783_v22, %v10135_v45  ;;  %v5872_v29 = vpop.f32.mrb[17].mxu1 }
 0x38e   : > { %v6044_v49 = vpack.c.bf16 %v6019_v38, %v6018_v55  ;;  %v7884_v53 = vadd.f32 %v5872_v29, %v10137_v48  ;;  %v7784_v58 = vpop.f32.mrb[18].mxu1 }
 0x38f   : > { %v5992_v41 = vadd.f32 %v7883_v52, %v10177_v26  ;;  %v7885_v54 = vadd.f32 %v7784_v58, %v10139_v9  ;;  %v5875_v32 = vpop.f32.mrb[19].mxu1 }
 0x390   : > { %v5990_v12 = vadd.f32 %v7884_v53, %v10177_v26  ;;  %v7886_v24 = vadd.f32 %v5875_v32, %v10141_v37  ;;  %7811 = vmatprep.mubr.msk.bf16.mxu0 %vm1895_vm11, %v6044_v49 }
 0x391   : > { %v5993_v44 = vadd.f32 %v7885_v54, %v10177_v26  ;;  %7812 = vmatmul.mubr.msk.bf16.gmra.mrb[76].mxu0 %vm1895_vm11, %v6045_v20  ;;  %v6024_v17 = vmax.f32 %v5992_v41, 0.0 }
 0x392   : > { %v5991_v45 = vadd.f32 %v7886_v24, %v10177_v26  ;;  %v6022_v1 = vmax.f32 %v5990_v12, 0.0 }
 0x393   : > { %v6025_v48 = vmax.f32 %v5993_v44, 0.0  ;;  %v8293_v44 = vld [vmem:[%s8489_s29 + $0x8] sm:$0xff]  }
 0x394   : > { %v6023_v40 = vmax.f32 %v5991_v45, 0.0  ;;  %v7787_v27 = vpop.f32.mrb[20].mxu1  ;;  %v724_v45 = vunpack.c.l.bf16 %v8293_v44 }
 0x395   : > { %v6047_v11 = vpack.c.bf16 %v6025_v48, %v6024_v17  ;;  %v7887_v9 = vadd.f32 %v7787_v27, %v10147_v6  ;;  %v5888_v15 = vpop.f32.mrb[21].mxu1  ;;  %v725_v27 = vunpack.c.h.bf16 %v8293_v44 }
 0x396   : > { %v6046_v21 = vpack.c.bf16 %v6023_v40, %v6022_v1  ;;  %v7888_v37 = vadd.f32 %v5888_v15, %v10149_v14  ;;  %v7788_v42 = vpop.f32.mrb[22].mxu1 }
 0x397   : > { %v5996_v59 = vadd.f32 %v7887_v9, %v10177_v26  ;;  %v7889_v31 = vadd.f32 %v7788_v42, %v10151_v57  ;;  %v5891_v2 = vpop.f32.mrb[23].mxu1 }
 0x398   : > { %v5994_v62 = vadd.f32 %v7888_v37, %v10177_v26  ;;  %v7890_v16 = vadd.f32 %v5891_v2, %v10153_v43  ;;  %7815 = vmatprep.mubr.msk.bf16.mxu0 %vm1895_vm11, %v6046_v21 }
 0x399   : > { %v5997_v34 = vadd.f32 %v7889_v31, %v10177_v26  ;;  %7816 = vmatmul.mubr.msk.bf16.gmra.mrb[80].mxu0 %vm1895_vm11, %v6047_v11  ;;  %v6028_v51 = vmax.f32 %v5996_v59, 0.0 }
 0x39a   : > { %v5995_v6 = vadd.f32 %v7890_v16, %v10177_v26  ;;  %v6026_v46 = vmax.f32 %v5994_v62, 0.0 }
 0x39b   : > { %v6029_v14 = vmax.f32 %v5997_v34, 0.0 }
 0x39c   : > { %v6027_v8 = vmax.f32 %v5995_v6, 0.0  ;;  %v7791_v23 = vpop.f32.mrb[24].mxu1 }
 0x39d   : > { %v6049_v63 = vpack.c.bf16 %v6029_v14, %v6028_v51  ;;  %v7891_v57 = vadd.f32 %v7791_v23, %v10155_v30  ;;  %v5904_v35 = vpop.f32.mrb[25].mxu1  ;;  %v8295_v51 = vld [vmem:[%s8489_s29 + $0x18] sm:$0xff]   ;;  %v8296_v23 = vld [vmem:[%s8489_s29 + $0x10] sm:$0xff]  }
 0x39e   : > { %v6048_v50 = vpack.c.bf16 %v6027_v8, %v6026_v46  ;;  %v7892_v43 = vadd.f32 %v5904_v35, %v10157_v7  ;;  %v7792_v33 = vpop.f32.mrb[26].mxu1  ;;  %v728_v14 = vunpack.c.l.bf16 %v8295_v51 }
 0x39f   : > { %v6000_v0 = vadd.f32 %v7891_v57, %v10177_v26  ;;  %v7893_v39 = vadd.f32 %v7792_v33, %v10159_v10  ;;  %v5907_v13 = vpop.f32.mrb[27].mxu1 }
 0x3a0   : > { %v5998_v18 = vadd.f32 %v7892_v43, %v10177_v26  ;;  %v7894_v56 = vadd.f32 %v5907_v13, %v10161_v19  ;;  %7819 = vmatprep.mubr.msk.bf16.mxu0 %vm1895_vm11, %v6048_v50  ;;  %v729_v43 = vunpack.c.h.bf16 %v8295_v51  ;;  %v727_v13 = vunpack.c.h.bf16 %v8296_v23 }
 0x3a1   : > { %v6001_v5 = vadd.f32 %v7893_v39, %v10177_v26  ;;  %7820 = vmatmul.mubr.msk.bf16.gmra.mrb[84].mxu0 %vm1895_vm11, %v6049_v63  ;;  %v6032_v60 = vmax.f32 %v6000_v0, 0.0  ;;  %v726_v63 = vunpack.c.l.bf16 %v8296_v23 }
 0x3a2   : > { %v5999_v30 = vadd.f32 %v7894_v56, %v10177_v26  ;;  %v6030_v25 = vmax.f32 %v5998_v18, 0.0 }
 0x3a3   : > { %v6033_v7 = vmax.f32 %v6001_v5, 0.0 }
 0x3a4   : > { %v6031_v61 = vmax.f32 %v5999_v30, 0.0  ;;  %v7795_v36 = vpop.f32.mrb[28].mxu1 }
 0x3a5   : > { %v6051_v55 = vpack.c.bf16 %v6033_v7, %v6032_v60  ;;  %v7895_v10 = vadd.f32 %v7795_v36, %v10163_v4  ;;  %v5920_v38 = vpop.f32.mrb[29].mxu1 }
 0x3a6   : > { %v6050_v22 = vpack.c.bf16 %v6031_v61, %v6030_v25  ;;  %v7896_v19 = vadd.f32 %v5920_v38, %v10165_v47  ;;  %v7796_v20 = vpop.f32.mrb[30].mxu1 }
 0x3a7   : > { %v6004_v52 = vadd.f32 %v7895_v10, %v10177_v26  ;;  %v7897_v29 = vadd.f32 %v7796_v20, %v10167_v3  ;;  %v5923_v49 = vpop.f32.mrb[31].mxu1  ;;  %v8297_v10 = vld [vmem:[%s8489_s29 + $0x28] sm:$0xff]   ;;  %v8298_v20 = vld [vmem:[%s8489_s29 + $0x20] sm:$0xff]  }
 0x3a8   : > { %v6002_v53 = vadd.f32 %v7896_v19, %v10177_v26  ;;  %v7898_v58 = vadd.f32 %v5923_v49, %v10169_v28  ;;  %7823 = vmatprep.mubr.msk.bf16.mxu0 %vm1895_vm11, %v6050_v22  ;;  %v10259_v28 = vld [vmem:[%s10521_s6] ss:$0 sm:$0xff]  ;;  %v732_v38 = vunpack.c.l.bf16 %v8297_v10 }
 0x3a9   : > { %v6005_v4 = vadd.f32 %v7897_v29, %v10177_v26  ;;  %7824 = vmatmul.mubr.msk.bf16.gmra.mrb[88].mxu0 %vm1895_vm11, %v6051_v55  ;;  %v6036_v41 = vmax.f32 %v6004_v52, 0.0  ;;  %v730_v52 = vunpack.c.l.bf16 %v8298_v20 }
 0x3aa   : > { %v6003_v47 = vadd.f32 %v7898_v58, %v10177_v26  ;;  %v6034_v3 = vmax.f32 %v6002_v53, 0.0  ;;  %v8294_v26 = vld [vmem:[%s8489_s29] sm:$0xff]   ;;  %v733_v58 = vunpack.c.h.bf16 %v8297_v10 }
 0x3ab   : > { %v6037_v54 = vmax.f32 %v6005_v4, 0.0  ;;  %v722_v17 = vunpack.c.l.bf16 %v8294_v26  ;;  %v723_v11 = vunpack.c.h.bf16 %v8294_v26 }
 0x3ac   : > { %v6035_v32 = vmax.f32 %v6003_v47, 0.0 }
 0x3ad   : > { %v6053_v12 = vpack.c.bf16 %v6037_v54, %v6036_v41  ;;  %v731_v54 = vunpack.c.h.bf16 %v8298_v20 }
 0x3ae   : > { %v6052_v24 = vpack.c.bf16 %v6035_v32, %v6034_v3 }
 0x3b0   : > { %7827 = vmatprep.mubr.msk.bf16.mxu0 %vm1895_vm11, %v6052_v24 }
 0x3b1   : > { %7828 = vmatmul.mubr.msk.bf16.gmra.mrb[92].mxu0 %vm1895_vm11, %v6053_v12 }
 0x44c   : > { %v7801_v48 = vpop.f32.mrb[64].mxu0 }
 0x44d   : > { %v6156_v1 = vadd.f32 %v7801_v48, %v10259_v28  ;;  %v6147_v40 = vpop.f32.mrb[65].mxu0 }
 0x44e   : > { %v6148_v9 = vadd.f32 %v10259_v28, %v6147_v40  ;;  %v7802_v15 = vpop.f32.mrb[66].mxu0  ;;  %v8299_v40 = vld [vmem:[%s8489_s29 + $0x38] sm:$0xff]  }
 0x44f   : > { %v6276_v21 = vadd.f32 %v6156_v1, %v724_v45  ;;  %v6159_v37 = vadd.f32 %v7802_v15, %v10259_v28  ;;  %v6150_v42 = vpop.f32.mrb[67].mxu0  ;;  %v8300_v15 = vld [vmem:[%s8489_s29 + $0x30] sm:$0xff]  }
 0x450   : > { %v6274_v59 = vadd.f32 %v6148_v9, %v722_v17  ;;  %v6151_v31 = vadd.f32 %v10259_v28, %v6150_v42 }
 0x451   : > { %v6308_v2 = vmax.f32 %v6276_v21, 0.0  ;;  %v6277_v62 = vadd.f32 %v6159_v37, %v725_v27  ;;  %v736_v27 = vunpack.c.l.bf16 %v8299_v40  ;;  %v734_v21 = vunpack.c.l.bf16 %v8300_v15 }
 0x452   : > { %v6306_v16 = vmax.f32 %v6274_v59, 0.0  ;;  %v6275_v34 = vadd.f32 %v6151_v31, %v723_v11  ;;  %v737_v31 = vunpack.c.h.bf16 %v8299_v40 }
 0x453   : > { %6340 = vst.msk [vmem:[%s10269_s27 + $0x10] sm:$0xff] %vm480_vm0, %v6308_v2  ;;  %v6309_v6 = vmax.f32 %v6277_v62, 0.0 }
 0x454   : > { %6338 = vst.msk [vmem:[%s10269_s27] sm:$0xff] %vm480_vm0, %v6306_v16  ;;  %v6307_v46 = vmax.f32 %v6275_v34, 0.0  ;;  %v7805_v8 = vpop.f32.mrb[68].mxu0  ;;  %v735_v34 = vunpack.c.h.bf16 %v8300_v15 }
 0x455   : > { %6341 = vst.msk [vmem:[%s10269_s27 + $0x18] sm:$0xff] %vm480_vm0, %v6309_v6  ;;  %v6371_v57 = vpack.c.bf16 %v6309_v6, %v6308_v2  ;;  %v6172_v35 = vadd.f32 %v7805_v8, %v10259_v28  ;;  %v6163_v50 = vpop.f32.mrb[69].mxu0 }
 0x456   : > { %6339 = vst.msk [vmem:[%s10269_s27 + $0x8] sm:$0xff] %vm480_vm0, %v6307_v46  ;;  %v6370_v33 = vpack.c.bf16 %v6307_v46, %v6306_v16  ;;  %v6164_v0 = vadd.f32 %v10259_v28, %v6163_v50  ;;  %v7806_v39 = vpop.f32.mrb[70].mxu0 }
 0x457   : > { %v6280_v18 = vadd.f32 %v6172_v35, %v728_v14  ;;  %v6175_v56 = vadd.f32 %v7806_v39, %v10259_v28  ;;  %v6166_v5 = vpop.f32.mrb[71].mxu0 }
 0x458   : > { %v6278_v30 = vadd.f32 %v6164_v0, %v726_v63  ;;  %v6167_v60 = vadd.f32 %v10259_v28, %v6166_v5  ;;  %7835 = vmatprep.mubr.msk.bf16.mxu0 %vm480_vm0, %v6370_v33 }
 0x459   : > { %v6312_v7 = vmax.f32 %v6280_v18, 0.0  ;;  %v6281_v25 = vadd.f32 %v6175_v56, %v729_v43  ;;  %7836 = vmatmul.mubr.msk.bf16.vlgmr.msra.gmra.mrb[96].mxu0 %vm480_vm0, %v6371_v57  ;;  %v8301_v43 = vld [vmem:[%s8489_s29 + $0x48] sm:$0xff]  }
 0x45a   : > { %v6310_v61 = vmax.f32 %v6278_v30, 0.0  ;;  %v6279_v36 = vadd.f32 %v6167_v60, %v727_v13  ;;  %v740_v33 = vunpack.c.l.bf16 %v8301_v43  ;;  %v8302_v13 = vld [vmem:[%s8489_s29 + $0x40] sm:$0xff]   ;;  %v741_v60 = vunpack.c.h.bf16 %v8301_v43 }
 0x45b   : > { %6344 = vst.msk [vmem:[%s10269_s27 + $0x30] sm:$0xff] %vm480_vm0, %v6312_v7  ;;  %v6313_v55 = vmax.f32 %v6281_v25, 0.0  ;;  %v738_v18 = vunpack.c.l.bf16 %v8302_v13 }
 0x45c   : > { %6342 = vst.msk [vmem:[%s10269_s27 + $0x20] sm:$0xff] %vm480_vm0, %v6310_v61  ;;  %v6311_v22 = vmax.f32 %v6279_v36, 0.0  ;;  %v7809_v19 = vpop.f32.mrb[72].mxu0  ;;  %v739_v36 = vunpack.c.h.bf16 %v8302_v13 }
 0x45d   : > { %6345 = vst.msk [vmem:[%s10269_s27 + $0x38] sm:$0xff] %vm480_vm0, %v6313_v55  ;;  %v6373_v29 = vpack.c.bf16 %v6313_v55, %v6312_v7  ;;  %v6188_v49 = vadd.f32 %v7809_v19, %v10259_v28  ;;  %v6179_v53 = vpop.f32.mrb[73].mxu0 }
 0x45e   : > { %6343 = vst.msk [vmem:[%s10269_s27 + $0x28] sm:$0xff] %vm480_vm0, %v6311_v22  ;;  %v6372_v4 = vpack.c.bf16 %v6311_v22, %v6310_v61  ;;  %v6180_v47 = vadd.f32 %v10259_v28, %v6179_v53  ;;  %v7810_v41 = vpop.f32.mrb[74].mxu0 }
 0x45f   : > { %v6284_v3 = vadd.f32 %v6188_v49, %v732_v38  ;;  %v6191_v32 = vadd.f32 %v7810_v41, %v10259_v28  ;;  %v6182_v12 = vpop.f32.mrb[75].mxu0 }
 0x460   : > { %v6282_v24 = vadd.f32 %v6180_v47, %v730_v52  ;;  %v6183_v44 = vadd.f32 %v10259_v28, %v6182_v12  ;;  %7839 = vmatprep.mubr.msk.bf16.mxu0 %vm480_vm0, %v6372_v4 }
 0x461   : > { %v6316_v45 = vmax.f32 %v6284_v3, 0.0  ;;  %v6285_v26 = vadd.f32 %v6191_v32, %v733_v58  ;;  %7840 = vmatmul.mubr.msk.bf16.gmra.mrb[100].mxu0 %vm480_vm0, %v6373_v29  ;;  %v8303_v58 = vld [vmem:[%s8489_s29 + $0x58] sm:$0xff]  }
 0x462   : > { %v6314_v17 = vmax.f32 %v6282_v24, 0.0  ;;  %v6283_v48 = vadd.f32 %v6183_v44, %v731_v54  ;;  %v744_v4 = vunpack.c.l.bf16 %v8303_v58  ;;  %v8304_v54 = vld [vmem:[%s8489_s29 + $0x50] sm:$0xff]   ;;  %v745_v44 = vunpack.c.h.bf16 %v8303_v58 }
 0x463   : > { %6348 = vst.msk [vmem:[%s10269_s27 + $0x50] sm:$0xff] %vm480_vm0, %v6316_v45  ;;  %v6317_v1 = vmax.f32 %v6285_v26, 0.0  ;;  %v742_v3 = vunpack.c.l.bf16 %v8304_v54 }
 0x464   : > { %6346 = vst.msk [vmem:[%s10269_s27 + $0x40] sm:$0xff] %vm480_vm0, %v6314_v17  ;;  %v6315_v11 = vmax.f32 %v6283_v48, 0.0  ;;  %v7813_v9 = vpop.f32.mrb[76].mxu0  ;;  %v743_v48 = vunpack.c.h.bf16 %v8304_v54 }
 0x465   : > { %6349 = vst.msk [vmem:[%s10269_s27 + $0x58] sm:$0xff] %vm480_vm0, %v6317_v1  ;;  %v6375_v37 = vpack.c.bf16 %v6317_v1, %v6316_v45  ;;  %v6204_v42 = vadd.f32 %v7813_v9, %v10259_v28  ;;  %v6195_v59 = vpop.f32.mrb[77].mxu0 }
 0x466   : > { %6347 = vst.msk [vmem:[%s10269_s27 + $0x48] sm:$0xff] %vm480_vm0, %v6315_v11  ;;  %v6374_v2 = vpack.c.bf16 %v6315_v11, %v6314_v17  ;;  %v6196_v62 = vadd.f32 %v10259_v28, %v6195_v59  ;;  %v7814_v16 = vpop.f32.mrb[78].mxu0 }
 0x467   : > { %v6288_v6 = vadd.f32 %v6204_v42, %v736_v27  ;;  %v6207_v51 = vadd.f32 %v7814_v16, %v10259_v28  ;;  %v6198_v14 = vpop.f32.mrb[79].mxu0 }
 0x468   : > { %v6286_v46 = vadd.f32 %v6196_v62, %v734_v21  ;;  %v6199_v8 = vadd.f32 %v10259_v28, %v6198_v14  ;;  %7843 = vmatprep.mubr.msk.bf16.mxu0 %vm480_vm0, %v6374_v2 }
 0x469   : > { %v6320_v23 = vmax.f32 %v6288_v6, 0.0  ;;  %v6289_v63 = vadd.f32 %v6207_v51, %v737_v31  ;;  %7844 = vmatmul.mubr.msk.bf16.gmra.mrb[104].mxu0 %vm480_vm0, %v6375_v37  ;;  %v8305_v31 = vld [vmem:[%s8489_s29 + $0x68] sm:$0xff]  }
 0x46a   : > { %v6318_v57 = vmax.f32 %v6286_v46, 0.0  ;;  %v6287_v35 = vadd.f32 %v6199_v8, %v735_v34  ;;  %v748_v2 = vunpack.c.l.bf16 %v8305_v31  ;;  %v8306_v34 = vld [vmem:[%s8489_s29 + $0x60] sm:$0xff]   ;;  %v749_v8 = vunpack.c.h.bf16 %v8305_v31 }
 0x46b   : > { %6352 = vst.msk [vmem:[%s10269_s27 + $0x70] sm:$0xff] %vm480_vm0, %v6320_v23  ;;  %v6321_v50 = vmax.f32 %v6289_v63, 0.0  ;;  %v746_v6 = vunpack.c.l.bf16 %v8306_v34 }
 0x46c   : > { %6350 = vst.msk [vmem:[%s10269_s27 + $0x60] sm:$0xff] %vm480_vm0, %v6318_v57  ;;  %v6319_v0 = vmax.f32 %v6287_v35, 0.0  ;;  %v7817_v39 = vpop.f32.mrb[80].mxu0  ;;  %v747_v35 = vunpack.c.h.bf16 %v8306_v34 }
 0x46d   : > { %6353 = vst.msk [vmem:[%s10269_s27 + $0x78] sm:$0xff] %vm480_vm0, %v6321_v50  ;;  %v6377_v56 = vpack.c.bf16 %v6321_v50, %v6320_v23  ;;  %v6220_v5 = vadd.f32 %v7817_v39, %v10259_v28  ;;  %v6211_v30 = vpop.f32.mrb[81].mxu0 }
 0x46e   : > { %6351 = vst.msk [vmem:[%s10269_s27 + $0x68] sm:$0xff] %vm480_vm0, %v6319_v0  ;;  %v6376_v7 = vpack.c.bf16 %v6319_v0, %v6318_v57  ;;  %v6212_v25 = vadd.f32 %v10259_v28, %v6211_v30  ;;  %v7818_v61 = vpop.f32.mrb[82].mxu0 }
 0x46f   : > { %v6292_v55 = vadd.f32 %v6220_v5, %v740_v33  ;;  %v6223_v10 = vadd.f32 %v7818_v61, %v10259_v28  ;;  %v6214_v38 = vpop.f32.mrb[83].mxu0 }
 0x470   : > { %v6290_v22 = vadd.f32 %v6212_v25, %v738_v18  ;;  %v6215_v19 = vadd.f32 %v10259_v28, %v6214_v38  ;;  %7847 = vmatprep.mubr.msk.bf16.mxu0 %vm480_vm0, %v6376_v7 }
 0x471   : > { %v6324_v20 = vmax.f32 %v6292_v55, 0.0  ;;  %v6293_v52 = vadd.f32 %v6223_v10, %v741_v60  ;;  %7848 = vmatmul.mubr.msk.bf16.gmra.mrb[108].mxu0 %vm480_vm0, %v6377_v56  ;;  %v8307_v60 = vld [vmem:[%s8489_s29 + $0x78] sm:$0xff]  }
 0x472   : > { %v6322_v29 = vmax.f32 %v6290_v22, 0.0  ;;  %v6291_v49 = vadd.f32 %v6215_v19, %v739_v36  ;;  %v752_v7 = vunpack.c.l.bf16 %v8307_v60  ;;  %v8308_v36 = vld [vmem:[%s8489_s29 + $0x70] sm:$0xff]   ;;  %v753_v19 = vunpack.c.h.bf16 %v8307_v60  ;;  %s7248_s29 = sshll.u32 %s8448_s13, 12  ;;  %s8374_s13 = smov [#allocation3]  }
 0x473   : > { %6356 = vst.msk [vmem:[%s10269_s27 + $0x90] sm:$0xff] %vm480_vm0, %v6324_v20  ;;  %v6325_v53 = vmax.f32 %v6293_v52, 0.0  ;;  %v750_v55 = vunpack.c.l.bf16 %v8308_v36  ;;  %s10397_s16 = scalar_lea.hbm %s10523_s8, %s7248_s29  ;;  %s8313_s24 = sshll.u32 %s8374_s13, 4  ;;  %s8314_s24 = int_to_ptr.vmem [resolvable:$false] %s8313_s24 }
 0x474   : > { %6354 = vst.msk [vmem:[%s10269_s27 + $0x80] sm:$0xff] %vm480_vm0, %v6322_v29  ;;  %v6323_v47 = vmax.f32 %v6291_v49, 0.0  ;;  %v7821_v41 = vpop.f32.mrb[84].mxu0  ;;  %v751_v49 = vunpack.c.h.bf16 %v8308_v36  ;;  %s8315_s26 = scalar_lea.vmem %s8314_s24, 8192  ;;  %p8316_p0 = scmp.lt.s32.totalorder %s10400_s17, %s8314_s24 }
 0x475   : > { %6357 = vst.msk [vmem:[%s10269_s27 + $0x98] sm:$0xff] %vm480_vm0, %v6325_v53  ;;  %v6379_v32 = vpack.c.bf16 %v6325_v53, %v6324_v20  ;;  %v6236_v12 = vadd.f32 %v7821_v41, %v10259_v28  ;;  %v6227_v24 = vpop.f32.mrb[85].mxu0  ;;  %p8317_p1 = scmp.lt.s32.totalorder %s8315_s26, %s8309_s23 }
 0x476   : > { %6355 = vst.msk [vmem:[%s10269_s27 + $0x88] sm:$0xff] %vm480_vm0, %v6323_v47  ;;  %v6378_v45 = vpack.c.bf16 %v6323_v47, %v6322_v29  ;;  %v6228_v26 = vadd.f32 %v10259_v28, %v6227_v24  ;;  %v7822_v17 = vpop.f32.mrb[86].mxu0 }
 0x477   : > { %v6296_v1 = vadd.f32 %v6236_v12, %v744_v4  ;;  %v6239_v40 = vadd.f32 %v7822_v17, %v10259_v28  ;;  %v6230_v27 = vpop.f32.mrb[87].mxu0  ;;  %p8318_p2 = por %p8317_p1, %p8316_p0 }
 0x478   : > { %v6294_v11 = vadd.f32 %v6228_v26, %v742_v3  ;;  %v6231_v9 = vadd.f32 %v10259_v28, %v6230_v27  ;;  %7851 = vmatprep.mubr.msk.bf16.mxu0 %vm480_vm0, %v6378_v45 }
 0x479   : > { %v6328_v15 = vmax.f32 %v6296_v1, 0.0  ;;  %v6297_v21 = vadd.f32 %v6239_v40, %v745_v44  ;;  %7852 = vmatmul.mubr.msk.bf16.gmra.mrb[112].mxu0 %vm480_vm0, %v6379_v32  ;;  %p8319_p3 = pnand %p8318_p2, %p8312_p13 }
 0x47a   : > { %v6326_v37 = vmax.f32 %v6294_v11, 0.0  ;;  %v6295_v42 = vadd.f32 %v6231_v9, %v743_v48 }
 0x47b   : > { %6360 = vst.msk [vmem:[%s10269_s27 + $0xb0] sm:$0xff] %vm480_vm0, %v6328_v15  ;;  %v6329_v59 = vmax.f32 %v6297_v21, 0.0 }
 0x47c   : > { %6358 = vst.msk [vmem:[%s10269_s27 + $0xa0] sm:$0xff] %vm480_vm0, %v6326_v37  ;;  %v6327_v62 = vmax.f32 %v6295_v42, 0.0  ;;  %v7825_v16 = vpop.f32.mrb[88].mxu0 }
 0x47d   : > { %6361 = vst.msk [vmem:[%s10269_s27 + $0xb8] sm:$0xff] %vm480_vm0, %v6329_v59  ;;  %v6381_v51 = vpack.c.bf16 %v6329_v59, %v6328_v15  ;;  %v6252_v14 = vadd.f32 %v7825_v16, %v10259_v28  ;;  %v6243_v46 = vpop.f32.mrb[89].mxu0 }
 0x47e   : > { %6359 = vst.msk [vmem:[%s10269_s27 + $0xa8] sm:$0xff] %vm480_vm0, %v6327_v62  ;;  %v6380_v23 = vpack.c.bf16 %v6327_v62, %v6326_v37  ;;  %v6244_v63 = vadd.f32 %v10259_v28, %v6243_v46  ;;  %v7826_v57 = vpop.f32.mrb[90].mxu0 }
 0x47f   : > { %v6300_v50 = vadd.f32 %v6252_v14, %v748_v2  ;;  %v6255_v43 = vadd.f32 %v7826_v57, %v10259_v28  ;;  %v6246_v33 = vpop.f32.mrb[91].mxu0 }
 0x480   : > { %v6298_v0 = vadd.f32 %v6244_v63, %v746_v6  ;;  %v6247_v39 = vadd.f32 %v10259_v28, %v6246_v33  ;;  %7855 = vmatprep.mubr.msk.bf16.mxu0 %vm480_vm0, %v6380_v23 }
 0x481   : > { %v6332_v13 = vmax.f32 %v6300_v50, 0.0  ;;  %v6301_v18 = vadd.f32 %v6255_v43, %v749_v8  ;;  %7856 = vmatmul.mubr.msk.bf16.gmra.mrb[116].mxu0 %vm480_vm0, %v6381_v51 }
 0x482   : > { %v6330_v56 = vmax.f32 %v6298_v0, 0.0  ;;  %v6299_v5 = vadd.f32 %v6247_v39, %v747_v35 }
 0x483   : > { %6364 = vst.msk [vmem:[%s10269_s27 + $0xd0] sm:$0xff] %vm480_vm0, %v6332_v13  ;;  %v6333_v30 = vmax.f32 %v6301_v18, 0.0 }
 0x484   : > { %6362 = vst.msk [vmem:[%s10269_s27 + $0xc0] sm:$0xff] %vm480_vm0, %v6330_v56  ;;  %v6331_v25 = vmax.f32 %v6299_v5, 0.0  ;;  %v7829_v61 = vpop.f32.mrb[92].mxu0 }
 0x485   : > { %6365 = vst.msk [vmem:[%s10269_s27 + $0xd8] sm:$0xff] %vm480_vm0, %v6333_v30  ;;  %v6383_v10 = vpack.c.bf16 %v6333_v30, %v6332_v13  ;;  %v6268_v38 = vadd.f32 %v7829_v61, %v10259_v28  ;;  %v6259_v22 = vpop.f32.mrb[93].mxu0 }
 0x486   : > { %6363 = vst.msk [vmem:[%s10269_s27 + $0xc8] sm:$0xff] %vm480_vm0, %v6331_v25  ;;  %v6382_v20 = vpack.c.bf16 %v6331_v25, %v6330_v56  ;;  %v6260_v52 = vadd.f32 %v10259_v28, %v6259_v22  ;;  %v7830_v29 = vpop.f32.mrb[94].mxu0 }
 0x487   : > { %v6304_v53 = vadd.f32 %v6268_v38, %v752_v7  ;;  %v6271_v58 = vadd.f32 %v7830_v29, %v10259_v28  ;;  %v6262_v4 = vpop.f32.mrb[95].mxu0 }
 0x488   : > { %v6302_v47 = vadd.f32 %v6260_v52, %v750_v55  ;;  %v6263_v41 = vadd.f32 %v10259_v28, %v6262_v4  ;;  %7859 = vmatprep.mubr.msk.bf16.mxu0 %vm480_vm0, %v6382_v20 }
 0x489   : > { %v6336_v54 = vmax.f32 %v6304_v53, 0.0  ;;  %v6305_v3 = vadd.f32 %v6271_v58, %v753_v19  ;;  %7860 = vmatmul.mubr.msk.bf16.gmra.mrb[120].mxu0 %vm480_vm0, %v6383_v10 }
 0x48a   : > { %v6334_v32 = vmax.f32 %v6302_v47, 0.0  ;;  %v6303_v12 = vadd.f32 %v6263_v41, %v751_v49 }
 0x48b   : > { %6368 = vst.msk [vmem:[%s10269_s27 + $0xf0] sm:$0xff] %vm480_vm0, %v6336_v54  ;;  %v6337_v24 = vmax.f32 %v6305_v3, 0.0 }
 0x48c   : > { %6366 = vst.msk [vmem:[%s10269_s27 + $0xe0] sm:$0xff] %vm480_vm0, %v6334_v32  ;;  %v6335_v44 = vmax.f32 %v6303_v12, 0.0 }
 0x48d   : > { %6369 = vst.msk [vmem:[%s10269_s27 + $0xf8] sm:$0xff] %vm480_vm0, %v6337_v24  ;;  %v6385_v28 = vpack.c.bf16 %v6337_v24, %v6336_v54 }
 0x48e   : > { %6367 = vst.msk [vmem:[%s10269_s27 + $0xe8] sm:$0xff] %vm480_vm0, %v6335_v44  ;;  %v6384_v45 = vpack.c.bf16 %v6335_v44, %v6334_v32 }
 0x490   : > { %7863 = vmatprep.mubr.msk.bf16.mxu0 %vm480_vm0, %v6384_v45 }
 0x491   : > { %7864 = vmatmul.mubr.msk.bf16.gmra.mrb[124].mxu0 %vm480_vm0, %v6385_v28 }
 0x492   : > { %8322 = shalt.err (!%p8319_p3)
}
 0x493   : > { %s8323_s22 = scalar_lea.hbm %s10397_s16, 4096  ;;  %s8327_s28 = scalar_lea.hbm %s10523_s8, 8192 }
 0x494   : > { %p8324_p4 = scmp.ne.s32.totalorder %s10397_s16, %s8323_s22  ;;  %p8328_p9 = scmp.lt.u32.totalorder %s10397_s16, %s10523_s8 }
 0x495   : > { %p8329_p10 = scmp.lt.u32.totalorder %s8327_s28, %s8323_s22  ;;  %p8331_p12 = scmp.lt.u32.totalorder %s8323_s22, %s10397_s16 }
 0x496   : > { %p8325_p7 = pnand %p8324_p4, %p8465_p5 }
 0x497   : > { %p8330_p11 = por %p8329_p10, %p8328_p9 }
 0x498   : > { %p8326_p8 = pneg %p8325_p7 }
 0x499   : > { %p8332_p13 = por %p8331_p12, %p8330_p11 }
 0x49b   : > { %p8333_p0 = pnand %p8332_p13, %p8326_p8 }
 0x49d   : > { %8336 = shalt.err (!%p8333_p0)
}
 0x49e   : > { %s8375_s23 = smov 128   ;;  %s8376_s24 = smov 8   ;;  %vm6611_vm0 = vcmask 130048  }
 0x49f   : > { %8133 = dma.vmem_to_hbm [thread:$0]  (%p8465_p5), %s10400_s17, 4096, %s10397_s16, %s10404_s21, %s8375_s23, %s8375_s23, %s8376_s24  }
 0x4a0   : > { %s7215_s26 = sshll.u32 %s8483_s25, 8 }
 0x4a1   : > { %s10432_s14 = scalar_lea.vmem %s10524_s9, %s7215_s26 }
 0x52c   : > { %v7837_v26 = vpop.f32.mrb[96].mxu0 }
 0x52d   : > { %6614 = vst.msk [vmem:[%s10432_s14 + $0x10] sm:$0xff] %vm6611_vm0, %v7837_v26  ;;  %v6484_v17 = vpop.f32.mrb[97].mxu0 }
 0x52e   : > { %6612 = vst.msk [vmem:[%s10432_s14] sm:$0xff] %vm6611_vm0, %v6484_v17  ;;  %v7838_v48 = vpop.f32.mrb[98].mxu0 }
 0x52f   : > { %6615 = vst.msk [vmem:[%s10432_s14 + $0x18] sm:$0xff] %vm6611_vm0, %v7838_v48  ;;  %v6487_v1 = vpop.f32.mrb[99].mxu0 }
 0x530   : > { %6613 = vst.msk [vmem:[%s10432_s14 + $0x8] sm:$0xff] %vm6611_vm0, %v6487_v1 }
 0x534   : > { %v7841_v40 = vpop.f32.mrb[100].mxu0 }
 0x535   : > { %6618 = vst.msk [vmem:[%s10432_s14 + $0x30] sm:$0xff] %vm6611_vm0, %v7841_v40  ;;  %v6500_v27 = vpop.f32.mrb[101].mxu0 }
 0x536   : > { %6616 = vst.msk [vmem:[%s10432_s14 + $0x20] sm:$0xff] %vm6611_vm0, %v6500_v27  ;;  %v7842_v11 = vpop.f32.mrb[102].mxu0 }
 0x537   : > { %6619 = vst.msk [vmem:[%s10432_s14 + $0x38] sm:$0xff] %vm6611_vm0, %v7842_v11  ;;  %v6503_v9 = vpop.f32.mrb[103].mxu0 }
 0x538   : > { %6617 = vst.msk [vmem:[%s10432_s14 + $0x28] sm:$0xff] %vm6611_vm0, %v6503_v9 }
 0x53c   : > { %v7845_v15 = vpop.f32.mrb[104].mxu0 }
 0x53d   : > { %6622 = vst.msk [vmem:[%s10432_s14 + $0x50] sm:$0xff] %vm6611_vm0, %v7845_v15  ;;  %v6516_v21 = vpop.f32.mrb[105].mxu0 }
 0x53e   : > { %6620 = vst.msk [vmem:[%s10432_s14 + $0x40] sm:$0xff] %vm6611_vm0, %v6516_v21  ;;  %v7846_v37 = vpop.f32.mrb[106].mxu0 }
 0x53f   : > { %6623 = vst.msk [vmem:[%s10432_s14 + $0x58] sm:$0xff] %vm6611_vm0, %v7846_v37  ;;  %v6519_v42 = vpop.f32.mrb[107].mxu0 }
 0x540   : > { %6621 = vst.msk [vmem:[%s10432_s14 + $0x48] sm:$0xff] %vm6611_vm0, %v6519_v42 }
 0x544   : > { %v7849_v59 = vpop.f32.mrb[108].mxu0 }
 0x545   : > { %6626 = vst.msk [vmem:[%s10432_s14 + $0x70] sm:$0xff] %vm6611_vm0, %v7849_v59  ;;  %v6532_v31 = vpop.f32.mrb[109].mxu0 }
 0x546   : > { %6624 = vst.msk [vmem:[%s10432_s14 + $0x60] sm:$0xff] %vm6611_vm0, %v6532_v31  ;;  %v7850_v2 = vpop.f32.mrb[110].mxu0 }
 0x547   : > { %6627 = vst.msk [vmem:[%s10432_s14 + $0x78] sm:$0xff] %vm6611_vm0, %v7850_v2  ;;  %v6535_v62 = vpop.f32.mrb[111].mxu0 }
 0x548   : > { %6625 = vst.msk [vmem:[%s10432_s14 + $0x68] sm:$0xff] %vm6611_vm0, %v6535_v62 }
 0x54c   : > { %v7853_v16 = vpop.f32.mrb[112].mxu0 }
 0x54d   : > { %6630 = vst.msk [vmem:[%s10432_s14 + $0x90] sm:$0xff] %vm6611_vm0, %v7853_v16  ;;  %v6548_v34 = vpop.f32.mrb[113].mxu0 }
 0x54e   : > { %6628 = vst.msk [vmem:[%s10432_s14 + $0x80] sm:$0xff] %vm6611_vm0, %v6548_v34  ;;  %v7854_v6 = vpop.f32.mrb[114].mxu0 }
 0x54f   : > { %6631 = vst.msk [vmem:[%s10432_s14 + $0x98] sm:$0xff] %vm6611_vm0, %v7854_v6  ;;  %v6551_v51 = vpop.f32.mrb[115].mxu0 }
 0x550   : > { %6629 = vst.msk [vmem:[%s10432_s14 + $0x88] sm:$0xff] %vm6611_vm0, %v6551_v51 }
 0x554   : > { %v7857_v14 = vpop.f32.mrb[116].mxu0 }
 0x555   : > { %6634 = vst.msk [vmem:[%s10432_s14 + $0xb0] sm:$0xff] %vm6611_vm0, %v7857_v14  ;;  %v6564_v46 = vpop.f32.mrb[117].mxu0 }
 0x556   : > { %6632 = vst.msk [vmem:[%s10432_s14 + $0xa0] sm:$0xff] %vm6611_vm0, %v6564_v46  ;;  %v7858_v8 = vpop.f32.mrb[118].mxu0 }
 0x557   : > { %6635 = vst.msk [vmem:[%s10432_s14 + $0xb8] sm:$0xff] %vm6611_vm0, %v7858_v8  ;;  %v6567_v23 = vpop.f32.mrb[119].mxu0 }
 0x558   : > { %6633 = vst.msk [vmem:[%s10432_s14 + $0xa8] sm:$0xff] %vm6611_vm0, %v6567_v23 }
 0x55c   : > { %v7861_v63 = vpop.f32.mrb[120].mxu0 }
 0x55d   : > { %6638 = vst.msk [vmem:[%s10432_s14 + $0xd0] sm:$0xff] %vm6611_vm0, %v7861_v63  ;;  %v6580_v57 = vpop.f32.mrb[121].mxu0 }
 0x55e   : > { %6636 = vst.msk [vmem:[%s10432_s14 + $0xc0] sm:$0xff] %vm6611_vm0, %v6580_v57  ;;  %v7862_v35 = vpop.f32.mrb[122].mxu0 }
 0x55f   : > { %6639 = vst.msk [vmem:[%s10432_s14 + $0xd8] sm:$0xff] %vm6611_vm0, %v7862_v35  ;;  %v6583_v50 = vpop.f32.mrb[123].mxu0 }
 0x560   : > { %6637 = vst.msk [vmem:[%s10432_s14 + $0xc8] sm:$0xff] %vm6611_vm0, %v6583_v50 }
 0x564   : > { %v7865_v43 = vpop.f32.mrb[124].mxu0 }
 0x565   : > { %6642 = vst.msk [vmem:[%s10432_s14 + $0xf0] sm:$0xff] %vm6611_vm0, %v7865_v43  ;;  %v6596_v33 = vpop.f32.mrb[125].mxu0 }
 0x566   : > { %6640 = vst.msk [vmem:[%s10432_s14 + $0xe0] sm:$0xff] %vm6611_vm0, %v6596_v33  ;;  %v7866_v0 = vpop.f32.mrb[126].mxu0 }
 0x567   : > { %6643 = vst.msk [vmem:[%s10432_s14 + $0xf8] sm:$0xff] %vm6611_vm0, %v7866_v0  ;;  %v6599_v39 = vpop.f32.mrb[127].mxu0 }
 0x568   : > { %6641 = vst.msk [vmem:[%s10432_s14 + $0xe8] sm:$0xff] %vm6611_vm0, %v6599_v39 }
 0x569 PF: > { %p8139_p5 = scmp.ge.s32.totalorder %s8371_s12, 2  ;;  %s6681_s19 = sand.u32 1, %s8359_s30  }
 0x56a   : > { %s6682_s25 = scalar_lea.sflag [#allocation4], %s6681_s19 }
 0x56b   : > { %p8136_p1 = pnand %p8139_p5, %p8469_p6 }
 0x56d   : > { %8354 = dma.done.wait (!%p8136_p1), %s6682_s25, 4096  }
 0x56e   : > { %8356 = vsyncadd (!%p8136_p1), %s6682_s25, 4294963200  ;;  %p20_p2 = scmp.ge.s32.totalorder %s8452_s15, 4   ;;  %s10623_s30 = smov %s8363_s10 }
 0x56f   : > { %s10624_s10 = smov %s8367_s11  ;;  %s10625_s11 = smov %s8463_s18 }
 0x570   : > { %s10626_s12 = smov %s8452_s15  ;;  %22 = sbr.rel (!%p20_p2) target bundleno = 3 (0x3), region = 110 }
 0x577   :  { %6695 = vsyncpa [#allocation4], 1 }
 0x578   :  { %6697 = vsyncpa [#allocation4 + $0x1], 1 }

</bundles_post_ra>
